<compile_context>
chip_gen: v6e
topology: v6e:2x2x1
jax: 0.10.0
libtpu: 0.0.40
codegen_flags: <defaults>
</compile_context>

<pallas_src>
import numpy as np

import jax
import jax.numpy as jnp
from jax import lax
from jax.experimental import pallas as pl
from jax.experimental.pallas import tpu as pltpu

NUM_POINTS = 8           # (x, y) points per predicted path / lane
_SPLIT_MIN_M = 512       # only split M across TensorCores when there is enough work


def _round_up(v, m):
    return ((v + m - 1) // m) * m


def _detect_num_tensorcores():
    """v7x packs 2 TensorCores per chip; v5e/v6e have 1.  A single full-M block
    is also correct (just not 2-core parallel) everywhere, so default to 1."""
    try:
        dev = jax.devices()[0]
        if dev.platform == "tpu" and "v7" in str(getattr(dev, "device_kind", "")).lower():
            return 2
    except Exception:
        pass
    return 1


NUM_TC = _detect_num_tensorcores()


# ----------------------------------------------------------------------------
# Pallas kernel 1: single-pass fused  y = relu(x @ w + b)   (backbone bb0 / bb1)
# ----------------------------------------------------------------------------
def _matmul_bias_relu_kernel(x_ref, w_ref, b_ref, o_ref):
    y = jnp.dot(x_ref[...], w_ref[...], preferred_element_type=jnp.float32)
    o_ref[...] = jnp.maximum(y + b_ref[...], 0.0).astype(o_ref.dtype)


def matmul_bias_relu(x, w, b_row, out_dtype=jnp.bfloat16):
    """relu(x @ w + b).  x: (M, K) bf16, w: (K, N) bf16, b_row: (1, N) f32.
    Full-extent K and N blocks (weights resident); M is the only grid axis."""
    M, K = x.shape
    Kw, N = w.shape
    assert K == Kw and b_row.shape == (1, N)

    if NUM_TC > 1 and M >= _SPLIT_MIN_M:
        tm = _round_up(pl.cdiv(M, NUM_TC), 8)   # one block per TensorCore (v7x)
    else:
        tm = M                                  # single full-extent block (v5e/v6e)
    Mp = _round_up(M, tm)
    xp = jnp.pad(x, ((0, Mp - M), (0, 0))) if Mp != M else x

    out = pl.pallas_call(
        _matmul_bias_relu_kernel,
        out_shape=jax.ShapeDtypeStruct((Mp, N), out_dtype),
        grid_spec=pltpu.PrefetchScalarGridSpec(
            num_scalar_prefetch=0,
            grid=(Mp // tm,),
            in_specs=[
                pl.BlockSpec((tm, K), lambda i: (i, 0)),   # full-K row block
                pl.BlockSpec((K, N), lambda i: (0, 0)),    # whole weight, resident
                pl.BlockSpec((1, N), lambda i: (0, 0)),    # bias, resident
            ],
            out_specs=pl.BlockSpec((tm, N), lambda i: (i, 0)),
        ),
        compiler_params=pltpu.CompilerParams(
            dimension_semantics=("parallel",),
        ),
    )(xp, w, b_row)
    return out[:M] if Mp != M else out


# ----------------------------------------------------------------------------
# Pallas kernel 2: fused tail  (bb2 -> bb3 -> bb4 -> ctx0 -> ctx1 -> GAP ->
#                               head_fc -> [ego|left|right] heads + sigmoid)
# ----------------------------------------------------------------------------
def _tail_kernel(x1_ref,
                 s2_ref, w2_ref, b2_ref,
                 s3_ref, w3_ref, b3_ref,
                 s4_ref, w4_ref, b4_ref,
                 wc0_ref, bc0_ref, wc1_ref, bc1_ref,
                 pool_ref, wfc_ref, bfc_ref, wh_ref, bh_ref,
                 o_ref):
    f32, bf16 = jnp.float32, jnp.bfloat16

    def conv3x3_s2(x, s_ref, w_ref, b_ref):
        # y = relu( sum_t (sel_t @ x) @ w_t + b ); sel_t is a 0/1 gather matrix
        # for tap t (all-zero rows encode the pad=1 border), so this is exactly
        # the stride-2 3x3 conv, expressed purely as MXU matmuls.
        acc = None
        for t in range(9):
            tap = jnp.dot(s_ref[t], x, preferred_element_type=f32).astype(bf16)
            y = jnp.dot(tap, w_ref[t], preferred_element_type=f32)
            acc = y if acc is None else acc + y
        return jnp.maximum(acc + b_ref[...], 0.0).astype(bf16)

    h2 = conv3x3_s2(x1_ref[...], s2_ref, w2_ref, b2_ref)    # (B*8*8 , 24)
    h3 = conv3x3_s2(h2,          s3_ref, w3_ref, b3_ref)    # (B*4*4 , 32)
    h4 = conv3x3_s2(h3,          s4_ref, w4_ref, b4_ref)    # (B*2*2 , 64) deep features

    # PathContext: two 1x1 conv + ReLU (pure matmuls on the flattened pixels).
    c0 = jnp.maximum(jnp.dot(h4, wc0_ref[...], preferred_element_type=f32)
                     + bc0_ref[...], 0.0).astype(bf16)
    c1 = jnp.maximum(jnp.dot(c0, wc1_ref[...], preferred_element_type=f32)
                     + bc1_ref[...], 0.0).astype(bf16)

    # EgoPathHead: global average pool (as a tiny pooling matmul), FC+ReLU,
    # and the three concatenated sigmoid heads.
    pooled = jnp.dot(pool_ref[...], c1, preferred_element_type=f32).astype(bf16)   # (B, 128)
    hfc = jnp.maximum(jnp.dot(pooled, wfc_ref[...], preferred_element_type=f32)
                      + bfc_ref[...], 0.0).astype(bf16)                             # (B, 64)
    logits = jnp.dot(hfc, wh_ref[...], preferred_element_type=f32) + bh_ref[...]    # (B, 48)
    o_ref[...] = jax.nn.sigmoid(logits).astype(o_ref.dtype)


def _zero_map(nd):
    return lambda i: (0,) * nd


def tail_fused(x1, prep):
    operands = [
        x1,
        prep["sel2"], prep["bb2"][0], prep["bb2"][1],
        prep["sel3"], prep["bb3"][0], prep["bb3"][1],
        prep["sel4"], prep["bb4"][0], prep["bb4"][1],
        prep["ctx0"][0], prep["ctx0"][1],
        prep["ctx1"][0], prep["ctx1"][1],
        prep["pool"],
        prep["head_fc"][0], prep["head_fc"][1],
        prep["heads"][0], prep["heads"][1],
    ]
    B = prep["pool"].shape[0]
    Nh = prep["heads"][0].shape[1]
    return pl.pallas_call(
        _tail_kernel,
        out_shape=jax.ShapeDtypeStruct((B, Nh), jnp.float32),
        grid_spec=pltpu.PrefetchScalarGridSpec(
            num_scalar_prefetch=0,
            grid=(1,),
            in_specs=[pl.BlockSpec(a.shape, _zero_map(a.ndim)) for a in operands],
            out_specs=pl.BlockSpec((B, Nh), _zero_map(2)),
        ),
        compiler_params=pltpu.CompilerParams(
            dimension_semantics=("arbitrary",),
        ),
    )(*operands)


# ----------------------------------------------------------------------------
# Wrapper-side glue (thin XLA ops feeding the Pallas kernels)
# ----------------------------------------------------------------------------
def _patches_3x3_s2(x):
    """im2col for a 3x3/stride-2/pad-1 conv.  x: (B,H,W,C) -> (B*(H//2)*(W//2), 9C)
    with (C, kh, kw) feature ordering (matches the weight layout in prepare_params)."""
    B, H, W, C = x.shape
    p = lax.conv_general_dilated_patches(
        lhs=x, filter_shape=(3, 3), window_strides=(2, 2),
        padding=((1, 1), (1, 1)),
        dimension_numbers=("NHWC", "HWIO", "NHWC"))
    return p.reshape(B * (H // 2) * (W // 2), 9 * C)


def _tap_selectors(batch, H, W):
    """0/1 gather matrices for a 3x3/stride-2/pad-1 conv on a (batch,H,W,*) map
    flattened row-major to (batch*H*W, *).  Returns (9, batch*Ho*Wo, batch*H*W)."""
    Ho, Wo = (H - 1) // 2 + 1, (W - 1) // 2 + 1
    sel = np.zeros((9, batch * Ho * Wo, batch * H * W), np.float32)
    for dy in range(3):
        for dx in range(3):
            t = dy * 3 + dx
            for b in range(batch):
                for ho in range(Ho):
                    hi = 2 * ho + dy - 1
                    if not (0 <= hi < H):
                        continue
                    for wo in range(Wo):
                        wi = 2 * wo + dx - 1
                        if 0 <= wi < W:
                            sel[t, (b * Ho + ho) * Wo + wo, (b * H + hi) * W + wi] = 1.0
    return jnp.asarray(sel, jnp.bfloat16)


# ----------------------------------------------------------------------------
# Deterministic parameter construction + one-time preprocessing
# ----------------------------------------------------------------------------
def init_params(key):
    def conv_p(k, kh, kw, cin, cout):
        k1, k2 = jax.random.split(k)
        fan_in = kh * kw * cin
        w = jax.random.normal(k1, (kh, kw, cin, cout), jnp.float32) * (2.0 / fan_in) ** 0.5
        b = jax.random.normal(k2, (cout,), jnp.float32) * 0.01
        return w, b

    def lin_p(k, fin, fout):
        k1, k2 = jax.random.split(k)
        w = jax.random.normal(k1, (fin, fout), jnp.float32) * (2.0 / fin) ** 0.5
        b = jax.random.normal(k2, (fout,), jnp.float32) * 0.01
        return w, b

    keys = jax.random.split(key, 12)
    params = {}
    chans = [3, 8, 16, 24, 32, 64]           # backbone channel progression
    for s in range(5):
        params[f"bb{s}"] = conv_p(keys[s], 3, 3, chans[s], chans[s + 1])
    params["ctx0"] = conv_p(keys[5], 1, 1, 64, 128)
    params["ctx1"] = conv_p(keys[6], 1, 1, 128, 128)
    params["head_fc"] = lin_p(keys[7], 128, 64)
    params["ego"] = lin_p(keys[8], 64, 2 * NUM_POINTS)
    params["left"] = lin_p(keys[9], 64, 2 * NUM_POINTS)
    params["right"] = lin_p(keys[10], 64, 2 * NUM_POINTS)
    return params


def prepare_params(params, batch, in_hw):
    """One-time parameter preprocessing (hoisted out of the per-forward graph):
    bf16 casts, matmul-layout weights, per-tap weight stacks, head concat, and
    the constant tap-selection / pooling matrices for the fused tail kernel."""
    f32, bf16 = jnp.float32, jnp.bfloat16

    def conv_mat(w):   # (3,3,Cin,Cout) -> (9*Cin, Cout) in (C, kh, kw) feature order
        return jnp.transpose(w, (2, 0, 1, 3)).reshape(-1, w.shape[3]).astype(bf16)

    def tap_stack(w):  # (3,3,Cin,Cout) -> (9, Cin, Cout), tap index t = dy*3 + dx
        return w.reshape(9, w.shape[2], w.shape[3]).astype(bf16)

    def bias_row(b):
        return b.reshape(1, -1).astype(f32)

    prep = {}
    for name in ("bb0", "bb1"):
        w, b = params[name]
        prep[name] = (conv_mat(w), bias_row(b))
    for name in ("bb2", "bb3", "bb4"):
        w, b = params[name]
        prep[name] = (tap_stack(w), bias_row(b))
    for name in ("ctx0", "ctx1"):
        w, b = params[name]
        prep[name] = (w.reshape(w.shape[2], w.shape[3]).astype(bf16), bias_row(b))
    w, b = params["head_fc"]
    prep["head_fc"] = (w.astype(bf16), bias_row(b))
    wh = jnp.concatenate([params["ego"][0], params["left"][0], params["right"][0]], axis=1)
    bh = jnp.concatenate([params["ego"][1], params["left"][1], params["right"][1]], axis=0)
    prep["heads"] = (wh.astype(bf16), bias_row(bh))

    # Constant gather / pooling matrices (shapes depend only on batch & input size).
    s2_in = in_hw // 4                       # spatial size of bb2's input (bb1 output)
    prep["sel2"] = _tap_selectors(batch, s2_in, s2_in)
    prep["sel3"] = _tap_selectors(batch, s2_in // 2, s2_in // 2)
    prep["sel4"] = _tap_selectors(batch, s2_in // 4, s2_in // 4)

    s = (in_hw // 32) ** 2                   # deep-feature pixels per image
    pool = np.zeros((batch, batch * s), np.float32)
    for b_i in range(batch):
        pool[b_i, b_i * s:(b_i + 1) * s] = 1.0 / s
    prep["pool"] = jnp.asarray(pool, jnp.bfloat16)
    return prep


# ----------------------------------------------------------------------------
# Forward pass (mirrors EgoPathNetwork.forward)
# ----------------------------------------------------------------------------
def ego_path_network(prep, image_nchw):
    B, _, H, W = image_nchw.shape
    x = jnp.transpose(image_nchw, (0, 2, 3, 1)).astype(jnp.bfloat16)     # NHWC

    # PreTrainedBackbone stages 0-1: im2col + fused Pallas matmul+bias+ReLU.
    w0, b0 = prep["bb0"]
    x = matmul_bias_relu(_patches_3x3_s2(x), w0, b0)                     # (B*H/2*W/2, 8)
    x = x.reshape(B, H // 2, W // 2, w0.shape[1])
    w1, b1 = prep["bb1"]
    x1 = matmul_bias_relu(_patches_3x3_s2(x), w1, b1)                    # (B*H/4*W/4, 16)

    # Backbone stages 2-4 + PathContext + EgoPathHead: one fused Pallas kernel.
    heads = tail_fused(x1, prep)                                          # (B, 48) f32

    n = 2 * NUM_POINTS
    ego_path = heads[:, 0 * n:1 * n]
    left_lane = heads[:, 1 * n:2 * n]
    right_lane = heads[:, 2 * n:3 * n]
    return ego_path, left_lane, right_lane


if __name__ == "__main__":
    key = jax.random.PRNGKey(0)
    k_img, k_par = jax.random.split(key)

    image = jax.random.normal(k_img, (2, 3, 64, 64), jnp.float32)   # NCHW, like PyTorch
    params = init_params(k_par)
    prep = prepare_params(params, batch=image.shape[0], in_hw=image.shape[2])

    fwd = jax.jit(ego_path_network)
    ego_path, left_lane, right_lane = fwd(prep, image)
    jax.block_until_ready((ego_path, left_lane, right_lane))

    assert ego_path.shape == (2, 2 * NUM_POINTS)
    assert left_lane.shape == (2, 2 * NUM_POINTS)
    assert right_lane.shape == (2, 2 * NUM_POINTS)
    for out in (ego_path, left_lane, right_lane):
        assert bool(jnp.all(jnp.isfinite(out)))
        assert bool(jnp.all((out >= 0.0) & (out <= 1.0)))   # sigmoid range sanity
    print("KERNEL_OK")
</pallas_src>

<mosaic_0001>
module attributes {stable_mosaic.version = 11 : i64} {
  func.func @_matmul_bias_relu_kernel(%arg0: i32, %arg1: memref<2048x27xbf16, #tpu.memory_space<vmem>>, %arg2: memref<27x8xbf16, #tpu.memory_space<vmem>>, %arg3: memref<1x8xf32, #tpu.memory_space<vmem>>, %arg4: memref<2048x8xbf16, #tpu.memory_space<vmem>>) attributes {dimension_semantics = [#tpu.dimension_semantics<parallel>], iteration_bounds = array<i64: 1>, scalar_prefetch = 0 : i64, scratch_operands = 0 : i64, tpu.core_type = #tpu.core_type<tc>, window_params = [{transform_indices = @transform_0, window_bounds = array<i64: 2048, 27>}, {pipeline_mode = #tpu.pipeline_mode<synchronous>, transform_indices = @transform_1, window_bounds = array<i64: 27, 8>}, {pipeline_mode = #tpu.pipeline_mode<synchronous>, transform_indices = @transform_2, window_bounds = array<i64: 1, 8>}, {transform_indices = @transform_3, window_bounds = array<i64: 2048, 8>}]} {
    %c0 = arith.constant 0 : index
    %c0_0 = arith.constant 0 : index
    %0 = vector.load %arg1[%c0, %c0_0] : memref<2048x27xbf16, #tpu.memory_space<vmem>>, vector<2048x27xbf16>
    %c0_1 = arith.constant 0 : index
    %c0_2 = arith.constant 0 : index
    %1 = vector.load %arg2[%c0_1, %c0_2] : memref<27x8xbf16, #tpu.memory_space<vmem>>, vector<27x8xbf16>
    %cst = arith.constant dense<0.000000e+00> : vector<2048x8xf32>
    %2 = tpu.matmul %0, %1, %cst {dimension_numbers = #tpu.dot_dimension_numbers<[1], [0], [0], [1], [0, 0, 1, 1], [], []>} : vector<2048x27xbf16>, vector<27x8xbf16>, vector<2048x8xf32> -> vector<2048x8xf32>
    %c0_3 = arith.constant 0 : index
    %c0_4 = arith.constant 0 : index
    %3 = vector.load %arg3[%c0_3, %c0_4] : memref<1x8xf32, #tpu.memory_space<vmem>>, vector<1x8xf32>
    %4 = vector.broadcast %3 : vector<1x8xf32> to vector<2048x8xf32>
    %5 = arith.addf %2, %4 : vector<2048x8xf32>
    %cst_5 = arith.constant 0.000000e+00 : f32
    %6 = vector.broadcast %cst_5 : f32 to vector<2048x8xf32>
    %7 = arith.maximumf %5, %6 : vector<2048x8xf32>
    %8 = arith.truncf %7 : vector<2048x8xf32> to vector<2048x8xbf16>
    %c0_6 = arith.constant 0 : index
    %c0_7 = arith.constant 0 : index
    %9 = vector.load %arg4[%c0_6, %c0_7] : memref<2048x8xbf16, #tpu.memory_space<vmem>>, vector<2048x8xbf16>
    tpu.vector_store %arg4[%c0_6, %c0_7], %8 {strides = array<i32>} : memref<2048x8xbf16, #tpu.memory_space<vmem>>, vector<2048x8xbf16>,
    return
  }
  func.func @transform_0(%arg0: i32) -> (i32, i32) {
    %c0_i32 = arith.constant 0 : i32
    %c0_i32_0 = arith.constant 0 : i32
    return %arg0, %c0_i32 : i32, i32
  }
  func.func @transform_1(%arg0: i32) -> (i32, i32) {
    %c0_i32 = arith.constant 0 : i32
    %c0_i32_0 = arith.constant 0 : i32
    %c0_i32_1 = arith.constant 0 : i32
    return %c0_i32, %c0_i32_0 : i32, i32
  }
  func.func @transform_2(%arg0: i32) -> (i32, i32) {
    %c0_i32 = arith.constant 0 : i32
    %c0_i32_0 = arith.constant 0 : i32
    %c0_i32_1 = arith.constant 0 : i32
    return %c0_i32, %c0_i32_0 : i32, i32
  }
  func.func @transform_3(%arg0: i32) -> (i32, i32) {
    %c0_i32 = arith.constant 0 : i32
    %c0_i32_0 = arith.constant 0 : i32
    return %arg0, %c0_i32 : i32, i32
  }
}

module attributes {stable_mosaic.version = 11 : i64} {
  func.func @_matmul_bias_relu_kernel(%arg0: i32, %arg1: memref<512x72xbf16, #tpu.memory_space<vmem>>, %arg2: memref<72x16xbf16, #tpu.memory_space<vmem>>, %arg3: memref<1x16xf32, #tpu.memory_space<vmem>>, %arg4: memref<512x16xbf16, #tpu.memory_space<vmem>>) attributes {dimension_semantics = [#tpu.dimension_semantics<parallel>], iteration_bounds = array<i64: 1>, scalar_prefetch = 0 : i64, scratch_operands = 0 : i64, tpu.core_type = #tpu.core_type<tc>, window_params = [{transform_indices = @transform_0, window_bounds = array<i64: 512, 72>}, {pipeline_mode = #tpu.pipeline_mode<synchronous>, transform_indices = @transform_1, window_bounds = array<i64: 72, 16>}, {pipeline_mode = #tpu.pipeline_mode<synchronous>, transform_indices = @transform_2, window_bounds = array<i64: 1, 16>}, {transform_indices = @transform_3, window_bounds = array<i64: 512, 16>}]} {
    %c0 = arith.constant 0 : index
    %c0_0 = arith.constant 0 : index
    %0 = vector.load %arg1[%c0, %c0_0] : memref<512x72xbf16, #tpu.memory_space<vmem>>, vector<512x72xbf16>
    %c0_1 = arith.constant 0 : index
    %c0_2 = arith.constant 0 : index
    %1 = vector.load %arg2[%c0_1, %c0_2] : memref<72x16xbf16, #tpu.memory_space<vmem>>, vector<72x16xbf16>
    %cst = arith.constant dense<0.000000e+00> : vector<512x16xf32>
    %2 = tpu.matmul %0, %1, %cst {dimension_numbers = #tpu.dot_dimension_numbers<[1], [0], [0], [1], [0, 0, 1, 1], [], []>} : vector<512x72xbf16>, vector<72x16xbf16>, vector<512x16xf32> -> vector<512x16xf32>
    %c0_3 = arith.constant 0 : index
    %c0_4 = arith.constant 0 : index
    %3 = vector.load %arg3[%c0_3, %c0_4] : memref<1x16xf32, #tpu.memory_space<vmem>>, vector<1x16xf32>
    %4 = vector.broadcast %3 : vector<1x16xf32> to vector<512x16xf32>
    %5 = arith.addf %2, %4 : vector<512x16xf32>
    %cst_5 = arith.constant 0.000000e+00 : f32
    %6 = vector.broadcast %cst_5 : f32 to vector<512x16xf32>
    %7 = arith.maximumf %5, %6 : vector<512x16xf32>
    %8 = arith.truncf %7 : vector<512x16xf32> to vector<512x16xbf16>
    %c0_6 = arith.constant 0 : index
    %c0_7 = arith.constant 0 : index
    %9 = vector.load %arg4[%c0_6, %c0_7] : memref<512x16xbf16, #tpu.memory_space<vmem>>, vector<512x16xbf16>
    tpu.vector_store %arg4[%c0_6, %c0_7], %8 {strides = array<i32>} : memref<512x16xbf16, #tpu.memory_space<vmem>>, vector<512x16xbf16>,
    return
  }
  func.func @transform_0(%arg0: i32) -> (i32, i32) {
    %c0_i32 = arith.constant 0 : i32
    %c0_i32_0 = arith.constant 0 : i32
    return %arg0, %c0_i32 : i32, i32
  }
  func.func @transform_1(%arg0: i32) -> (i32, i32) {
    %c0_i32 = arith.constant 0 : i32
    %c0_i32_0 = arith.constant 0 : i32
    %c0_i32_1 = arith.constant 0 : i32
    return %c0_i32, %c0_i32_0 : i32, i32
  }
  func.func @transform_2(%arg0: i32) -> (i32, i32) {
    %c0_i32 = arith.constant 0 : i32
    %c0_i32_0 = arith.constant 0 : i32
    %c0_i32_1 = arith.constant 0 : i32
    return %c0_i32, %c0_i32_0 : i32, i32
  }
  func.func @transform_3(%arg0: i32) -> (i32, i32) {
    %c0_i32 = arith.constant 0 : i32
    %c0_i32_0 = arith.constant 0 : i32
    return %arg0, %c0_i32 : i32, i32
  }
}

module attributes {stable_mosaic.version = 11 : i64} {
  func.func @_tail_kernel(%arg0: i32, %arg1: memref<512x16xbf16, #tpu.memory_space<vmem>>, %arg2: memref<9x128x512xbf16, #tpu.memory_space<vmem>>, %arg3: memref<9x16x24xbf16, #tpu.memory_space<vmem>>, %arg4: memref<1x24xf32, #tpu.memory_space<vmem>>, %arg5: memref<9x32x128xbf16, #tpu.memory_space<vmem>>, %arg6: memref<9x24x32xbf16, #tpu.memory_space<vmem>>, %arg7: memref<1x32xf32, #tpu.memory_space<vmem>>, %arg8: memref<9x8x32xbf16, #tpu.memory_space<vmem>>, %arg9: memref<9x32x64xbf16, #tpu.memory_space<vmem>>, %arg10: memref<1x64xf32, #tpu.memory_space<vmem>>, %arg11: memref<64x128xbf16, #tpu.memory_space<vmem>>, %arg12: memref<1x128xf32, #tpu.memory_space<vmem>>, %arg13: memref<128x128xbf16, #tpu.memory_space<vmem>>, %arg14: memref<1x128xf32, #tpu.memory_space<vmem>>, %arg15: memref<2x8xbf16, #tpu.memory_space<vmem>>, %arg16: memref<128x64xbf16, #tpu.memory_space<vmem>>, %arg17: memref<1x64xf32, #tpu.memory_space<vmem>>, %arg18: memref<64x48xbf16, #tpu.memory_space<vmem>>, %arg19: memref<1x48xf32, #tpu.memory_space<vmem>>, %arg20: memref<2x48xf32, #tpu.memory_space<vmem>>) attributes {dimension_semantics = [#tpu.dimension_semantics<arbitrary>], iteration_bounds = array<i64: 1>, scalar_prefetch = 0 : i64, scratch_operands = 0 : i64, tpu.core_type = #tpu.core_type<tc>, window_params = [{pipeline_mode = #tpu.pipeline_mode<synchronous>, transform_indices = @transform_0, window_bounds = array<i64: 512, 16>}, {pipeline_mode = #tpu.pipeline_mode<synchronous>, transform_indices = @transform_1, window_bounds = array<i64: 9, 128, 512>}, {pipeline_mode = #tpu.pipeline_mode<synchronous>, transform_indices = @transform_2, window_bounds = array<i64: 9, 16, 24>}, {pipeline_mode = #tpu.pipeline_mode<synchronous>, transform_indices = @transform_3, window_bounds = array<i64: 1, 24>}, {pipeline_mode = #tpu.pipeline_mode<synchronous>, transform_indices = @transform_4, window_bounds = array<i64: 9, 32, 128>}, {pipeline_mode = #tpu.pipeline_mode<synchronous>, transform_indices = @transform_5, window_bounds = array<i64: 9, 24, 32>}, {pipeline_mode = #tpu.pipeline_mode<synchronous>, transform_indices = @transform_6, window_bounds = array<i64: 1, 32>}, {pipeline_mode = #tpu.pipeline_mode<synchronous>, transform_indices = @transform_7, window_bounds = array<i64: 9, 8, 32>}, {pipeline_mode = #tpu.pipeline_mode<synchronous>, transform_indices = @transform_8, window_bounds = array<i64: 9, 32, 64>}, {pipeline_mode = #tpu.pipeline_mode<synchronous>, transform_indices = @transform_9, window_bounds = array<i64: 1, 64>}, {pipeline_mode = #tpu.pipeline_mode<synchronous>, transform_indices = @transform_10, window_bounds = array<i64: 64, 128>}, {pipeline_mode = #tpu.pipeline_mode<synchronous>, transform_indices = @transform_11, window_bounds = array<i64: 1, 128>}, {pipeline_mode = #tpu.pipeline_mode<synchronous>, transform_indices = @transform_12, window_bounds = array<i64: 128, 128>}, {pipeline_mode = #tpu.pipeline_mode<synchronous>, transform_indices = @transform_13, window_bounds = array<i64: 1, 128>}, {pipeline_mode = #tpu.pipeline_mode<synchronous>, transform_indices = @transform_14, window_bounds = array<i64: 2, 8>}, {pipeline_mode = #tpu.pipeline_mode<synchronous>, transform_indices = @transform_15, window_bounds = array<i64: 128, 64>}, {pipeline_mode = #tpu.pipeline_mode<synchronous>, transform_indices = @transform_16, window_bounds = array<i64: 1, 64>}, {pipeline_mode = #tpu.pipeline_mode<synchronous>, transform_indices = @transform_17, window_bounds = array<i64: 64, 48>}, {pipeline_mode = #tpu.pipeline_mode<synchronous>, transform_indices = @transform_18, window_bounds = array<i64: 1, 48>}, {pipeline_mode = #tpu.pipeline_mode<synchronous>, transform_indices = @transform_19, window_bounds = array<i64: 2, 48>}]} {
    %c0 = arith.constant 0 : index
    %c0_0 = arith.constant 0 : index
    %0 = vector.load %arg1[%c0, %c0_0] : memref<512x16xbf16, #tpu.memory_space<vmem>>, vector<512x16xbf16>
    %c0_1 = arith.constant 0 : index
    %c0_2 = arith.constant 0 : index
    %c0_3 = arith.constant 0 : index
    %1 = vector.load %arg2[%c0_1, %c0_2, %c0_3] : memref<9x128x512xbf16, #tpu.memory_space<vmem>>, vector<1x128x512xbf16>
    %2 = vector.shape_cast %1 : vector<1x128x512xbf16> to vector<128x512xbf16>
    %cst = arith.constant dense<0.000000e+00> : vector<128x16xf32>
    %3 = tpu.matmul %2, %0, %cst {dimension_numbers = #tpu.dot_dimension_numbers<[1], [0], [0], [1], [0, 0, 1, 1], [], []>} : vector<128x512xbf16>, vector<512x16xbf16>, vector<128x16xf32> -> vector<128x16xf32>
    %4 = arith.truncf %3 : vector<128x16xf32> to vector<128x16xbf16>
    %c0_4 = arith.constant 0 : index
    %c0_5 = arith.constant 0 : index
    %c0_6 = arith.constant 0 : index
    %5 = vector.load %arg3[%c0_4, %c0_5, %c0_6] : memref<9x16x24xbf16, #tpu.memory_space<vmem>>, vector<1x16x24xbf16>
    %6 = vector.shape_cast %5 : vector<1x16x24xbf16> to vector<16x24xbf16>
    %cst_7 = arith.constant dense<0.000000e+00> : vector<128x24xf32>
    %7 = tpu.matmul %4, %6, %cst_7 {dimension_numbers = #tpu.dot_dimension_numbers<[1], [0], [0], [1], [0, 0, 1, 1], [], []>} : vector<128x16xbf16>, vector<16x24xbf16>, vector<128x24xf32> -> vector<128x24xf32>
    %c1 = arith.constant 1 : index
    %c0_8 = arith.constant 0 : index
    %c0_9 = arith.constant 0 : index
    %8 = vector.load %arg2[%c1, %c0_8, %c0_9] : memref<9x128x512xbf16, #tpu.memory_space<vmem>>, vector<1x128x512xbf16>
    %9 = vector.shape_cast %8 : vector<1x128x512xbf16> to vector<128x512xbf16>
    %cst_10 = arith.constant dense<0.000000e+00> : vector<128x16xf32>
    %10 = tpu.matmul %9, %0, %cst_10 {dimension_numbers = #tpu.dot_dimension_numbers<[1], [0], [0], [1], [0, 0, 1, 1], [], []>} : vector<128x512xbf16>, vector<512x16xbf16>, vector<128x16xf32> -> vector<128x16xf32>
    %11 = arith.truncf %10 : vector<128x16xf32> to vector<128x16xbf16>
    %c1_11 = arith.constant 1 : index
    %c0_12 = arith.constant 0 : index
    %c0_13 = arith.constant 0 : index
    %12 = vector.load %arg3[%c1_11, %c0_12, %c0_13] : memref<9x16x24xbf16, #tpu.memory_space<vmem>>, vector<1x16x24xbf16>
    %13 = vector.shape_cast %12 : vector<1x16x24xbf16> to vector<16x24xbf16>
    %cst_14 = arith.constant dense<0.000000e+00> : vector<128x24xf32>
    %14 = tpu.matmul %11, %13, %cst_14 {dimension_numbers = #tpu.dot_dimension_numbers<[1], [0], [0], [1], [0, 0, 1, 1], [], []>} : vector<128x16xbf16>, vector<16x24xbf16>, vector<128x24xf32> -> vector<128x24xf32>
    %15 = arith.addf %7, %14 : vector<128x24xf32>
    %c2 = arith.constant 2 : index
    %c0_15 = arith.constant 0 : index
    %c0_16 = arith.constant 0 : index
    %16 = vector.load %arg2[%c2, %c0_15, %c0_16] : memref<9x128x512xbf16, #tpu.memory_space<vmem>>, vector<1x128x512xbf16>
    %17 = vector.shape_cast %16 : vector<1x128x512xbf16> to vector<128x512xbf16>
    %cst_17 = arith.constant dense<0.000000e+00> : vector<128x16xf32>
    %18 = tpu.matmul %17, %0, %cst_17 {dimension_numbers = #tpu.dot_dimension_numbers<[1], [0], [0], [1], [0, 0, 1, 1], [], []>} : vector<128x512xbf16>, vector<512x16xbf16>, vector<128x16xf32> -> vector<128x16xf32>
    %19 = arith.truncf %18 : vector<128x16xf32> to vector<128x16xbf16>
    %c2_18 = arith.constant 2 : index
    %c0_19 = arith.constant 0 : index
    %c0_20 = arith.constant 0 : index
    %20 = vector.load %arg3[%c2_18, %c0_19, %c0_20] : memref<9x16x24xbf16, #tpu.memory_space<vmem>>, vector<1x16x24xbf16>
    %21 = vector.shape_cast %20 : vector<1x16x24xbf16> to vector<16x24xbf16>
    %cst_21 = arith.constant dense<0.000000e+00> : vector<128x24xf32>
    %22 = tpu.matmul %19, %21, %cst_21 {dimension_numbers = #tpu.dot_dimension_numbers<[1], [0], [0], [1], [0, 0, 1, 1], [], []>} : vector<128x16xbf16>, vector<16x24xbf16>, vector<128x24xf32> -> vector<128x24xf32>
    %23 = arith.addf %15, %22 : vector<128x24xf32>
    %c3 = arith.constant 3 : index
    %c0_22 = arith.constant 0 : index
    %c0_23 = arith.constant 0 : index
    %24 = vector.load %arg2[%c3, %c0_22, %c0_23] : memref<9x128x512xbf16, #tpu.memory_space<vmem>>, vector<1x128x512xbf16>
    %25 = vector.shape_cast %24 : vector<1x128x512xbf16> to vector<128x512xbf16>
    %cst_24 = arith.constant dense<0.000000e+00> : vector<128x16xf32>
    %26 = tpu.matmul %25, %0, %cst_24 {dimension_numbers = #tpu.dot_dimension_numbers<[1], [0], [0], [1], [0, 0, 1, 1], [], []>} : vector<128x512xbf16>, vector<512x16xbf16>, vector<128x16xf32> -> vector<128x16xf32>
    %27 = arith.truncf %26 : vector<128x16xf32> to vector<128x16xbf16>
    %c3_25 = arith.constant 3 : index
    %c0_26 = arith.constant 0 : index
    %c0_27 = arith.constant 0 : index
    %28 = vector.load %arg3[%c3_25, %c0_26, %c0_27] : memref<9x16x24xbf16, #tpu.memory_space<vmem>>, vector<1x16x24xbf16>
    %29 = vector.shape_cast %28 : vector<1x16x24xbf16> to vector<16x24xbf16>
    %cst_28 = arith.constant dense<0.000000e+00> : vector<128x24xf32>
    %30 = tpu.matmul %27, %29, %cst_28 {dimension_numbers = #tpu.dot_dimension_numbers<[1], [0], [0], [1], [0, 0, 1, 1], [], []>} : vector<128x16xbf16>, vector<16x24xbf16>, vector<128x24xf32> -> vector<128x24xf32>
    %31 = arith.addf %23, %30 : vector<128x24xf32>
    %c4 = arith.constant 4 : index
    %c0_29 = arith.constant 0 : index
    %c0_30 = arith.constant 0 : index
    %32 = vector.load %arg2[%c4, %c0_29, %c0_30] : memref<9x128x512xbf16, #tpu.memory_space<vmem>>, vector<1x128x512xbf16>
    %33 = vector.shape_cast %32 : vector<1x128x512xbf16> to vector<128x512xbf16>
    %cst_31 = arith.constant dense<0.000000e+00> : vector<128x16xf32>
    %34 = tpu.matmul %33, %0, %cst_31 {dimension_numbers = #tpu.dot_dimension_numbers<[1], [0], [0], [1], [0, 0, 1, 1], [], []>} : vector<128x512xbf16>, vector<512x16xbf16>, vector<128x16xf32> -> vector<128x16xf32>
    %35 = arith.truncf %34 : vector<128x16xf32> to vector<128x16xbf16>
    %c4_32 = arith.constant 4 : index
    %c0_33 = arith.constant 0 : index
    %c0_34 = arith.constant 0 : index
    %36 = vector.load %arg3[%c4_32, %c0_33, %c0_34] : memref<9x16x24xbf16, #tpu.memory_space<vmem>>, vector<1x16x24xbf16>
    %37 = vector.shape_cast %36 : vector<1x16x24xbf16> to vector<16x24xbf16>
    %cst_35 = arith.constant dense<0.000000e+00> : vector<128x24xf32>
    %38 = tpu.matmul %35, %37, %cst_35 {dimension_numbers = #tpu.dot_dimension_numbers<[1], [0], [0], [1], [0, 0, 1, 1], [], []>} : vector<128x16xbf16>, vector<16x24xbf16>, vector<128x24xf32> -> vector<128x24xf32>
    %39 = arith.addf %31, %38 : vector<128x24xf32>
    %c5 = arith.constant 5 : index
    %c0_36 = arith.constant 0 : index
    %c0_37 = arith.constant 0 : index
    %40 = vector.load %arg2[%c5, %c0_36, %c0_37] : memref<9x128x512xbf16, #tpu.memory_space<vmem>>, vector<1x128x512xbf16>
    %41 = vector.shape_cast %40 : vector<1x128x512xbf16> to vector<128x512xbf16>
    %cst_38 = arith.constant dense<0.000000e+00> : vector<128x16xf32>
    %42 = tpu.matmul %41, %0, %cst_38 {dimension_numbers = #tpu.dot_dimension_numbers<[1], [0], [0], [1], [0, 0, 1, 1], [], []>} : vector<128x512xbf16>, vector<512x16xbf16>, vector<128x16xf32> -> vector<128x16xf32>
    %43 = arith.truncf %42 : vector<128x16xf32> to vector<128x16xbf16>
    %c5_39 = arith.constant 5 : index
    %c0_40 = arith.constant 0 : index
    %c0_41 = arith.constant 0 : index
    %44 = vector.load %arg3[%c5_39, %c0_40, %c0_41] : memref<9x16x24xbf16, #tpu.memory_space<vmem>>, vector<1x16x24xbf16>
    %45 = vector.shape_cast %44 : vector<1x16x24xbf16> to vector<16x24xbf16>
    %cst_42 = arith.constant dense<0.000000e+00> : vector<128x24xf32>
    %46 = tpu.matmul %43, %45, %cst_42 {dimension_numbers = #tpu.dot_dimension_numbers<[1], [0], [0], [1], [0, 0, 1, 1], [], []>} : vector<128x16xbf16>, vector<16x24xbf16>, vector<128x24xf32> -> vector<128x24xf32>
    %47 = arith.addf %39, %46 : vector<128x24xf32>
    %c6 = arith.constant 6 : index
    %c0_43 = arith.constant 0 : index
    %c0_44 = arith.constant 0 : index
    %48 = vector.load %arg2[%c6, %c0_43, %c0_44] : memref<9x128x512xbf16, #tpu.memory_space<vmem>>, vector<1x128x512xbf16>
    %49 = vector.shape_cast %48 : vector<1x128x512xbf16> to vector<128x512xbf16>
    %cst_45 = arith.constant dense<0.000000e+00> : vector<128x16xf32>
    %50 = tpu.matmul %49, %0, %cst_45 {dimension_numbers = #tpu.dot_dimension_numbers<[1], [0], [0], [1], [0, 0, 1, 1], [], []>} : vector<128x512xbf16>, vector<512x16xbf16>, vector<128x16xf32> -> vector<128x16xf32>
    %51 = arith.truncf %50 : vector<128x16xf32> to vector<128x16xbf16>
    %c6_46 = arith.constant 6 : index
    %c0_47 = arith.constant 0 : index
    %c0_48 = arith.constant 0 : index
    %52 = vector.load %arg3[%c6_46, %c0_47, %c0_48] : memref<9x16x24xbf16, #tpu.memory_space<vmem>>, vector<1x16x24xbf16>
    %53 = vector.shape_cast %52 : vector<1x16x24xbf16> to vector<16x24xbf16>
    %cst_49 = arith.constant dense<0.000000e+00> : vector<128x24xf32>
    %54 = tpu.matmul %51, %53, %cst_49 {dimension_numbers = #tpu.dot_dimension_numbers<[1], [0], [0], [1], [0, 0, 1, 1], [], []>} : vector<128x16xbf16>, vector<16x24xbf16>, vector<128x24xf32> -> vector<128x24xf32>
    %55 = arith.addf %47, %54 : vector<128x24xf32>
    %c7 = arith.constant 7 : index
    %c0_50 = arith.constant 0 : index
    %c0_51 = arith.constant 0 : index
    %56 = vector.load %arg2[%c7, %c0_50, %c0_51] : memref<9x128x512xbf16, #tpu.memory_space<vmem>>, vector<1x128x512xbf16>
    %57 = vector.shape_cast %56 : vector<1x128x512xbf16> to vector<128x512xbf16>
    %cst_52 = arith.constant dense<0.000000e+00> : vector<128x16xf32>
    %58 = tpu.matmul %57, %0, %cst_52 {dimension_numbers = #tpu.dot_dimension_numbers<[1], [0], [0], [1], [0, 0, 1, 1], [], []>} : vector<128x512xbf16>, vector<512x16xbf16>, vector<128x16xf32> -> vector<128x16xf32>
    %59 = arith.truncf %58 : vector<128x16xf32> to vector<128x16xbf16>
    %c7_53 = arith.constant 7 : index
    %c0_54 = arith.constant 0 : index
    %c0_55 = arith.constant 0 : index
    %60 = vector.load %arg3[%c7_53, %c0_54, %c0_55] : memref<9x16x24xbf16, #tpu.memory_space<vmem>>, vector<1x16x24xbf16>
    %61 = vector.shape_cast %60 : vector<1x16x24xbf16> to vector<16x24xbf16>
    %cst_56 = arith.constant dense<0.000000e+00> : vector<128x24xf32>
    %62 = tpu.matmul %59, %61, %cst_56 {dimension_numbers = #tpu.dot_dimension_numbers<[1], [0], [0], [1], [0, 0, 1, 1], [], []>} : vector<128x16xbf16>, vector<16x24xbf16>, vector<128x24xf32> -> vector<128x24xf32>
    %63 = arith.addf %55, %62 : vector<128x24xf32>
    %c8 = arith.constant 8 : index
    %c0_57 = arith.constant 0 : index
    %c0_58 = arith.constant 0 : index
    %64 = vector.load %arg2[%c8, %c0_57, %c0_58] : memref<9x128x512xbf16, #tpu.memory_space<vmem>>, vector<1x128x512xbf16>
    %65 = vector.shape_cast %64 : vector<1x128x512xbf16> to vector<128x512xbf16>
    %cst_59 = arith.constant dense<0.000000e+00> : vector<128x16xf32>
    %66 = tpu.matmul %65, %0, %cst_59 {dimension_numbers = #tpu.dot_dimension_numbers<[1], [0], [0], [1], [0, 0, 1, 1], [], []>} : vector<128x512xbf16>, vector<512x16xbf16>, vector<128x16xf32> -> vector<128x16xf32>
    %67 = arith.truncf %66 : vector<128x16xf32> to vector<128x16xbf16>
    %c8_60 = arith.constant 8 : index
    %c0_61 = arith.constant 0 : index
    %c0_62 = arith.constant 0 : index
    %68 = vector.load %arg3[%c8_60, %c0_61, %c0_62] : memref<9x16x24xbf16, #tpu.memory_space<vmem>>, vector<1x16x24xbf16>
    %69 = vector.shape_cast %68 : vector<1x16x24xbf16> to vector<16x24xbf16>
    %cst_63 = arith.constant dense<0.000000e+00> : vector<128x24xf32>
    %70 = tpu.matmul %67, %69, %cst_63 {dimension_numbers = #tpu.dot_dimension_numbers<[1], [0], [0], [1], [0, 0, 1, 1], [], []>} : vector<128x16xbf16>, vector<16x24xbf16>, vector<128x24xf32> -> vector<128x24xf32>
    %71 = arith.addf %63, %70 : vector<128x24xf32>
    %c0_64 = arith.constant 0 : index
    %c0_65 = arith.constant 0 : index
    %72 = vector.load %arg4[%c0_64, %c0_65] : memref<1x24xf32, #tpu.memory_space<vmem>>, vector<1x24xf32>
    %73 = vector.broadcast %72 : vector<1x24xf32> to vector<128x24xf32>
    %74 = arith.addf %71, %73 : vector<128x24xf32>
    %cst_66 = arith.constant 0.000000e+00 : f32
    %75 = vector.broadcast %cst_66 : f32 to vector<128x24xf32>
    %76 = arith.maximumf %74, %75 : vector<128x24xf32>
    %77 = arith.truncf %76 : vector<128x24xf32> to vector<128x24xbf16>
    %c0_67 = arith.constant 0 : index
    %c0_68 = arith.constant 0 : index
    %c0_69 = arith.constant 0 : index
    %78 = vector.load %arg5[%c0_67, %c0_68, %c0_69] : memref<9x32x128xbf16, #tpu.memory_space<vmem>>, vector<1x32x128xbf16>
    %79 = vector.shape_cast %78 : vector<1x32x128xbf16> to vector<32x128xbf16>
    %cst_70 = arith.constant dense<0.000000e+00> : vector<32x24xf32>
    %80 = tpu.matmul %79, %77, %cst_70 {dimension_numbers = #tpu.dot_dimension_numbers<[1], [0], [0], [1], [0, 0, 1, 1], [], []>} : vector<32x128xbf16>, vector<128x24xbf16>, vector<32x24xf32> -> vector<32x24xf32>
    %81 = arith.truncf %80 : vector<32x24xf32> to vector<32x24xbf16>
    %c0_71 = arith.constant 0 : index
    %c0_72 = arith.constant 0 : index
    %c0_73 = arith.constant 0 : index
    %82 = vector.load %arg6[%c0_71, %c0_72, %c0_73] : memref<9x24x32xbf16, #tpu.memory_space<vmem>>, vector<1x24x32xbf16>
    %83 = vector.shape_cast %82 : vector<1x24x32xbf16> to vector<24x32xbf16>
    %cst_74 = arith.constant dense<0.000000e+00> : vector<32x32xf32>
    %84 = tpu.matmul %81, %83, %cst_74 {dimension_numbers = #tpu.dot_dimension_numbers<[1], [0], [0], [1], [0, 0, 1, 1], [], []>} : vector<32x24xbf16>, vector<24x32xbf16>, vector<32x32xf32> -> vector<32x32xf32>
    %c1_75 = arith.constant 1 : index
    %c0_76 = arith.constant 0 : index
    %c0_77 = arith.constant 0 : index
    %85 = vector.load %arg5[%c1_75, %c0_76, %c0_77] : memref<9x32x128xbf16, #tpu.memory_space<vmem>>, vector<1x32x128xbf16>
    %86 = vector.shape_cast %85 : vector<1x32x128xbf16> to vector<32x128xbf16>
    %cst_78 = arith.constant dense<0.000000e+00> : vector<32x24xf32>
    %87 = tpu.matmul %86, %77, %cst_78 {dimension_numbers = #tpu.dot_dimension_numbers<[1], [0], [0], [1], [0, 0, 1, 1], [], []>} : vector<32x128xbf16>, vector<128x24xbf16>, vector<32x24xf32> -> vector<32x24xf32>
    %88 = arith.truncf %87 : vector<32x24xf32> to vector<32x24xbf16>
    %c1_79 = arith.constant 1 : index
    %c0_80 = arith.constant 0 : index
    %c0_81 = arith.constant 0 : index
    %89 = vector.load %arg6[%c1_79, %c0_80, %c0_81] : memref<9x24x32xbf16, #tpu.memory_space<vmem>>, vector<1x24x32xbf16>
    %90 = vector.shape_cast %89 : vector<1x24x32xbf16> to vector<24x32xbf16>
    %cst_82 = arith.constant dense<0.000000e+00> : vector<32x32xf32>
    %91 = tpu.matmul %88, %90, %cst_82 {dimension_numbers = #tpu.dot_dimension_numbers<[1], [0], [0], [1], [0, 0, 1, 1], [], []>} : vector<32x24xbf16>, vector<24x32xbf16>, vector<32x32xf32> -> vector<32x32xf32>
    %92 = arith.addf %84, %91 : vector<32x32xf32>
    %c2_83 = arith.constant 2 : index
    %c0_84 = arith.constant 0 : index
    %c0_85 = arith.constant 0 : index
    %93 = vector.load %arg5[%c2_83, %c0_84, %c0_85] : memref<9x32x128xbf16, #tpu.memory_space<vmem>>, vector<1x32x128xbf16>
    %94 = vector.shape_cast %93 : vector<1x32x128xbf16> to vector<32x128xbf16>
    %cst_86 = arith.constant dense<0.000000e+00> : vector<32x24xf32>
    %95 = tpu.matmul %94, %77, %cst_86 {dimension_numbers = #tpu.dot_dimension_numbers<[1], [0], [0], [1], [0, 0, 1, 1], [], []>} : vector<32x128xbf16>, vector<128x24xbf16>, vector<32x24xf32> -> vector<32x24xf32>
    %96 = arith.truncf %95 : vector<32x24xf32> to vector<32x24xbf16>
    %c2_87 = arith.constant 2 : index
    %c0_88 = arith.constant 0 : index
    %c0_89 = arith.constant 0 : index
    %97 = vector.load %arg6[%c2_87, %c0_88, %c0_89] : memref<9x24x32xbf16, #tpu.memory_space<vmem>>, vector<1x24x32xbf16>
    %98 = vector.shape_cast %97 : vector<1x24x32xbf16> to vector<24x32xbf16>
    %cst_90 = arith.constant dense<0.000000e+00> : vector<32x32xf32>
    %99 = tpu.matmul %96, %98, %cst_90 {dimension_numbers = #tpu.dot_dimension_numbers<[1], [0], [0], [1], [0, 0, 1, 1], [], []>} : vector<32x24xbf16>, vector<24x32xbf16>, vector<32x32xf32> -> vector<32x32xf32>
    %100 = arith.addf %92, %99 : vector<32x32xf32>
    %c3_91 = arith.constant 3 : index
    %c0_92 = arith.constant 0 : index
    %c0_93 = arith.constant 0 : index
    %101 = vector.load %arg5[%c3_91, %c0_92, %c0_93] : memref<9x32x128xbf16, #tpu.memory_space<vmem>>, vector<1x32x128xbf16>
    %102 = vector.shape_cast %101 : vector<1x32x128xbf16> to vector<32x128xbf16>
    %cst_94 = arith.constant dense<0.000000e+00> : vector<32x24xf32>
    %103 = tpu.matmul %102, %77, %cst_94 {dimension_numbers = #tpu.dot_dimension_numbers<[1], [0], [0], [1], [0, 0, 1, 1], [], []>} : vector<32x128xbf16>, vector<128x24xbf16>, vector<32x24xf32> -> vector<32x24xf32>
    %104 = arith.truncf %103 : vector<32x24xf32> to vector<32x24xbf16>
    %c3_95 = arith.constant 3 : index
    %c0_96 = arith.constant 0 : index
    %c0_97 = arith.constant 0 : index
    %105 = vector.load %arg6[%c3_95, %c0_96, %c0_97] : memref<9x24x32xbf16, #tpu.memory_space<vmem>>, vector<1x24x32xbf16>
    %106 = vector.shape_cast %105 : vector<1x24x32xbf16> to vector<24x32xbf16>
    %cst_98 = arith.constant dense<0.000000e+00> : vector<32x32xf32>
    %107 = tpu.matmul %104, %106, %cst_98 {dimension_numbers = #tpu.dot_dimension_numbers<[1], [0], [0], [1], [0, 0, 1, 1], [], []>} : vector<32x24xbf16>, vector<24x32xbf16>, vector<32x32xf32> -> vector<32x32xf32>
    %108 = arith.addf %100, %107 : vector<32x32xf32>
    %c4_99 = arith.constant 4 : index
    %c0_100 = arith.constant 0 : index
    %c0_101 = arith.constant 0 : index
    %109 = vector.load %arg5[%c4_99, %c0_100, %c0_101] : memref<9x32x128xbf16, #tpu.memory_space<vmem>>, vector<1x32x128xbf16>
    %110 = vector.shape_cast %109 : vector<1x32x128xbf16> to vector<32x128xbf16>
    %cst_102 = arith.constant dense<0.000000e+00> : vector<32x24xf32>
    %111 = tpu.matmul %110, %77, %cst_102 {dimension_numbers = #tpu.dot_dimension_numbers<[1], [0], [0], [1], [0, 0, 1, 1], [], []>} : vector<32x128xbf16>, vector<128x24xbf16>, vector<32x24xf32> -> vector<32x24xf32>
    %112 = arith.truncf %111 : vector<32x24xf32> to vector<32x24xbf16>
    %c4_103 = arith.constant 4 : index
    %c0_104 = arith.constant 0 : index
    %c0_105 = arith.constant 0 : index
    %113 = vector.load %arg6[%c4_103, %c0_104, %c0_105] : memref<9x24x32xbf16, #tpu.memory_space<vmem>>, vector<1x24x32xbf16>
    %114 = vector.shape_cast %113 : vector<1x24x32xbf16> to vector<24x32xbf16>
    %cst_106 = arith.constant dense<0.000000e+00> : vector<32x32xf32>
    %115 = tpu.matmul %112, %114, %cst_106 {dimension_numbers = #tpu.dot_dimension_numbers<[1], [0], [0], [1], [0, 0, 1, 1], [], []>} : vector<32x24xbf16>, vector<24x32xbf16>, vector<32x32xf32> -> vector<32x32xf32>
    %116 = arith.addf %108, %115 : vector<32x32xf32>
    %c5_107 = arith.constant 5 : index
    %c0_108 = arith.constant 0 : index
    %c0_109 = arith.constant 0 : index
    %117 = vector.load %arg5[%c5_107, %c0_108, %c0_109] : memref<9x32x128xbf16, #tpu.memory_space<vmem>>, vector<1x32x128xbf16>
    %118 = vector.shape_cast %117 : vector<1x32x128xbf16> to vector<32x128xbf16>
    %cst_110 = arith.constant dense<0.000000e+00> : vector<32x24xf32>
    %119 = tpu.matmul %118, %77, %cst_110 {dimension_numbers = #tpu.dot_dimension_numbers<[1], [0], [0], [1], [0, 0, 1, 1], [], []>} : vector<32x128xbf16>, vector<128x24xbf16>, vector<32x24xf32> -> vector<32x24xf32>
    %120 = arith.truncf %119 : vector<32x24xf32> to vector<32x24xbf16>
    %c5_111 = arith.constant 5 : index
    %c0_112 = arith.constant 0 : index
    %c0_113 = arith.constant 0 : index
    %121 = vector.load %arg6[%c5_111, %c0_112, %c0_113] : memref<9x24x32xbf16, #tpu.memory_space<vmem>>, vector<1x24x32xbf16>
    %122 = vector.shape_cast %121 : vector<1x24x32xbf16> to vector<24x32xbf16>
    %cst_114 = arith.constant dense<0.000000e+00> : vector<32x32xf32>
    %123 = tpu.matmul %120, %122, %cst_114 {dimension_numbers = #tpu.dot_dimension_numbers<[1], [0], [0], [1], [0, 0, 1, 1], [], []>} : vector<32x24xbf16>, vector<24x32xbf16>, vector<32x32xf32> -> vector<32x32xf32>
    %124 = arith.addf %116, %123 : vector<32x32xf32>
    %c6_115 = arith.constant 6 : index
    %c0_116 = arith.constant 0 : index
    %c0_117 = arith.constant 0 : index
    %125 = vector.load %arg5[%c6_115, %c0_116, %c0_117] : memref<9x32x128xbf16, #tpu.memory_space<vmem>>, vector<1x32x128xbf16>
    %126 = vector.shape_cast %125 : vector<1x32x128xbf16> to vector<32x128xbf16>
    %cst_118 = arith.constant dense<0.000000e+00> : vector<32x24xf32>
    %127 = tpu.matmul %126, %77, %cst_118 {dimension_numbers = #tpu.dot_dimension_numbers<[1], [0], [0], [1], [0, 0, 1, 1], [], []>} : vector<32x128xbf16>, vector<128x24xbf16>, vector<32x24xf32> -> vector<32x24xf32>
    %128 = arith.truncf %127 : vector<32x24xf32> to vector<32x24xbf16>
    %c6_119 = arith.constant 6 : index
    %c0_120 = arith.constant 0 : index
    %c0_121 = arith.constant 0 : index
    %129 = vector.load %arg6[%c6_119, %c0_120, %c0_121] : memref<9x24x32xbf16, #tpu.memory_space<vmem>>, vector<1x24x32xbf16>
    %130 = vector.shape_cast %129 : vector<1x24x32xbf16> to vector<24x32xbf16>
    %cst_122 = arith.constant dense<0.000000e+00> : vector<32x32xf32>
    %131 = tpu.matmul %128, %130, %cst_122 {dimension_numbers = #tpu.dot_dimension_numbers<[1], [0], [0], [1], [0, 0, 1, 1], [], []>} : vector<32x24xbf16>, vector<24x32xbf16>, vector<32x32xf32> -> vector<32x32xf32>
    %132 = arith.addf %124, %131 : vector<32x32xf32>
    %c7_123 = arith.constant 7 : index
    %c0_124 = arith.constant 0 : index
    %c0_125 = arith.constant 0 : index
    %133 = vector.load %arg5[%c7_123, %c0_124, %c0_125] : memref<9x32x128xbf16, #tpu.memory_space<vmem>>, vector<1x32x128xbf16>
    %134 = vector.shape_cast %133 : vector<1x32x128xbf16> to vector<32x128xbf16>
    %cst_126 = arith.constant dense<0.000000e+00> : vector<32x24xf32>
    %135 = tpu.matmul %134, %77, %cst_126 {dimension_numbers = #tpu.dot_dimension_numbers<[1], [0], [0], [1], [0, 0, 1, 1], [], []>} : vector<32x128xbf16>, vector<128x24xbf16>, vector<32x24xf32> -> vector<32x24xf32>
    %136 = arith.truncf %135 : vector<32x24xf32> to vector<32x24xbf16>
    %c7_127 = arith.constant 7 : index
    %c0_128 = arith.constant 0 : index
    %c0_129 = arith.constant 0 : index
    %137 = vector.load %arg6[%c7_127, %c0_128, %c0_129] : memref<9x24x32xbf16, #tpu.memory_space<vmem>>, vector<1x24x32xbf16>
    %138 = vector.shape_cast %137 : vector<1x24x32xbf16> to vector<24x32xbf16>
    %cst_130 = arith.constant dense<0.000000e+00> : vector<32x32xf32>
    %139 = tpu.matmul %136, %138, %cst_130 {dimension_numbers = #tpu.dot_dimension_numbers<[1], [0], [0], [1], [0, 0, 1, 1], [], []>} : vector<32x24xbf16>, vector<24x32xbf16>, vector<32x32xf32> -> vector<32x32xf32>
    %140 = arith.addf %132, %139 : vector<32x32xf32>
    %c8_131 = arith.constant 8 : index
    %c0_132 = arith.constant 0 : index
    %c0_133 = arith.constant 0 : index
    %141 = vector.load %arg5[%c8_131, %c0_132, %c0_133] : memref<9x32x128xbf16, #tpu.memory_space<vmem>>, vector<1x32x128xbf16>
    %142 = vector.shape_cast %141 : vector<1x32x128xbf16> to vector<32x128xbf16>
    %cst_134 = arith.constant dense<0.000000e+00> : vector<32x24xf32>
    %143 = tpu.matmul %142, %77, %cst_134 {dimension_numbers = #tpu.dot_dimension_numbers<[1], [0], [0], [1], [0, 0, 1, 1], [], []>} : vector<32x128xbf16>, vector<128x24xbf16>, vector<32x24xf32> -> vector<32x24xf32>
    %144 = arith.truncf %143 : vector<32x24xf32> to vector<32x24xbf16>
    %c8_135 = arith.constant 8 : index
    %c0_136 = arith.constant 0 : index
    %c0_137 = arith.constant 0 : index
    %145 = vector.load %arg6[%c8_135, %c0_136, %c0_137] : memref<9x24x32xbf16, #tpu.memory_space<vmem>>, vector<1x24x32xbf16>
    %146 = vector.shape_cast %145 : vector<1x24x32xbf16> to vector<24x32xbf16>
    %cst_138 = arith.constant dense<0.000000e+00> : vector<32x32xf32>
    %147 = tpu.matmul %144, %146, %cst_138 {dimension_numbers = #tpu.dot_dimension_numbers<[1], [0], [0], [1], [0, 0, 1, 1], [], []>} : vector<32x24xbf16>, vector<24x32xbf16>, vector<32x32xf32> -> vector<32x32xf32>
    %148 = arith.addf %140, %147 : vector<32x32xf32>
    %c0_139 = arith.constant 0 : index
    %c0_140 = arith.constant 0 : index
    %149 = vector.load %arg7[%c0_139, %c0_140] : memref<1x32xf32, #tpu.memory_space<vmem>>, vector<1x32xf32>
    %150 = vector.broadcast %149 : vector<1x32xf32> to vector<32x32xf32>
    %151 = arith.addf %148, %150 : vector<32x32xf32>
    %cst_141 = arith.constant 0.000000e+00 : f32
    %152 = vector.broadcast %cst_141 : f32 to vector<32x32xf32>
    %153 = arith.maximumf %151, %152 : vector<32x32xf32>
    %154 = arith.truncf %153 : vector<32x32xf32> to vector<32x32xbf16>
    %c0_142 = arith.constant 0 : index
    %c0_143 = arith.constant 0 : index
    %c0_144 = arith.constant 0 : index
    %155 = vector.load %arg8[%c0_142, %c0_143, %c0_144] : memref<9x8x32xbf16, #tpu.memory_space<vmem>>, vector<1x8x32xbf16>
    %156 = vector.shape_cast %155 : vector<1x8x32xbf16> to vector<8x32xbf16>
    %cst_145 = arith.constant dense<0.000000e+00> : vector<8x32xf32>
    %157 = tpu.matmul %156, %154, %cst_145 {dimension_numbers = #tpu.dot_dimension_numbers<[1], [0], [0], [1], [0, 0, 1, 1], [], []>} : vector<8x32xbf16>, vector<32x32xbf16>, vector<8x32xf32> -> vector<8x32xf32>
    %158 = arith.truncf %157 : vector<8x32xf32> to vector<8x32xbf16>
    %c0_146 = arith.constant 0 : index
    %c0_147 = arith.constant 0 : index
    %c0_148 = arith.constant 0 : index
    %159 = vector.load %arg9[%c0_146, %c0_147, %c0_148] : memref<9x32x64xbf16, #tpu.memory_space<vmem>>, vector<1x32x64xbf16>
    %160 = vector.shape_cast %159 : vector<1x32x64xbf16> to vector<32x64xbf16>
    %cst_149 = arith.constant dense<0.000000e+00> : vector<8x64xf32>
    %161 = tpu.matmul %158, %160, %cst_149 {dimension_numbers = #tpu.dot_dimension_numbers<[1], [0], [0], [1], [0, 0, 1, 1], [], []>} : vector<8x32xbf16>, vector<32x64xbf16>, vector<8x64xf32> -> vector<8x64xf32>
    %c1_150 = arith.constant 1 : index
    %c0_151 = arith.constant 0 : index
    %c0_152 = arith.constant 0 : index
    %162 = vector.load %arg8[%c1_150, %c0_151, %c0_152] : memref<9x8x32xbf16, #tpu.memory_space<vmem>>, vector<1x8x32xbf16>
    %163 = vector.shape_cast %162 : vector<1x8x32xbf16> to vector<8x32xbf16>
    %cst_153 = arith.constant dense<0.000000e+00> : vector<8x32xf32>
    %164 = tpu.matmul %163, %154, %cst_153 {dimension_numbers = #tpu.dot_dimension_numbers<[1], [0], [0], [1], [0, 0, 1, 1], [], []>} : vector<8x32xbf16>, vector<32x32xbf16>, vector<8x32xf32> -> vector<8x32xf32>
    %165 = arith.truncf %164 : vector<8x32xf32> to vector<8x32xbf16>
    %c1_154 = arith.constant 1 : index
    %c0_155 = arith.constant 0 : index
    %c0_156 = arith.constant 0 : index
    %166 = vector.load %arg9[%c1_154, %c0_155, %c0_156] : memref<9x32x64xbf16, #tpu.memory_space<vmem>>, vector<1x32x64xbf16>
    %167 = vector.shape_cast %166 : vector<1x32x64xbf16> to vector<32x64xbf16>
    %cst_157 = arith.constant dense<0.000000e+00> : vector<8x64xf32>
    %168 = tpu.matmul %165, %167, %cst_157 {dimension_numbers = #tpu.dot_dimension_numbers<[1], [0], [0], [1], [0, 0, 1, 1], [], []>} : vector<8x32xbf16>, vector<32x64xbf16>, vector<8x64xf32> -> vector<8x64xf32>
    %169 = arith.addf %161, %168 : vector<8x64xf32>
    %c2_158 = arith.constant 2 : index
    %c0_159 = arith.constant 0 : index
    %c0_160 = arith.constant 0 : index
    %170 = vector.load %arg8[%c2_158, %c0_159, %c0_160] : memref<9x8x32xbf16, #tpu.memory_space<vmem>>, vector<1x8x32xbf16>
    %171 = vector.shape_cast %170 : vector<1x8x32xbf16> to vector<8x32xbf16>
    %cst_161 = arith.constant dense<0.000000e+00> : vector<8x32xf32>
    %172 = tpu.matmul %171, %154, %cst_161 {dimension_numbers = #tpu.dot_dimension_numbers<[1], [0], [0], [1], [0, 0, 1, 1], [], []>} : vector<8x32xbf16>, vector<32x32xbf16>, vector<8x32xf32> -> vector<8x32xf32>
    %173 = arith.truncf %172 : vector<8x32xf32> to vector<8x32xbf16>
    %c2_162 = arith.constant 2 : index
    %c0_163 = arith.constant 0 : index
    %c0_164 = arith.constant 0 : index
    %174 = vector.load %arg9[%c2_162, %c0_163, %c0_164] : memref<9x32x64xbf16, #tpu.memory_space<vmem>>, vector<1x32x64xbf16>
    %175 = vector.shape_cast %174 : vector<1x32x64xbf16> to vector<32x64xbf16>
    %cst_165 = arith.constant dense<0.000000e+00> : vector<8x64xf32>
    %176 = tpu.matmul %173, %175, %cst_165 {dimension_numbers = #tpu.dot_dimension_numbers<[1], [0], [0], [1], [0, 0, 1, 1], [], []>} : vector<8x32xbf16>, vector<32x64xbf16>, vector<8x64xf32> -> vector<8x64xf32>
    %177 = arith.addf %169, %176 : vector<8x64xf32>
    %c3_166 = arith.constant 3 : index
    %c0_167 = arith.constant 0 : index
    %c0_168 = arith.constant 0 : index
    %178 = vector.load %arg8[%c3_166, %c0_167, %c0_168] : memref<9x8x32xbf16, #tpu.memory_space<vmem>>, vector<1x8x32xbf16>
    %179 = vector.shape_cast %178 : vector<1x8x32xbf16> to vector<8x32xbf16>
    %cst_169 = arith.constant dense<0.000000e+00> : vector<8x32xf32>
    %180 = tpu.matmul %179, %154, %cst_169 {dimension_numbers = #tpu.dot_dimension_numbers<[1], [0], [0], [1], [0, 0, 1, 1], [], []>} : vector<8x32xbf16>, vector<32x32xbf16>, vector<8x32xf32> -> vector<8x32xf32>
    %181 = arith.truncf %180 : vector<8x32xf32> to vector<8x32xbf16>
    %c3_170 = arith.constant 3 : index
    %c0_171 = arith.constant 0 : index
    %c0_172 = arith.constant 0 : index
    %182 = vector.load %arg9[%c3_170, %c0_171, %c0_172] : memref<9x32x64xbf16, #tpu.memory_space<vmem>>, vector<1x32x64xbf16>
    %183 = vector.shape_cast %182 : vector<1x32x64xbf16> to vector<32x64xbf16>
    %cst_173 = arith.constant dense<0.000000e+00> : vector<8x64xf32>
    %184 = tpu.matmul %181, %183, %cst_173 {dimension_numbers = #tpu.dot_dimension_numbers<[1], [0], [0], [1], [0, 0, 1, 1], [], []>} : vector<8x32xbf16>, vector<32x64xbf16>, vector<8x64xf32> -> vector<8x64xf32>
    %185 = arith.addf %177, %184 : vector<8x64xf32>
    %c4_174 = arith.constant 4 : index
    %c0_175 = arith.constant 0 : index
    %c0_176 = arith.constant 0 : index
    %186 = vector.load %arg8[%c4_174, %c0_175, %c0_176] : memref<9x8x32xbf16, #tpu.memory_space<vmem>>, vector<1x8x32xbf16>
    %187 = vector.shape_cast %186 : vector<1x8x32xbf16> to vector<8x32xbf16>
    %cst_177 = arith.constant dense<0.000000e+00> : vector<8x32xf32>
    %188 = tpu.matmul %187, %154, %cst_177 {dimension_numbers = #tpu.dot_dimension_numbers<[1], [0], [0], [1], [0, 0, 1, 1], [], []>} : vector<8x32xbf16>, vector<32x32xbf16>, vector<8x32xf32> -> vector<8x32xf32>
    %189 = arith.truncf %188 : vector<8x32xf32> to vector<8x32xbf16>
    %c4_178 = arith.constant 4 : index
    %c0_179 = arith.constant 0 : index
    %c0_180 = arith.constant 0 : index
    %190 = vector.load %arg9[%c4_178, %c0_179, %c0_180] : memref<9x32x64xbf16, #tpu.memory_space<vmem>>, vector<1x32x64xbf16>
    %191 = vector.shape_cast %190 : vector<1x32x64xbf16> to vector<32x64xbf16>
    %cst_181 = arith.constant dense<0.000000e+00> : vector<8x64xf32>
    %192 = tpu.matmul %189, %191, %cst_181 {dimension_numbers = #tpu.dot_dimension_numbers<[1], [0], [0], [1], [0, 0, 1, 1], [], []>} : vector<8x32xbf16>, vector<32x64xbf16>, vector<8x64xf32> -> vector<8x64xf32>
    %193 = arith.addf %185, %192 : vector<8x64xf32>
    %c5_182 = arith.constant 5 : index
    %c0_183 = arith.constant 0 : index
    %c0_184 = arith.constant 0 : index
    %194 = vector.load %arg8[%c5_182, %c0_183, %c0_184] : memref<9x8x32xbf16, #tpu.memory_space<vmem>>, vector<1x8x32xbf16>
    %195 = vector.shape_cast %194 : vector<1x8x32xbf16> to vector<8x32xbf16>
    %cst_185 = arith.constant dense<0.000000e+00> : vector<8x32xf32>
    %196 = tpu.matmul %195, %154, %cst_185 {dimension_numbers = #tpu.dot_dimension_numbers<[1], [0], [0], [1], [0, 0, 1, 1], [], []>} : vector<8x32xbf16>, vector<32x32xbf16>, vector<8x32xf32> -> vector<8x32xf32>
    %197 = arith.truncf %196 : vector<8x32xf32> to vector<8x32xbf16>
    %c5_186 = arith.constant 5 : index
    %c0_187 = arith.constant 0 : index
    %c0_188 = arith.constant 0 : index
    %198 = vector.load %arg9[%c5_186, %c0_187, %c0_188] : memref<9x32x64xbf16, #tpu.memory_space<vmem>>, vector<1x32x64xbf16>
    %199 = vector.shape_cast %198 : vector<1x32x64xbf16> to vector<32x64xbf16>
    %cst_189 = arith.constant dense<0.000000e+00> : vector<8x64xf32>
    %200 = tpu.matmul %197, %199, %cst_189 {dimension_numbers = #tpu.dot_dimension_numbers<[1], [0], [0], [1], [0, 0, 1, 1], [], []>} : vector<8x32xbf16>, vector<32x64xbf16>, vector<8x64xf32> -> vector<8x64xf32>
    %201 = arith.addf %193, %200 : vector<8x64xf32>
    %c6_190 = arith.constant 6 : index
    %c0_191 = arith.constant 0 : index
    %c0_192 = arith.constant 0 : index
    %202 = vector.load %arg8[%c6_190, %c0_191, %c0_192] : memref<9x8x32xbf16, #tpu.memory_space<vmem>>, vector<1x8x32xbf16>
    %203 = vector.shape_cast %202 : vector<1x8x32xbf16> to vector<8x32xbf16>
    %cst_193 = arith.constant dense<0.000000e+00> : vector<8x32xf32>
    %204 = tpu.matmul %203, %154, %cst_193 {dimension_numbers = #tpu.dot_dimension_numbers<[1], [0], [0], [1], [0, 0, 1, 1], [], []>} : vector<8x32xbf16>, vector<32x32xbf16>, vector<8x32xf32> -> vector<8x32xf32>
    %205 = arith.truncf %204 : vector<8x32xf32> to vector<8x32xbf16>
    %c6_194 = arith.constant 6 : index
    %c0_195 = arith.constant 0 : index
    %c0_196 = arith.constant 0 : index
    %206 = vector.load %arg9[%c6_194, %c0_195, %c0_196] : memref<9x32x64xbf16, #tpu.memory_space<vmem>>, vector<1x32x64xbf16>
    %207 = vector.shape_cast %206 : vector<1x32x64xbf16> to vector<32x64xbf16>
    %cst_197 = arith.constant dense<0.000000e+00> : vector<8x64xf32>
    %208 = tpu.matmul %205, %207, %cst_197 {dimension_numbers = #tpu.dot_dimension_numbers<[1], [0], [0], [1], [0, 0, 1, 1], [], []>} : vector<8x32xbf16>, vector<32x64xbf16>, vector<8x64xf32> -> vector<8x64xf32>
    %209 = arith.addf %201, %208 : vector<8x64xf32>
    %c7_198 = arith.constant 7 : index
    %c0_199 = arith.constant 0 : index
    %c0_200 = arith.constant 0 : index
    %210 = vector.load %arg8[%c7_198, %c0_199, %c0_200] : memref<9x8x32xbf16, #tpu.memory_space<vmem>>, vector<1x8x32xbf16>
    %211 = vector.shape_cast %210 : vector<1x8x32xbf16> to vector<8x32xbf16>
    %cst_201 = arith.constant dense<0.000000e+00> : vector<8x32xf32>
    %212 = tpu.matmul %211, %154, %cst_201 {dimension_numbers = #tpu.dot_dimension_numbers<[1], [0], [0], [1], [0, 0, 1, 1], [], []>} : vector<8x32xbf16>, vector<32x32xbf16>, vector<8x32xf32> -> vector<8x32xf32>
    %213 = arith.truncf %212 : vector<8x32xf32> to vector<8x32xbf16>
    %c7_202 = arith.constant 7 : index
    %c0_203 = arith.constant 0 : index
    %c0_204 = arith.constant 0 : index
    %214 = vector.load %arg9[%c7_202, %c0_203, %c0_204] : memref<9x32x64xbf16, #tpu.memory_space<vmem>>, vector<1x32x64xbf16>
    %215 = vector.shape_cast %214 : vector<1x32x64xbf16> to vector<32x64xbf16>
    %cst_205 = arith.constant dense<0.000000e+00> : vector<8x64xf32>
    %216 = tpu.matmul %213, %215, %cst_205 {dimension_numbers = #tpu.dot_dimension_numbers<[1], [0], [0], [1], [0, 0, 1, 1], [], []>} : vector<8x32xbf16>, vector<32x64xbf16>, vector<8x64xf32> -> vector<8x64xf32>
    %217 = arith.addf %209, %216 : vector<8x64xf32>
    %c8_206 = arith.constant 8 : index
    %c0_207 = arith.constant 0 : index
    %c0_208 = arith.constant 0 : index
    %218 = vector.load %arg8[%c8_206, %c0_207, %c0_208] : memref<9x8x32xbf16, #tpu.memory_space<vmem>>, vector<1x8x32xbf16>
    %219 = vector.shape_cast %218 : vector<1x8x32xbf16> to vector<8x32xbf16>
    %cst_209 = arith.constant dense<0.000000e+00> : vector<8x32xf32>
    %220 = tpu.matmul %219, %154, %cst_209 {dimension_numbers = #tpu.dot_dimension_numbers<[1], [0], [0], [1], [0, 0, 1, 1], [], []>} : vector<8x32xbf16>, vector<32x32xbf16>, vector<8x32xf32> -> vector<8x32xf32>
    %221 = arith.truncf %220 : vector<8x32xf32> to vector<8x32xbf16>
    %c8_210 = arith.constant 8 : index
    %c0_211 = arith.constant 0 : index
    %c0_212 = arith.constant 0 : index
    %222 = vector.load %arg9[%c8_210, %c0_211, %c0_212] : memref<9x32x64xbf16, #tpu.memory_space<vmem>>, vector<1x32x64xbf16>
    %223 = vector.shape_cast %222 : vector<1x32x64xbf16> to vector<32x64xbf16>
    %cst_213 = arith.constant dense<0.000000e+00> : vector<8x64xf32>
    %224 = tpu.matmul %221, %223, %cst_213 {dimension_numbers = #tpu.dot_dimension_numbers<[1], [0], [0], [1], [0, 0, 1, 1], [], []>} : vector<8x32xbf16>, vector<32x64xbf16>, vector<8x64xf32> -> vector<8x64xf32>
    %225 = arith.addf %217, %224 : vector<8x64xf32>
    %c0_214 = arith.constant 0 : index
    %c0_215 = arith.constant 0 : index
    %226 = vector.load %arg10[%c0_214, %c0_215] : memref<1x64xf32, #tpu.memory_space<vmem>>, vector<1x64xf32>
    %227 = vector.broadcast %226 : vector<1x64xf32> to vector<8x64xf32>
    %228 = arith.addf %225, %227 : vector<8x64xf32>
    %cst_216 = arith.constant 0.000000e+00 : f32
    %229 = vector.broadcast %cst_216 : f32 to vector<8x64xf32>
    %230 = arith.maximumf %228, %229 : vector<8x64xf32>
    %231 = arith.truncf %230 : vector<8x64xf32> to vector<8x64xbf16>
    %c0_217 = arith.constant 0 : index
    %c0_218 = arith.constant 0 : index
    %232 = vector.load %arg11[%c0_217, %c0_218] : memref<64x128xbf16, #tpu.memory_space<vmem>>, vector<64x128xbf16>
    %cst_219 = arith.constant dense<0.000000e+00> : vector<8x128xf32>
    %233 = tpu.matmul %231, %232, %cst_219 {dimension_numbers = #tpu.dot_dimension_numbers<[1], [0], [0], [1], [0, 0, 1, 1], [], []>} : vector<8x64xbf16>, vector<64x128xbf16>, vector<8x128xf32> -> vector<8x128xf32>
    %c0_220 = arith.constant 0 : index
    %c0_221 = arith.constant 0 : index
    %234 = vector.load %arg12[%c0_220, %c0_221] : memref<1x128xf32, #tpu.memory_space<vmem>>, vector<1x128xf32>
    %235 = vector.broadcast %234 : vector<1x128xf32> to vector<8x128xf32>
    %236 = arith.addf %233, %235 : vector<8x128xf32>
    %cst_222 = arith.constant 0.000000e+00 : f32
    %237 = vector.broadcast %cst_222 : f32 to vector<8x128xf32>
    %238 = arith.maximumf %236, %237 : vector<8x128xf32>
    %239 = arith.truncf %238 : vector<8x128xf32> to vector<8x128xbf16>
    %c0_223 = arith.constant 0 : index
    %c0_224 = arith.constant 0 : index
    %240 = vector.load %arg13[%c0_223, %c0_224] : memref<128x128xbf16, #tpu.memory_space<vmem>>, vector<128x128xbf16>
    %cst_225 = arith.constant dense<0.000000e+00> : vector<8x128xf32>
    %241 = tpu.matmul %239, %240, %cst_225 {dimension_numbers = #tpu.dot_dimension_numbers<[1], [0], [0], [1], [0, 0, 1, 1], [], []>} : vector<8x128xbf16>, vector<128x128xbf16>, vector<8x128xf32> -> vector<8x128xf32>
    %c0_226 = arith.constant 0 : index
    %c0_227 = arith.constant 0 : index
    %242 = vector.load %arg14[%c0_226, %c0_227] : memref<1x128xf32, #tpu.memory_space<vmem>>, vector<1x128xf32>
    %243 = vector.broadcast %242 : vector<1x128xf32> to vector<8x128xf32>
    %244 = arith.addf %241, %243 : vector<8x128xf32>
    %cst_228 = arith.constant 0.000000e+00 : f32
    %245 = vector.broadcast %cst_228 : f32 to vector<8x128xf32>
    %246 = arith.maximumf %244, %245 : vector<8x128xf32>
    %247 = arith.truncf %246 : vector<8x128xf32> to vector<8x128xbf16>
    %c0_229 = arith.constant 0 : index
    %c0_230 = arith.constant 0 : index
    %248 = vector.load %arg15[%c0_229, %c0_230] : memref<2x8xbf16, #tpu.memory_space<vmem>>, vector<2x8xbf16>
    %cst_231 = arith.constant dense<0.000000e+00> : vector<2x128xf32>
    %249 = tpu.matmul %248, %247, %cst_231 {dimension_numbers = #tpu.dot_dimension_numbers<[1], [0], [0], [1], [0, 0, 1, 1], [], []>} : vector<2x8xbf16>, vector<8x128xbf16>, vector<2x128xf32> -> vector<2x128xf32>
    %250 = arith.truncf %249 : vector<2x128xf32> to vector<2x128xbf16>
    %c0_232 = arith.constant 0 : index
    %c0_233 = arith.constant 0 : index
    %251 = vector.load %arg16[%c0_232, %c0_233] : memref<128x64xbf16, #tpu.memory_space<vmem>>, vector<128x64xbf16>
    %cst_234 = arith.constant dense<0.000000e+00> : vector<2x64xf32>
    %252 = tpu.matmul %250, %251, %cst_234 {dimension_numbers = #tpu.dot_dimension_numbers<[1], [0], [0], [1], [0, 0, 1, 1], [], []>} : vector<2x128xbf16>, vector<128x64xbf16>, vector<2x64xf32> -> vector<2x64xf32>
    %c0_235 = arith.constant 0 : index
    %c0_236 = arith.constant 0 : index
    %253 = vector.load %arg17[%c0_235, %c0_236] : memref<1x64xf32, #tpu.memory_space<vmem>>, vector<1x64xf32>
    %254 = vector.broadcast %253 : vector<1x64xf32> to vector<2x64xf32>
    %255 = arith.addf %252, %254 : vector<2x64xf32>
    %cst_237 = arith.constant 0.000000e+00 : f32
    %256 = vector.broadcast %cst_237 : f32 to vector<2x64xf32>
    %257 = arith.maximumf %255, %256 : vector<2x64xf32>
    %258 = arith.truncf %257 : vector<2x64xf32> to vector<2x64xbf16>
    %c0_238 = arith.constant 0 : index
    %c0_239 = arith.constant 0 : index
    %259 = vector.load %arg18[%c0_238, %c0_239] : memref<64x48xbf16, #tpu.memory_space<vmem>>, vector<64x48xbf16>
    %cst_240 = arith.constant dense<0.000000e+00> : vector<2x48xf32>
    %260 = tpu.matmul %258, %259, %cst_240 {dimension_numbers = #tpu.dot_dimension_numbers<[1], [0], [0], [1], [0, 0, 1, 1], [], []>} : vector<2x64xbf16>, vector<64x48xbf16>, vector<2x48xf32> -> vector<2x48xf32>
    %c0_241 = arith.constant 0 : index
    %c0_242 = arith.constant 0 : index
    %261 = vector.load %arg19[%c0_241, %c0_242] : memref<1x48xf32, #tpu.memory_space<vmem>>, vector<1x48xf32>
    %262 = vector.broadcast %261 : vector<1x48xf32> to vector<2x48xf32>
    %263 = arith.addf %260, %262 : vector<2x48xf32>
    %264 = arith.negf %263 : vector<2x48xf32>
    %265 = math.exp %264 : vector<2x48xf32>
    %cst_243 = arith.constant 1.000000e+00 : f32
    %266 = vector.broadcast %cst_243 : f32 to vector<2x48xf32>
    %267 = arith.addf %266, %265 : vector<2x48xf32>
    %268 = arith.divf %266, %267 : vector<2x48xf32>
    %c0_244 = arith.constant 0 : index
    %c0_245 = arith.constant 0 : index
    %269 = vector.load %arg20[%c0_244, %c0_245] : memref<2x48xf32, #tpu.memory_space<vmem>>, vector<2x48xf32>
    tpu.vector_store %arg20[%c0_244, %c0_245], %268 {strides = array<i32>} : memref<2x48xf32, #tpu.memory_space<vmem>>, vector<2x48xf32>,
    return
  }
  func.func @transform_0(%arg0: i32) -> (i32, i32) {
    %c0_i32 = arith.constant 0 : i32
    %c0_i32_0 = arith.constant 0 : i32
    %c0_i32_1 = arith.constant 0 : i32
    return %c0_i32, %c0_i32_0 : i32, i32
  }
  func.func @transform_1(%arg0: i32) -> (i32, i32, i32) {
    %c0_i32 = arith.constant 0 : i32
    %c0_i32_0 = arith.constant 0 : i32
    %c0_i32_1 = arith.constant 0 : i32
    %c0_i32_2 = arith.constant 0 : i32
    return %c0_i32, %c0_i32_0, %c0_i32_1 : i32, i32, i32
  }
  func.func @transform_2(%arg0: i32) -> (i32, i32, i32) {
    %c0_i32 = arith.constant 0 : i32
    %c0_i32_0 = arith.constant 0 : i32
    %c0_i32_1 = arith.constant 0 : i32
    %c0_i32_2 = arith.constant 0 : i32
    return %c0_i32, %c0_i32_0, %c0_i32_1 : i32, i32, i32
  }
  func.func @transform_3(%arg0: i32) -> (i32, i32) {
    %c0_i32 = arith.constant 0 : i32
    %c0_i32_0 = arith.constant 0 : i32
    %c0_i32_1 = arith.constant 0 : i32
    return %c0_i32, %c0_i32_0 : i32, i32
  }
  func.func @transform_4(%arg0: i32) -> (i32, i32, i32) {
    %c0_i32 = arith.constant 0 : i32
    %c0_i32_0 = arith.constant 0 : i32
    %c0_i32_1 = arith.constant 0 : i32
    %c0_i32_2 = arith.constant 0 : i32
    return %c0_i32, %c0_i32_0, %c0_i32_1 : i32, i32, i32
  }
  func.func @transform_5(%arg0: i32) -> (i32, i32, i32) {
    %c0_i32 = arith.constant 0 : i32
    %c0_i32_0 = arith.constant 0 : i32
    %c0_i32_1 = arith.constant 0 : i32
    %c0_i32_2 = arith.constant 0 : i32
    return %c0_i32, %c0_i32_0, %c0_i32_1 : i32, i32, i32
  }
  func.func @transform_6(%arg0: i32) -> (i32, i32) {
    %c0_i32 = arith.constant 0 : i32
    %c0_i32_0 = arith.constant 0 : i32
    %c0_i32_1 = arith.constant 0 : i32
    return %c0_i32, %c0_i32_0 : i32, i32
  }
  func.func @transform_7(%arg0: i32) -> (i32, i32, i32) {
    %c0_i32 = arith.constant 0 : i32
    %c0_i32_0 = arith.constant 0 : i32
    %c0_i32_1 = arith.constant 0 : i32
    %c0_i32_2 = arith.constant 0 : i32
    return %c0_i32, %c0_i32_0, %c0_i32_1 : i32, i32, i32
  }
  func.func @transform_8(%arg0: i32) -> (i32, i32, i32) {
    %c0_i32 = arith.constant 0 : i32
    %c0_i32_0 = arith.constant 0 : i32
    %c0_i32_1 = arith.constant 0 : i32
    %c0_i32_2 = arith.constant 0 : i32
    return %c0_i32, %c0_i32_0, %c0_i32_1 : i32, i32, i32
  }
  func.func @transform_9(%arg0: i32) -> (i32, i32) {
    %c0_i32 = arith.constant 0 : i32
    %c0_i32_0 = arith.constant 0 : i32
    %c0_i32_1 = arith.constant 0 : i32
    return %c0_i32, %c0_i32_0 : i32, i32
  }
  func.func @transform_10(%arg0: i32) -> (i32, i32) {
    %c0_i32 = arith.constant 0 : i32
    %c0_i32_0 = arith.constant 0 : i32
    %c0_i32_1 = arith.constant 0 : i32
    return %c0_i32, %c0_i32_0 : i32, i32
  }
  func.func @transform_11(%arg0: i32) -> (i32, i32) {
    %c0_i32 = arith.constant 0 : i32
    %c0_i32_0 = arith.constant 0 : i32
    %c0_i32_1 = arith.constant 0 : i32
    return %c0_i32, %c0_i32_0 : i32, i32
  }
  func.func @transform_12(%arg0: i32) -> (i32, i32) {
    %c0_i32 = arith.constant 0 : i32
    %c0_i32_0 = arith.constant 0 : i32
    %c0_i32_1 = arith.constant 0 : i32
    return %c0_i32, %c0_i32_0 : i32, i32
  }
  func.func @transform_13(%arg0: i32) -> (i32, i32) {
    %c0_i32 = arith.constant 0 : i32
    %c0_i32_0 = arith.constant 0 : i32
    %c0_i32_1 = arith.constant 0 : i32
    return %c0_i32, %c0_i32_0 : i32, i32
  }
  func.func @transform_14(%arg0: i32) -> (i32, i32) {
    %c0_i32 = arith.constant 0 : i32
    %c0_i32_0 = arith.constant 0 : i32
    %c0_i32_1 = arith.constant 0 : i32
    return %c0_i32, %c0_i32_0 : i32, i32
  }
  func.func @transform_15(%arg0: i32) -> (i32, i32) {
    %c0_i32 = arith.constant 0 : i32
    %c0_i32_0 = arith.constant 0 : i32
    %c0_i32_1 = arith.constant 0 : i32
    return %c0_i32, %c0_i32_0 : i32, i32
  }
  func.func @transform_16(%arg0: i32) -> (i32, i32) {
    %c0_i32 = arith.constant 0 : i32
    %c0_i32_0 = arith.constant 0 : i32
    %c0_i32_1 = arith.constant 0 : i32
    return %c0_i32, %c0_i32_0 : i32, i32
  }
  func.func @transform_17(%arg0: i32) -> (i32, i32) {
    %c0_i32 = arith.constant 0 : i32
    %c0_i32_0 = arith.constant 0 : i32
    %c0_i32_1 = arith.constant 0 : i32
    return %c0_i32, %c0_i32_0 : i32, i32
  }
  func.func @transform_18(%arg0: i32) -> (i32, i32) {
    %c0_i32 = arith.constant 0 : i32
    %c0_i32_0 = arith.constant 0 : i32
    %c0_i32_1 = arith.constant 0 : i32
    return %c0_i32, %c0_i32_0 : i32, i32
  }
  func.func @transform_19(%arg0: i32) -> (i32, i32) {
    %c0_i32 = arith.constant 0 : i32
    %c0_i32_0 = arith.constant 0 : i32
    %c0_i32_1 = arith.constant 0 : i32
    return %c0_i32, %c0_i32_0 : i32, i32
  }
}

</mosaic_0001>

<bundles_post_ra>
// kernel: ego_path_network.4
= control target key start
LH: loop header
LB: loop body
LE: loop exit
PB: predicated region body
PF: predicated region fallthrough
CT: control target
= control target key end

     0   :  { %vm379_vm0 = vcmask 1043456   ;;  %vm282_vm1 = vcmask 588800   ;;  %vm992_vm2 = vcmask 125952   ;;  %s1907_s1 = inlined_call_operand.vmem [shape: bf16[72,16], index: 1, kind: input, shape index: {}]   ;;  %s1908_s0 = inlined_call_operand.vmem [shape: bf16[512,72], index: 0, kind: input, shape index: {}]   ;;  %s1909_s2 = inlined_call_operand.vmem [shape: f32[1,16], index: 2, kind: input, shape index: {}]   ;;  %s1910_s3 = inlined_call_operand.vmem [shape: bf16[512,16], index: 3, kind: output, shape index: {}]  }
   0x1   :  { %v1382_v0 = vld [vmem:[%s1907_s1 + $0x20] ss:$0 sps:$4 sm:$0xff]   ;;  %v1383_v1 = vld [vmem:[%s1907_s1 + $0x18] sm:$0xff]   ;;  %v1384_v3 = vld [vmem:[%s1907_s1 + $0x10] sm:$0xff]  }
   0x2   :  { %1380 = vmatprep.subr.msk.bf16.mxu0 %vm379_vm0, %v1382_v0  ;;  %1381 = vmatprep.subr.msk.bf16.mxu1 %vm379_vm0, %v1382_v0  ;;  %v381_v2 = vsel %vm379_vm0, %v1382_v0, 0  ;;  %v1387_v4 = vld [vmem:[%s1908_s0] sm:$0xff]   ;;  %v1385_v6 = vld [vmem:[%s1907_s1 + $0x8] sm:$0xff]   ;;  %v1391_v10 = vld [vmem:[%s1908_s0 + $0x10] sm:$0xff]  }
   0x3   :  { %1297 = vmatpush3.bf16.msra.mxu0 %v381_v2  ;;  %1375 = vmatpush3.bf16.msra.mxu1 %v381_v2  ;;  %v1388_v5 = vld [vmem:[%s1908_s0 + $0x80] sm:$0xff]   ;;  %v1389_v8 = vld [vmem:[%s1908_s0 + $0x8] sm:$0xff]   ;;  %v1392_v11 = vld [vmem:[%s1908_s0 + $0x90] sm:$0xff]  }
   0x4   :  { %1298 = vmatprep.subr.bf16.mxu0 %v1383_v1  ;;  %1371 = vmatprep.subr.bf16.mxu1 %v1383_v1  ;;  %v1386_v7 = vld [vmem:[%s1907_s1] sm:$0xff]   ;;  %v1390_v9 = vld [vmem:[%s1908_s0 + $0x88] sm:$0xff]   ;;  %v1393_v12 = vld [vmem:[%s1908_s0 + $0x18] sm:$0xff]  }
   0x5   :  { %1306 = vmatprep.mubr.msk.bf16.mxu0 %vm282_vm1, %v1387_v4  ;;  %1338 = vmatprep.mubr.msk.bf16.mxu1 %vm282_vm1, %v1388_v5  ;;  %v1394_v13 = vld [vmem:[%s1908_s0 + $0x98] sm:$0xff]   ;;  %v1395_v14 = vld [vmem:[%s1908_s0 + $0x20] sm:$0xff]   ;;  %v1397_v16 = vld [vmem:[%s1908_s0 + $0x28] sm:$0xff]  }
   0x6   :  { %v1396_v15 = vld [vmem:[%s1908_s0 + $0xa0] sm:$0xff]   ;;  %v1398_v17 = vld [vmem:[%s1908_s0 + $0xa8] sm:$0xff]   ;;  %v1399_v18 = vld [vmem:[%s1908_s0 + $0x30] sm:$0xff]  }
   0x7   :  { %1299 = vmatpush3.bf16.msra.mxu0 %v1383_v1  ;;  %1376 = vmatpush3.bf16.msra.mxu1 %v1383_v1  ;;  %v1400_v19 = vld [vmem:[%s1908_s0 + $0xb0] sm:$0xff]   ;;  %v1401_v20 = vld [vmem:[%s1908_s0 + $0x38] sm:$0xff]   ;;  %v1403_v22 = vld [vmem:[%s1908_s0 + $0x40] sm:$0xff]  }
   0x8   :  { %1300 = vmatprep.subr.bf16.mxu0 %v1384_v3  ;;  %1372 = vmatprep.subr.bf16.mxu1 %v1384_v3  ;;  %v1402_v21 = vld [vmem:[%s1908_s0 + $0xb8] sm:$0xff]   ;;  %v1404_v23 = vld [vmem:[%s1908_s0 + $0xc0] sm:$0xff]   ;;  %v1405_v24 = vld [vmem:[%s1908_s0 + $0x48] sm:$0xff]  }
   0x9   :  { %v1406_v25 = vld [vmem:[%s1908_s0 + $0xc8] sm:$0xff]   ;;  %v1407_v26 = vld [vmem:[%s1908_s0 + $0x50] sm:$0xff]   ;;  %v1409_v28 = vld [vmem:[%s1908_s0 + $0x58] sm:$0xff]  }
   0xa   :  { %v1408_v27 = vld [vmem:[%s1908_s0 + $0xd0] sm:$0xff]   ;;  %v1410_v29 = vld [vmem:[%s1908_s0 + $0xd8] sm:$0xff]   ;;  %v1411_v30 = vld [vmem:[%s1908_s0 + $0x60] sm:$0xff]  }
   0xb   :  { %1301 = vmatpush3.bf16.msra.mxu0 %v1384_v3  ;;  %1377 = vmatpush3.bf16.msra.mxu1 %v1384_v3  ;;  %v1412_v31 = vld [vmem:[%s1908_s0 + $0xe0] sm:$0xff]   ;;  %v1413_v32 = vld [vmem:[%s1908_s0 + $0x68] sm:$0xff]   ;;  %v1415_v34 = vld [vmem:[%s1908_s0 + $0x70] sm:$0xff]  }
   0xc   :  { %1302 = vmatprep.subr.bf16.mxu0 %v1385_v6  ;;  %1373 = vmatprep.subr.bf16.mxu1 %v1385_v6  ;;  %v1414_v33 = vld [vmem:[%s1908_s0 + $0xe8] sm:$0xff]   ;;  %v1416_v35 = vld [vmem:[%s1908_s0 + $0xf0] sm:$0xff]   ;;  %v1417_v36 = vld [vmem:[%s1908_s0 + $0x78] sm:$0xff]  }
   0xd   :  { %v1418_v37 = vld [vmem:[%s1908_s0 + $0xf8] sm:$0xff]   ;;  %v1585_v38 = vld [vmem:[%s1909_s2] ss:$0 sm:$0xff] }
   0xf   :  { %1303 = vmatpush3.bf16.msra.mxu0 %v1385_v6  ;;  %1378 = vmatpush3.bf16.msra.mxu1 %v1385_v6 }
  0x10   :  { %1304 = vmatprep.subr.bf16.mxu0 %v1386_v7  ;;  %1374 = vmatprep.subr.bf16.mxu1 %v1386_v7 }
  0x13   :  { %1305 = vmatpush3.bf16.msra.mxu0 %v1386_v7  ;;  %1379 = vmatpush3.bf16.msra.mxu1 %v1386_v7 }
  0x16   :  { %1307 = vmatmul.mubr.msk.bf16.vlgmr.msra.gmra.mxu0 %vm282_vm1, %v1389_v8  ;;  %1339 = vmatmul.mubr.msk.bf16.vlgmr.msra.gmra.mxu1 %vm282_vm1, %v1390_v9 }
  0x17   :  { %1310 = vmatprep.mubr.msk.bf16.mxu0 %vm282_vm1, %v1391_v10  ;;  %1342 = vmatprep.mubr.msk.bf16.mxu1 %vm282_vm1, %v1392_v11 }
  0x1e   :  { %1311 = vmatmul.mubr.msk.bf16.gmra.mxu0 %vm282_vm1, %v1393_v12  ;;  %1343 = vmatmul.mubr.msk.bf16.gmra.mxu1 %vm282_vm1, %v1394_v13 }
  0x1f   :  { %1314 = vmatprep.mubr.msk.bf16.mxu0 %vm282_vm1, %v1395_v14  ;;  %1346 = vmatprep.mubr.msk.bf16.mxu1 %vm282_vm1, %v1396_v15 }
  0x26   :  { %1315 = vmatmul.mubr.msk.bf16.gmra.mxu0 %vm282_vm1, %v1397_v16  ;;  %1347 = vmatmul.mubr.msk.bf16.gmra.mxu1 %vm282_vm1, %v1398_v17 }
  0x27   :  { %1318 = vmatprep.mubr.msk.bf16.mxu0 %vm282_vm1, %v1399_v18  ;;  %1350 = vmatprep.mubr.msk.bf16.mxu1 %vm282_vm1, %v1400_v19 }
  0x2e   :  { %1319 = vmatmul.mubr.msk.bf16.gmra.mxu0 %vm282_vm1, %v1401_v20  ;;  %1351 = vmatmul.mubr.msk.bf16.gmra.mxu1 %vm282_vm1, %v1402_v21 }
  0x2f   :  { %1322 = vmatprep.mubr.msk.bf16.mxu0 %vm282_vm1, %v1403_v22  ;;  %1354 = vmatprep.mubr.msk.bf16.mxu1 %vm282_vm1, %v1404_v23 }
  0x36   :  { %1323 = vmatmul.mubr.msk.bf16.gmra.mxu0 %vm282_vm1, %v1405_v24  ;;  %1355 = vmatmul.mubr.msk.bf16.gmra.mxu1 %vm282_vm1, %v1406_v25 }
  0x37   :  { %1326 = vmatprep.mubr.msk.bf16.mxu0 %vm282_vm1, %v1407_v26  ;;  %1358 = vmatprep.mubr.msk.bf16.mxu1 %vm282_vm1, %v1408_v27 }
  0x3e   :  { %1327 = vmatmul.mubr.msk.bf16.gmra.mxu0 %vm282_vm1, %v1409_v28  ;;  %1359 = vmatmul.mubr.msk.bf16.gmra.mxu1 %vm282_vm1, %v1410_v29 }
  0x3f   :  { %1330 = vmatprep.mubr.msk.bf16.mxu0 %vm282_vm1, %v1411_v30  ;;  %1362 = vmatprep.mubr.msk.bf16.mxu1 %vm282_vm1, %v1412_v31 }
  0x46   :  { %1331 = vmatmul.mubr.msk.bf16.gmra.mxu0 %vm282_vm1, %v1413_v32  ;;  %1363 = vmatmul.mubr.msk.bf16.gmra.mxu1 %vm282_vm1, %v1414_v33 }
  0x47   :  { %1334 = vmatprep.mubr.msk.bf16.mxu0 %vm282_vm1, %v1415_v34  ;;  %1366 = vmatprep.mubr.msk.bf16.mxu1 %vm282_vm1, %v1416_v35 }
  0x4e   :  { %1335 = vmatmul.mubr.msk.bf16.gmra.mxu0 %vm282_vm1, %v1417_v36  ;;  %1367 = vmatmul.mubr.msk.bf16.gmra.mxu1 %vm282_vm1, %v1418_v37 }
  0xd6   :  { %v1308_v39 = vpop.f32.mrf.mxu0  ;;  %v1340_v40 = vpop.f32.mrf.mxu1 }
  0xd7   :  { %v426_v41 = vadd.f32 %v1308_v39, %v1585_v38  ;;  %v554_v42 = vadd.f32 %v1340_v40, %v1585_v38 }
  0xd8   :  { %v417_v43 = vpop.f32.mrf.mxu0  ;;  %v545_v44 = vpop.f32.mrf.mxu1 }
  0xd9   :  { %v674_v45 = vmax.f32 %v426_v41, 0.0  ;;  %v706_v46 = vmax.f32 %v554_v42, 0.0  ;;  %v418_v47 = vadd.f32 %v1585_v38, %v417_v43  ;;  %v546_v48 = vadd.f32 %v1585_v38, %v545_v44 }
  0xda   :  { %v1309_v49 = vpop.f32.mrf.mxu0  ;;  %v1341_v50 = vpop.f32.mrf.mxu1 }
  0xdb   :  { %v1197_v51 = vpack.c.bf16 %v674_v45, %v674_v45  ;;  %v1229_v52 = vpack.c.bf16 %v706_v46, %v706_v46  ;;  %v672_v53 = vmax.f32 %v418_v47, 0.0  ;;  %v704_v54 = vmax.f32 %v546_v48, 0.0 }
  0xdc   :  { %v429_v55 = vadd.f32 %v1309_v49, %v1585_v38  ;;  %v557_v56 = vadd.f32 %v1341_v50, %v1585_v38  ;;  %v420_v57 = vpop.f32.mrf.mxu0  ;;  %v548_v58 = vpop.f32.mrf.mxu1 }
  0xdd   :  { %995 = vst.msk [vmem:[%s1910_s3 + $0x8] sm:$0xf] %vm992_vm2, %v1197_v51  ;;  %1027 = vst.msk [vmem:[%s1910_s3 + $0x88] sm:$0xf] %vm992_vm2, %v1229_v52  ;;  %v1195_v59 = vpack.c.bf16 %v672_v53, %v672_v53  ;;  %v1227_v60 = vpack.c.bf16 %v704_v54, %v704_v54  ;;  %v421_v61 = vadd.f32 %v1585_v38, %v420_v57 }
  0xde   :  { %v549_v62 = vadd.f32 %v1585_v38, %v548_v58  ;;  %v675_v63 = vmax.f32 %v429_v55, 0.0  ;;  %v707_v0 = vmax.f32 %v557_v56, 0.0  ;;  %v1312_v1 = vpop.f32.mrf.mxu0  ;;  %v1344_v2 = vpop.f32.mrf.mxu1 }
  0xdf   :  { %993 = vst.msk [vmem:[%s1910_s3] sm:$0xf] %vm992_vm2, %v1195_v59  ;;  %1025 = vst.msk [vmem:[%s1910_s3 + $0x80] sm:$0xf] %vm992_vm2, %v1227_v60  ;;  %v673_v3 = vmax.f32 %v421_v61, 0.0  ;;  %v442_v5 = vadd.f32 %v1312_v1, %v1585_v38  ;;  %v570_v6 = vadd.f32 %v1344_v2, %v1585_v38 }
  0xe0   :  { %v705_v4 = vmax.f32 %v549_v62, 0.0  ;;  %v1198_v7 = vpack.c.bf16 %v675_v63, %v675_v63  ;;  %v1230_v8 = vpack.c.bf16 %v707_v0, %v707_v0  ;;  %v433_v9 = vpop.f32.mrf.mxu0  ;;  %v561_v10 = vpop.f32.mrf.mxu1 }
  0xe1   :  { %v1196_v11 = vpack.c.bf16 %v673_v3, %v673_v3  ;;  %v678_v13 = vmax.f32 %v442_v5, 0.0  ;;  %v710_v14 = vmax.f32 %v570_v6, 0.0  ;;  %v434_v15 = vadd.f32 %v1585_v38, %v433_v9 }
  0xe2   :  { %v1228_v12 = vpack.c.bf16 %v705_v4, %v705_v4  ;;  %996 = vst.msk [vmem:[%s1910_s3 + $0xc] sm:$0xf] %vm992_vm2, %v1198_v7  ;;  %1028 = vst.msk [vmem:[%s1910_s3 + $0x8c] sm:$0xf] %vm992_vm2, %v1230_v8  ;;  %v562_v16 = vadd.f32 %v1585_v38, %v561_v10  ;;  %v1313_v17 = vpop.f32.mrf.mxu0  ;;  %v1345_v18 = vpop.f32.mrf.mxu1 }
  0xe3   :  { %994 = vst.msk [vmem:[%s1910_s3 + $0x4] sm:$0xf] %vm992_vm2, %v1196_v11  ;;  %v1201_v19 = vpack.c.bf16 %v678_v13, %v678_v13  ;;  %v1233_v20 = vpack.c.bf16 %v710_v14, %v710_v14  ;;  %v445_v21 = vadd.f32 %v1313_v17, %v1585_v38  ;;  %v573_v22 = vadd.f32 %v1345_v18, %v1585_v38 }
  0xe4   :  { %1026 = vst.msk [vmem:[%s1910_s3 + $0x84] sm:$0xf] %vm992_vm2, %v1228_v12  ;;  %v676_v23 = vmax.f32 %v434_v15, 0.0  ;;  %v708_v24 = vmax.f32 %v562_v16, 0.0  ;;  %v436_v25 = vpop.f32.mrf.mxu0  ;;  %v564_v26 = vpop.f32.mrf.mxu1 }
  0xe5   :  { %999 = vst.msk [vmem:[%s1910_s3 + $0x18] sm:$0xf] %vm992_vm2, %v1201_v19  ;;  %1031 = vst.msk [vmem:[%s1910_s3 + $0x98] sm:$0xf] %vm992_vm2, %v1233_v20  ;;  %v679_v27 = vmax.f32 %v445_v21, 0.0  ;;  %v711_v28 = vmax.f32 %v573_v22, 0.0  ;;  %v437_v29 = vadd.f32 %v1585_v38, %v436_v25  ;;  %v565_v30 = vadd.f32 %v1585_v38, %v564_v26 }
  0xe6   :  { %v1199_v31 = vpack.c.bf16 %v676_v23, %v676_v23  ;;  %v1231_v32 = vpack.c.bf16 %v708_v24, %v708_v24  ;;  %v1316_v33 = vpop.f32.mrf.mxu0  ;;  %v1348_v34 = vpop.f32.mrf.mxu1 }
  0xe7   :  { %v1202_v35 = vpack.c.bf16 %v679_v27, %v679_v27  ;;  %v1234_v36 = vpack.c.bf16 %v711_v28, %v711_v28  ;;  %v677_v37 = vmax.f32 %v437_v29, 0.0  ;;  %v709_v39 = vmax.f32 %v565_v30, 0.0 }
  0xe8   :  { %997 = vst.msk [vmem:[%s1910_s3 + $0x10] sm:$0xf] %vm992_vm2, %v1199_v31  ;;  %1029 = vst.msk [vmem:[%s1910_s3 + $0x90] sm:$0xf] %vm992_vm2, %v1231_v32  ;;  %v458_v40 = vadd.f32 %v1316_v33, %v1585_v38  ;;  %v586_v41 = vadd.f32 %v1348_v34, %v1585_v38  ;;  %v449_v42 = vpop.f32.mrf.mxu0  ;;  %v577_v43 = vpop.f32.mrf.mxu1 }
  0xe9   :  { %1000 = vst.msk [vmem:[%s1910_s3 + $0x1c] sm:$0xf] %vm992_vm2, %v1202_v35  ;;  %1032 = vst.msk [vmem:[%s1910_s3 + $0x9c] sm:$0xf] %vm992_vm2, %v1234_v36  ;;  %v1200_v44 = vpack.c.bf16 %v677_v37, %v677_v37  ;;  %v1232_v45 = vpack.c.bf16 %v709_v39, %v709_v39  ;;  %v450_v46 = vadd.f32 %v1585_v38, %v449_v42 }
  0xea   :  { %v578_v47 = vadd.f32 %v1585_v38, %v577_v43  ;;  %v682_v48 = vmax.f32 %v458_v40, 0.0  ;;  %v714_v49 = vmax.f32 %v586_v41, 0.0  ;;  %v1317_v50 = vpop.f32.mrf.mxu0  ;;  %v1349_v51 = vpop.f32.mrf.mxu1 }
  0xeb   :  { %998 = vst.msk [vmem:[%s1910_s3 + $0x14] sm:$0xf] %vm992_vm2, %v1200_v44  ;;  %1030 = vst.msk [vmem:[%s1910_s3 + $0x94] sm:$0xf] %vm992_vm2, %v1232_v45  ;;  %v680_v52 = vmax.f32 %v450_v46, 0.0  ;;  %v461_v54 = vadd.f32 %v1317_v50, %v1585_v38  ;;  %v589_v55 = vadd.f32 %v1349_v51, %v1585_v38 }
  0xec   :  { %v712_v53 = vmax.f32 %v578_v47, 0.0  ;;  %v1205_v56 = vpack.c.bf16 %v682_v48, %v682_v48  ;;  %v1237_v57 = vpack.c.bf16 %v714_v49, %v714_v49  ;;  %v452_v58 = vpop.f32.mrf.mxu0  ;;  %v580_v59 = vpop.f32.mrf.mxu1 }
  0xed   :  { %v1203_v60 = vpack.c.bf16 %v680_v52, %v680_v52  ;;  %v683_v62 = vmax.f32 %v461_v54, 0.0  ;;  %v715_v63 = vmax.f32 %v589_v55, 0.0  ;;  %v453_v0 = vadd.f32 %v1585_v38, %v452_v58 }
  0xee   :  { %v1235_v61 = vpack.c.bf16 %v712_v53, %v712_v53  ;;  %1003 = vst.msk [vmem:[%s1910_s3 + $0x28] sm:$0xf] %vm992_vm2, %v1205_v56  ;;  %1035 = vst.msk [vmem:[%s1910_s3 + $0xa8] sm:$0xf] %vm992_vm2, %v1237_v57  ;;  %v581_v1 = vadd.f32 %v1585_v38, %v580_v59  ;;  %v1320_v2 = vpop.f32.mrf.mxu0  ;;  %v1352_v3 = vpop.f32.mrf.mxu1 }
  0xef   :  { %1001 = vst.msk [vmem:[%s1910_s3 + $0x20] sm:$0xf] %vm992_vm2, %v1203_v60  ;;  %v1206_v4 = vpack.c.bf16 %v683_v62, %v683_v62  ;;  %v1238_v5 = vpack.c.bf16 %v715_v63, %v715_v63  ;;  %v474_v6 = vadd.f32 %v1320_v2, %v1585_v38  ;;  %v602_v7 = vadd.f32 %v1352_v3, %v1585_v38 }
  0xf0   :  { %1033 = vst.msk [vmem:[%s1910_s3 + $0xa0] sm:$0xf] %vm992_vm2, %v1235_v61  ;;  %v681_v8 = vmax.f32 %v453_v0, 0.0  ;;  %v713_v9 = vmax.f32 %v581_v1, 0.0  ;;  %v465_v10 = vpop.f32.mrf.mxu0  ;;  %v593_v11 = vpop.f32.mrf.mxu1 }
  0xf1   :  { %1004 = vst.msk [vmem:[%s1910_s3 + $0x2c] sm:$0xf] %vm992_vm2, %v1206_v4  ;;  %1036 = vst.msk [vmem:[%s1910_s3 + $0xac] sm:$0xf] %vm992_vm2, %v1238_v5  ;;  %v686_v12 = vmax.f32 %v474_v6, 0.0  ;;  %v718_v13 = vmax.f32 %v602_v7, 0.0  ;;  %v466_v14 = vadd.f32 %v1585_v38, %v465_v10  ;;  %v594_v15 = vadd.f32 %v1585_v38, %v593_v11 }
  0xf2   :  { %v1204_v16 = vpack.c.bf16 %v681_v8, %v681_v8  ;;  %v1236_v17 = vpack.c.bf16 %v713_v9, %v713_v9  ;;  %v1321_v18 = vpop.f32.mrf.mxu0  ;;  %v1353_v19 = vpop.f32.mrf.mxu1 }
  0xf3   :  { %v1209_v20 = vpack.c.bf16 %v686_v12, %v686_v12  ;;  %v1241_v21 = vpack.c.bf16 %v718_v13, %v718_v13  ;;  %v684_v22 = vmax.f32 %v466_v14, 0.0  ;;  %v716_v23 = vmax.f32 %v594_v15, 0.0 }
  0xf4   :  { %1002 = vst.msk [vmem:[%s1910_s3 + $0x24] sm:$0xf] %vm992_vm2, %v1204_v16  ;;  %1034 = vst.msk [vmem:[%s1910_s3 + $0xa4] sm:$0xf] %vm992_vm2, %v1236_v17  ;;  %v477_v24 = vadd.f32 %v1321_v18, %v1585_v38  ;;  %v605_v25 = vadd.f32 %v1353_v19, %v1585_v38  ;;  %v468_v26 = vpop.f32.mrf.mxu0  ;;  %v596_v27 = vpop.f32.mrf.mxu1 }
  0xf5   :  { %1007 = vst.msk [vmem:[%s1910_s3 + $0x38] sm:$0xf] %vm992_vm2, %v1209_v20  ;;  %1039 = vst.msk [vmem:[%s1910_s3 + $0xb8] sm:$0xf] %vm992_vm2, %v1241_v21  ;;  %v1207_v28 = vpack.c.bf16 %v684_v22, %v684_v22  ;;  %v1239_v29 = vpack.c.bf16 %v716_v23, %v716_v23  ;;  %v469_v30 = vadd.f32 %v1585_v38, %v468_v26 }
  0xf6   :  { %v597_v31 = vadd.f32 %v1585_v38, %v596_v27  ;;  %v687_v32 = vmax.f32 %v477_v24, 0.0  ;;  %v719_v33 = vmax.f32 %v605_v25, 0.0  ;;  %v1324_v34 = vpop.f32.mrf.mxu0  ;;  %v1356_v35 = vpop.f32.mrf.mxu1 }
  0xf7   :  { %1005 = vst.msk [vmem:[%s1910_s3 + $0x30] sm:$0xf] %vm992_vm2, %v1207_v28  ;;  %1037 = vst.msk [vmem:[%s1910_s3 + $0xb0] sm:$0xf] %vm992_vm2, %v1239_v29  ;;  %v685_v36 = vmax.f32 %v469_v30, 0.0  ;;  %v490_v39 = vadd.f32 %v1324_v34, %v1585_v38  ;;  %v618_v40 = vadd.f32 %v1356_v35, %v1585_v38 }
  0xf8   :  { %v717_v37 = vmax.f32 %v597_v31, 0.0  ;;  %v1210_v41 = vpack.c.bf16 %v687_v32, %v687_v32  ;;  %v1242_v42 = vpack.c.bf16 %v719_v33, %v719_v33  ;;  %v481_v43 = vpop.f32.mrf.mxu0  ;;  %v609_v44 = vpop.f32.mrf.mxu1 }
  0xf9   :  { %v1208_v45 = vpack.c.bf16 %v685_v36, %v685_v36  ;;  %v690_v47 = vmax.f32 %v490_v39, 0.0  ;;  %v722_v48 = vmax.f32 %v618_v40, 0.0  ;;  %v482_v49 = vadd.f32 %v1585_v38, %v481_v43 }
  0xfa   :  { %v1240_v46 = vpack.c.bf16 %v717_v37, %v717_v37  ;;  %1008 = vst.msk [vmem:[%s1910_s3 + $0x3c] sm:$0xf] %vm992_vm2, %v1210_v41  ;;  %1040 = vst.msk [vmem:[%s1910_s3 + $0xbc] sm:$0xf] %vm992_vm2, %v1242_v42  ;;  %v610_v50 = vadd.f32 %v1585_v38, %v609_v44  ;;  %v1325_v51 = vpop.f32.mrf.mxu0  ;;  %v1357_v52 = vpop.f32.mrf.mxu1 }
  0xfb   :  { %1006 = vst.msk [vmem:[%s1910_s3 + $0x34] sm:$0xf] %vm992_vm2, %v1208_v45  ;;  %v1213_v53 = vpack.c.bf16 %v690_v47, %v690_v47  ;;  %v1245_v54 = vpack.c.bf16 %v722_v48, %v722_v48  ;;  %v493_v55 = vadd.f32 %v1325_v51, %v1585_v38  ;;  %v621_v56 = vadd.f32 %v1357_v52, %v1585_v38 }
  0xfc   :  { %1038 = vst.msk [vmem:[%s1910_s3 + $0xb4] sm:$0xf] %vm992_vm2, %v1240_v46  ;;  %v688_v57 = vmax.f32 %v482_v49, 0.0  ;;  %v720_v58 = vmax.f32 %v610_v50, 0.0  ;;  %v484_v59 = vpop.f32.mrf.mxu0  ;;  %v612_v60 = vpop.f32.mrf.mxu1 }
  0xfd   :  { %1011 = vst.msk [vmem:[%s1910_s3 + $0x48] sm:$0xf] %vm992_vm2, %v1213_v53  ;;  %1043 = vst.msk [vmem:[%s1910_s3 + $0xc8] sm:$0xf] %vm992_vm2, %v1245_v54  ;;  %v691_v61 = vmax.f32 %v493_v55, 0.0  ;;  %v723_v62 = vmax.f32 %v621_v56, 0.0  ;;  %v485_v63 = vadd.f32 %v1585_v38, %v484_v59  ;;  %v613_v0 = vadd.f32 %v1585_v38, %v612_v60 }
  0xfe   :  { %v1211_v1 = vpack.c.bf16 %v688_v57, %v688_v57  ;;  %v1243_v2 = vpack.c.bf16 %v720_v58, %v720_v58  ;;  %v1328_v3 = vpop.f32.mrf.mxu0  ;;  %v1360_v4 = vpop.f32.mrf.mxu1 }
  0xff   :  { %v1214_v5 = vpack.c.bf16 %v691_v61, %v691_v61  ;;  %v1246_v6 = vpack.c.bf16 %v723_v62, %v723_v62  ;;  %v689_v7 = vmax.f32 %v485_v63, 0.0  ;;  %v721_v8 = vmax.f32 %v613_v0, 0.0 }
 0x100   :  { %1009 = vst.msk [vmem:[%s1910_s3 + $0x40] sm:$0xf] %vm992_vm2, %v1211_v1  ;;  %1041 = vst.msk [vmem:[%s1910_s3 + $0xc0] sm:$0xf] %vm992_vm2, %v1243_v2  ;;  %v506_v9 = vadd.f32 %v1328_v3, %v1585_v38  ;;  %v634_v10 = vadd.f32 %v1360_v4, %v1585_v38  ;;  %v497_v11 = vpop.f32.mrf.mxu0  ;;  %v625_v12 = vpop.f32.mrf.mxu1 }
 0x101   :  { %1012 = vst.msk [vmem:[%s1910_s3 + $0x4c] sm:$0xf] %vm992_vm2, %v1214_v5  ;;  %1044 = vst.msk [vmem:[%s1910_s3 + $0xcc] sm:$0xf] %vm992_vm2, %v1246_v6  ;;  %v1212_v13 = vpack.c.bf16 %v689_v7, %v689_v7  ;;  %v1244_v14 = vpack.c.bf16 %v721_v8, %v721_v8  ;;  %v498_v15 = vadd.f32 %v1585_v38, %v497_v11 }
 0x102   :  { %v626_v16 = vadd.f32 %v1585_v38, %v625_v12  ;;  %v694_v17 = vmax.f32 %v506_v9, 0.0  ;;  %v726_v18 = vmax.f32 %v634_v10, 0.0  ;;  %v1329_v19 = vpop.f32.mrf.mxu0  ;;  %v1361_v20 = vpop.f32.mrf.mxu1 }
 0x103   :  { %1010 = vst.msk [vmem:[%s1910_s3 + $0x44] sm:$0xf] %vm992_vm2, %v1212_v13  ;;  %1042 = vst.msk [vmem:[%s1910_s3 + $0xc4] sm:$0xf] %vm992_vm2, %v1244_v14  ;;  %v692_v21 = vmax.f32 %v498_v15, 0.0  ;;  %v509_v23 = vadd.f32 %v1329_v19, %v1585_v38  ;;  %v637_v24 = vadd.f32 %v1361_v20, %v1585_v38 }
 0x104   :  { %v724_v22 = vmax.f32 %v626_v16, 0.0  ;;  %v1217_v25 = vpack.c.bf16 %v694_v17, %v694_v17  ;;  %v1249_v26 = vpack.c.bf16 %v726_v18, %v726_v18  ;;  %v500_v27 = vpop.f32.mrf.mxu0  ;;  %v628_v28 = vpop.f32.mrf.mxu1 }
 0x105   :  { %v1215_v29 = vpack.c.bf16 %v692_v21, %v692_v21  ;;  %v695_v31 = vmax.f32 %v509_v23, 0.0  ;;  %v727_v32 = vmax.f32 %v637_v24, 0.0  ;;  %v501_v33 = vadd.f32 %v1585_v38, %v500_v27 }
 0x106   :  { %v1247_v30 = vpack.c.bf16 %v724_v22, %v724_v22  ;;  %1015 = vst.msk [vmem:[%s1910_s3 + $0x58] sm:$0xf] %vm992_vm2, %v1217_v25  ;;  %1047 = vst.msk [vmem:[%s1910_s3 + $0xd8] sm:$0xf] %vm992_vm2, %v1249_v26  ;;  %v629_v34 = vadd.f32 %v1585_v38, %v628_v28  ;;  %v1332_v35 = vpop.f32.mrf.mxu0  ;;  %v1364_v36 = vpop.f32.mrf.mxu1 }
 0x107   :  { %1013 = vst.msk [vmem:[%s1910_s3 + $0x50] sm:$0xf] %vm992_vm2, %v1215_v29  ;;  %v1218_v37 = vpack.c.bf16 %v695_v31, %v695_v31  ;;  %v1250_v39 = vpack.c.bf16 %v727_v32, %v727_v32  ;;  %v522_v40 = vadd.f32 %v1332_v35, %v1585_v38  ;;  %v650_v41 = vadd.f32 %v1364_v36, %v1585_v38 }
 0x108   :  { %1045 = vst.msk [vmem:[%s1910_s3 + $0xd0] sm:$0xf] %vm992_vm2, %v1247_v30  ;;  %v693_v42 = vmax.f32 %v501_v33, 0.0  ;;  %v725_v43 = vmax.f32 %v629_v34, 0.0  ;;  %v513_v44 = vpop.f32.mrf.mxu0  ;;  %v641_v45 = vpop.f32.mrf.mxu1 }
 0x109   :  { %1016 = vst.msk [vmem:[%s1910_s3 + $0x5c] sm:$0xf] %vm992_vm2, %v1218_v37  ;;  %1048 = vst.msk [vmem:[%s1910_s3 + $0xdc] sm:$0xf] %vm992_vm2, %v1250_v39  ;;  %v698_v46 = vmax.f32 %v522_v40, 0.0  ;;  %v730_v47 = vmax.f32 %v650_v41, 0.0  ;;  %v514_v48 = vadd.f32 %v1585_v38, %v513_v44  ;;  %v642_v49 = vadd.f32 %v1585_v38, %v641_v45 }
 0x10a   :  { %v1216_v50 = vpack.c.bf16 %v693_v42, %v693_v42  ;;  %v1248_v51 = vpack.c.bf16 %v725_v43, %v725_v43  ;;  %v1333_v52 = vpop.f32.mrf.mxu0  ;;  %v1365_v53 = vpop.f32.mrf.mxu1 }
 0x10b   :  { %v1221_v54 = vpack.c.bf16 %v698_v46, %v698_v46  ;;  %v1253_v55 = vpack.c.bf16 %v730_v47, %v730_v47  ;;  %v696_v56 = vmax.f32 %v514_v48, 0.0  ;;  %v728_v57 = vmax.f32 %v642_v49, 0.0 }
 0x10c   :  { %1014 = vst.msk [vmem:[%s1910_s3 + $0x54] sm:$0xf] %vm992_vm2, %v1216_v50  ;;  %1046 = vst.msk [vmem:[%s1910_s3 + $0xd4] sm:$0xf] %vm992_vm2, %v1248_v51  ;;  %v525_v58 = vadd.f32 %v1333_v52, %v1585_v38  ;;  %v653_v59 = vadd.f32 %v1365_v53, %v1585_v38  ;;  %v516_v60 = vpop.f32.mrf.mxu0  ;;  %v644_v61 = vpop.f32.mrf.mxu1 }
 0x10d   :  { %1019 = vst.msk [vmem:[%s1910_s3 + $0x68] sm:$0xf] %vm992_vm2, %v1221_v54  ;;  %1051 = vst.msk [vmem:[%s1910_s3 + $0xe8] sm:$0xf] %vm992_vm2, %v1253_v55  ;;  %v1219_v62 = vpack.c.bf16 %v696_v56, %v696_v56  ;;  %v1251_v63 = vpack.c.bf16 %v728_v57, %v728_v57  ;;  %v517_v0 = vadd.f32 %v1585_v38, %v516_v60 }
 0x10e   :  { %v645_v1 = vadd.f32 %v1585_v38, %v644_v61  ;;  %v699_v2 = vmax.f32 %v525_v58, 0.0  ;;  %v731_v3 = vmax.f32 %v653_v59, 0.0  ;;  %v1336_v4 = vpop.f32.mrf.mxu0  ;;  %v1368_v5 = vpop.f32.mrf.mxu1 }
 0x10f   :  { %1017 = vst.msk [vmem:[%s1910_s3 + $0x60] sm:$0xf] %vm992_vm2, %v1219_v62  ;;  %1049 = vst.msk [vmem:[%s1910_s3 + $0xe0] sm:$0xf] %vm992_vm2, %v1251_v63  ;;  %v697_v6 = vmax.f32 %v517_v0, 0.0  ;;  %v538_v8 = vadd.f32 %v1336_v4, %v1585_v38  ;;  %v666_v9 = vadd.f32 %v1368_v5, %v1585_v38 }
 0x110   :  { %v729_v7 = vmax.f32 %v645_v1, 0.0  ;;  %v1222_v10 = vpack.c.bf16 %v699_v2, %v699_v2  ;;  %v1254_v11 = vpack.c.bf16 %v731_v3, %v731_v3  ;;  %v529_v12 = vpop.f32.mrf.mxu0  ;;  %v657_v13 = vpop.f32.mrf.mxu1 }
 0x111   :  { %v1220_v14 = vpack.c.bf16 %v697_v6, %v697_v6  ;;  %v702_v16 = vmax.f32 %v538_v8, 0.0  ;;  %v734_v17 = vmax.f32 %v666_v9, 0.0  ;;  %v530_v18 = vadd.f32 %v1585_v38, %v529_v12 }
 0x112   :  { %v1252_v15 = vpack.c.bf16 %v729_v7, %v729_v7  ;;  %1020 = vst.msk [vmem:[%s1910_s3 + $0x6c] sm:$0xf] %vm992_vm2, %v1222_v10  ;;  %1052 = vst.msk [vmem:[%s1910_s3 + $0xec] sm:$0xf] %vm992_vm2, %v1254_v11  ;;  %v658_v19 = vadd.f32 %v1585_v38, %v657_v13  ;;  %v1337_v20 = vpop.f32.mrf.mxu0  ;;  %v1369_v21 = vpop.f32.mrf.mxu1 }
 0x113   :  { %1018 = vst.msk [vmem:[%s1910_s3 + $0x64] sm:$0xf] %vm992_vm2, %v1220_v14  ;;  %v1225_v22 = vpack.c.bf16 %v702_v16, %v702_v16  ;;  %v1257_v23 = vpack.c.bf16 %v734_v17, %v734_v17  ;;  %v541_v24 = vadd.f32 %v1337_v20, %v1585_v38  ;;  %v669_v25 = vadd.f32 %v1369_v21, %v1585_v38 }
 0x114   :  { %1050 = vst.msk [vmem:[%s1910_s3 + $0xe4] sm:$0xf] %vm992_vm2, %v1252_v15  ;;  %v700_v26 = vmax.f32 %v530_v18, 0.0  ;;  %v732_v27 = vmax.f32 %v658_v19, 0.0  ;;  %v532_v28 = vpop.f32.mrf.mxu0  ;;  %v660_v29 = vpop.f32.mrf.mxu1 }
 0x115   :  { %1023 = vst.msk [vmem:[%s1910_s3 + $0x78] sm:$0xf] %vm992_vm2, %v1225_v22  ;;  %1055 = vst.msk [vmem:[%s1910_s3 + $0xf8] sm:$0xf] %vm992_vm2, %v1257_v23  ;;  %v703_v30 = vmax.f32 %v541_v24, 0.0  ;;  %v735_v31 = vmax.f32 %v669_v25, 0.0  ;;  %v533_v32 = vadd.f32 %v1585_v38, %v532_v28  ;;  %v661_v33 = vadd.f32 %v1585_v38, %v660_v29 }
 0x116   :  { %v1223_v34 = vpack.c.bf16 %v700_v26, %v700_v26  ;;  %v1255_v35 = vpack.c.bf16 %v732_v27, %v732_v27 }
 0x117   :  { %v1226_v36 = vpack.c.bf16 %v703_v30, %v703_v30  ;;  %v1258_v37 = vpack.c.bf16 %v735_v31, %v735_v31  ;;  %v701_v39 = vmax.f32 %v533_v32, 0.0  ;;  %v733_v40 = vmax.f32 %v661_v33, 0.0 }
 0x118   :  { %1021 = vst.msk [vmem:[%s1910_s3 + $0x70] sm:$0xf] %vm992_vm2, %v1223_v34  ;;  %1053 = vst.msk [vmem:[%s1910_s3 + $0xf0] sm:$0xf] %vm992_vm2, %v1255_v35 }
 0x119   :  { %1024 = vst.msk [vmem:[%s1910_s3 + $0x7c] sm:$0xf] %vm992_vm2, %v1226_v36  ;;  %1056 = vst.msk [vmem:[%s1910_s3 + $0xfc] sm:$0xf] %vm992_vm2, %v1258_v37  ;;  %v1224_v38 = vpack.c.bf16 %v701_v39, %v701_v39  ;;  %v1256_v41 = vpack.c.bf16 %v733_v40, %v733_v40 }
 0x11b   :  { %1022 = vst.msk [vmem:[%s1910_s3 + $0x74] sm:$0xf] %vm992_vm2, %v1224_v38  ;;  %1054 = vst.msk [vmem:[%s1910_s3 + $0xf4] sm:$0xf] %vm992_vm2, %v1256_v41 }

// kernel: ego_path_network.3
= control target key start
LH: loop header
LB: loop body
LE: loop exit
PB: predicated region body
PF: predicated region fallthrough
CT: control target
= control target key end

     0   :  { %vm1318_vm0 = vcmask 1044480   ;;  %vm1319_vm1 = vcmask 1045504   ;;  %v5221_v1 = vmov 65535   ;;  %vm933_vm2 = vcmask 220160   ;;  %s7055_s1 = inlined_call_operand.vmem [shape: bf16[27,8], index: 1, kind: input, shape index: {}]   ;;  %s7056_s0 = inlined_call_operand.vmem [shape: bf16[2048,27], index: 0, kind: input, shape index: {}]   ;;  %s7057_s2 = inlined_call_operand.vmem [shape: f32[1,8], index: 2, kind: input, shape index: {}]   ;;  %s7058_s3 = inlined_call_operand.vmem [shape: bf16[2048,8], index: 3, kind: output, shape index: {}]  }
   0x1   :  { %v5089_v0 = vld [vmem:[%s7055_s1 + $0x8] sm:$0x3f]   ;;  %v1320_v2 = vsel %vm1318_vm0, 4294967295, %v5221_v1  ;;  %v5091_v4 = vld [vmem:[%s7056_s0] sm:$0xff]   ;;  %v5095_v10 = vld [vmem:[%s7056_s0 + $0x10] sm:$0xff]   ;;  %vm3662_vm3 = vcmask 60416  }
   0x2   :  { %v1321_v3 = vsel %vm1319_vm1, %v1320_v2, 0  ;;  %v5090_v6 = vld [vmem:[%s7055_s1] sm:$0xff]   ;;  %4828 = vmatprep.mubr.msk.bf16.mxu0 %vm933_vm2, %v5091_v4  ;;  %v5093_v8 = vld [vmem:[%s7056_s0 + $0x8] sm:$0xff]   ;;  %v5096_v11 = vld [vmem:[%s7056_s0 + $0x210] sm:$0xff]  }
   0x3   :  { %v1323_v5 = vand.u32 %v5089_v0, %v1321_v3  ;;  %v5092_v7 = vld [vmem:[%s7056_s0 + $0x200] sm:$0xff]   ;;  %v5094_v9 = vld [vmem:[%s7056_s0 + $0x208] sm:$0xff]   ;;  %v5097_v12 = vld [vmem:[%s7056_s0 + $0x18] sm:$0xff]  }
   0x4   :  { %4956 = vmatprep.mubr.msk.bf16.mxu1 %vm933_vm2, %v5092_v7  ;;  %v5098_v13 = vld [vmem:[%s7056_s0 + $0x218] sm:$0xff]   ;;  %v5099_v14 = vld [vmem:[%s7056_s0 + $0x20] sm:$0xff]   ;;  %v5101_v16 = vld [vmem:[%s7056_s0 + $0x28] sm:$0xff]  }
   0x5   :  { %4824 = vmatprep.subr.bf16.mxu0 %v1323_v5  ;;  %5084 = vmatprep.subr.bf16.mxu1 %v1323_v5  ;;  %v5100_v15 = vld [vmem:[%s7056_s0 + $0x220] sm:$0xff]   ;;  %v5102_v17 = vld [vmem:[%s7056_s0 + $0x228] sm:$0xff]   ;;  %v5103_v18 = vld [vmem:[%s7056_s0 + $0x30] sm:$0xff]  }
   0x6   :  { %4825 = vmatpush3.bf16.msra.mxu0 %v1323_v5  ;;  %5086 = vmatpush3.bf16.msra.mxu1 %v1323_v5  ;;  %v5104_v19 = vld [vmem:[%s7056_s0 + $0x230] sm:$0xff]   ;;  %v5105_v20 = vld [vmem:[%s7056_s0 + $0x38] sm:$0xff]   ;;  %v5107_v22 = vld [vmem:[%s7056_s0 + $0x40] sm:$0xff]  }
   0x7   :  { %4826 = vmatprep.subr.bf16.mxu0 %v5090_v6  ;;  %5085 = vmatprep.subr.bf16.mxu1 %v5090_v6  ;;  %v5106_v21 = vld [vmem:[%s7056_s0 + $0x238] sm:$0xff]   ;;  %v5108_v23 = vld [vmem:[%s7056_s0 + $0x240] sm:$0xff]   ;;  %v5109_v24 = vld [vmem:[%s7056_s0 + $0x48] sm:$0xff]  }
   0x8   :  { %v5110_v25 = vld [vmem:[%s7056_s0 + $0x248] sm:$0xff]   ;;  %v5111_v26 = vld [vmem:[%s7056_s0 + $0x50] sm:$0xff]   ;;  %v5113_v28 = vld [vmem:[%s7056_s0 + $0x58] sm:$0xff]  }
   0x9   :  { %v5112_v27 = vld [vmem:[%s7056_s0 + $0x250] sm:$0xff]   ;;  %v5114_v29 = vld [vmem:[%s7056_s0 + $0x258] sm:$0xff]   ;;  %v5115_v30 = vld [vmem:[%s7056_s0 + $0x60] sm:$0xff]  }
   0xa   :  { %4827 = vmatpush3.bf16.msra.mxu0 %v5090_v6  ;;  %5087 = vmatpush3.bf16.msra.mxu1 %v5090_v6  ;;  %v5116_v31 = vld [vmem:[%s7056_s0 + $0x260] sm:$0xff]   ;;  %v5117_v32 = vld [vmem:[%s7056_s0 + $0x68] sm:$0xff]   ;;  %v5119_v34 = vld [vmem:[%s7056_s0 + $0x70] sm:$0xff]  }
   0xb   :  { %v5118_v33 = vld [vmem:[%s7056_s0 + $0x268] sm:$0xff]   ;;  %v5120_v35 = vld [vmem:[%s7056_s0 + $0x270] sm:$0xff]   ;;  %v5121_v36 = vld [vmem:[%s7056_s0 + $0x78] sm:$0xff]  }
   0xc   :  { %v5122_v37 = vld [vmem:[%s7056_s0 + $0x278] sm:$0xff]   ;;  %v5123_v38 = vld [vmem:[%s7056_s0 + $0x80] sm:$0xff]   ;;  %v5125_v40 = vld [vmem:[%s7056_s0 + $0x88] sm:$0xff]  }
   0xd   :  { %4829 = vmatmul.mubr.msk.bf16.vlgmr.msra.gmra.mxu0 %vm933_vm2, %v5093_v8  ;;  %4957 = vmatmul.mubr.msk.bf16.vlgmr.msra.gmra.mxu1 %vm933_vm2, %v5094_v9  ;;  %v5124_v39 = vld [vmem:[%s7056_s0 + $0x280] sm:$0xff]   ;;  %v5126_v41 = vld [vmem:[%s7056_s0 + $0x288] sm:$0xff]   ;;  %v5127_v42 = vld [vmem:[%s7056_s0 + $0x90] sm:$0xff]  }
   0xe   :  { %4832 = vmatprep.mubr.msk.bf16.mxu0 %vm933_vm2, %v5095_v10  ;;  %4960 = vmatprep.mubr.msk.bf16.mxu1 %vm933_vm2, %v5096_v11  ;;  %v5128_v43 = vld [vmem:[%s7056_s0 + $0x290] sm:$0xff]   ;;  %v5129_v44 = vld [vmem:[%s7056_s0 + $0x98] sm:$0xff]   ;;  %v5131_v46 = vld [vmem:[%s7056_s0 + $0xa0] sm:$0xff]  }
   0xf   :  { %v5130_v45 = vld [vmem:[%s7056_s0 + $0x298] sm:$0xff]   ;;  %v5132_v47 = vld [vmem:[%s7056_s0 + $0x2a0] sm:$0xff]   ;;  %v5133_v48 = vld [vmem:[%s7056_s0 + $0xa8] sm:$0xff]  }
  0x10   :  { %v5134_v49 = vld [vmem:[%s7056_s0 + $0x2a8] sm:$0xff]   ;;  %v5135_v50 = vld [vmem:[%s7056_s0 + $0xb0] sm:$0xff]   ;;  %v5137_v52 = vld [vmem:[%s7056_s0 + $0xb8] sm:$0xff]  }
  0x11   :  { %v5136_v51 = vld [vmem:[%s7056_s0 + $0x2b0] sm:$0xff]   ;;  %v5138_v53 = vld [vmem:[%s7056_s0 + $0x2b8] sm:$0xff]   ;;  %v5139_v54 = vld [vmem:[%s7056_s0 + $0xc0] sm:$0xff]  }
  0x12   :  { %v5140_v55 = vld [vmem:[%s7056_s0 + $0x2c0] sm:$0xff]   ;;  %v5141_v56 = vld [vmem:[%s7056_s0 + $0xc8] sm:$0xff]   ;;  %v5143_v58 = vld [vmem:[%s7056_s0 + $0xd0] sm:$0xff]  }
  0x13   :  { %v5142_v57 = vld [vmem:[%s7056_s0 + $0x2c8] sm:$0xff]   ;;  %v5144_v59 = vld [vmem:[%s7056_s0 + $0x2d0] sm:$0xff]   ;;  %v5145_v60 = vld [vmem:[%s7056_s0 + $0xd8] sm:$0xff]  }
  0x14   :  { %v5146_v61 = vld [vmem:[%s7056_s0 + $0x2d8] sm:$0xff]   ;;  %v5147_v62 = vld [vmem:[%s7056_s0 + $0xe0] sm:$0xff]   ;;  %v5149_v0 = vld [vmem:[%s7056_s0 + $0xe8] sm:$0xff]  }
  0x15   :  { %4833 = vmatmul.mubr.msk.bf16.gmra.mxu0 %vm933_vm2, %v5097_v12  ;;  %4961 = vmatmul.mubr.msk.bf16.gmra.mxu1 %vm933_vm2, %v5098_v13  ;;  %v5148_v63 = vld [vmem:[%s7056_s0 + $0x2e0] sm:$0xff]   ;;  %v5150_v1 = vld [vmem:[%s7056_s0 + $0x2e8] sm:$0xff]   ;;  %v5151_v2 = vld [vmem:[%s7056_s0 + $0xf0] sm:$0xff]  }
  0x16   :  { %4836 = vmatprep.mubr.msk.bf16.mxu0 %vm933_vm2, %v5099_v14  ;;  %4964 = vmatprep.mubr.msk.bf16.mxu1 %vm933_vm2, %v5100_v15  ;;  %v5152_v3 = vld [vmem:[%s7056_s0 + $0x2f0] sm:$0xff]   ;;  %v5153_v4 = vld [vmem:[%s7056_s0 + $0xf8] sm:$0xff]   ;;  %v5155_v6 = vld [vmem:[%s7056_s0 + $0x100] sm:$0xff]  }
  0x17   :  { %v5154_v5 = vld [vmem:[%s7056_s0 + $0x2f8] sm:$0xff]   ;;  %v5156_v7 = vld [vmem:[%s7056_s0 + $0x300] sm:$0xff]   ;;  %v5157_v8 = vld [vmem:[%s7056_s0 + $0x108] sm:$0xff]  }
  0x18   :  { %v5158_v9 = vld [vmem:[%s7056_s0 + $0x308] sm:$0xff]   ;;  %v5159_v10 = vld [vmem:[%s7056_s0 + $0x110] sm:$0xff]   ;;  %v5161_v12 = vld [vmem:[%s7056_s0 + $0x118] sm:$0xff]  }
  0x19   :  { %v5160_v11 = vld [vmem:[%s7056_s0 + $0x310] sm:$0xff]   ;;  %v5162_v13 = vld [vmem:[%s7056_s0 + $0x318] sm:$0xff]   ;;  %v5163_v14 = vld [vmem:[%s7056_s0 + $0x120] sm:$0xff]  }
  0x1a   :  { %v5164_v15 = vld [vmem:[%s7056_s0 + $0x320] sm:$0xff]  }
  0x1d   :  { %4837 = vmatmul.mubr.msk.bf16.gmra.mxu0 %vm933_vm2, %v5101_v16  ;;  %4965 = vmatmul.mubr.msk.bf16.gmra.mxu1 %vm933_vm2, %v5102_v17  ;;  %v5165_v16 = vld [vmem:[%s7056_s0 + $0x128] sm:$0xff]  }
  0x1e   :  { %4840 = vmatprep.mubr.msk.bf16.mxu0 %vm933_vm2, %v5103_v18  ;;  %4968 = vmatprep.mubr.msk.bf16.mxu1 %vm933_vm2, %v5104_v19  ;;  %v5166_v17 = vld [vmem:[%s7056_s0 + $0x328] sm:$0xff]   ;;  %v5167_v18 = vld [vmem:[%s7056_s0 + $0x130] sm:$0xff]  }
  0x1f   :  { %v5168_v19 = vld [vmem:[%s7056_s0 + $0x330] sm:$0xff]  }
  0x25   :  { %4841 = vmatmul.mubr.msk.bf16.gmra.mxu0 %vm933_vm2, %v5105_v20  ;;  %4969 = vmatmul.mubr.msk.bf16.gmra.mxu1 %vm933_vm2, %v5106_v21  ;;  %v5169_v20 = vld [vmem:[%s7056_s0 + $0x138] sm:$0xff]  }
  0x26   :  { %4844 = vmatprep.mubr.msk.bf16.mxu0 %vm933_vm2, %v5107_v22  ;;  %4972 = vmatprep.mubr.msk.bf16.mxu1 %vm933_vm2, %v5108_v23  ;;  %v5170_v21 = vld [vmem:[%s7056_s0 + $0x338] sm:$0xff]   ;;  %v5171_v22 = vld [vmem:[%s7056_s0 + $0x140] sm:$0xff]  }
  0x27   :  { %v5172_v23 = vld [vmem:[%s7056_s0 + $0x340] sm:$0xff]  }
  0x2d   :  { %4845 = vmatmul.mubr.msk.bf16.gmra.mxu0 %vm933_vm2, %v5109_v24  ;;  %4973 = vmatmul.mubr.msk.bf16.gmra.mxu1 %vm933_vm2, %v5110_v25  ;;  %v5173_v24 = vld [vmem:[%s7056_s0 + $0x148] sm:$0xff]  }
  0x2e   :  { %4848 = vmatprep.mubr.msk.bf16.mxu0 %vm933_vm2, %v5111_v26  ;;  %4976 = vmatprep.mubr.msk.bf16.mxu1 %vm933_vm2, %v5112_v27  ;;  %v5174_v25 = vld [vmem:[%s7056_s0 + $0x348] sm:$0xff]   ;;  %v5175_v26 = vld [vmem:[%s7056_s0 + $0x150] sm:$0xff]  }
  0x2f   :  { %v5176_v27 = vld [vmem:[%s7056_s0 + $0x350] sm:$0xff]  }
  0x35   :  { %4849 = vmatmul.mubr.msk.bf16.gmra.mxu0 %vm933_vm2, %v5113_v28  ;;  %4977 = vmatmul.mubr.msk.bf16.gmra.mxu1 %vm933_vm2, %v5114_v29  ;;  %v5177_v28 = vld [vmem:[%s7056_s0 + $0x158] sm:$0xff]  }
  0x36   :  { %4852 = vmatprep.mubr.msk.bf16.mxu0 %vm933_vm2, %v5115_v30  ;;  %4980 = vmatprep.mubr.msk.bf16.mxu1 %vm933_vm2, %v5116_v31  ;;  %v5178_v29 = vld [vmem:[%s7056_s0 + $0x358] sm:$0xff]   ;;  %v5179_v30 = vld [vmem:[%s7056_s0 + $0x160] sm:$0xff]  }
  0x37   :  { %v5180_v31 = vld [vmem:[%s7056_s0 + $0x360] sm:$0xff]  }
  0x3d   :  { %4853 = vmatmul.mubr.msk.bf16.gmra.mxu0 %vm933_vm2, %v5117_v32  ;;  %4981 = vmatmul.mubr.msk.bf16.gmra.mxu1 %vm933_vm2, %v5118_v33  ;;  %v5181_v32 = vld [vmem:[%s7056_s0 + $0x168] sm:$0xff]  }
  0x3e   :  { %4856 = vmatprep.mubr.msk.bf16.mxu0 %vm933_vm2, %v5119_v34  ;;  %4984 = vmatprep.mubr.msk.bf16.mxu1 %vm933_vm2, %v5120_v35  ;;  %v5182_v33 = vld [vmem:[%s7056_s0 + $0x368] sm:$0xff]   ;;  %v5183_v34 = vld [vmem:[%s7056_s0 + $0x170] sm:$0xff]  }
  0x3f   :  { %v5184_v35 = vld [vmem:[%s7056_s0 + $0x370] sm:$0xff]  }
  0x45   :  { %4857 = vmatmul.mubr.msk.bf16.gmra.mxu0 %vm933_vm2, %v5121_v36  ;;  %4985 = vmatmul.mubr.msk.bf16.gmra.mxu1 %vm933_vm2, %v5122_v37  ;;  %v5185_v36 = vld [vmem:[%s7056_s0 + $0x178] sm:$0xff]  }
  0x46   :  { %4860 = vmatprep.mubr.msk.bf16.mxu0 %vm933_vm2, %v5123_v38  ;;  %4988 = vmatprep.mubr.msk.bf16.mxu1 %vm933_vm2, %v5124_v39  ;;  %v5186_v37 = vld [vmem:[%s7056_s0 + $0x378] sm:$0xff]   ;;  %v5187_v38 = vld [vmem:[%s7056_s0 + $0x180] sm:$0xff]  }
  0x47   :  { %v5188_v39 = vld [vmem:[%s7056_s0 + $0x380] sm:$0xff]  }
  0x4d   :  { %4861 = vmatmul.mubr.msk.bf16.gmra.mxu0 %vm933_vm2, %v5125_v40  ;;  %4989 = vmatmul.mubr.msk.bf16.gmra.mxu1 %vm933_vm2, %v5126_v41  ;;  %v5189_v40 = vld [vmem:[%s7056_s0 + $0x188] sm:$0xff]  }
  0x4e   :  { %4864 = vmatprep.mubr.msk.bf16.mxu0 %vm933_vm2, %v5127_v42  ;;  %4992 = vmatprep.mubr.msk.bf16.mxu1 %vm933_vm2, %v5128_v43  ;;  %v5190_v41 = vld [vmem:[%s7056_s0 + $0x388] sm:$0xff]   ;;  %v5191_v42 = vld [vmem:[%s7056_s0 + $0x190] sm:$0xff]  }
  0x4f   :  { %v5192_v43 = vld [vmem:[%s7056_s0 + $0x390] sm:$0xff]  }
  0x55   :  { %4865 = vmatmul.mubr.msk.bf16.gmra.mxu0 %vm933_vm2, %v5129_v44  ;;  %4993 = vmatmul.mubr.msk.bf16.gmra.mxu1 %vm933_vm2, %v5130_v45  ;;  %v5655_v44 = vld [vmem:[%s7057_s2] ss:$0 sm:$0xff] }
  0x56   :  { %4868 = vmatprep.mubr.msk.bf16.mxu0 %vm933_vm2, %v5131_v46  ;;  %4996 = vmatprep.mubr.msk.bf16.mxu1 %vm933_vm2, %v5132_v47 }
  0x5d   :  { %4869 = vmatmul.mubr.msk.bf16.gmra.mxu0 %vm933_vm2, %v5133_v48  ;;  %4997 = vmatmul.mubr.msk.bf16.gmra.mxu1 %vm933_vm2, %v5134_v49 }
  0x5e   :  { %4872 = vmatprep.mubr.msk.bf16.mxu0 %vm933_vm2, %v5135_v50  ;;  %5000 = vmatprep.mubr.msk.bf16.mxu1 %vm933_vm2, %v5136_v51 }
  0x65   :  { %4873 = vmatmul.mubr.msk.bf16.gmra.mxu0 %vm933_vm2, %v5137_v52  ;;  %5001 = vmatmul.mubr.msk.bf16.gmra.mxu1 %vm933_vm2, %v5138_v53 }
  0x66   :  { %4876 = vmatprep.mubr.msk.bf16.mxu0 %vm933_vm2, %v5139_v54  ;;  %5004 = vmatprep.mubr.msk.bf16.mxu1 %vm933_vm2, %v5140_v55 }
  0x6d   :  { %4877 = vmatmul.mubr.msk.bf16.gmra.mxu0 %vm933_vm2, %v5141_v56  ;;  %5005 = vmatmul.mubr.msk.bf16.gmra.mxu1 %vm933_vm2, %v5142_v57  ;;  %v5193_v57 = vld [vmem:[%s7056_s0 + $0x198] sm:$0xff]  }
  0x6e   :  { %4880 = vmatprep.mubr.msk.bf16.mxu0 %vm933_vm2, %v5143_v58  ;;  %5008 = vmatprep.mubr.msk.bf16.mxu1 %vm933_vm2, %v5144_v59  ;;  %v5194_v58 = vld [vmem:[%s7056_s0 + $0x398] sm:$0xff]  }
  0x75   :  { %4881 = vmatmul.mubr.msk.bf16.gmra.mxu0 %vm933_vm2, %v5145_v60  ;;  %5009 = vmatmul.mubr.msk.bf16.gmra.mxu1 %vm933_vm2, %v5146_v61 }
  0x76   :  { %4884 = vmatprep.mubr.msk.bf16.mxu0 %vm933_vm2, %v5147_v62  ;;  %5012 = vmatprep.mubr.msk.bf16.mxu1 %vm933_vm2, %v5148_v63  ;;  %v5195_v63 = vld [vmem:[%s7056_s0 + $0x1a0] sm:$0xff]  }
  0x7d   :  { %4885 = vmatmul.mubr.msk.bf16.gmra.mxu0 %vm933_vm2, %v5149_v0  ;;  %5013 = vmatmul.mubr.msk.bf16.gmra.mxu1 %vm933_vm2, %v5150_v1  ;;  %v5196_v0 = vld [vmem:[%s7056_s0 + $0x3a0] sm:$0xff]  }
  0x7e   :  { %4888 = vmatprep.mubr.msk.bf16.mxu0 %vm933_vm2, %v5151_v2  ;;  %5016 = vmatprep.mubr.msk.bf16.mxu1 %vm933_vm2, %v5152_v3 }
  0x85   :  { %4889 = vmatmul.mubr.msk.bf16.gmra.mxu0 %vm933_vm2, %v5153_v4  ;;  %5017 = vmatmul.mubr.msk.bf16.gmra.mxu1 %vm933_vm2, %v5154_v5 }
  0x86   :  { %4892 = vmatprep.mubr.msk.bf16.mxu0 %vm933_vm2, %v5155_v6  ;;  %5020 = vmatprep.mubr.msk.bf16.mxu1 %vm933_vm2, %v5156_v7 }
  0x8d   :  { %4893 = vmatmul.mubr.msk.bf16.gmra.mxu0 %vm933_vm2, %v5157_v8  ;;  %5021 = vmatmul.mubr.msk.bf16.gmra.mxu1 %vm933_vm2, %v5158_v9 }
  0x8e   :  { %4896 = vmatprep.mubr.msk.bf16.mxu0 %vm933_vm2, %v5159_v10  ;;  %5024 = vmatprep.mubr.msk.bf16.mxu1 %vm933_vm2, %v5160_v11 }
  0x95   :  { %4897 = vmatmul.mubr.msk.bf16.gmra.mxu0 %vm933_vm2, %v5161_v12  ;;  %5025 = vmatmul.mubr.msk.bf16.gmra.mxu1 %vm933_vm2, %v5162_v13 }
  0x96   :  { %4900 = vmatprep.mubr.msk.bf16.mxu0 %vm933_vm2, %v5163_v14  ;;  %5028 = vmatprep.mubr.msk.bf16.mxu1 %vm933_vm2, %v5164_v15 }
  0x9d   :  { %4901 = vmatmul.mubr.msk.bf16.gmra.mxu0 %vm933_vm2, %v5165_v16  ;;  %5029 = vmatmul.mubr.msk.bf16.gmra.mxu1 %vm933_vm2, %v5166_v17 }
  0x9e   :  { %4904 = vmatprep.mubr.msk.bf16.mxu0 %vm933_vm2, %v5167_v18  ;;  %5032 = vmatprep.mubr.msk.bf16.mxu1 %vm933_vm2, %v5168_v19 }
  0xa5   :  { %4905 = vmatmul.mubr.msk.bf16.gmra.mxu0 %vm933_vm2, %v5169_v20  ;;  %5033 = vmatmul.mubr.msk.bf16.gmra.mxu1 %vm933_vm2, %v5170_v21 }
  0xa6   :  { %4908 = vmatprep.mubr.msk.bf16.mxu0 %vm933_vm2, %v5171_v22  ;;  %5036 = vmatprep.mubr.msk.bf16.mxu1 %vm933_vm2, %v5172_v23 }
  0xad   :  { %4909 = vmatmul.mubr.msk.bf16.gmra.mxu0 %vm933_vm2, %v5173_v24  ;;  %5037 = vmatmul.mubr.msk.bf16.gmra.mxu1 %vm933_vm2, %v5174_v25 }
  0xae   :  { %4912 = vmatprep.mubr.msk.bf16.mxu0 %vm933_vm2, %v5175_v26  ;;  %5040 = vmatprep.mubr.msk.bf16.mxu1 %vm933_vm2, %v5176_v27 }
  0xb5   :  { %4913 = vmatmul.mubr.msk.bf16.gmra.mxu0 %vm933_vm2, %v5177_v28  ;;  %5041 = vmatmul.mubr.msk.bf16.gmra.mxu1 %vm933_vm2, %v5178_v29  ;;  %v5197_v29 = vld [vmem:[%s7056_s0 + $0x1a8] sm:$0xff]  }
  0xb6   :  { %4916 = vmatprep.mubr.msk.bf16.mxu0 %vm933_vm2, %v5179_v30  ;;  %5044 = vmatprep.mubr.msk.bf16.mxu1 %vm933_vm2, %v5180_v31  ;;  %v5198_v30 = vld [vmem:[%s7056_s0 + $0x3a8] sm:$0xff]  }
  0xbd   :  { %4917 = vmatmul.mubr.msk.bf16.gmra.mxu0 %vm933_vm2, %v5181_v32  ;;  %5045 = vmatmul.mubr.msk.bf16.gmra.mxu1 %vm933_vm2, %v5182_v33 }
  0xbe   :  { %4920 = vmatprep.mubr.msk.bf16.mxu0 %vm933_vm2, %v5183_v34  ;;  %5048 = vmatprep.mubr.msk.bf16.mxu1 %vm933_vm2, %v5184_v35  ;;  %v5199_v35 = vld [vmem:[%s7056_s0 + $0x1b0] sm:$0xff]  }
  0xc5   :  { %4921 = vmatmul.mubr.msk.bf16.gmra.mxu0 %vm933_vm2, %v5185_v36  ;;  %5049 = vmatmul.mubr.msk.bf16.gmra.mxu1 %vm933_vm2, %v5186_v37  ;;  %v5200_v36 = vld [vmem:[%s7056_s0 + $0x3b0] sm:$0xff]  }
  0xc6   :  { %4924 = vmatprep.mubr.msk.bf16.mxu0 %vm933_vm2, %v5187_v38  ;;  %5052 = vmatprep.mubr.msk.bf16.mxu1 %vm933_vm2, %v5188_v39 }
  0xcd   :  { %v4830_v45 = vpop.f32.mrf.mxu0  ;;  %4925 = vmatmul.mubr.msk.bf16.gmra.mxu0 %vm933_vm2, %v5189_v40  ;;  %v4958_v46 = vpop.f32.mrf.mxu1  ;;  %5053 = vmatmul.mubr.msk.bf16.gmra.mxu1 %vm933_vm2, %v5190_v41 }
  0xce   :  { %v1368_v47 = vadd.f32 %v4830_v45, %v5655_v44  ;;  %v1880_v48 = vadd.f32 %v4958_v46, %v5655_v44  ;;  %4928 = vmatprep.mubr.msk.bf16.mxu0 %vm933_vm2, %v5191_v42  ;;  %5056 = vmatprep.mubr.msk.bf16.mxu1 %vm933_vm2, %v5192_v43 }
  0xcf   :  { %v1359_v49 = vpop.f32.mrf.mxu0  ;;  %v1871_v50 = vpop.f32.mrf.mxu1 }
  0xd0   :  { %v2384_v51 = vmax.f32 %v1368_v47, 0.0  ;;  %v2512_v52 = vmax.f32 %v1880_v48, 0.0  ;;  %v1360_v53 = vadd.f32 %v5655_v44, %v1359_v49  ;;  %v1872_v54 = vadd.f32 %v5655_v44, %v1871_v50 }
  0xd1   :  { %v4831_v55 = vpop.f32.mrf.mxu0  ;;  %v4959_v56 = vpop.f32.mrf.mxu1 }
  0xd2   :  { %v4440_v59 = vpack.c.bf16 %v2384_v51, %v2384_v51  ;;  %v4568_v60 = vpack.c.bf16 %v2512_v52, %v2512_v52  ;;  %v2382_v61 = vmax.f32 %v1360_v53, 0.0  ;;  %v2510_v62 = vmax.f32 %v1872_v54, 0.0 }
  0xd3   :  { %v1371_v1 = vadd.f32 %v4831_v55, %v5655_v44  ;;  %v1883_v2 = vadd.f32 %v4959_v56, %v5655_v44  ;;  %v1362_v3 = vpop.f32.mrf.mxu0  ;;  %v1874_v4 = vpop.f32.mrf.mxu1 }
  0xd4   :  { %3665 = vst.msk [vmem:[%s7058_s3 + $0x8] sm:$0xf] %vm3662_vm3, %v4440_v59  ;;  %3793 = vst.msk [vmem:[%s7058_s3 + $0x208] sm:$0xf] %vm3662_vm3, %v4568_v60  ;;  %v4438_v5 = vpack.c.bf16 %v2382_v61, %v2382_v61  ;;  %v4566_v6 = vpack.c.bf16 %v2510_v62, %v2510_v62  ;;  %v1363_v7 = vadd.f32 %v5655_v44, %v1362_v3  ;;  %v5202_v3 = vld [vmem:[%s7056_s0 + $0x3b8] sm:$0xff]  }
  0xd5   :  { %v1875_v8 = vadd.f32 %v5655_v44, %v1874_v4  ;;  %v2385_v9 = vmax.f32 %v1371_v1, 0.0  ;;  %v2513_v10 = vmax.f32 %v1883_v2, 0.0  ;;  %v4834_v11 = vpop.f32.mrf.mxu0  ;;  %4929 = vmatmul.mubr.msk.bf16.gmra.mxu0 %vm933_vm2, %v5193_v57  ;;  %v4962_v12 = vpop.f32.mrf.mxu1  ;;  %5057 = vmatmul.mubr.msk.bf16.gmra.mxu1 %vm933_vm2, %v5194_v58  ;;  %v5201_v2 = vld [vmem:[%s7056_s0 + $0x1b8] sm:$0xff]  }
  0xd6   :  { %3663 = vst.msk [vmem:[%s7058_s3] sm:$0xf] %vm3662_vm3, %v4438_v5  ;;  %3791 = vst.msk [vmem:[%s7058_s3 + $0x200] sm:$0xf] %vm3662_vm3, %v4566_v6  ;;  %v2383_v13 = vmax.f32 %v1363_v7, 0.0  ;;  %v1384_v15 = vadd.f32 %v4834_v11, %v5655_v44  ;;  %v1896_v16 = vadd.f32 %v4962_v12, %v5655_v44  ;;  %4932 = vmatprep.mubr.msk.bf16.mxu0 %vm933_vm2, %v5195_v63  ;;  %5060 = vmatprep.mubr.msk.bf16.mxu1 %vm933_vm2, %v5196_v0 }
  0xd7   :  { %v2511_v14 = vmax.f32 %v1875_v8, 0.0  ;;  %v4441_v17 = vpack.c.bf16 %v2385_v9, %v2385_v9  ;;  %v4569_v18 = vpack.c.bf16 %v2513_v10, %v2513_v10  ;;  %v1375_v19 = vpop.f32.mrf.mxu0  ;;  %v1887_v20 = vpop.f32.mrf.mxu1  ;;  %v5203_v8 = vld [vmem:[%s7056_s0 + $0x1c0] sm:$0xff]  }
  0xd8   :  { %v4439_v21 = vpack.c.bf16 %v2383_v13, %v2383_v13  ;;  %v2388_v23 = vmax.f32 %v1384_v15, 0.0  ;;  %v2516_v24 = vmax.f32 %v1896_v16, 0.0  ;;  %v1376_v25 = vadd.f32 %v5655_v44, %v1375_v19  ;;  %v5204_v13 = vld [vmem:[%s7056_s0 + $0x3c0] sm:$0xff]  }
  0xd9   :  { %v4567_v22 = vpack.c.bf16 %v2511_v14, %v2511_v14  ;;  %3666 = vst.msk [vmem:[%s7058_s3 + $0xc] sm:$0xf] %vm3662_vm3, %v4441_v17  ;;  %3794 = vst.msk [vmem:[%s7058_s3 + $0x20c] sm:$0xf] %vm3662_vm3, %v4569_v18  ;;  %v1888_v26 = vadd.f32 %v5655_v44, %v1887_v20  ;;  %v4835_v27 = vpop.f32.mrf.mxu0  ;;  %v4963_v28 = vpop.f32.mrf.mxu1 }
  0xda   :  { %3664 = vst.msk [vmem:[%s7058_s3 + $0x4] sm:$0xf] %vm3662_vm3, %v4439_v21  ;;  %v4444_v31 = vpack.c.bf16 %v2388_v23, %v2388_v23  ;;  %v4572_v32 = vpack.c.bf16 %v2516_v24, %v2516_v24  ;;  %v1387_v33 = vadd.f32 %v4835_v27, %v5655_v44  ;;  %v1899_v34 = vadd.f32 %v4963_v28, %v5655_v44 }
  0xdb   :  { %3792 = vst.msk [vmem:[%s7058_s3 + $0x204] sm:$0xf] %vm3662_vm3, %v4567_v22  ;;  %v2386_v37 = vmax.f32 %v1376_v25, 0.0  ;;  %v2514_v38 = vmax.f32 %v1888_v26, 0.0  ;;  %v1378_v39 = vpop.f32.mrf.mxu0  ;;  %v1890_v40 = vpop.f32.mrf.mxu1 }
  0xdc   :  { %3669 = vst.msk [vmem:[%s7058_s3 + $0x18] sm:$0xf] %vm3662_vm3, %v4444_v31  ;;  %3797 = vst.msk [vmem:[%s7058_s3 + $0x218] sm:$0xf] %vm3662_vm3, %v4572_v32  ;;  %v2389_v41 = vmax.f32 %v1387_v33, 0.0  ;;  %v2517_v42 = vmax.f32 %v1899_v34, 0.0  ;;  %v1379_v43 = vadd.f32 %v5655_v44, %v1378_v39  ;;  %v1891_v45 = vadd.f32 %v5655_v44, %v1890_v40 }
  0xdd   :  { %v4442_v46 = vpack.c.bf16 %v2386_v37, %v2386_v37  ;;  %v4570_v47 = vpack.c.bf16 %v2514_v38, %v2514_v38  ;;  %v4838_v48 = vpop.f32.mrf.mxu0  ;;  %4933 = vmatmul.mubr.msk.bf16.gmra.mxu0 %vm933_vm2, %v5197_v29  ;;  %v4966_v49 = vpop.f32.mrf.mxu1  ;;  %5061 = vmatmul.mubr.msk.bf16.gmra.mxu1 %vm933_vm2, %v5198_v30  ;;  %v5205_v38 = vld [vmem:[%s7056_s0 + $0x1c8] sm:$0xff]  }
  0xde   :  { %v4445_v50 = vpack.c.bf16 %v2389_v41, %v2389_v41  ;;  %v4573_v51 = vpack.c.bf16 %v2517_v42, %v2517_v42  ;;  %v2387_v52 = vmax.f32 %v1379_v43, 0.0  ;;  %v2515_v53 = vmax.f32 %v1891_v45, 0.0  ;;  %4936 = vmatprep.mubr.msk.bf16.mxu0 %vm933_vm2, %v5199_v35  ;;  %5064 = vmatprep.mubr.msk.bf16.mxu1 %vm933_vm2, %v5200_v36  ;;  %v5206_v39 = vld [vmem:[%s7056_s0 + $0x3c8] sm:$0xff]   ;;  %v5207_v45 = vld [vmem:[%s7056_s0 + $0x1d0] sm:$0xff]  }
  0xdf   :  { %3667 = vst.msk [vmem:[%s7058_s3 + $0x10] sm:$0xf] %vm3662_vm3, %v4442_v46  ;;  %3795 = vst.msk [vmem:[%s7058_s3 + $0x210] sm:$0xf] %vm3662_vm3, %v4570_v47  ;;  %v1400_v54 = vadd.f32 %v4838_v48, %v5655_v44  ;;  %v1912_v55 = vadd.f32 %v4966_v49, %v5655_v44  ;;  %v1391_v56 = vpop.f32.mrf.mxu0  ;;  %v1903_v57 = vpop.f32.mrf.mxu1  ;;  %v5208_v46 = vld [vmem:[%s7056_s0 + $0x3d0] sm:$0xff]  }
  0xe0   :  { %3670 = vst.msk [vmem:[%s7058_s3 + $0x1c] sm:$0xf] %vm3662_vm3, %v4445_v50  ;;  %3798 = vst.msk [vmem:[%s7058_s3 + $0x21c] sm:$0xf] %vm3662_vm3, %v4573_v51  ;;  %v4443_v58 = vpack.c.bf16 %v2387_v52, %v2387_v52  ;;  %v4571_v59 = vpack.c.bf16 %v2515_v53, %v2515_v53  ;;  %v1392_v60 = vadd.f32 %v5655_v44, %v1391_v56 }
  0xe1   :  { %v1904_v61 = vadd.f32 %v5655_v44, %v1903_v57  ;;  %v2392_v62 = vmax.f32 %v1400_v54, 0.0  ;;  %v2520_v63 = vmax.f32 %v1912_v55, 0.0  ;;  %v4839_v0 = vpop.f32.mrf.mxu0  ;;  %v4967_v1 = vpop.f32.mrf.mxu1 }
  0xe2   :  { %3668 = vst.msk [vmem:[%s7058_s3 + $0x14] sm:$0xf] %vm3662_vm3, %v4443_v58  ;;  %3796 = vst.msk [vmem:[%s7058_s3 + $0x214] sm:$0xf] %vm3662_vm3, %v4571_v59  ;;  %v2390_v4 = vmax.f32 %v1392_v60, 0.0  ;;  %v1403_v6 = vadd.f32 %v4839_v0, %v5655_v44  ;;  %v1915_v7 = vadd.f32 %v4967_v1, %v5655_v44 }
  0xe3   :  { %v2518_v5 = vmax.f32 %v1904_v61, 0.0  ;;  %v4448_v9 = vpack.c.bf16 %v2392_v62, %v2392_v62  ;;  %v4576_v10 = vpack.c.bf16 %v2520_v63, %v2520_v63  ;;  %v1394_v11 = vpop.f32.mrf.mxu0  ;;  %v1906_v12 = vpop.f32.mrf.mxu1 }
  0xe4   :  { %v4446_v14 = vpack.c.bf16 %v2390_v4, %v2390_v4  ;;  %v2393_v16 = vmax.f32 %v1403_v6, 0.0  ;;  %v2521_v17 = vmax.f32 %v1915_v7, 0.0  ;;  %v1395_v18 = vadd.f32 %v5655_v44, %v1394_v11  ;;  %v5209_v11 = vld [vmem:[%s7056_s0 + $0x1d8] sm:$0xff]  }
  0xe5   :  { %v4574_v15 = vpack.c.bf16 %v2518_v5, %v2518_v5  ;;  %3673 = vst.msk [vmem:[%s7058_s3 + $0x28] sm:$0xf] %vm3662_vm3, %v4448_v9  ;;  %3801 = vst.msk [vmem:[%s7058_s3 + $0x228] sm:$0xf] %vm3662_vm3, %v4576_v10  ;;  %v1907_v19 = vadd.f32 %v5655_v44, %v1906_v12  ;;  %v4842_v20 = vpop.f32.mrf.mxu0  ;;  %4937 = vmatmul.mubr.msk.bf16.gmra.mxu0 %vm933_vm2, %v5201_v2  ;;  %v4970_v21 = vpop.f32.mrf.mxu1  ;;  %5065 = vmatmul.mubr.msk.bf16.gmra.mxu1 %vm933_vm2, %v5202_v3  ;;  %v5210_v12 = vld [vmem:[%s7056_s0 + $0x3d8] sm:$0xff]  }
  0xe6   :  { %3671 = vst.msk [vmem:[%s7058_s3 + $0x20] sm:$0xf] %vm3662_vm3, %v4446_v14  ;;  %v4449_v22 = vpack.c.bf16 %v2393_v16, %v2393_v16  ;;  %v4577_v23 = vpack.c.bf16 %v2521_v17, %v2521_v17  ;;  %v1416_v24 = vadd.f32 %v4842_v20, %v5655_v44  ;;  %v1928_v25 = vadd.f32 %v4970_v21, %v5655_v44  ;;  %v5211_v17 = vld [vmem:[%s7056_s0 + $0x1e0] sm:$0xff]  }
  0xe7   :  { %3799 = vst.msk [vmem:[%s7058_s3 + $0x220] sm:$0xf] %vm3662_vm3, %v4574_v15  ;;  %4940 = vmatprep.mubr.msk.bf16.mxu0 %vm933_vm2, %v5203_v8  ;;  %v2391_v26 = vmax.f32 %v1395_v18, 0.0  ;;  %v2519_v27 = vmax.f32 %v1907_v19, 0.0  ;;  %v1407_v28 = vpop.f32.mrf.mxu0  ;;  %v1919_v29 = vpop.f32.mrf.mxu1  ;;  %5068 = vmatprep.mubr.msk.bf16.mxu1 %vm933_vm2, %v5204_v13  ;;  %v5212_v18 = vld [vmem:[%s7056_s0 + $0x3e0] sm:$0xff]  }
  0xe8   :  { %3674 = vst.msk [vmem:[%s7058_s3 + $0x2c] sm:$0xf] %vm3662_vm3, %v4449_v22  ;;  %3802 = vst.msk [vmem:[%s7058_s3 + $0x22c] sm:$0xf] %vm3662_vm3, %v4577_v23  ;;  %v2396_v30 = vmax.f32 %v1416_v24, 0.0  ;;  %v2524_v31 = vmax.f32 %v1928_v25, 0.0  ;;  %v1408_v32 = vadd.f32 %v5655_v44, %v1407_v28  ;;  %v1920_v33 = vadd.f32 %v5655_v44, %v1919_v29 }
  0xe9   :  { %v4447_v34 = vpack.c.bf16 %v2391_v26, %v2391_v26  ;;  %v4575_v35 = vpack.c.bf16 %v2519_v27, %v2519_v27  ;;  %v4843_v36 = vpop.f32.mrf.mxu0  ;;  %v4971_v37 = vpop.f32.mrf.mxu1 }
  0xea   :  { %v4452_v40 = vpack.c.bf16 %v2396_v30, %v2396_v30  ;;  %v4580_v41 = vpack.c.bf16 %v2524_v31, %v2524_v31  ;;  %v2394_v42 = vmax.f32 %v1408_v32, 0.0  ;;  %v2522_v43 = vmax.f32 %v1920_v33, 0.0 }
  0xeb   :  { %3672 = vst.msk [vmem:[%s7058_s3 + $0x24] sm:$0xf] %vm3662_vm3, %v4447_v34  ;;  %3800 = vst.msk [vmem:[%s7058_s3 + $0x224] sm:$0xf] %vm3662_vm3, %v4575_v35  ;;  %v1419_v47 = vadd.f32 %v4843_v36, %v5655_v44  ;;  %v1931_v48 = vadd.f32 %v4971_v37, %v5655_v44  ;;  %v1410_v49 = vpop.f32.mrf.mxu0  ;;  %v1922_v50 = vpop.f32.mrf.mxu1 }
  0xec   :  { %3677 = vst.msk [vmem:[%s7058_s3 + $0x38] sm:$0xf] %vm3662_vm3, %v4452_v40  ;;  %3805 = vst.msk [vmem:[%s7058_s3 + $0x238] sm:$0xf] %vm3662_vm3, %v4580_v41  ;;  %v4450_v51 = vpack.c.bf16 %v2394_v42, %v2394_v42  ;;  %v4578_v52 = vpack.c.bf16 %v2522_v43, %v2522_v43  ;;  %v1411_v53 = vadd.f32 %v5655_v44, %v1410_v49  ;;  %v5214_v49 = vld [vmem:[%s7056_s0 + $0x3e8] sm:$0xff]  }
  0xed   :  { %v1923_v54 = vadd.f32 %v5655_v44, %v1922_v50  ;;  %v2397_v55 = vmax.f32 %v1419_v47, 0.0  ;;  %v2525_v56 = vmax.f32 %v1931_v48, 0.0  ;;  %v4846_v57 = vpop.f32.mrf.mxu0  ;;  %4941 = vmatmul.mubr.msk.bf16.gmra.mxu0 %vm933_vm2, %v5205_v38  ;;  %v4974_v58 = vpop.f32.mrf.mxu1  ;;  %5069 = vmatmul.mubr.msk.bf16.gmra.mxu1 %vm933_vm2, %v5206_v39  ;;  %v5213_v48 = vld [vmem:[%s7056_s0 + $0x1e8] sm:$0xff]  }
  0xee   :  { %3675 = vst.msk [vmem:[%s7058_s3 + $0x30] sm:$0xf] %vm3662_vm3, %v4450_v51  ;;  %3803 = vst.msk [vmem:[%s7058_s3 + $0x230] sm:$0xf] %vm3662_vm3, %v4578_v52  ;;  %v2395_v59 = vmax.f32 %v1411_v53, 0.0  ;;  %v1432_v61 = vadd.f32 %v4846_v57, %v5655_v44  ;;  %v1944_v62 = vadd.f32 %v4974_v58, %v5655_v44  ;;  %4944 = vmatprep.mubr.msk.bf16.mxu0 %vm933_vm2, %v5207_v45  ;;  %5072 = vmatprep.mubr.msk.bf16.mxu1 %vm933_vm2, %v5208_v46 }
  0xef   :  { %v2523_v60 = vmax.f32 %v1923_v54, 0.0  ;;  %v4453_v63 = vpack.c.bf16 %v2397_v55, %v2397_v55  ;;  %v4581_v0 = vpack.c.bf16 %v2525_v56, %v2525_v56  ;;  %v1423_v1 = vpop.f32.mrf.mxu0  ;;  %v1935_v2 = vpop.f32.mrf.mxu1  ;;  %v5215_v54 = vld [vmem:[%s7056_s0 + $0x1f0] sm:$0xff]  }
  0xf0   :  { %v4451_v3 = vpack.c.bf16 %v2395_v59, %v2395_v59  ;;  %v2400_v5 = vmax.f32 %v1432_v61, 0.0  ;;  %v2528_v6 = vmax.f32 %v1944_v62, 0.0  ;;  %v1424_v7 = vadd.f32 %v5655_v44, %v1423_v1  ;;  %v5216_v59 = vld [vmem:[%s7056_s0 + $0x3f0] sm:$0xff]  }
  0xf1   :  { %v4579_v4 = vpack.c.bf16 %v2523_v60, %v2523_v60  ;;  %3678 = vst.msk [vmem:[%s7058_s3 + $0x3c] sm:$0xf] %vm3662_vm3, %v4453_v63  ;;  %3806 = vst.msk [vmem:[%s7058_s3 + $0x23c] sm:$0xf] %vm3662_vm3, %v4581_v0  ;;  %v1936_v8 = vadd.f32 %v5655_v44, %v1935_v2  ;;  %v4847_v9 = vpop.f32.mrf.mxu0  ;;  %v4975_v10 = vpop.f32.mrf.mxu1 }
  0xf2   :  { %3676 = vst.msk [vmem:[%s7058_s3 + $0x34] sm:$0xf] %vm3662_vm3, %v4451_v3  ;;  %v4456_v13 = vpack.c.bf16 %v2400_v5, %v2400_v5  ;;  %v4584_v14 = vpack.c.bf16 %v2528_v6, %v2528_v6  ;;  %v1435_v15 = vadd.f32 %v4847_v9, %v5655_v44  ;;  %v1947_v16 = vadd.f32 %v4975_v10, %v5655_v44 }
  0xf3   :  { %3804 = vst.msk [vmem:[%s7058_s3 + $0x234] sm:$0xf] %vm3662_vm3, %v4579_v4  ;;  %v2398_v19 = vmax.f32 %v1424_v7, 0.0  ;;  %v2526_v20 = vmax.f32 %v1936_v8, 0.0  ;;  %v1426_v21 = vpop.f32.mrf.mxu0  ;;  %v1938_v22 = vpop.f32.mrf.mxu1 }
  0xf4   :  { %3681 = vst.msk [vmem:[%s7058_s3 + $0x48] sm:$0xf] %vm3662_vm3, %v4456_v13  ;;  %3809 = vst.msk [vmem:[%s7058_s3 + $0x248] sm:$0xf] %vm3662_vm3, %v4584_v14  ;;  %v2401_v23 = vmax.f32 %v1435_v15, 0.0  ;;  %v2529_v24 = vmax.f32 %v1947_v16, 0.0  ;;  %v1427_v25 = vadd.f32 %v5655_v44, %v1426_v21  ;;  %v1939_v26 = vadd.f32 %v5655_v44, %v1938_v22 }
  0xf5   :  { %v4454_v27 = vpack.c.bf16 %v2398_v19, %v2398_v19  ;;  %v4582_v28 = vpack.c.bf16 %v2526_v20, %v2526_v20  ;;  %v4850_v29 = vpop.f32.mrf.mxu0  ;;  %4945 = vmatmul.mubr.msk.bf16.gmra.mxu0 %vm933_vm2, %v5209_v11  ;;  %v4978_v30 = vpop.f32.mrf.mxu1  ;;  %5073 = vmatmul.mubr.msk.bf16.gmra.mxu1 %vm933_vm2, %v5210_v12  ;;  %v5217_v20 = vld [vmem:[%s7056_s0 + $0x1f8] sm:$0xff]  }
  0xf6   :  { %v4457_v31 = vpack.c.bf16 %v2401_v23, %v2401_v23  ;;  %v4585_v32 = vpack.c.bf16 %v2529_v24, %v2529_v24  ;;  %v2399_v33 = vmax.f32 %v1427_v25, 0.0  ;;  %v2527_v34 = vmax.f32 %v1939_v26, 0.0  ;;  %4948 = vmatprep.mubr.msk.bf16.mxu0 %vm933_vm2, %v5211_v17  ;;  %5076 = vmatprep.mubr.msk.bf16.mxu1 %vm933_vm2, %v5212_v18  ;;  %v5218_v21 = vld [vmem:[%s7056_s0 + $0x3f8] sm:$0xff]  }
  0xf7   :  { %3679 = vst.msk [vmem:[%s7058_s3 + $0x40] sm:$0xf] %vm3662_vm3, %v4454_v27  ;;  %3807 = vst.msk [vmem:[%s7058_s3 + $0x240] sm:$0xf] %vm3662_vm3, %v4582_v28  ;;  %v1448_v35 = vadd.f32 %v4850_v29, %v5655_v44  ;;  %v1960_v36 = vadd.f32 %v4978_v30, %v5655_v44  ;;  %v1439_v37 = vpop.f32.mrf.mxu0  ;;  %v1951_v38 = vpop.f32.mrf.mxu1 }
  0xf8   :  { %3682 = vst.msk [vmem:[%s7058_s3 + $0x4c] sm:$0xf] %vm3662_vm3, %v4457_v31  ;;  %3810 = vst.msk [vmem:[%s7058_s3 + $0x24c] sm:$0xf] %vm3662_vm3, %v4585_v32  ;;  %v4455_v39 = vpack.c.bf16 %v2399_v33, %v2399_v33  ;;  %v4583_v40 = vpack.c.bf16 %v2527_v34, %v2527_v34  ;;  %v1440_v41 = vadd.f32 %v5655_v44, %v1439_v37 }
  0xf9   :  { %v1952_v42 = vadd.f32 %v5655_v44, %v1951_v38  ;;  %v2404_v43 = vmax.f32 %v1448_v35, 0.0  ;;  %v2532_v45 = vmax.f32 %v1960_v36, 0.0  ;;  %v4851_v46 = vpop.f32.mrf.mxu0  ;;  %v4979_v47 = vpop.f32.mrf.mxu1 }
  0xfa   :  { %3680 = vst.msk [vmem:[%s7058_s3 + $0x44] sm:$0xf] %vm3662_vm3, %v4455_v39  ;;  %3808 = vst.msk [vmem:[%s7058_s3 + $0x244] sm:$0xf] %vm3662_vm3, %v4583_v40  ;;  %v2402_v50 = vmax.f32 %v1440_v41, 0.0  ;;  %v1451_v52 = vadd.f32 %v4851_v46, %v5655_v44  ;;  %v1963_v53 = vadd.f32 %v4979_v47, %v5655_v44 }
  0xfb   :  { %v2530_v51 = vmax.f32 %v1952_v42, 0.0  ;;  %v4460_v55 = vpack.c.bf16 %v2404_v43, %v2404_v43  ;;  %v4588_v56 = vpack.c.bf16 %v2532_v45, %v2532_v45  ;;  %v1442_v57 = vpop.f32.mrf.mxu0  ;;  %v1954_v58 = vpop.f32.mrf.mxu1 }
  0xfc   :  { %v4458_v60 = vpack.c.bf16 %v2402_v50, %v2402_v50  ;;  %v2405_v62 = vmax.f32 %v1451_v52, 0.0  ;;  %v2533_v63 = vmax.f32 %v1963_v53, 0.0  ;;  %v1443_v0 = vadd.f32 %v5655_v44, %v1442_v57 }
  0xfd   :  { %v4586_v61 = vpack.c.bf16 %v2530_v51, %v2530_v51  ;;  %3685 = vst.msk [vmem:[%s7058_s3 + $0x58] sm:$0xf] %vm3662_vm3, %v4460_v55  ;;  %3813 = vst.msk [vmem:[%s7058_s3 + $0x258] sm:$0xf] %vm3662_vm3, %v4588_v56  ;;  %v1955_v1 = vadd.f32 %v5655_v44, %v1954_v58  ;;  %v4854_v2 = vpop.f32.mrf.mxu0  ;;  %4949 = vmatmul.mubr.msk.bf16.gmra.mxu0 %vm933_vm2, %v5213_v48  ;;  %v4982_v3 = vpop.f32.mrf.mxu1  ;;  %5077 = vmatmul.mubr.msk.bf16.gmra.mxu1 %vm933_vm2, %v5214_v49 }
  0xfe   :  { %3683 = vst.msk [vmem:[%s7058_s3 + $0x50] sm:$0xf] %vm3662_vm3, %v4458_v60  ;;  %v4461_v4 = vpack.c.bf16 %v2405_v62, %v2405_v62  ;;  %v4589_v5 = vpack.c.bf16 %v2533_v63, %v2533_v63  ;;  %v1464_v6 = vadd.f32 %v4854_v2, %v5655_v44  ;;  %v1976_v7 = vadd.f32 %v4982_v3, %v5655_v44 }
  0xff   :  { %3811 = vst.msk [vmem:[%s7058_s3 + $0x250] sm:$0xf] %vm3662_vm3, %v4586_v61  ;;  %4952 = vmatprep.mubr.msk.bf16.mxu0 %vm933_vm2, %v5215_v54  ;;  %v2403_v8 = vmax.f32 %v1443_v0, 0.0  ;;  %v2531_v9 = vmax.f32 %v1955_v1, 0.0  ;;  %v1455_v10 = vpop.f32.mrf.mxu0  ;;  %v1967_v11 = vpop.f32.mrf.mxu1  ;;  %5080 = vmatprep.mubr.msk.bf16.mxu1 %vm933_vm2, %v5216_v59 }
 0x100   :  { %3686 = vst.msk [vmem:[%s7058_s3 + $0x5c] sm:$0xf] %vm3662_vm3, %v4461_v4  ;;  %3814 = vst.msk [vmem:[%s7058_s3 + $0x25c] sm:$0xf] %vm3662_vm3, %v4589_v5  ;;  %v2408_v12 = vmax.f32 %v1464_v6, 0.0  ;;  %v2536_v13 = vmax.f32 %v1976_v7, 0.0  ;;  %v1456_v14 = vadd.f32 %v5655_v44, %v1455_v10  ;;  %v1968_v15 = vadd.f32 %v5655_v44, %v1967_v11 }
 0x101   :  { %v4459_v16 = vpack.c.bf16 %v2403_v8, %v2403_v8  ;;  %v4587_v17 = vpack.c.bf16 %v2531_v9, %v2531_v9  ;;  %v4855_v18 = vpop.f32.mrf.mxu0  ;;  %v4983_v19 = vpop.f32.mrf.mxu1 }
 0x102   :  { %v4464_v22 = vpack.c.bf16 %v2408_v12, %v2408_v12  ;;  %v4592_v23 = vpack.c.bf16 %v2536_v13, %v2536_v13  ;;  %v2406_v24 = vmax.f32 %v1456_v14, 0.0  ;;  %v2534_v25 = vmax.f32 %v1968_v15, 0.0 }
 0x103   :  { %3684 = vst.msk [vmem:[%s7058_s3 + $0x54] sm:$0xf] %vm3662_vm3, %v4459_v16  ;;  %3812 = vst.msk [vmem:[%s7058_s3 + $0x254] sm:$0xf] %vm3662_vm3, %v4587_v17  ;;  %v1467_v26 = vadd.f32 %v4855_v18, %v5655_v44  ;;  %v1979_v27 = vadd.f32 %v4983_v19, %v5655_v44  ;;  %v1458_v28 = vpop.f32.mrf.mxu0  ;;  %v1970_v29 = vpop.f32.mrf.mxu1 }
 0x104   :  { %3689 = vst.msk [vmem:[%s7058_s3 + $0x68] sm:$0xf] %vm3662_vm3, %v4464_v22  ;;  %3817 = vst.msk [vmem:[%s7058_s3 + $0x268] sm:$0xf] %vm3662_vm3, %v4592_v23  ;;  %v4462_v30 = vpack.c.bf16 %v2406_v24, %v2406_v24  ;;  %v4590_v31 = vpack.c.bf16 %v2534_v25, %v2534_v25  ;;  %v1459_v32 = vadd.f32 %v5655_v44, %v1458_v28 }
 0x105   :  { %v1971_v33 = vadd.f32 %v5655_v44, %v1970_v29  ;;  %v2409_v34 = vmax.f32 %v1467_v26, 0.0  ;;  %v2537_v35 = vmax.f32 %v1979_v27, 0.0  ;;  %v4858_v36 = vpop.f32.mrf.mxu0  ;;  %4953 = vmatmul.mubr.msk.bf16.gmra.mxu0 %vm933_vm2, %v5217_v20  ;;  %v4986_v37 = vpop.f32.mrf.mxu1  ;;  %5081 = vmatmul.mubr.msk.bf16.gmra.mxu1 %vm933_vm2, %v5218_v21 }
 0x106   :  { %3687 = vst.msk [vmem:[%s7058_s3 + $0x60] sm:$0xf] %vm3662_vm3, %v4462_v30  ;;  %3815 = vst.msk [vmem:[%s7058_s3 + $0x260] sm:$0xf] %vm3662_vm3, %v4590_v31  ;;  %v2407_v38 = vmax.f32 %v1459_v32, 0.0  ;;  %v1480_v40 = vadd.f32 %v4858_v36, %v5655_v44  ;;  %v1992_v41 = vadd.f32 %v4986_v37, %v5655_v44 }
 0x107   :  { %v2535_v39 = vmax.f32 %v1971_v33, 0.0  ;;  %v4465_v42 = vpack.c.bf16 %v2409_v34, %v2409_v34  ;;  %v4593_v43 = vpack.c.bf16 %v2537_v35, %v2537_v35  ;;  %v1471_v45 = vpop.f32.mrf.mxu0  ;;  %v1983_v46 = vpop.f32.mrf.mxu1 }
 0x108   :  { %v4463_v47 = vpack.c.bf16 %v2407_v38, %v2407_v38  ;;  %v2412_v49 = vmax.f32 %v1480_v40, 0.0  ;;  %v2540_v50 = vmax.f32 %v1992_v41, 0.0  ;;  %v1472_v51 = vadd.f32 %v5655_v44, %v1471_v45 }
 0x109   :  { %v4591_v48 = vpack.c.bf16 %v2535_v39, %v2535_v39  ;;  %3690 = vst.msk [vmem:[%s7058_s3 + $0x6c] sm:$0xf] %vm3662_vm3, %v4465_v42  ;;  %3818 = vst.msk [vmem:[%s7058_s3 + $0x26c] sm:$0xf] %vm3662_vm3, %v4593_v43  ;;  %v1984_v52 = vadd.f32 %v5655_v44, %v1983_v46  ;;  %v4859_v53 = vpop.f32.mrf.mxu0  ;;  %v4987_v54 = vpop.f32.mrf.mxu1 }
 0x10a   :  { %3688 = vst.msk [vmem:[%s7058_s3 + $0x64] sm:$0xf] %vm3662_vm3, %v4463_v47  ;;  %v4468_v55 = vpack.c.bf16 %v2412_v49, %v2412_v49  ;;  %v4596_v56 = vpack.c.bf16 %v2540_v50, %v2540_v50  ;;  %v1483_v57 = vadd.f32 %v4859_v53, %v5655_v44  ;;  %v1995_v58 = vadd.f32 %v4987_v54, %v5655_v44 }
 0x10b   :  { %3816 = vst.msk [vmem:[%s7058_s3 + $0x264] sm:$0xf] %vm3662_vm3, %v4591_v48  ;;  %v2410_v59 = vmax.f32 %v1472_v51, 0.0  ;;  %v2538_v60 = vmax.f32 %v1984_v52, 0.0  ;;  %v1474_v61 = vpop.f32.mrf.mxu0  ;;  %v1986_v62 = vpop.f32.mrf.mxu1 }
 0x10c   :  { %3693 = vst.msk [vmem:[%s7058_s3 + $0x78] sm:$0xf] %vm3662_vm3, %v4468_v55  ;;  %3821 = vst.msk [vmem:[%s7058_s3 + $0x278] sm:$0xf] %vm3662_vm3, %v4596_v56  ;;  %v2413_v63 = vmax.f32 %v1483_v57, 0.0  ;;  %v2541_v0 = vmax.f32 %v1995_v58, 0.0  ;;  %v1475_v1 = vadd.f32 %v5655_v44, %v1474_v61  ;;  %v1987_v2 = vadd.f32 %v5655_v44, %v1986_v62 }
 0x10d   :  { %v4466_v3 = vpack.c.bf16 %v2410_v59, %v2410_v59  ;;  %v4594_v4 = vpack.c.bf16 %v2538_v60, %v2538_v60  ;;  %v4862_v5 = vpop.f32.mrf.mxu0  ;;  %v4990_v6 = vpop.f32.mrf.mxu1 }
 0x10e   :  { %v4469_v7 = vpack.c.bf16 %v2413_v63, %v2413_v63  ;;  %v4597_v8 = vpack.c.bf16 %v2541_v0, %v2541_v0  ;;  %v2411_v9 = vmax.f32 %v1475_v1, 0.0  ;;  %v2539_v10 = vmax.f32 %v1987_v2, 0.0 }
 0x10f   :  { %3691 = vst.msk [vmem:[%s7058_s3 + $0x70] sm:$0xf] %vm3662_vm3, %v4466_v3  ;;  %3819 = vst.msk [vmem:[%s7058_s3 + $0x270] sm:$0xf] %vm3662_vm3, %v4594_v4  ;;  %v1496_v11 = vadd.f32 %v4862_v5, %v5655_v44  ;;  %v2008_v12 = vadd.f32 %v4990_v6, %v5655_v44  ;;  %v1487_v13 = vpop.f32.mrf.mxu0  ;;  %v1999_v14 = vpop.f32.mrf.mxu1 }
 0x110   :  { %3694 = vst.msk [vmem:[%s7058_s3 + $0x7c] sm:$0xf] %vm3662_vm3, %v4469_v7  ;;  %3822 = vst.msk [vmem:[%s7058_s3 + $0x27c] sm:$0xf] %vm3662_vm3, %v4597_v8  ;;  %v4467_v15 = vpack.c.bf16 %v2411_v9, %v2411_v9  ;;  %v4595_v16 = vpack.c.bf16 %v2539_v10, %v2539_v10  ;;  %v1488_v17 = vadd.f32 %v5655_v44, %v1487_v13 }
 0x111   :  { %v2000_v18 = vadd.f32 %v5655_v44, %v1999_v14  ;;  %v2416_v19 = vmax.f32 %v1496_v11, 0.0  ;;  %v2544_v20 = vmax.f32 %v2008_v12, 0.0  ;;  %v4863_v21 = vpop.f32.mrf.mxu0  ;;  %v4991_v22 = vpop.f32.mrf.mxu1 }
 0x112   :  { %3692 = vst.msk [vmem:[%s7058_s3 + $0x74] sm:$0xf] %vm3662_vm3, %v4467_v15  ;;  %3820 = vst.msk [vmem:[%s7058_s3 + $0x274] sm:$0xf] %vm3662_vm3, %v4595_v16  ;;  %v2414_v23 = vmax.f32 %v1488_v17, 0.0  ;;  %v1499_v25 = vadd.f32 %v4863_v21, %v5655_v44  ;;  %v2011_v26 = vadd.f32 %v4991_v22, %v5655_v44 }
 0x113   :  { %v2542_v24 = vmax.f32 %v2000_v18, 0.0  ;;  %v4472_v27 = vpack.c.bf16 %v2416_v19, %v2416_v19  ;;  %v4600_v28 = vpack.c.bf16 %v2544_v20, %v2544_v20  ;;  %v1490_v29 = vpop.f32.mrf.mxu0  ;;  %v2002_v30 = vpop.f32.mrf.mxu1 }
 0x114   :  { %v4470_v31 = vpack.c.bf16 %v2414_v23, %v2414_v23  ;;  %v2417_v33 = vmax.f32 %v1499_v25, 0.0  ;;  %v2545_v34 = vmax.f32 %v2011_v26, 0.0  ;;  %v1491_v35 = vadd.f32 %v5655_v44, %v1490_v29 }
 0x115   :  { %v4598_v32 = vpack.c.bf16 %v2542_v24, %v2542_v24  ;;  %3697 = vst.msk [vmem:[%s7058_s3 + $0x88] sm:$0xf] %vm3662_vm3, %v4472_v27  ;;  %3825 = vst.msk [vmem:[%s7058_s3 + $0x288] sm:$0xf] %vm3662_vm3, %v4600_v28  ;;  %v2003_v36 = vadd.f32 %v5655_v44, %v2002_v30  ;;  %v4866_v37 = vpop.f32.mrf.mxu0  ;;  %v4994_v38 = vpop.f32.mrf.mxu1 }
 0x116   :  { %3695 = vst.msk [vmem:[%s7058_s3 + $0x80] sm:$0xf] %vm3662_vm3, %v4470_v31  ;;  %v4473_v39 = vpack.c.bf16 %v2417_v33, %v2417_v33  ;;  %v4601_v40 = vpack.c.bf16 %v2545_v34, %v2545_v34  ;;  %v1512_v41 = vadd.f32 %v4866_v37, %v5655_v44  ;;  %v2024_v42 = vadd.f32 %v4994_v38, %v5655_v44 }
 0x117   :  { %3823 = vst.msk [vmem:[%s7058_s3 + $0x280] sm:$0xf] %vm3662_vm3, %v4598_v32  ;;  %v2415_v43 = vmax.f32 %v1491_v35, 0.0  ;;  %v2543_v45 = vmax.f32 %v2003_v36, 0.0  ;;  %v1503_v46 = vpop.f32.mrf.mxu0  ;;  %v2015_v47 = vpop.f32.mrf.mxu1 }
 0x118   :  { %3698 = vst.msk [vmem:[%s7058_s3 + $0x8c] sm:$0xf] %vm3662_vm3, %v4473_v39  ;;  %3826 = vst.msk [vmem:[%s7058_s3 + $0x28c] sm:$0xf] %vm3662_vm3, %v4601_v40  ;;  %v2420_v48 = vmax.f32 %v1512_v41, 0.0  ;;  %v2548_v49 = vmax.f32 %v2024_v42, 0.0  ;;  %v1504_v50 = vadd.f32 %v5655_v44, %v1503_v46  ;;  %v2016_v51 = vadd.f32 %v5655_v44, %v2015_v47 }
 0x119   :  { %v4471_v52 = vpack.c.bf16 %v2415_v43, %v2415_v43  ;;  %v4599_v53 = vpack.c.bf16 %v2543_v45, %v2543_v45  ;;  %v4867_v54 = vpop.f32.mrf.mxu0  ;;  %v4995_v55 = vpop.f32.mrf.mxu1 }
 0x11a   :  { %v4476_v56 = vpack.c.bf16 %v2420_v48, %v2420_v48  ;;  %v4604_v57 = vpack.c.bf16 %v2548_v49, %v2548_v49  ;;  %v2418_v58 = vmax.f32 %v1504_v50, 0.0  ;;  %v2546_v59 = vmax.f32 %v2016_v51, 0.0 }
 0x11b   :  { %3696 = vst.msk [vmem:[%s7058_s3 + $0x84] sm:$0xf] %vm3662_vm3, %v4471_v52  ;;  %3824 = vst.msk [vmem:[%s7058_s3 + $0x284] sm:$0xf] %vm3662_vm3, %v4599_v53  ;;  %v1515_v60 = vadd.f32 %v4867_v54, %v5655_v44  ;;  %v2027_v61 = vadd.f32 %v4995_v55, %v5655_v44  ;;  %v1506_v62 = vpop.f32.mrf.mxu0  ;;  %v2018_v63 = vpop.f32.mrf.mxu1 }
 0x11c   :  { %3701 = vst.msk [vmem:[%s7058_s3 + $0x98] sm:$0xf] %vm3662_vm3, %v4476_v56  ;;  %3829 = vst.msk [vmem:[%s7058_s3 + $0x298] sm:$0xf] %vm3662_vm3, %v4604_v57  ;;  %v4474_v0 = vpack.c.bf16 %v2418_v58, %v2418_v58  ;;  %v4602_v1 = vpack.c.bf16 %v2546_v59, %v2546_v59  ;;  %v1507_v2 = vadd.f32 %v5655_v44, %v1506_v62 }
 0x11d   :  { %v2019_v3 = vadd.f32 %v5655_v44, %v2018_v63  ;;  %v2421_v4 = vmax.f32 %v1515_v60, 0.0  ;;  %v2549_v5 = vmax.f32 %v2027_v61, 0.0  ;;  %v4870_v6 = vpop.f32.mrf.mxu0  ;;  %v4998_v7 = vpop.f32.mrf.mxu1 }
 0x11e   :  { %3699 = vst.msk [vmem:[%s7058_s3 + $0x90] sm:$0xf] %vm3662_vm3, %v4474_v0  ;;  %3827 = vst.msk [vmem:[%s7058_s3 + $0x290] sm:$0xf] %vm3662_vm3, %v4602_v1  ;;  %v2419_v8 = vmax.f32 %v1507_v2, 0.0  ;;  %v1528_v10 = vadd.f32 %v4870_v6, %v5655_v44  ;;  %v2040_v11 = vadd.f32 %v4998_v7, %v5655_v44 }
 0x11f   :  { %v2547_v9 = vmax.f32 %v2019_v3, 0.0  ;;  %v4477_v12 = vpack.c.bf16 %v2421_v4, %v2421_v4  ;;  %v4605_v13 = vpack.c.bf16 %v2549_v5, %v2549_v5  ;;  %v1519_v14 = vpop.f32.mrf.mxu0  ;;  %v2031_v15 = vpop.f32.mrf.mxu1 }
 0x120   :  { %v4475_v16 = vpack.c.bf16 %v2419_v8, %v2419_v8  ;;  %v2424_v18 = vmax.f32 %v1528_v10, 0.0  ;;  %v2552_v19 = vmax.f32 %v2040_v11, 0.0  ;;  %v1520_v20 = vadd.f32 %v5655_v44, %v1519_v14 }
 0x121   :  { %v4603_v17 = vpack.c.bf16 %v2547_v9, %v2547_v9  ;;  %3702 = vst.msk [vmem:[%s7058_s3 + $0x9c] sm:$0xf] %vm3662_vm3, %v4477_v12  ;;  %3830 = vst.msk [vmem:[%s7058_s3 + $0x29c] sm:$0xf] %vm3662_vm3, %v4605_v13  ;;  %v2032_v21 = vadd.f32 %v5655_v44, %v2031_v15  ;;  %v4871_v22 = vpop.f32.mrf.mxu0  ;;  %v4999_v23 = vpop.f32.mrf.mxu1 }
 0x122   :  { %3700 = vst.msk [vmem:[%s7058_s3 + $0x94] sm:$0xf] %vm3662_vm3, %v4475_v16  ;;  %v4480_v24 = vpack.c.bf16 %v2424_v18, %v2424_v18  ;;  %v4608_v25 = vpack.c.bf16 %v2552_v19, %v2552_v19  ;;  %v1531_v26 = vadd.f32 %v4871_v22, %v5655_v44  ;;  %v2043_v27 = vadd.f32 %v4999_v23, %v5655_v44 }
 0x123   :  { %3828 = vst.msk [vmem:[%s7058_s3 + $0x294] sm:$0xf] %vm3662_vm3, %v4603_v17  ;;  %v2422_v28 = vmax.f32 %v1520_v20, 0.0  ;;  %v2550_v29 = vmax.f32 %v2032_v21, 0.0  ;;  %v1522_v30 = vpop.f32.mrf.mxu0  ;;  %v2034_v31 = vpop.f32.mrf.mxu1 }
 0x124   :  { %3705 = vst.msk [vmem:[%s7058_s3 + $0xa8] sm:$0xf] %vm3662_vm3, %v4480_v24  ;;  %3833 = vst.msk [vmem:[%s7058_s3 + $0x2a8] sm:$0xf] %vm3662_vm3, %v4608_v25  ;;  %v2425_v32 = vmax.f32 %v1531_v26, 0.0  ;;  %v2553_v33 = vmax.f32 %v2043_v27, 0.0  ;;  %v1523_v34 = vadd.f32 %v5655_v44, %v1522_v30  ;;  %v2035_v35 = vadd.f32 %v5655_v44, %v2034_v31 }
 0x125   :  { %v4478_v36 = vpack.c.bf16 %v2422_v28, %v2422_v28  ;;  %v4606_v37 = vpack.c.bf16 %v2550_v29, %v2550_v29  ;;  %v4874_v38 = vpop.f32.mrf.mxu0  ;;  %v5002_v39 = vpop.f32.mrf.mxu1 }
 0x126   :  { %v4481_v40 = vpack.c.bf16 %v2425_v32, %v2425_v32  ;;  %v4609_v41 = vpack.c.bf16 %v2553_v33, %v2553_v33  ;;  %v2423_v42 = vmax.f32 %v1523_v34, 0.0  ;;  %v2551_v43 = vmax.f32 %v2035_v35, 0.0 }
 0x127   :  { %3703 = vst.msk [vmem:[%s7058_s3 + $0xa0] sm:$0xf] %vm3662_vm3, %v4478_v36  ;;  %3831 = vst.msk [vmem:[%s7058_s3 + $0x2a0] sm:$0xf] %vm3662_vm3, %v4606_v37  ;;  %v1544_v45 = vadd.f32 %v4874_v38, %v5655_v44  ;;  %v2056_v46 = vadd.f32 %v5002_v39, %v5655_v44  ;;  %v1535_v47 = vpop.f32.mrf.mxu0  ;;  %v2047_v48 = vpop.f32.mrf.mxu1 }
 0x128   :  { %3706 = vst.msk [vmem:[%s7058_s3 + $0xac] sm:$0xf] %vm3662_vm3, %v4481_v40  ;;  %3834 = vst.msk [vmem:[%s7058_s3 + $0x2ac] sm:$0xf] %vm3662_vm3, %v4609_v41  ;;  %v4479_v49 = vpack.c.bf16 %v2423_v42, %v2423_v42  ;;  %v4607_v50 = vpack.c.bf16 %v2551_v43, %v2551_v43  ;;  %v1536_v51 = vadd.f32 %v5655_v44, %v1535_v47 }
 0x129   :  { %v2048_v52 = vadd.f32 %v5655_v44, %v2047_v48  ;;  %v2428_v53 = vmax.f32 %v1544_v45, 0.0  ;;  %v2556_v54 = vmax.f32 %v2056_v46, 0.0  ;;  %v4875_v55 = vpop.f32.mrf.mxu0  ;;  %v5003_v56 = vpop.f32.mrf.mxu1  ;;  %v6212_v44 = vld [vmem:[%s7057_s2] ss:$0 sm:$0xff] }
 0x12a   :  { %3704 = vst.msk [vmem:[%s7058_s3 + $0xa4] sm:$0xf] %vm3662_vm3, %v4479_v49  ;;  %3832 = vst.msk [vmem:[%s7058_s3 + $0x2a4] sm:$0xf] %vm3662_vm3, %v4607_v50  ;;  %v2426_v57 = vmax.f32 %v1536_v51, 0.0  ;;  %v1547_v59 = vadd.f32 %v6212_v44, %v4875_v55  ;;  %v2059_v60 = vadd.f32 %v6212_v44, %v5003_v56 }
 0x12b   :  { %v2554_v58 = vmax.f32 %v2048_v52, 0.0  ;;  %v4484_v61 = vpack.c.bf16 %v2428_v53, %v2428_v53  ;;  %v4612_v62 = vpack.c.bf16 %v2556_v54, %v2556_v54  ;;  %v1538_v63 = vpop.f32.mrf.mxu0  ;;  %v2050_v0 = vpop.f32.mrf.mxu1 }
 0x12c   :  { %v4482_v1 = vpack.c.bf16 %v2426_v57, %v2426_v57  ;;  %v2429_v3 = vmax.f32 %v1547_v59, 0.0  ;;  %v2557_v4 = vmax.f32 %v2059_v60, 0.0  ;;  %v1539_v5 = vadd.f32 %v6212_v44, %v1538_v63 }
 0x12d   :  { %v4610_v2 = vpack.c.bf16 %v2554_v58, %v2554_v58  ;;  %3709 = vst.msk [vmem:[%s7058_s3 + $0xb8] sm:$0xf] %vm3662_vm3, %v4484_v61  ;;  %3837 = vst.msk [vmem:[%s7058_s3 + $0x2b8] sm:$0xf] %vm3662_vm3, %v4612_v62  ;;  %v2051_v6 = vadd.f32 %v6212_v44, %v2050_v0  ;;  %v4878_v7 = vpop.f32.mrf.mxu0  ;;  %v5006_v8 = vpop.f32.mrf.mxu1 }
 0x12e   :  { %3707 = vst.msk [vmem:[%s7058_s3 + $0xb0] sm:$0xf] %vm3662_vm3, %v4482_v1  ;;  %v4485_v9 = vpack.c.bf16 %v2429_v3, %v2429_v3  ;;  %v4613_v10 = vpack.c.bf16 %v2557_v4, %v2557_v4  ;;  %v1560_v11 = vadd.f32 %v6212_v44, %v4878_v7  ;;  %v2072_v12 = vadd.f32 %v6212_v44, %v5006_v8 }
 0x12f   :  { %3835 = vst.msk [vmem:[%s7058_s3 + $0x2b0] sm:$0xf] %vm3662_vm3, %v4610_v2  ;;  %v2427_v13 = vmax.f32 %v1539_v5, 0.0  ;;  %v2555_v14 = vmax.f32 %v2051_v6, 0.0  ;;  %v1551_v15 = vpop.f32.mrf.mxu0  ;;  %v2063_v16 = vpop.f32.mrf.mxu1 }
 0x130   :  { %3710 = vst.msk [vmem:[%s7058_s3 + $0xbc] sm:$0xf] %vm3662_vm3, %v4485_v9  ;;  %3838 = vst.msk [vmem:[%s7058_s3 + $0x2bc] sm:$0xf] %vm3662_vm3, %v4613_v10  ;;  %v2432_v17 = vmax.f32 %v1560_v11, 0.0  ;;  %v2560_v18 = vmax.f32 %v2072_v12, 0.0  ;;  %v1552_v19 = vadd.f32 %v6212_v44, %v1551_v15  ;;  %v2064_v20 = vadd.f32 %v6212_v44, %v2063_v16 }
 0x131   :  { %v4483_v21 = vpack.c.bf16 %v2427_v13, %v2427_v13  ;;  %v4611_v22 = vpack.c.bf16 %v2555_v14, %v2555_v14  ;;  %v4879_v23 = vpop.f32.mrf.mxu0  ;;  %v5007_v24 = vpop.f32.mrf.mxu1 }
 0x132   :  { %v4488_v25 = vpack.c.bf16 %v2432_v17, %v2432_v17  ;;  %v4616_v26 = vpack.c.bf16 %v2560_v18, %v2560_v18  ;;  %v2430_v27 = vmax.f32 %v1552_v19, 0.0  ;;  %v2558_v28 = vmax.f32 %v2064_v20, 0.0 }
 0x133   :  { %3708 = vst.msk [vmem:[%s7058_s3 + $0xb4] sm:$0xf] %vm3662_vm3, %v4483_v21  ;;  %3836 = vst.msk [vmem:[%s7058_s3 + $0x2b4] sm:$0xf] %vm3662_vm3, %v4611_v22  ;;  %v1563_v29 = vadd.f32 %v6212_v44, %v4879_v23  ;;  %v2075_v30 = vadd.f32 %v6212_v44, %v5007_v24  ;;  %v1554_v31 = vpop.f32.mrf.mxu0  ;;  %v2066_v32 = vpop.f32.mrf.mxu1 }
 0x134   :  { %3713 = vst.msk [vmem:[%s7058_s3 + $0xc8] sm:$0xf] %vm3662_vm3, %v4488_v25  ;;  %3841 = vst.msk [vmem:[%s7058_s3 + $0x2c8] sm:$0xf] %vm3662_vm3, %v4616_v26  ;;  %v4486_v33 = vpack.c.bf16 %v2430_v27, %v2430_v27  ;;  %v4614_v34 = vpack.c.bf16 %v2558_v28, %v2558_v28  ;;  %v1555_v35 = vadd.f32 %v6212_v44, %v1554_v31 }
 0x135   :  { %v2067_v36 = vadd.f32 %v6212_v44, %v2066_v32  ;;  %v2433_v37 = vmax.f32 %v1563_v29, 0.0  ;;  %v2561_v38 = vmax.f32 %v2075_v30, 0.0  ;;  %v4882_v39 = vpop.f32.mrf.mxu0  ;;  %v5010_v40 = vpop.f32.mrf.mxu1 }
 0x136   :  { %3711 = vst.msk [vmem:[%s7058_s3 + $0xc0] sm:$0xf] %vm3662_vm3, %v4486_v33  ;;  %3839 = vst.msk [vmem:[%s7058_s3 + $0x2c0] sm:$0xf] %vm3662_vm3, %v4614_v34  ;;  %v2431_v41 = vmax.f32 %v1555_v35, 0.0  ;;  %v1576_v43 = vadd.f32 %v6212_v44, %v4882_v39  ;;  %v2088_v45 = vadd.f32 %v6212_v44, %v5010_v40 }
 0x137   :  { %v2559_v42 = vmax.f32 %v2067_v36, 0.0  ;;  %v4489_v46 = vpack.c.bf16 %v2433_v37, %v2433_v37  ;;  %v4617_v47 = vpack.c.bf16 %v2561_v38, %v2561_v38  ;;  %v1567_v48 = vpop.f32.mrf.mxu0  ;;  %v2079_v49 = vpop.f32.mrf.mxu1 }
 0x138   :  { %v4487_v50 = vpack.c.bf16 %v2431_v41, %v2431_v41  ;;  %v2436_v52 = vmax.f32 %v1576_v43, 0.0  ;;  %v2564_v53 = vmax.f32 %v2088_v45, 0.0  ;;  %v1568_v54 = vadd.f32 %v6212_v44, %v1567_v48 }
 0x139   :  { %v4615_v51 = vpack.c.bf16 %v2559_v42, %v2559_v42  ;;  %3714 = vst.msk [vmem:[%s7058_s3 + $0xcc] sm:$0xf] %vm3662_vm3, %v4489_v46  ;;  %3842 = vst.msk [vmem:[%s7058_s3 + $0x2cc] sm:$0xf] %vm3662_vm3, %v4617_v47  ;;  %v2080_v55 = vadd.f32 %v6212_v44, %v2079_v49  ;;  %v4883_v56 = vpop.f32.mrf.mxu0  ;;  %v5011_v57 = vpop.f32.mrf.mxu1 }
 0x13a   :  { %3712 = vst.msk [vmem:[%s7058_s3 + $0xc4] sm:$0xf] %vm3662_vm3, %v4487_v50  ;;  %v4492_v58 = vpack.c.bf16 %v2436_v52, %v2436_v52  ;;  %v4620_v59 = vpack.c.bf16 %v2564_v53, %v2564_v53  ;;  %v1579_v60 = vadd.f32 %v6212_v44, %v4883_v56  ;;  %v2091_v61 = vadd.f32 %v6212_v44, %v5011_v57 }
 0x13b   :  { %3840 = vst.msk [vmem:[%s7058_s3 + $0x2c4] sm:$0xf] %vm3662_vm3, %v4615_v51  ;;  %v2434_v62 = vmax.f32 %v1568_v54, 0.0  ;;  %v2562_v63 = vmax.f32 %v2080_v55, 0.0  ;;  %v1570_v0 = vpop.f32.mrf.mxu0  ;;  %v2082_v1 = vpop.f32.mrf.mxu1 }
 0x13c   :  { %3717 = vst.msk [vmem:[%s7058_s3 + $0xd8] sm:$0xf] %vm3662_vm3, %v4492_v58  ;;  %3845 = vst.msk [vmem:[%s7058_s3 + $0x2d8] sm:$0xf] %vm3662_vm3, %v4620_v59  ;;  %v2437_v2 = vmax.f32 %v1579_v60, 0.0  ;;  %v2565_v3 = vmax.f32 %v2091_v61, 0.0  ;;  %v1571_v4 = vadd.f32 %v6212_v44, %v1570_v0  ;;  %v2083_v5 = vadd.f32 %v6212_v44, %v2082_v1 }
 0x13d   :  { %v4490_v6 = vpack.c.bf16 %v2434_v62, %v2434_v62  ;;  %v4618_v7 = vpack.c.bf16 %v2562_v63, %v2562_v63  ;;  %v4886_v8 = vpop.f32.mrf.mxu0  ;;  %v5014_v9 = vpop.f32.mrf.mxu1 }
 0x13e   :  { %v4493_v10 = vpack.c.bf16 %v2437_v2, %v2437_v2  ;;  %v4621_v11 = vpack.c.bf16 %v2565_v3, %v2565_v3  ;;  %v2435_v12 = vmax.f32 %v1571_v4, 0.0  ;;  %v2563_v13 = vmax.f32 %v2083_v5, 0.0 }
 0x13f   :  { %3715 = vst.msk [vmem:[%s7058_s3 + $0xd0] sm:$0xf] %vm3662_vm3, %v4490_v6  ;;  %3843 = vst.msk [vmem:[%s7058_s3 + $0x2d0] sm:$0xf] %vm3662_vm3, %v4618_v7  ;;  %v1592_v14 = vadd.f32 %v6212_v44, %v4886_v8  ;;  %v2104_v15 = vadd.f32 %v6212_v44, %v5014_v9  ;;  %v1583_v16 = vpop.f32.mrf.mxu0  ;;  %v2095_v17 = vpop.f32.mrf.mxu1 }
 0x140   :  { %3718 = vst.msk [vmem:[%s7058_s3 + $0xdc] sm:$0xf] %vm3662_vm3, %v4493_v10  ;;  %3846 = vst.msk [vmem:[%s7058_s3 + $0x2dc] sm:$0xf] %vm3662_vm3, %v4621_v11  ;;  %v4491_v18 = vpack.c.bf16 %v2435_v12, %v2435_v12  ;;  %v4619_v19 = vpack.c.bf16 %v2563_v13, %v2563_v13  ;;  %v1584_v20 = vadd.f32 %v6212_v44, %v1583_v16 }
 0x141   :  { %v2096_v21 = vadd.f32 %v6212_v44, %v2095_v17  ;;  %v2440_v22 = vmax.f32 %v1592_v14, 0.0  ;;  %v2568_v23 = vmax.f32 %v2104_v15, 0.0  ;;  %v4887_v24 = vpop.f32.mrf.mxu0  ;;  %v5015_v25 = vpop.f32.mrf.mxu1 }
 0x142   :  { %3716 = vst.msk [vmem:[%s7058_s3 + $0xd4] sm:$0xf] %vm3662_vm3, %v4491_v18  ;;  %3844 = vst.msk [vmem:[%s7058_s3 + $0x2d4] sm:$0xf] %vm3662_vm3, %v4619_v19  ;;  %v2438_v26 = vmax.f32 %v1584_v20, 0.0  ;;  %v1595_v28 = vadd.f32 %v6212_v44, %v4887_v24  ;;  %v2107_v29 = vadd.f32 %v6212_v44, %v5015_v25 }
 0x143   :  { %v2566_v27 = vmax.f32 %v2096_v21, 0.0  ;;  %v4496_v30 = vpack.c.bf16 %v2440_v22, %v2440_v22  ;;  %v4624_v31 = vpack.c.bf16 %v2568_v23, %v2568_v23  ;;  %v1586_v32 = vpop.f32.mrf.mxu0  ;;  %v2098_v33 = vpop.f32.mrf.mxu1 }
 0x144   :  { %v4494_v34 = vpack.c.bf16 %v2438_v26, %v2438_v26  ;;  %v2441_v36 = vmax.f32 %v1595_v28, 0.0  ;;  %v2569_v37 = vmax.f32 %v2107_v29, 0.0  ;;  %v1587_v38 = vadd.f32 %v6212_v44, %v1586_v32 }
 0x145   :  { %v4622_v35 = vpack.c.bf16 %v2566_v27, %v2566_v27  ;;  %3721 = vst.msk [vmem:[%s7058_s3 + $0xe8] sm:$0xf] %vm3662_vm3, %v4496_v30  ;;  %3849 = vst.msk [vmem:[%s7058_s3 + $0x2e8] sm:$0xf] %vm3662_vm3, %v4624_v31  ;;  %v2099_v39 = vadd.f32 %v6212_v44, %v2098_v33  ;;  %v4890_v40 = vpop.f32.mrf.mxu0  ;;  %v5018_v41 = vpop.f32.mrf.mxu1 }
 0x146   :  { %3719 = vst.msk [vmem:[%s7058_s3 + $0xe0] sm:$0xf] %vm3662_vm3, %v4494_v34  ;;  %v4497_v42 = vpack.c.bf16 %v2441_v36, %v2441_v36  ;;  %v4625_v43 = vpack.c.bf16 %v2569_v37, %v2569_v37  ;;  %v1608_v45 = vadd.f32 %v6212_v44, %v4890_v40  ;;  %v2120_v46 = vadd.f32 %v6212_v44, %v5018_v41 }
 0x147   :  { %3847 = vst.msk [vmem:[%s7058_s3 + $0x2e0] sm:$0xf] %vm3662_vm3, %v4622_v35  ;;  %v2439_v47 = vmax.f32 %v1587_v38, 0.0  ;;  %v2567_v48 = vmax.f32 %v2099_v39, 0.0  ;;  %v1599_v49 = vpop.f32.mrf.mxu0  ;;  %v2111_v50 = vpop.f32.mrf.mxu1 }
 0x148   :  { %3722 = vst.msk [vmem:[%s7058_s3 + $0xec] sm:$0xf] %vm3662_vm3, %v4497_v42  ;;  %3850 = vst.msk [vmem:[%s7058_s3 + $0x2ec] sm:$0xf] %vm3662_vm3, %v4625_v43  ;;  %v2444_v51 = vmax.f32 %v1608_v45, 0.0  ;;  %v2572_v52 = vmax.f32 %v2120_v46, 0.0  ;;  %v1600_v53 = vadd.f32 %v6212_v44, %v1599_v49  ;;  %v2112_v54 = vadd.f32 %v6212_v44, %v2111_v50 }
 0x149   :  { %v4495_v55 = vpack.c.bf16 %v2439_v47, %v2439_v47  ;;  %v4623_v56 = vpack.c.bf16 %v2567_v48, %v2567_v48  ;;  %v4891_v57 = vpop.f32.mrf.mxu0  ;;  %v5019_v58 = vpop.f32.mrf.mxu1 }
 0x14a   :  { %v4500_v59 = vpack.c.bf16 %v2444_v51, %v2444_v51  ;;  %v4628_v60 = vpack.c.bf16 %v2572_v52, %v2572_v52  ;;  %v2442_v61 = vmax.f32 %v1600_v53, 0.0  ;;  %v2570_v62 = vmax.f32 %v2112_v54, 0.0 }
 0x14b   :  { %3720 = vst.msk [vmem:[%s7058_s3 + $0xe4] sm:$0xf] %vm3662_vm3, %v4495_v55  ;;  %3848 = vst.msk [vmem:[%s7058_s3 + $0x2e4] sm:$0xf] %vm3662_vm3, %v4623_v56  ;;  %v1611_v63 = vadd.f32 %v6212_v44, %v4891_v57  ;;  %v2123_v0 = vadd.f32 %v6212_v44, %v5019_v58  ;;  %v1602_v1 = vpop.f32.mrf.mxu0  ;;  %v2114_v2 = vpop.f32.mrf.mxu1 }
 0x14c   :  { %3725 = vst.msk [vmem:[%s7058_s3 + $0xf8] sm:$0xf] %vm3662_vm3, %v4500_v59  ;;  %3853 = vst.msk [vmem:[%s7058_s3 + $0x2f8] sm:$0xf] %vm3662_vm3, %v4628_v60  ;;  %v4498_v3 = vpack.c.bf16 %v2442_v61, %v2442_v61  ;;  %v4626_v4 = vpack.c.bf16 %v2570_v62, %v2570_v62  ;;  %v1603_v5 = vadd.f32 %v6212_v44, %v1602_v1 }
 0x14d   :  { %v2115_v6 = vadd.f32 %v6212_v44, %v2114_v2  ;;  %v2445_v7 = vmax.f32 %v1611_v63, 0.0  ;;  %v2573_v8 = vmax.f32 %v2123_v0, 0.0  ;;  %v4894_v9 = vpop.f32.mrf.mxu0  ;;  %v5022_v10 = vpop.f32.mrf.mxu1 }
 0x14e   :  { %3723 = vst.msk [vmem:[%s7058_s3 + $0xf0] sm:$0xf] %vm3662_vm3, %v4498_v3  ;;  %3851 = vst.msk [vmem:[%s7058_s3 + $0x2f0] sm:$0xf] %vm3662_vm3, %v4626_v4  ;;  %v2443_v11 = vmax.f32 %v1603_v5, 0.0  ;;  %v1624_v13 = vadd.f32 %v6212_v44, %v4894_v9  ;;  %v2136_v14 = vadd.f32 %v6212_v44, %v5022_v10 }
 0x14f   :  { %v2571_v12 = vmax.f32 %v2115_v6, 0.0  ;;  %v4501_v15 = vpack.c.bf16 %v2445_v7, %v2445_v7  ;;  %v4629_v16 = vpack.c.bf16 %v2573_v8, %v2573_v8  ;;  %v1615_v17 = vpop.f32.mrf.mxu0  ;;  %v2127_v18 = vpop.f32.mrf.mxu1 }
 0x150   :  { %v4499_v19 = vpack.c.bf16 %v2443_v11, %v2443_v11  ;;  %v2448_v21 = vmax.f32 %v1624_v13, 0.0  ;;  %v2576_v22 = vmax.f32 %v2136_v14, 0.0  ;;  %v1616_v23 = vadd.f32 %v6212_v44, %v1615_v17 }
 0x151   :  { %v4627_v20 = vpack.c.bf16 %v2571_v12, %v2571_v12  ;;  %3726 = vst.msk [vmem:[%s7058_s3 + $0xfc] sm:$0xf] %vm3662_vm3, %v4501_v15  ;;  %3854 = vst.msk [vmem:[%s7058_s3 + $0x2fc] sm:$0xf] %vm3662_vm3, %v4629_v16  ;;  %v2128_v24 = vadd.f32 %v6212_v44, %v2127_v18  ;;  %v4895_v25 = vpop.f32.mrf.mxu0  ;;  %v5023_v26 = vpop.f32.mrf.mxu1 }
 0x152   :  { %3724 = vst.msk [vmem:[%s7058_s3 + $0xf4] sm:$0xf] %vm3662_vm3, %v4499_v19  ;;  %v4504_v27 = vpack.c.bf16 %v2448_v21, %v2448_v21  ;;  %v4632_v28 = vpack.c.bf16 %v2576_v22, %v2576_v22  ;;  %v1627_v29 = vadd.f32 %v6212_v44, %v4895_v25  ;;  %v2139_v30 = vadd.f32 %v6212_v44, %v5023_v26 }
 0x153   :  { %3852 = vst.msk [vmem:[%s7058_s3 + $0x2f4] sm:$0xf] %vm3662_vm3, %v4627_v20  ;;  %v2446_v31 = vmax.f32 %v1616_v23, 0.0  ;;  %v2574_v32 = vmax.f32 %v2128_v24, 0.0  ;;  %v1618_v33 = vpop.f32.mrf.mxu0  ;;  %v2130_v34 = vpop.f32.mrf.mxu1 }
 0x154   :  { %3729 = vst.msk [vmem:[%s7058_s3 + $0x108] sm:$0xf] %vm3662_vm3, %v4504_v27  ;;  %3857 = vst.msk [vmem:[%s7058_s3 + $0x308] sm:$0xf] %vm3662_vm3, %v4632_v28  ;;  %v2449_v35 = vmax.f32 %v1627_v29, 0.0  ;;  %v2577_v36 = vmax.f32 %v2139_v30, 0.0  ;;  %v1619_v37 = vadd.f32 %v6212_v44, %v1618_v33  ;;  %v2131_v38 = vadd.f32 %v6212_v44, %v2130_v34 }
 0x155   :  { %v4502_v39 = vpack.c.bf16 %v2446_v31, %v2446_v31  ;;  %v4630_v40 = vpack.c.bf16 %v2574_v32, %v2574_v32  ;;  %v4898_v41 = vpop.f32.mrf.mxu0  ;;  %v5026_v42 = vpop.f32.mrf.mxu1 }
 0x156   :  { %v4505_v43 = vpack.c.bf16 %v2449_v35, %v2449_v35  ;;  %v4633_v45 = vpack.c.bf16 %v2577_v36, %v2577_v36  ;;  %v2447_v46 = vmax.f32 %v1619_v37, 0.0  ;;  %v2575_v47 = vmax.f32 %v2131_v38, 0.0 }
 0x157   :  { %3727 = vst.msk [vmem:[%s7058_s3 + $0x100] sm:$0xf] %vm3662_vm3, %v4502_v39  ;;  %3855 = vst.msk [vmem:[%s7058_s3 + $0x300] sm:$0xf] %vm3662_vm3, %v4630_v40  ;;  %v1640_v48 = vadd.f32 %v6212_v44, %v4898_v41  ;;  %v2152_v49 = vadd.f32 %v6212_v44, %v5026_v42  ;;  %v1631_v50 = vpop.f32.mrf.mxu0  ;;  %v2143_v51 = vpop.f32.mrf.mxu1 }
 0x158   :  { %3730 = vst.msk [vmem:[%s7058_s3 + $0x10c] sm:$0xf] %vm3662_vm3, %v4505_v43  ;;  %3858 = vst.msk [vmem:[%s7058_s3 + $0x30c] sm:$0xf] %vm3662_vm3, %v4633_v45  ;;  %v4503_v52 = vpack.c.bf16 %v2447_v46, %v2447_v46  ;;  %v4631_v53 = vpack.c.bf16 %v2575_v47, %v2575_v47  ;;  %v1632_v54 = vadd.f32 %v6212_v44, %v1631_v50 }
 0x159   :  { %v2144_v55 = vadd.f32 %v6212_v44, %v2143_v51  ;;  %v2452_v56 = vmax.f32 %v1640_v48, 0.0  ;;  %v2580_v57 = vmax.f32 %v2152_v49, 0.0  ;;  %v4899_v58 = vpop.f32.mrf.mxu0  ;;  %v5027_v59 = vpop.f32.mrf.mxu1 }
 0x15a   :  { %3728 = vst.msk [vmem:[%s7058_s3 + $0x104] sm:$0xf] %vm3662_vm3, %v4503_v52  ;;  %3856 = vst.msk [vmem:[%s7058_s3 + $0x304] sm:$0xf] %vm3662_vm3, %v4631_v53  ;;  %v2450_v60 = vmax.f32 %v1632_v54, 0.0  ;;  %v1643_v62 = vadd.f32 %v6212_v44, %v4899_v58  ;;  %v2155_v63 = vadd.f32 %v6212_v44, %v5027_v59 }
 0x15b   :  { %v2578_v61 = vmax.f32 %v2144_v55, 0.0  ;;  %v4508_v0 = vpack.c.bf16 %v2452_v56, %v2452_v56  ;;  %v4636_v1 = vpack.c.bf16 %v2580_v57, %v2580_v57  ;;  %v1634_v2 = vpop.f32.mrf.mxu0  ;;  %v2146_v3 = vpop.f32.mrf.mxu1 }
 0x15c   :  { %v4506_v4 = vpack.c.bf16 %v2450_v60, %v2450_v60  ;;  %v2453_v6 = vmax.f32 %v1643_v62, 0.0  ;;  %v2581_v7 = vmax.f32 %v2155_v63, 0.0  ;;  %v1635_v8 = vadd.f32 %v6212_v44, %v1634_v2 }
 0x15d   :  { %v4634_v5 = vpack.c.bf16 %v2578_v61, %v2578_v61  ;;  %3733 = vst.msk [vmem:[%s7058_s3 + $0x118] sm:$0xf] %vm3662_vm3, %v4508_v0  ;;  %3861 = vst.msk [vmem:[%s7058_s3 + $0x318] sm:$0xf] %vm3662_vm3, %v4636_v1  ;;  %v2147_v9 = vadd.f32 %v6212_v44, %v2146_v3  ;;  %v4902_v10 = vpop.f32.mrf.mxu0  ;;  %v5030_v11 = vpop.f32.mrf.mxu1 }
 0x15e   :  { %3731 = vst.msk [vmem:[%s7058_s3 + $0x110] sm:$0xf] %vm3662_vm3, %v4506_v4  ;;  %v4509_v12 = vpack.c.bf16 %v2453_v6, %v2453_v6  ;;  %v4637_v13 = vpack.c.bf16 %v2581_v7, %v2581_v7  ;;  %v1656_v14 = vadd.f32 %v6212_v44, %v4902_v10  ;;  %v2168_v15 = vadd.f32 %v6212_v44, %v5030_v11 }
 0x15f   :  { %3859 = vst.msk [vmem:[%s7058_s3 + $0x310] sm:$0xf] %vm3662_vm3, %v4634_v5  ;;  %v2451_v16 = vmax.f32 %v1635_v8, 0.0  ;;  %v2579_v17 = vmax.f32 %v2147_v9, 0.0  ;;  %v1647_v18 = vpop.f32.mrf.mxu0  ;;  %v2159_v19 = vpop.f32.mrf.mxu1 }
 0x160   :  { %3734 = vst.msk [vmem:[%s7058_s3 + $0x11c] sm:$0xf] %vm3662_vm3, %v4509_v12  ;;  %3862 = vst.msk [vmem:[%s7058_s3 + $0x31c] sm:$0xf] %vm3662_vm3, %v4637_v13  ;;  %v2456_v20 = vmax.f32 %v1656_v14, 0.0  ;;  %v2584_v21 = vmax.f32 %v2168_v15, 0.0  ;;  %v1648_v22 = vadd.f32 %v6212_v44, %v1647_v18  ;;  %v2160_v23 = vadd.f32 %v6212_v44, %v2159_v19 }
 0x161   :  { %v4507_v24 = vpack.c.bf16 %v2451_v16, %v2451_v16  ;;  %v4635_v25 = vpack.c.bf16 %v2579_v17, %v2579_v17  ;;  %v4903_v26 = vpop.f32.mrf.mxu0  ;;  %v5031_v27 = vpop.f32.mrf.mxu1 }
 0x162   :  { %v4512_v28 = vpack.c.bf16 %v2456_v20, %v2456_v20  ;;  %v4640_v29 = vpack.c.bf16 %v2584_v21, %v2584_v21  ;;  %v2454_v30 = vmax.f32 %v1648_v22, 0.0  ;;  %v2582_v31 = vmax.f32 %v2160_v23, 0.0 }
 0x163   :  { %3732 = vst.msk [vmem:[%s7058_s3 + $0x114] sm:$0xf] %vm3662_vm3, %v4507_v24  ;;  %3860 = vst.msk [vmem:[%s7058_s3 + $0x314] sm:$0xf] %vm3662_vm3, %v4635_v25  ;;  %v1659_v32 = vadd.f32 %v6212_v44, %v4903_v26  ;;  %v2171_v33 = vadd.f32 %v6212_v44, %v5031_v27  ;;  %v1650_v34 = vpop.f32.mrf.mxu0  ;;  %v2162_v35 = vpop.f32.mrf.mxu1 }
 0x164   :  { %3737 = vst.msk [vmem:[%s7058_s3 + $0x128] sm:$0xf] %vm3662_vm3, %v4512_v28  ;;  %3865 = vst.msk [vmem:[%s7058_s3 + $0x328] sm:$0xf] %vm3662_vm3, %v4640_v29  ;;  %v4510_v36 = vpack.c.bf16 %v2454_v30, %v2454_v30  ;;  %v4638_v37 = vpack.c.bf16 %v2582_v31, %v2582_v31  ;;  %v1651_v38 = vadd.f32 %v6212_v44, %v1650_v34 }
 0x165   :  { %v2163_v39 = vadd.f32 %v6212_v44, %v2162_v35  ;;  %v2457_v40 = vmax.f32 %v1659_v32, 0.0  ;;  %v2585_v41 = vmax.f32 %v2171_v33, 0.0  ;;  %v4906_v42 = vpop.f32.mrf.mxu0  ;;  %v5034_v43 = vpop.f32.mrf.mxu1 }
 0x166   :  { %3735 = vst.msk [vmem:[%s7058_s3 + $0x120] sm:$0xf] %vm3662_vm3, %v4510_v36  ;;  %3863 = vst.msk [vmem:[%s7058_s3 + $0x320] sm:$0xf] %vm3662_vm3, %v4638_v37  ;;  %v2455_v45 = vmax.f32 %v1651_v38, 0.0  ;;  %v1672_v47 = vadd.f32 %v6212_v44, %v4906_v42  ;;  %v2184_v48 = vadd.f32 %v6212_v44, %v5034_v43 }
 0x167   :  { %v2583_v46 = vmax.f32 %v2163_v39, 0.0  ;;  %v4513_v49 = vpack.c.bf16 %v2457_v40, %v2457_v40  ;;  %v4641_v50 = vpack.c.bf16 %v2585_v41, %v2585_v41  ;;  %v1663_v51 = vpop.f32.mrf.mxu0  ;;  %v2175_v52 = vpop.f32.mrf.mxu1 }
 0x168   :  { %v4511_v53 = vpack.c.bf16 %v2455_v45, %v2455_v45  ;;  %v2460_v55 = vmax.f32 %v1672_v47, 0.0  ;;  %v2588_v56 = vmax.f32 %v2184_v48, 0.0  ;;  %v1664_v57 = vadd.f32 %v6212_v44, %v1663_v51 }
 0x169   :  { %v4639_v54 = vpack.c.bf16 %v2583_v46, %v2583_v46  ;;  %3738 = vst.msk [vmem:[%s7058_s3 + $0x12c] sm:$0xf] %vm3662_vm3, %v4513_v49  ;;  %3866 = vst.msk [vmem:[%s7058_s3 + $0x32c] sm:$0xf] %vm3662_vm3, %v4641_v50  ;;  %v2176_v58 = vadd.f32 %v6212_v44, %v2175_v52  ;;  %v4907_v59 = vpop.f32.mrf.mxu0  ;;  %v5035_v60 = vpop.f32.mrf.mxu1 }
 0x16a   :  { %3736 = vst.msk [vmem:[%s7058_s3 + $0x124] sm:$0xf] %vm3662_vm3, %v4511_v53  ;;  %v4516_v61 = vpack.c.bf16 %v2460_v55, %v2460_v55  ;;  %v4644_v62 = vpack.c.bf16 %v2588_v56, %v2588_v56  ;;  %v1675_v63 = vadd.f32 %v6212_v44, %v4907_v59  ;;  %v2187_v0 = vadd.f32 %v6212_v44, %v5035_v60 }
 0x16b   :  { %3864 = vst.msk [vmem:[%s7058_s3 + $0x324] sm:$0xf] %vm3662_vm3, %v4639_v54  ;;  %v2458_v1 = vmax.f32 %v1664_v57, 0.0  ;;  %v2586_v2 = vmax.f32 %v2176_v58, 0.0  ;;  %v1666_v3 = vpop.f32.mrf.mxu0  ;;  %v2178_v4 = vpop.f32.mrf.mxu1 }
 0x16c   :  { %3741 = vst.msk [vmem:[%s7058_s3 + $0x138] sm:$0xf] %vm3662_vm3, %v4516_v61  ;;  %3869 = vst.msk [vmem:[%s7058_s3 + $0x338] sm:$0xf] %vm3662_vm3, %v4644_v62  ;;  %v2461_v5 = vmax.f32 %v1675_v63, 0.0  ;;  %v2589_v6 = vmax.f32 %v2187_v0, 0.0  ;;  %v1667_v7 = vadd.f32 %v6212_v44, %v1666_v3  ;;  %v2179_v8 = vadd.f32 %v6212_v44, %v2178_v4 }
 0x16d   :  { %v4514_v9 = vpack.c.bf16 %v2458_v1, %v2458_v1  ;;  %v4642_v10 = vpack.c.bf16 %v2586_v2, %v2586_v2  ;;  %v4910_v11 = vpop.f32.mrf.mxu0  ;;  %v5038_v12 = vpop.f32.mrf.mxu1 }
 0x16e   :  { %v4517_v13 = vpack.c.bf16 %v2461_v5, %v2461_v5  ;;  %v4645_v14 = vpack.c.bf16 %v2589_v6, %v2589_v6  ;;  %v2459_v15 = vmax.f32 %v1667_v7, 0.0  ;;  %v2587_v16 = vmax.f32 %v2179_v8, 0.0 }
 0x16f   :  { %3739 = vst.msk [vmem:[%s7058_s3 + $0x130] sm:$0xf] %vm3662_vm3, %v4514_v9  ;;  %3867 = vst.msk [vmem:[%s7058_s3 + $0x330] sm:$0xf] %vm3662_vm3, %v4642_v10  ;;  %v1688_v17 = vadd.f32 %v6212_v44, %v4910_v11  ;;  %v2200_v18 = vadd.f32 %v6212_v44, %v5038_v12  ;;  %v1679_v19 = vpop.f32.mrf.mxu0  ;;  %v2191_v20 = vpop.f32.mrf.mxu1 }
 0x170   :  { %3742 = vst.msk [vmem:[%s7058_s3 + $0x13c] sm:$0xf] %vm3662_vm3, %v4517_v13  ;;  %3870 = vst.msk [vmem:[%s7058_s3 + $0x33c] sm:$0xf] %vm3662_vm3, %v4645_v14  ;;  %v4515_v21 = vpack.c.bf16 %v2459_v15, %v2459_v15  ;;  %v4643_v22 = vpack.c.bf16 %v2587_v16, %v2587_v16  ;;  %v1680_v23 = vadd.f32 %v6212_v44, %v1679_v19 }
 0x171   :  { %v2192_v24 = vadd.f32 %v6212_v44, %v2191_v20  ;;  %v2464_v25 = vmax.f32 %v1688_v17, 0.0  ;;  %v2592_v26 = vmax.f32 %v2200_v18, 0.0  ;;  %v4911_v27 = vpop.f32.mrf.mxu0  ;;  %v5039_v28 = vpop.f32.mrf.mxu1 }
 0x172   :  { %3740 = vst.msk [vmem:[%s7058_s3 + $0x134] sm:$0xf] %vm3662_vm3, %v4515_v21  ;;  %3868 = vst.msk [vmem:[%s7058_s3 + $0x334] sm:$0xf] %vm3662_vm3, %v4643_v22  ;;  %v2462_v29 = vmax.f32 %v1680_v23, 0.0  ;;  %v1691_v31 = vadd.f32 %v6212_v44, %v4911_v27  ;;  %v2203_v32 = vadd.f32 %v6212_v44, %v5039_v28 }
 0x173   :  { %v2590_v30 = vmax.f32 %v2192_v24, 0.0  ;;  %v4520_v33 = vpack.c.bf16 %v2464_v25, %v2464_v25  ;;  %v4648_v34 = vpack.c.bf16 %v2592_v26, %v2592_v26  ;;  %v1682_v35 = vpop.f32.mrf.mxu0  ;;  %v2194_v36 = vpop.f32.mrf.mxu1 }
 0x174   :  { %v4518_v37 = vpack.c.bf16 %v2462_v29, %v2462_v29  ;;  %v2465_v39 = vmax.f32 %v1691_v31, 0.0  ;;  %v2593_v40 = vmax.f32 %v2203_v32, 0.0  ;;  %v1683_v41 = vadd.f32 %v6212_v44, %v1682_v35 }
 0x175   :  { %v4646_v38 = vpack.c.bf16 %v2590_v30, %v2590_v30  ;;  %3745 = vst.msk [vmem:[%s7058_s3 + $0x148] sm:$0xf] %vm3662_vm3, %v4520_v33  ;;  %3873 = vst.msk [vmem:[%s7058_s3 + $0x348] sm:$0xf] %vm3662_vm3, %v4648_v34  ;;  %v2195_v42 = vadd.f32 %v6212_v44, %v2194_v36  ;;  %v4914_v43 = vpop.f32.mrf.mxu0  ;;  %v5042_v45 = vpop.f32.mrf.mxu1 }
 0x176   :  { %3743 = vst.msk [vmem:[%s7058_s3 + $0x140] sm:$0xf] %vm3662_vm3, %v4518_v37  ;;  %v4521_v46 = vpack.c.bf16 %v2465_v39, %v2465_v39  ;;  %v4649_v47 = vpack.c.bf16 %v2593_v40, %v2593_v40  ;;  %v1704_v48 = vadd.f32 %v6212_v44, %v4914_v43  ;;  %v2216_v49 = vadd.f32 %v6212_v44, %v5042_v45 }
 0x177   :  { %3871 = vst.msk [vmem:[%s7058_s3 + $0x340] sm:$0xf] %vm3662_vm3, %v4646_v38  ;;  %v2463_v50 = vmax.f32 %v1683_v41, 0.0  ;;  %v2591_v51 = vmax.f32 %v2195_v42, 0.0  ;;  %v1695_v52 = vpop.f32.mrf.mxu0  ;;  %v2207_v53 = vpop.f32.mrf.mxu1 }
 0x178   :  { %3746 = vst.msk [vmem:[%s7058_s3 + $0x14c] sm:$0xf] %vm3662_vm3, %v4521_v46  ;;  %3874 = vst.msk [vmem:[%s7058_s3 + $0x34c] sm:$0xf] %vm3662_vm3, %v4649_v47  ;;  %v2468_v54 = vmax.f32 %v1704_v48, 0.0  ;;  %v2596_v55 = vmax.f32 %v2216_v49, 0.0  ;;  %v1696_v56 = vadd.f32 %v6212_v44, %v1695_v52  ;;  %v2208_v57 = vadd.f32 %v6212_v44, %v2207_v53 }
 0x179   :  { %v4519_v58 = vpack.c.bf16 %v2463_v50, %v2463_v50  ;;  %v4647_v59 = vpack.c.bf16 %v2591_v51, %v2591_v51  ;;  %v4915_v60 = vpop.f32.mrf.mxu0  ;;  %v5043_v61 = vpop.f32.mrf.mxu1 }
 0x17a   :  { %v4524_v62 = vpack.c.bf16 %v2468_v54, %v2468_v54  ;;  %v4652_v63 = vpack.c.bf16 %v2596_v55, %v2596_v55  ;;  %v2466_v0 = vmax.f32 %v1696_v56, 0.0  ;;  %v2594_v1 = vmax.f32 %v2208_v57, 0.0 }
 0x17b   :  { %3744 = vst.msk [vmem:[%s7058_s3 + $0x144] sm:$0xf] %vm3662_vm3, %v4519_v58  ;;  %3872 = vst.msk [vmem:[%s7058_s3 + $0x344] sm:$0xf] %vm3662_vm3, %v4647_v59  ;;  %v1707_v2 = vadd.f32 %v6212_v44, %v4915_v60  ;;  %v2219_v3 = vadd.f32 %v6212_v44, %v5043_v61  ;;  %v1698_v4 = vpop.f32.mrf.mxu0  ;;  %v2210_v5 = vpop.f32.mrf.mxu1 }
 0x17c   :  { %3749 = vst.msk [vmem:[%s7058_s3 + $0x158] sm:$0xf] %vm3662_vm3, %v4524_v62  ;;  %3877 = vst.msk [vmem:[%s7058_s3 + $0x358] sm:$0xf] %vm3662_vm3, %v4652_v63  ;;  %v4522_v6 = vpack.c.bf16 %v2466_v0, %v2466_v0  ;;  %v4650_v7 = vpack.c.bf16 %v2594_v1, %v2594_v1  ;;  %v1699_v8 = vadd.f32 %v6212_v44, %v1698_v4 }
 0x17d   :  { %v2211_v9 = vadd.f32 %v6212_v44, %v2210_v5  ;;  %v2469_v10 = vmax.f32 %v1707_v2, 0.0  ;;  %v2597_v11 = vmax.f32 %v2219_v3, 0.0  ;;  %v4918_v12 = vpop.f32.mrf.mxu0  ;;  %v5046_v13 = vpop.f32.mrf.mxu1 }
 0x17e   :  { %3747 = vst.msk [vmem:[%s7058_s3 + $0x150] sm:$0xf] %vm3662_vm3, %v4522_v6  ;;  %3875 = vst.msk [vmem:[%s7058_s3 + $0x350] sm:$0xf] %vm3662_vm3, %v4650_v7  ;;  %v2467_v14 = vmax.f32 %v1699_v8, 0.0  ;;  %v1720_v16 = vadd.f32 %v6212_v44, %v4918_v12  ;;  %v2232_v17 = vadd.f32 %v6212_v44, %v5046_v13 }
 0x17f   :  { %v2595_v15 = vmax.f32 %v2211_v9, 0.0  ;;  %v4525_v18 = vpack.c.bf16 %v2469_v10, %v2469_v10  ;;  %v4653_v19 = vpack.c.bf16 %v2597_v11, %v2597_v11  ;;  %v1711_v20 = vpop.f32.mrf.mxu0  ;;  %v2223_v21 = vpop.f32.mrf.mxu1 }
 0x180   :  { %v4523_v22 = vpack.c.bf16 %v2467_v14, %v2467_v14  ;;  %v2472_v24 = vmax.f32 %v1720_v16, 0.0  ;;  %v2600_v25 = vmax.f32 %v2232_v17, 0.0  ;;  %v1712_v26 = vadd.f32 %v6212_v44, %v1711_v20 }
 0x181   :  { %v4651_v23 = vpack.c.bf16 %v2595_v15, %v2595_v15  ;;  %3750 = vst.msk [vmem:[%s7058_s3 + $0x15c] sm:$0xf] %vm3662_vm3, %v4525_v18  ;;  %3878 = vst.msk [vmem:[%s7058_s3 + $0x35c] sm:$0xf] %vm3662_vm3, %v4653_v19  ;;  %v2224_v27 = vadd.f32 %v6212_v44, %v2223_v21  ;;  %v4919_v28 = vpop.f32.mrf.mxu0  ;;  %v5047_v29 = vpop.f32.mrf.mxu1 }
 0x182   :  { %3748 = vst.msk [vmem:[%s7058_s3 + $0x154] sm:$0xf] %vm3662_vm3, %v4523_v22  ;;  %v4528_v30 = vpack.c.bf16 %v2472_v24, %v2472_v24  ;;  %v4656_v31 = vpack.c.bf16 %v2600_v25, %v2600_v25  ;;  %v1723_v32 = vadd.f32 %v6212_v44, %v4919_v28  ;;  %v2235_v33 = vadd.f32 %v6212_v44, %v5047_v29 }
 0x183   :  { %3876 = vst.msk [vmem:[%s7058_s3 + $0x354] sm:$0xf] %vm3662_vm3, %v4651_v23  ;;  %v2470_v34 = vmax.f32 %v1712_v26, 0.0  ;;  %v2598_v35 = vmax.f32 %v2224_v27, 0.0  ;;  %v1714_v36 = vpop.f32.mrf.mxu0  ;;  %v2226_v37 = vpop.f32.mrf.mxu1 }
 0x184   :  { %3753 = vst.msk [vmem:[%s7058_s3 + $0x168] sm:$0xf] %vm3662_vm3, %v4528_v30  ;;  %3881 = vst.msk [vmem:[%s7058_s3 + $0x368] sm:$0xf] %vm3662_vm3, %v4656_v31  ;;  %v2473_v38 = vmax.f32 %v1723_v32, 0.0  ;;  %v2601_v39 = vmax.f32 %v2235_v33, 0.0  ;;  %v1715_v40 = vadd.f32 %v6212_v44, %v1714_v36  ;;  %v2227_v41 = vadd.f32 %v6212_v44, %v2226_v37 }
 0x185   :  { %v4526_v42 = vpack.c.bf16 %v2470_v34, %v2470_v34  ;;  %v4654_v43 = vpack.c.bf16 %v2598_v35, %v2598_v35  ;;  %v4922_v45 = vpop.f32.mrf.mxu0  ;;  %v5050_v46 = vpop.f32.mrf.mxu1 }
 0x186   :  { %v4529_v47 = vpack.c.bf16 %v2473_v38, %v2473_v38  ;;  %v4657_v48 = vpack.c.bf16 %v2601_v39, %v2601_v39  ;;  %v2471_v49 = vmax.f32 %v1715_v40, 0.0  ;;  %v2599_v50 = vmax.f32 %v2227_v41, 0.0 }
 0x187   :  { %3751 = vst.msk [vmem:[%s7058_s3 + $0x160] sm:$0xf] %vm3662_vm3, %v4526_v42  ;;  %3879 = vst.msk [vmem:[%s7058_s3 + $0x360] sm:$0xf] %vm3662_vm3, %v4654_v43  ;;  %v1736_v51 = vadd.f32 %v6212_v44, %v4922_v45  ;;  %v2248_v52 = vadd.f32 %v6212_v44, %v5050_v46  ;;  %v1727_v53 = vpop.f32.mrf.mxu0  ;;  %v2239_v54 = vpop.f32.mrf.mxu1 }
 0x188   :  { %3754 = vst.msk [vmem:[%s7058_s3 + $0x16c] sm:$0xf] %vm3662_vm3, %v4529_v47  ;;  %3882 = vst.msk [vmem:[%s7058_s3 + $0x36c] sm:$0xf] %vm3662_vm3, %v4657_v48  ;;  %v4527_v55 = vpack.c.bf16 %v2471_v49, %v2471_v49  ;;  %v4655_v56 = vpack.c.bf16 %v2599_v50, %v2599_v50  ;;  %v1728_v57 = vadd.f32 %v6212_v44, %v1727_v53 }
 0x189   :  { %v2240_v58 = vadd.f32 %v6212_v44, %v2239_v54  ;;  %v2476_v59 = vmax.f32 %v1736_v51, 0.0  ;;  %v2604_v60 = vmax.f32 %v2248_v52, 0.0  ;;  %v4923_v61 = vpop.f32.mrf.mxu0  ;;  %v5051_v62 = vpop.f32.mrf.mxu1 }
 0x18a   :  { %3752 = vst.msk [vmem:[%s7058_s3 + $0x164] sm:$0xf] %vm3662_vm3, %v4527_v55  ;;  %3880 = vst.msk [vmem:[%s7058_s3 + $0x364] sm:$0xf] %vm3662_vm3, %v4655_v56  ;;  %v2474_v63 = vmax.f32 %v1728_v57, 0.0  ;;  %v1739_v1 = vadd.f32 %v6212_v44, %v4923_v61  ;;  %v2251_v2 = vadd.f32 %v6212_v44, %v5051_v62 }
 0x18b   :  { %v2602_v0 = vmax.f32 %v2240_v58, 0.0  ;;  %v4532_v3 = vpack.c.bf16 %v2476_v59, %v2476_v59  ;;  %v4660_v4 = vpack.c.bf16 %v2604_v60, %v2604_v60  ;;  %v1730_v5 = vpop.f32.mrf.mxu0  ;;  %v2242_v6 = vpop.f32.mrf.mxu1 }
 0x18c   :  { %v4530_v7 = vpack.c.bf16 %v2474_v63, %v2474_v63  ;;  %v2477_v9 = vmax.f32 %v1739_v1, 0.0  ;;  %v2605_v10 = vmax.f32 %v2251_v2, 0.0  ;;  %v1731_v11 = vadd.f32 %v6212_v44, %v1730_v5 }
 0x18d   :  { %v4658_v8 = vpack.c.bf16 %v2602_v0, %v2602_v0  ;;  %3757 = vst.msk [vmem:[%s7058_s3 + $0x178] sm:$0xf] %vm3662_vm3, %v4532_v3  ;;  %3885 = vst.msk [vmem:[%s7058_s3 + $0x378] sm:$0xf] %vm3662_vm3, %v4660_v4  ;;  %v2243_v12 = vadd.f32 %v6212_v44, %v2242_v6  ;;  %v4926_v13 = vpop.f32.mrf.mxu0  ;;  %v5054_v14 = vpop.f32.mrf.mxu1 }
 0x18e   :  { %3755 = vst.msk [vmem:[%s7058_s3 + $0x170] sm:$0xf] %vm3662_vm3, %v4530_v7  ;;  %v4533_v15 = vpack.c.bf16 %v2477_v9, %v2477_v9  ;;  %v4661_v16 = vpack.c.bf16 %v2605_v10, %v2605_v10  ;;  %v1752_v17 = vadd.f32 %v6212_v44, %v4926_v13  ;;  %v2264_v18 = vadd.f32 %v6212_v44, %v5054_v14 }
 0x18f   :  { %3883 = vst.msk [vmem:[%s7058_s3 + $0x370] sm:$0xf] %vm3662_vm3, %v4658_v8  ;;  %v2475_v19 = vmax.f32 %v1731_v11, 0.0  ;;  %v2603_v20 = vmax.f32 %v2243_v12, 0.0  ;;  %v1743_v21 = vpop.f32.mrf.mxu0  ;;  %v2255_v22 = vpop.f32.mrf.mxu1 }
 0x190   :  { %3758 = vst.msk [vmem:[%s7058_s3 + $0x17c] sm:$0xf] %vm3662_vm3, %v4533_v15  ;;  %3886 = vst.msk [vmem:[%s7058_s3 + $0x37c] sm:$0xf] %vm3662_vm3, %v4661_v16  ;;  %v2480_v23 = vmax.f32 %v1752_v17, 0.0  ;;  %v2608_v24 = vmax.f32 %v2264_v18, 0.0  ;;  %v1744_v25 = vadd.f32 %v6212_v44, %v1743_v21  ;;  %v2256_v26 = vadd.f32 %v6212_v44, %v2255_v22 }
 0x191   :  { %v4531_v27 = vpack.c.bf16 %v2475_v19, %v2475_v19  ;;  %v4659_v28 = vpack.c.bf16 %v2603_v20, %v2603_v20  ;;  %v4927_v29 = vpop.f32.mrf.mxu0  ;;  %v5055_v30 = vpop.f32.mrf.mxu1  ;;  %v6737_v44 = vld [vmem:[%s7057_s2] ss:$0 sm:$0xff] }
 0x192   :  { %v4536_v31 = vpack.c.bf16 %v2480_v23, %v2480_v23  ;;  %v4664_v32 = vpack.c.bf16 %v2608_v24, %v2608_v24  ;;  %v2478_v33 = vmax.f32 %v1744_v25, 0.0  ;;  %v2606_v34 = vmax.f32 %v2256_v26, 0.0 }
 0x193   :  { %3756 = vst.msk [vmem:[%s7058_s3 + $0x174] sm:$0xf] %vm3662_vm3, %v4531_v27  ;;  %3884 = vst.msk [vmem:[%s7058_s3 + $0x374] sm:$0xf] %vm3662_vm3, %v4659_v28  ;;  %v1755_v35 = vadd.f32 %v6737_v44, %v4927_v29  ;;  %v2267_v36 = vadd.f32 %v6737_v44, %v5055_v30  ;;  %v1746_v37 = vpop.f32.mrf.mxu0  ;;  %v2258_v38 = vpop.f32.mrf.mxu1 }
 0x194   :  { %3761 = vst.msk [vmem:[%s7058_s3 + $0x188] sm:$0xf] %vm3662_vm3, %v4536_v31  ;;  %3889 = vst.msk [vmem:[%s7058_s3 + $0x388] sm:$0xf] %vm3662_vm3, %v4664_v32  ;;  %v4534_v39 = vpack.c.bf16 %v2478_v33, %v2478_v33  ;;  %v4662_v40 = vpack.c.bf16 %v2606_v34, %v2606_v34  ;;  %v1747_v41 = vadd.f32 %v6737_v44, %v1746_v37 }
 0x195   :  { %v2259_v42 = vadd.f32 %v6737_v44, %v2258_v38  ;;  %v2481_v43 = vmax.f32 %v1755_v35, 0.0  ;;  %v2609_v45 = vmax.f32 %v2267_v36, 0.0  ;;  %v4930_v46 = vpop.f32.mrf.mxu0  ;;  %v5058_v47 = vpop.f32.mrf.mxu1 }
 0x196   :  { %3759 = vst.msk [vmem:[%s7058_s3 + $0x180] sm:$0xf] %vm3662_vm3, %v4534_v39  ;;  %3887 = vst.msk [vmem:[%s7058_s3 + $0x380] sm:$0xf] %vm3662_vm3, %v4662_v40  ;;  %v2479_v48 = vmax.f32 %v1747_v41, 0.0  ;;  %v1768_v50 = vadd.f32 %v6737_v44, %v4930_v46  ;;  %v2280_v51 = vadd.f32 %v6737_v44, %v5058_v47 }
 0x197   :  { %v2607_v49 = vmax.f32 %v2259_v42, 0.0  ;;  %v4537_v52 = vpack.c.bf16 %v2481_v43, %v2481_v43  ;;  %v4665_v53 = vpack.c.bf16 %v2609_v45, %v2609_v45  ;;  %v1759_v54 = vpop.f32.mrf.mxu0  ;;  %v2271_v55 = vpop.f32.mrf.mxu1 }
 0x198   :  { %v4535_v56 = vpack.c.bf16 %v2479_v48, %v2479_v48  ;;  %v2484_v58 = vmax.f32 %v1768_v50, 0.0  ;;  %v2612_v59 = vmax.f32 %v2280_v51, 0.0  ;;  %v1760_v60 = vadd.f32 %v6737_v44, %v1759_v54 }
 0x199   :  { %v4663_v57 = vpack.c.bf16 %v2607_v49, %v2607_v49  ;;  %3762 = vst.msk [vmem:[%s7058_s3 + $0x18c] sm:$0xf] %vm3662_vm3, %v4537_v52  ;;  %3890 = vst.msk [vmem:[%s7058_s3 + $0x38c] sm:$0xf] %vm3662_vm3, %v4665_v53  ;;  %v2272_v61 = vadd.f32 %v6737_v44, %v2271_v55  ;;  %v4931_v62 = vpop.f32.mrf.mxu0  ;;  %v5059_v63 = vpop.f32.mrf.mxu1 }
 0x19a   :  { %3760 = vst.msk [vmem:[%s7058_s3 + $0x184] sm:$0xf] %vm3662_vm3, %v4535_v56  ;;  %v4540_v0 = vpack.c.bf16 %v2484_v58, %v2484_v58  ;;  %v4668_v1 = vpack.c.bf16 %v2612_v59, %v2612_v59  ;;  %v1771_v2 = vadd.f32 %v6737_v44, %v4931_v62  ;;  %v2283_v3 = vadd.f32 %v6737_v44, %v5059_v63 }
 0x19b   :  { %3888 = vst.msk [vmem:[%s7058_s3 + $0x384] sm:$0xf] %vm3662_vm3, %v4663_v57  ;;  %v2482_v4 = vmax.f32 %v1760_v60, 0.0  ;;  %v2610_v5 = vmax.f32 %v2272_v61, 0.0  ;;  %v1762_v6 = vpop.f32.mrf.mxu0  ;;  %v2274_v7 = vpop.f32.mrf.mxu1 }
 0x19c   :  { %3765 = vst.msk [vmem:[%s7058_s3 + $0x198] sm:$0xf] %vm3662_vm3, %v4540_v0  ;;  %3893 = vst.msk [vmem:[%s7058_s3 + $0x398] sm:$0xf] %vm3662_vm3, %v4668_v1  ;;  %v2485_v8 = vmax.f32 %v1771_v2, 0.0  ;;  %v2613_v9 = vmax.f32 %v2283_v3, 0.0  ;;  %v1763_v10 = vadd.f32 %v6737_v44, %v1762_v6  ;;  %v2275_v11 = vadd.f32 %v6737_v44, %v2274_v7 }
 0x19d   :  { %v4538_v12 = vpack.c.bf16 %v2482_v4, %v2482_v4  ;;  %v4666_v13 = vpack.c.bf16 %v2610_v5, %v2610_v5  ;;  %v4934_v14 = vpop.f32.mrf.mxu0  ;;  %v5062_v15 = vpop.f32.mrf.mxu1 }
 0x19e   :  { %v4541_v16 = vpack.c.bf16 %v2485_v8, %v2485_v8  ;;  %v4669_v17 = vpack.c.bf16 %v2613_v9, %v2613_v9  ;;  %v2483_v18 = vmax.f32 %v1763_v10, 0.0  ;;  %v2611_v19 = vmax.f32 %v2275_v11, 0.0 }
 0x19f   :  { %3763 = vst.msk [vmem:[%s7058_s3 + $0x190] sm:$0xf] %vm3662_vm3, %v4538_v12  ;;  %3891 = vst.msk [vmem:[%s7058_s3 + $0x390] sm:$0xf] %vm3662_vm3, %v4666_v13  ;;  %v1784_v20 = vadd.f32 %v6737_v44, %v4934_v14  ;;  %v2296_v21 = vadd.f32 %v6737_v44, %v5062_v15  ;;  %v1775_v22 = vpop.f32.mrf.mxu0  ;;  %v2287_v23 = vpop.f32.mrf.mxu1 }
 0x1a0   :  { %3766 = vst.msk [vmem:[%s7058_s3 + $0x19c] sm:$0xf] %vm3662_vm3, %v4541_v16  ;;  %3894 = vst.msk [vmem:[%s7058_s3 + $0x39c] sm:$0xf] %vm3662_vm3, %v4669_v17  ;;  %v4539_v24 = vpack.c.bf16 %v2483_v18, %v2483_v18  ;;  %v4667_v25 = vpack.c.bf16 %v2611_v19, %v2611_v19  ;;  %v1776_v26 = vadd.f32 %v6737_v44, %v1775_v22 }
 0x1a1   :  { %v2288_v27 = vadd.f32 %v6737_v44, %v2287_v23  ;;  %v2488_v28 = vmax.f32 %v1784_v20, 0.0  ;;  %v2616_v29 = vmax.f32 %v2296_v21, 0.0  ;;  %v4935_v30 = vpop.f32.mrf.mxu0  ;;  %v5063_v31 = vpop.f32.mrf.mxu1 }
 0x1a2   :  { %3764 = vst.msk [vmem:[%s7058_s3 + $0x194] sm:$0xf] %vm3662_vm3, %v4539_v24  ;;  %3892 = vst.msk [vmem:[%s7058_s3 + $0x394] sm:$0xf] %vm3662_vm3, %v4667_v25  ;;  %v2486_v32 = vmax.f32 %v1776_v26, 0.0  ;;  %v1787_v34 = vadd.f32 %v6737_v44, %v4935_v30  ;;  %v2299_v35 = vadd.f32 %v6737_v44, %v5063_v31 }
 0x1a3   :  { %v2614_v33 = vmax.f32 %v2288_v27, 0.0  ;;  %v4544_v36 = vpack.c.bf16 %v2488_v28, %v2488_v28  ;;  %v4672_v37 = vpack.c.bf16 %v2616_v29, %v2616_v29  ;;  %v1778_v38 = vpop.f32.mrf.mxu0  ;;  %v2290_v39 = vpop.f32.mrf.mxu1 }
 0x1a4   :  { %v4542_v40 = vpack.c.bf16 %v2486_v32, %v2486_v32  ;;  %v2489_v42 = vmax.f32 %v1787_v34, 0.0  ;;  %v2617_v43 = vmax.f32 %v2299_v35, 0.0  ;;  %v1779_v45 = vadd.f32 %v6737_v44, %v1778_v38 }
 0x1a5   :  { %v4670_v41 = vpack.c.bf16 %v2614_v33, %v2614_v33  ;;  %3769 = vst.msk [vmem:[%s7058_s3 + $0x1a8] sm:$0xf] %vm3662_vm3, %v4544_v36  ;;  %3897 = vst.msk [vmem:[%s7058_s3 + $0x3a8] sm:$0xf] %vm3662_vm3, %v4672_v37  ;;  %v2291_v46 = vadd.f32 %v6737_v44, %v2290_v39  ;;  %v4938_v47 = vpop.f32.mrf.mxu0  ;;  %v5066_v48 = vpop.f32.mrf.mxu1 }
 0x1a6   :  { %3767 = vst.msk [vmem:[%s7058_s3 + $0x1a0] sm:$0xf] %vm3662_vm3, %v4542_v40  ;;  %v4545_v49 = vpack.c.bf16 %v2489_v42, %v2489_v42  ;;  %v4673_v50 = vpack.c.bf16 %v2617_v43, %v2617_v43  ;;  %v1800_v51 = vadd.f32 %v6737_v44, %v4938_v47  ;;  %v2312_v52 = vadd.f32 %v6737_v44, %v5066_v48 }
 0x1a7   :  { %3895 = vst.msk [vmem:[%s7058_s3 + $0x3a0] sm:$0xf] %vm3662_vm3, %v4670_v41  ;;  %v2487_v53 = vmax.f32 %v1779_v45, 0.0  ;;  %v2615_v54 = vmax.f32 %v2291_v46, 0.0  ;;  %v1791_v55 = vpop.f32.mrf.mxu0  ;;  %v2303_v56 = vpop.f32.mrf.mxu1 }
 0x1a8   :  { %3770 = vst.msk [vmem:[%s7058_s3 + $0x1ac] sm:$0xf] %vm3662_vm3, %v4545_v49  ;;  %3898 = vst.msk [vmem:[%s7058_s3 + $0x3ac] sm:$0xf] %vm3662_vm3, %v4673_v50  ;;  %v2492_v57 = vmax.f32 %v1800_v51, 0.0  ;;  %v2620_v58 = vmax.f32 %v2312_v52, 0.0  ;;  %v1792_v59 = vadd.f32 %v6737_v44, %v1791_v55  ;;  %v2304_v60 = vadd.f32 %v6737_v44, %v2303_v56 }
 0x1a9   :  { %v4543_v61 = vpack.c.bf16 %v2487_v53, %v2487_v53  ;;  %v4671_v62 = vpack.c.bf16 %v2615_v54, %v2615_v54  ;;  %v4939_v63 = vpop.f32.mrf.mxu0  ;;  %v5067_v0 = vpop.f32.mrf.mxu1 }
 0x1aa   :  { %v4548_v1 = vpack.c.bf16 %v2492_v57, %v2492_v57  ;;  %v4676_v2 = vpack.c.bf16 %v2620_v58, %v2620_v58  ;;  %v2490_v3 = vmax.f32 %v1792_v59, 0.0  ;;  %v2618_v4 = vmax.f32 %v2304_v60, 0.0 }
 0x1ab   :  { %3768 = vst.msk [vmem:[%s7058_s3 + $0x1a4] sm:$0xf] %vm3662_vm3, %v4543_v61  ;;  %3896 = vst.msk [vmem:[%s7058_s3 + $0x3a4] sm:$0xf] %vm3662_vm3, %v4671_v62  ;;  %v1803_v5 = vadd.f32 %v6737_v44, %v4939_v63  ;;  %v2315_v6 = vadd.f32 %v6737_v44, %v5067_v0  ;;  %v1794_v7 = vpop.f32.mrf.mxu0  ;;  %v2306_v8 = vpop.f32.mrf.mxu1 }
 0x1ac   :  { %3773 = vst.msk [vmem:[%s7058_s3 + $0x1b8] sm:$0xf] %vm3662_vm3, %v4548_v1  ;;  %3901 = vst.msk [vmem:[%s7058_s3 + $0x3b8] sm:$0xf] %vm3662_vm3, %v4676_v2  ;;  %v4546_v9 = vpack.c.bf16 %v2490_v3, %v2490_v3  ;;  %v4674_v10 = vpack.c.bf16 %v2618_v4, %v2618_v4  ;;  %v1795_v11 = vadd.f32 %v6737_v44, %v1794_v7 }
 0x1ad   :  { %v2307_v12 = vadd.f32 %v6737_v44, %v2306_v8  ;;  %v2493_v13 = vmax.f32 %v1803_v5, 0.0  ;;  %v2621_v14 = vmax.f32 %v2315_v6, 0.0  ;;  %v4942_v15 = vpop.f32.mrf.mxu0  ;;  %v5070_v16 = vpop.f32.mrf.mxu1 }
 0x1ae   :  { %3771 = vst.msk [vmem:[%s7058_s3 + $0x1b0] sm:$0xf] %vm3662_vm3, %v4546_v9  ;;  %3899 = vst.msk [vmem:[%s7058_s3 + $0x3b0] sm:$0xf] %vm3662_vm3, %v4674_v10  ;;  %v2491_v17 = vmax.f32 %v1795_v11, 0.0  ;;  %v1816_v19 = vadd.f32 %v6737_v44, %v4942_v15  ;;  %v2328_v20 = vadd.f32 %v6737_v44, %v5070_v16 }
 0x1af   :  { %v2619_v18 = vmax.f32 %v2307_v12, 0.0  ;;  %v4549_v21 = vpack.c.bf16 %v2493_v13, %v2493_v13  ;;  %v4677_v22 = vpack.c.bf16 %v2621_v14, %v2621_v14  ;;  %v1807_v23 = vpop.f32.mrf.mxu0  ;;  %v2319_v24 = vpop.f32.mrf.mxu1 }
 0x1b0   :  { %v4547_v25 = vpack.c.bf16 %v2491_v17, %v2491_v17  ;;  %v2496_v27 = vmax.f32 %v1816_v19, 0.0  ;;  %v2624_v28 = vmax.f32 %v2328_v20, 0.0  ;;  %v1808_v29 = vadd.f32 %v6737_v44, %v1807_v23 }
 0x1b1   :  { %v4675_v26 = vpack.c.bf16 %v2619_v18, %v2619_v18  ;;  %3774 = vst.msk [vmem:[%s7058_s3 + $0x1bc] sm:$0xf] %vm3662_vm3, %v4549_v21  ;;  %3902 = vst.msk [vmem:[%s7058_s3 + $0x3bc] sm:$0xf] %vm3662_vm3, %v4677_v22  ;;  %v2320_v30 = vadd.f32 %v6737_v44, %v2319_v24  ;;  %v4943_v31 = vpop.f32.mrf.mxu0  ;;  %v5071_v32 = vpop.f32.mrf.mxu1 }
 0x1b2   :  { %3772 = vst.msk [vmem:[%s7058_s3 + $0x1b4] sm:$0xf] %vm3662_vm3, %v4547_v25  ;;  %v4552_v33 = vpack.c.bf16 %v2496_v27, %v2496_v27  ;;  %v4680_v34 = vpack.c.bf16 %v2624_v28, %v2624_v28  ;;  %v1819_v35 = vadd.f32 %v6737_v44, %v4943_v31  ;;  %v2331_v36 = vadd.f32 %v6737_v44, %v5071_v32 }
 0x1b3   :  { %3900 = vst.msk [vmem:[%s7058_s3 + $0x3b4] sm:$0xf] %vm3662_vm3, %v4675_v26  ;;  %v2494_v37 = vmax.f32 %v1808_v29, 0.0  ;;  %v2622_v38 = vmax.f32 %v2320_v30, 0.0  ;;  %v1810_v39 = vpop.f32.mrf.mxu0  ;;  %v2322_v40 = vpop.f32.mrf.mxu1 }
 0x1b4   :  { %3777 = vst.msk [vmem:[%s7058_s3 + $0x1c8] sm:$0xf] %vm3662_vm3, %v4552_v33  ;;  %3905 = vst.msk [vmem:[%s7058_s3 + $0x3c8] sm:$0xf] %vm3662_vm3, %v4680_v34  ;;  %v2497_v41 = vmax.f32 %v1819_v35, 0.0  ;;  %v2625_v42 = vmax.f32 %v2331_v36, 0.0  ;;  %v1811_v43 = vadd.f32 %v6737_v44, %v1810_v39  ;;  %v2323_v45 = vadd.f32 %v6737_v44, %v2322_v40 }
 0x1b5   :  { %v4550_v46 = vpack.c.bf16 %v2494_v37, %v2494_v37  ;;  %v4678_v47 = vpack.c.bf16 %v2622_v38, %v2622_v38  ;;  %v4946_v48 = vpop.f32.mrf.mxu0  ;;  %v5074_v49 = vpop.f32.mrf.mxu1 }
 0x1b6   :  { %v4553_v50 = vpack.c.bf16 %v2497_v41, %v2497_v41  ;;  %v4681_v51 = vpack.c.bf16 %v2625_v42, %v2625_v42  ;;  %v2495_v52 = vmax.f32 %v1811_v43, 0.0  ;;  %v2623_v53 = vmax.f32 %v2323_v45, 0.0 }
 0x1b7   :  { %3775 = vst.msk [vmem:[%s7058_s3 + $0x1c0] sm:$0xf] %vm3662_vm3, %v4550_v46  ;;  %3903 = vst.msk [vmem:[%s7058_s3 + $0x3c0] sm:$0xf] %vm3662_vm3, %v4678_v47  ;;  %v1832_v54 = vadd.f32 %v6737_v44, %v4946_v48  ;;  %v2344_v55 = vadd.f32 %v6737_v44, %v5074_v49  ;;  %v1823_v56 = vpop.f32.mrf.mxu0  ;;  %v2335_v57 = vpop.f32.mrf.mxu1 }
 0x1b8   :  { %3778 = vst.msk [vmem:[%s7058_s3 + $0x1cc] sm:$0xf] %vm3662_vm3, %v4553_v50  ;;  %3906 = vst.msk [vmem:[%s7058_s3 + $0x3cc] sm:$0xf] %vm3662_vm3, %v4681_v51  ;;  %v4551_v58 = vpack.c.bf16 %v2495_v52, %v2495_v52  ;;  %v4679_v59 = vpack.c.bf16 %v2623_v53, %v2623_v53  ;;  %v1824_v60 = vadd.f32 %v6737_v44, %v1823_v56 }
 0x1b9   :  { %v2336_v61 = vadd.f32 %v6737_v44, %v2335_v57  ;;  %v2500_v62 = vmax.f32 %v1832_v54, 0.0  ;;  %v2628_v63 = vmax.f32 %v2344_v55, 0.0  ;;  %v4947_v0 = vpop.f32.mrf.mxu0  ;;  %v5075_v1 = vpop.f32.mrf.mxu1 }
 0x1ba   :  { %3776 = vst.msk [vmem:[%s7058_s3 + $0x1c4] sm:$0xf] %vm3662_vm3, %v4551_v58  ;;  %3904 = vst.msk [vmem:[%s7058_s3 + $0x3c4] sm:$0xf] %vm3662_vm3, %v4679_v59  ;;  %v2498_v2 = vmax.f32 %v1824_v60, 0.0  ;;  %v1835_v4 = vadd.f32 %v6737_v44, %v4947_v0  ;;  %v2347_v5 = vadd.f32 %v6737_v44, %v5075_v1 }
 0x1bb   :  { %v2626_v3 = vmax.f32 %v2336_v61, 0.0  ;;  %v4556_v6 = vpack.c.bf16 %v2500_v62, %v2500_v62  ;;  %v4684_v7 = vpack.c.bf16 %v2628_v63, %v2628_v63  ;;  %v1826_v8 = vpop.f32.mrf.mxu0  ;;  %v2338_v9 = vpop.f32.mrf.mxu1 }
 0x1bc   :  { %v4554_v10 = vpack.c.bf16 %v2498_v2, %v2498_v2  ;;  %v2501_v12 = vmax.f32 %v1835_v4, 0.0  ;;  %v2629_v13 = vmax.f32 %v2347_v5, 0.0  ;;  %v1827_v14 = vadd.f32 %v6737_v44, %v1826_v8 }
 0x1bd   :  { %v4682_v11 = vpack.c.bf16 %v2626_v3, %v2626_v3  ;;  %3781 = vst.msk [vmem:[%s7058_s3 + $0x1d8] sm:$0xf] %vm3662_vm3, %v4556_v6  ;;  %3909 = vst.msk [vmem:[%s7058_s3 + $0x3d8] sm:$0xf] %vm3662_vm3, %v4684_v7  ;;  %v2339_v15 = vadd.f32 %v6737_v44, %v2338_v9  ;;  %v4950_v16 = vpop.f32.mrf.mxu0  ;;  %v5078_v17 = vpop.f32.mrf.mxu1 }
 0x1be   :  { %3779 = vst.msk [vmem:[%s7058_s3 + $0x1d0] sm:$0xf] %vm3662_vm3, %v4554_v10  ;;  %v4557_v18 = vpack.c.bf16 %v2501_v12, %v2501_v12  ;;  %v4685_v19 = vpack.c.bf16 %v2629_v13, %v2629_v13  ;;  %v1848_v20 = vadd.f32 %v6737_v44, %v4950_v16  ;;  %v2360_v21 = vadd.f32 %v6737_v44, %v5078_v17 }
 0x1bf   :  { %3907 = vst.msk [vmem:[%s7058_s3 + $0x3d0] sm:$0xf] %vm3662_vm3, %v4682_v11  ;;  %v2499_v22 = vmax.f32 %v1827_v14, 0.0  ;;  %v2627_v23 = vmax.f32 %v2339_v15, 0.0  ;;  %v1839_v24 = vpop.f32.mrf.mxu0  ;;  %v2351_v25 = vpop.f32.mrf.mxu1 }
 0x1c0   :  { %3782 = vst.msk [vmem:[%s7058_s3 + $0x1dc] sm:$0xf] %vm3662_vm3, %v4557_v18  ;;  %3910 = vst.msk [vmem:[%s7058_s3 + $0x3dc] sm:$0xf] %vm3662_vm3, %v4685_v19  ;;  %v2504_v26 = vmax.f32 %v1848_v20, 0.0  ;;  %v2632_v27 = vmax.f32 %v2360_v21, 0.0  ;;  %v1840_v28 = vadd.f32 %v6737_v44, %v1839_v24  ;;  %v2352_v29 = vadd.f32 %v6737_v44, %v2351_v25 }
 0x1c1   :  { %v4555_v30 = vpack.c.bf16 %v2499_v22, %v2499_v22  ;;  %v4683_v31 = vpack.c.bf16 %v2627_v23, %v2627_v23  ;;  %v4951_v32 = vpop.f32.mrf.mxu0  ;;  %v5079_v33 = vpop.f32.mrf.mxu1 }
 0x1c2   :  { %v4560_v34 = vpack.c.bf16 %v2504_v26, %v2504_v26  ;;  %v4688_v35 = vpack.c.bf16 %v2632_v27, %v2632_v27  ;;  %v2502_v36 = vmax.f32 %v1840_v28, 0.0  ;;  %v2630_v37 = vmax.f32 %v2352_v29, 0.0 }
 0x1c3   :  { %3780 = vst.msk [vmem:[%s7058_s3 + $0x1d4] sm:$0xf] %vm3662_vm3, %v4555_v30  ;;  %3908 = vst.msk [vmem:[%s7058_s3 + $0x3d4] sm:$0xf] %vm3662_vm3, %v4683_v31  ;;  %v1851_v38 = vadd.f32 %v6737_v44, %v4951_v32  ;;  %v2363_v39 = vadd.f32 %v6737_v44, %v5079_v33  ;;  %v1842_v40 = vpop.f32.mrf.mxu0  ;;  %v2354_v41 = vpop.f32.mrf.mxu1 }
 0x1c4   :  { %3785 = vst.msk [vmem:[%s7058_s3 + $0x1e8] sm:$0xf] %vm3662_vm3, %v4560_v34  ;;  %3913 = vst.msk [vmem:[%s7058_s3 + $0x3e8] sm:$0xf] %vm3662_vm3, %v4688_v35  ;;  %v4558_v42 = vpack.c.bf16 %v2502_v36, %v2502_v36  ;;  %v4686_v43 = vpack.c.bf16 %v2630_v37, %v2630_v37  ;;  %v1843_v45 = vadd.f32 %v6737_v44, %v1842_v40 }
 0x1c5   :  { %v2355_v46 = vadd.f32 %v6737_v44, %v2354_v41  ;;  %v2505_v47 = vmax.f32 %v1851_v38, 0.0  ;;  %v2633_v48 = vmax.f32 %v2363_v39, 0.0  ;;  %v4954_v49 = vpop.f32.mrf.mxu0  ;;  %v5082_v50 = vpop.f32.mrf.mxu1 }
 0x1c6   :  { %3783 = vst.msk [vmem:[%s7058_s3 + $0x1e0] sm:$0xf] %vm3662_vm3, %v4558_v42  ;;  %3911 = vst.msk [vmem:[%s7058_s3 + $0x3e0] sm:$0xf] %vm3662_vm3, %v4686_v43  ;;  %v2503_v51 = vmax.f32 %v1843_v45, 0.0  ;;  %v1864_v53 = vadd.f32 %v6737_v44, %v4954_v49  ;;  %v2376_v54 = vadd.f32 %v6737_v44, %v5082_v50 }
 0x1c7   :  { %v2631_v52 = vmax.f32 %v2355_v46, 0.0  ;;  %v4561_v55 = vpack.c.bf16 %v2505_v47, %v2505_v47  ;;  %v4689_v56 = vpack.c.bf16 %v2633_v48, %v2633_v48  ;;  %v1855_v57 = vpop.f32.mrf.mxu0  ;;  %v2367_v58 = vpop.f32.mrf.mxu1 }
 0x1c8   :  { %v4559_v59 = vpack.c.bf16 %v2503_v51, %v2503_v51  ;;  %v2508_v61 = vmax.f32 %v1864_v53, 0.0  ;;  %v2636_v62 = vmax.f32 %v2376_v54, 0.0  ;;  %v1856_v63 = vadd.f32 %v6737_v44, %v1855_v57 }
 0x1c9   :  { %v4687_v60 = vpack.c.bf16 %v2631_v52, %v2631_v52  ;;  %3786 = vst.msk [vmem:[%s7058_s3 + $0x1ec] sm:$0xf] %vm3662_vm3, %v4561_v55  ;;  %3914 = vst.msk [vmem:[%s7058_s3 + $0x3ec] sm:$0xf] %vm3662_vm3, %v4689_v56  ;;  %v2368_v0 = vadd.f32 %v6737_v44, %v2367_v58  ;;  %v4955_v1 = vpop.f32.mrf.mxu0  ;;  %v5083_v2 = vpop.f32.mrf.mxu1 }
 0x1ca   :  { %3784 = vst.msk [vmem:[%s7058_s3 + $0x1e4] sm:$0xf] %vm3662_vm3, %v4559_v59  ;;  %v4564_v3 = vpack.c.bf16 %v2508_v61, %v2508_v61  ;;  %v4692_v4 = vpack.c.bf16 %v2636_v62, %v2636_v62  ;;  %v1867_v5 = vadd.f32 %v6737_v44, %v4955_v1  ;;  %v2379_v6 = vadd.f32 %v6737_v44, %v5083_v2 }
 0x1cb   :  { %3912 = vst.msk [vmem:[%s7058_s3 + $0x3e4] sm:$0xf] %vm3662_vm3, %v4687_v60  ;;  %v2506_v7 = vmax.f32 %v1856_v63, 0.0  ;;  %v2634_v8 = vmax.f32 %v2368_v0, 0.0  ;;  %v1858_v9 = vpop.f32.mrf.mxu0  ;;  %v2370_v10 = vpop.f32.mrf.mxu1 }
 0x1cc   :  { %3789 = vst.msk [vmem:[%s7058_s3 + $0x1f8] sm:$0xf] %vm3662_vm3, %v4564_v3  ;;  %3917 = vst.msk [vmem:[%s7058_s3 + $0x3f8] sm:$0xf] %vm3662_vm3, %v4692_v4  ;;  %v2509_v11 = vmax.f32 %v1867_v5, 0.0  ;;  %v2637_v12 = vmax.f32 %v2379_v6, 0.0  ;;  %v1859_v13 = vadd.f32 %v6737_v44, %v1858_v9  ;;  %v2371_v14 = vadd.f32 %v6737_v44, %v2370_v10 }
 0x1cd   :  { %v4562_v15 = vpack.c.bf16 %v2506_v7, %v2506_v7  ;;  %v4690_v16 = vpack.c.bf16 %v2634_v8, %v2634_v8 }
 0x1ce   :  { %v4565_v17 = vpack.c.bf16 %v2509_v11, %v2509_v11  ;;  %v4693_v18 = vpack.c.bf16 %v2637_v12, %v2637_v12  ;;  %v2507_v19 = vmax.f32 %v1859_v13, 0.0  ;;  %v2635_v20 = vmax.f32 %v2371_v14, 0.0 }
 0x1cf   :  { %3787 = vst.msk [vmem:[%s7058_s3 + $0x1f0] sm:$0xf] %vm3662_vm3, %v4562_v15  ;;  %3915 = vst.msk [vmem:[%s7058_s3 + $0x3f0] sm:$0xf] %vm3662_vm3, %v4690_v16 }
 0x1d0   :  { %3790 = vst.msk [vmem:[%s7058_s3 + $0x1fc] sm:$0xf] %vm3662_vm3, %v4565_v17  ;;  %3918 = vst.msk [vmem:[%s7058_s3 + $0x3fc] sm:$0xf] %vm3662_vm3, %v4693_v18  ;;  %v4563_v44 = vpack.c.bf16 %v2507_v19, %v2507_v19  ;;  %v4691_v21 = vpack.c.bf16 %v2635_v20, %v2635_v20 }
 0x1d2   :  { %3788 = vst.msk [vmem:[%s7058_s3 + $0x1f4] sm:$0xf] %vm3662_vm3, %v4563_v44  ;;  %3916 = vst.msk [vmem:[%s7058_s3 + $0x3f4] sm:$0xf] %vm3662_vm3, %v4691_v21 }

// kernel: ego_path_network.5
= control target key start
LH: loop header
LB: loop body
LE: loop exit
PB: predicated region body
PF: predicated region fallthrough
CT: control target
= control target key end

     0   :  { %vm1119_vm0 = vcmask 130048   ;;  %vm5360_vm1 = vcmask 1043456   ;;  %vm5353_vm2 = vcmask 195584   ;;  %vm11550_vm3 = vmmov 0   ;;  %s14866_s0 = inlined_call_operand.vmem [shape: bf16[512,16], index: 0, kind: input, shape index: {}]   ;;  %s14867_s1 = inlined_call_operand.vmem [shape: bf16[9,128,512], index: 1, kind: input, shape index: {}]   ;;  %s14868_s2 = inlined_call_operand.vmem [shape: bf16[9,16,24], index: 2, kind: input, shape index: {}]   ;;  %s14869_s4 = inlined_call_operand.vmem [shape: bf16[9,32,128], index: 4, kind: input, shape index: {}]   ;;  %s14870_s5 = inlined_call_operand.vmem [shape: bf16[9,24,32], index: 5, kind: input, shape index: {}]   ;;  %s14871_s3 = inlined_call_operand.vmem [shape: f32[1,24], index: 3, kind: input, shape index: {}]   ;;  %s14872_s6 = inlined_call_operand.vmem [shape: f32[1,32], index: 6, kind: input, shape index: {}]   ;;  %s14873_s7 = inlined_call_operand.vmem [shape: bf16[9,8,32], index: 7, kind: input, shape index: {}]   ;;  %s14874_s8 = inlined_call_operand.vmem [shape: bf16[9,32,64], index: 8, kind: input, shape index: {}]   ;;  %s14875_s10 = inlined_call_operand.vmem [shape: bf16[64,128], index: 10, kind: input, shape index: {}]   ;;  %s14876_s12 = inlined_call_operand.vmem [shape: bf16[128,128], index: 12, kind: input, shape index: {}]   ;;  %s14877_s9 = inlined_call_operand.vmem [shape: f32[1,64], index: 9, kind: input, shape index: {}]   ;;  %s14878_s11 = inlined_call_operand.vmem [shape: f32[1,128], index: 11, kind: input, shape index: {}]   ;;  %s14879_s15 = inlined_call_operand.vmem [shape: bf16[128,64], index: 15, kind: input, shape index: {}]   ;;  %s14880_s13 = inlined_call_operand.vmem [shape: f32[1,128], index: 13, kind: input, shape index: {}]   ;;  %s14881_s14 = inlined_call_operand.vmem [shape: bf16[2,8], index: 14, kind: input, shape index: {}]   ;;  %s14882_s17 = inlined_call_operand.vmem [shape: bf16[64,48], index: 17, kind: input, shape index: {}]   ;;  %s14883_s16 = inlined_call_operand.vmem [shape: f32[1,64], index: 16, kind: input, shape index: {}]   ;;  %s14884_s18 = inlined_call_operand.vmem [shape: f32[1,48], index: 18, kind: input, shape index: {}]   ;;  %s14885_s19 = inlined_call_operand.vmem [shape: f32[2,48], index: 19, kind: output, shape index: {}]  }
   0x1   :  { %14898 = sst [smem:[#allocation36_spill]] %s14866_s0  ;;  %vm6499_vm4 = vcmask 261120   ;;  %vm7507_vm5 = vcmask 523264   ;;  %vm7667_vm6 = vcmask 64512   ;;  %vm7916_vm7 = vcmask 386048  }
   0x2   :  { %14899 = sst [smem:[#allocation37_spill]] %s14867_s1 }
   0x3   :  { %14900 = sst [smem:[#allocation38_spill]] %s14868_s2 }
   0x4   :  { %14901 = sst [smem:[#allocation39_spill]] %s14869_s4 }
   0x5   :  { %s14902_s20 = sld [smem:[#allocation36_spill]] }
   0x6   :  { %s14903_s26 = sld [smem:[#allocation37_spill]] }
   0x7   :  { %s14904_s28 = sld [smem:[#allocation38_spill]] }
   0x8   :  { %s15015_s21 = sld [smem:[#allocation39_spill]] }
   0xb   :  { %v11654_v0 = vld [vmem:[%s14902_s20 + $0x78] sm:$0xff]   ;;  %v11677_v4 = vld [vmem:[%s14902_s20 + $0x70] sm:$0xff]   ;;  %v11701_v8 = vld [vmem:[%s14902_s20 + $0x68] sm:$0xff]  }
   0xc   :  { %v11659_v1 = vld [vmem:[%s14902_s20 + $0xf8] sm:$0xff]   ;;  %8816 = vmatprep.subr.bf16.mxu0 %v11654_v0  ;;  %v11683_v5 = vld [vmem:[%s14902_s20 + $0xf0] sm:$0xff]   ;;  %v11707_v9 = vld [vmem:[%s14902_s20 + $0xe8] sm:$0xff]  }
   0xd   :  { %v11665_v2 = vld [vmem:[%s14902_s20 + $0x38] sm:$0xff]   ;;  %8880 = vmatprep.subr.bf16.mxu1 %v11659_v1  ;;  %v11689_v6 = vld [vmem:[%s14902_s20 + $0x30] sm:$0xff]   ;;  %v11713_v10 = vld [vmem:[%s14902_s20 + $0x28] sm:$0xff]  }
   0xe   :  { %v11671_v3 = vld [vmem:[%s14902_s20 + $0xb8] sm:$0xff]   ;;  %8817 = vmatpush3.bf16.msra.mxu0 %v11665_v2  ;;  %v11695_v7 = vld [vmem:[%s14902_s20 + $0xb0] sm:$0xff]   ;;  %v11719_v11 = vld [vmem:[%s14902_s20 + $0xa8] sm:$0xff]  }
   0xf   :  { %8881 = vmatpush3.bf16.msra.mxu1 %v11671_v3  ;;  %8818 = vmatprep.subr.bf16.mxu0 %v11677_v4  ;;  %v11725_v12 = vld [vmem:[%s14902_s20 + $0x60] sm:$0xff]   ;;  %v11749_v16 = vld [vmem:[%s14902_s20 + $0x58] sm:$0xff]   ;;  %v11773_v20 = vld [vmem:[%s14902_s20 + $0x50] sm:$0xff]  }
  0x10   :  { %8882 = vmatprep.subr.bf16.mxu1 %v11683_v5  ;;  %v11731_v13 = vld [vmem:[%s14902_s20 + $0xe0] sm:$0xff]   ;;  %v11755_v17 = vld [vmem:[%s14902_s20 + $0xd8] sm:$0xff]   ;;  %v11779_v21 = vld [vmem:[%s14902_s20 + $0xd0] sm:$0xff]  }
  0x11   :  { %v11737_v14 = vld [vmem:[%s14902_s20 + $0x20] sm:$0xff]   ;;  %v11761_v18 = vld [vmem:[%s14902_s20 + $0x18] sm:$0xff]   ;;  %v11785_v22 = vld [vmem:[%s14902_s20 + $0x10] sm:$0xff]  }
  0x12   :  { %8819 = vmatpush3.bf16.msra.mxu0 %v11689_v6  ;;  %v11743_v15 = vld [vmem:[%s14902_s20 + $0xa0] sm:$0xff]   ;;  %v11767_v19 = vld [vmem:[%s14902_s20 + $0x98] sm:$0xff]   ;;  %v11791_v23 = vld [vmem:[%s14902_s20 + $0x90] sm:$0xff]  }
  0x13   :  { %8883 = vmatpush3.bf16.msra.mxu1 %v11695_v7  ;;  %8820 = vmatprep.subr.bf16.mxu0 %v11701_v8  ;;  %v11797_v24 = vld [vmem:[%s14902_s20 + $0x48] sm:$0xff]   ;;  %v11821_v28 = vld [vmem:[%s14902_s20 + $0x40] sm:$0xff]  }
  0x14   :  { %8884 = vmatprep.subr.bf16.mxu1 %v11707_v9  ;;  %v11803_v25 = vld [vmem:[%s14902_s20 + $0xc8] sm:$0xff]   ;;  %v11827_v29 = vld [vmem:[%s14902_s20 + $0xc0] sm:$0xff]  }
  0x15   :  { %v11809_v26 = vld [vmem:[%s14902_s20 + $0x8] sm:$0xff]   ;;  %v11833_v30 = vld [vmem:[%s14902_s20] sm:$0xff]  }
  0x16   :  { %8821 = vmatpush3.bf16.msra.mxu0 %v11713_v10  ;;  %v11815_v27 = vld [vmem:[%s14902_s20 + $0x88] sm:$0xff]   ;;  %v11839_v31 = vld [vmem:[%s14902_s20 + $0x80] sm:$0xff]  }
  0x17   :  { %8885 = vmatpush3.bf16.msra.mxu1 %v11719_v11  ;;  %8822 = vmatprep.subr.bf16.mxu0 %v11725_v12  ;;  %v10930_v32 = vld [vmem:[%s14903_s26] ss:$16 sps:$4 sm:$0xff]   ;;  %v10932_v33 = vld [vmem:[%s14903_s26 + $0x4] ss:$16 sps:$4 sm:$0xff]   ;;  %v10933_v34 = vld [vmem:[%s14903_s26 + $0x8] ss:$16 sps:$4 sm:$0xff]  }
  0x18   :  { %8886 = vmatprep.subr.bf16.mxu1 %v11731_v13  ;;  %v10935_v35 = vld [vmem:[%s14903_s26 + $0xc] ss:$16 sps:$4 sm:$0xff]   ;;  %543 = vmatprep.mubr.bf16.mxu0 %v10932_v33  ;;  %v10936_v36 = vld [vmem:[%s14903_s26 + $0x24] ss:$16 sps:$4 sm:$0xff]   ;;  %v10940_v38 = vld [vmem:[%s14903_s26 + $0x20] ss:$16 sps:$4 sm:$0xff]  }
  0x19   :  { %640 = vmatprep.mubr.bf16.mxu1 %v10935_v35  ;;  %v10938_v37 = vld [vmem:[%s14903_s26 + $0x2c] ss:$16 sps:$4 sm:$0xff]   ;;  %v10941_v39 = vld [vmem:[%s14903_s26 + $0x28] ss:$16 sps:$4 sm:$0xff]   ;;  %v10942_v40 = vld [vmem:[%s14903_s26 + $0x44] ss:$16 sps:$4 sm:$0xff]  }
  0x1a   :  { %8823 = vmatpush3.bf16.msra.mxu0 %v11737_v14  ;;  %v10944_v41 = vld [vmem:[%s14903_s26 + $0x4c] ss:$16 sps:$4 sm:$0xff]   ;;  %v10946_v42 = vld [vmem:[%s14903_s26 + $0x40] ss:$16 sps:$4 sm:$0xff]   ;;  %v10947_v43 = vld [vmem:[%s14903_s26 + $0x48] ss:$16 sps:$4 sm:$0xff]  }
  0x1b   :  { %8887 = vmatpush3.bf16.msra.mxu1 %v11743_v15  ;;  %8824 = vmatprep.subr.bf16.mxu0 %v11749_v16  ;;  %v10948_v44 = vld [vmem:[%s14903_s26 + $0x64] ss:$16 sps:$4 sm:$0xff]   ;;  %v10950_v45 = vld [vmem:[%s14903_s26 + $0x6c] ss:$16 sps:$4 sm:$0xff]   ;;  %v10952_v46 = vld [vmem:[%s14903_s26 + $0x60] ss:$16 sps:$4 sm:$0xff]  }
  0x1c   :  { %8888 = vmatprep.subr.bf16.mxu1 %v11755_v17  ;;  %v10953_v47 = vld [vmem:[%s14903_s26 + $0x68] ss:$16 sps:$4 sm:$0xff]   ;;  %v10954_v48 = vld [vmem:[%s14903_s26 + $0x84] ss:$16 sps:$4 sm:$0xff]   ;;  %v10956_v49 = vld [vmem:[%s14903_s26 + $0x8c] ss:$16 sps:$4 sm:$0xff]  }
  0x1d   :  { %v10958_v50 = vld [vmem:[%s14903_s26 + $0x80] ss:$16 sps:$4 sm:$0xff]   ;;  %v10959_v51 = vld [vmem:[%s14903_s26 + $0x88] ss:$16 sps:$4 sm:$0xff]   ;;  %v10960_v52 = vld [vmem:[%s14903_s26 + $0xa4] ss:$16 sps:$4 sm:$0xff]  }
  0x1e   :  { %8825 = vmatpush3.bf16.msra.mxu0 %v11761_v18  ;;  %v10962_v53 = vld [vmem:[%s14903_s26 + $0xac] ss:$16 sps:$4 sm:$0xff]   ;;  %v10964_v54 = vld [vmem:[%s14903_s26 + $0xa0] ss:$16 sps:$4 sm:$0xff]   ;;  %v10965_v55 = vld [vmem:[%s14903_s26 + $0xa8] ss:$16 sps:$4 sm:$0xff]  }
  0x1f   :  { %8889 = vmatpush3.bf16.msra.mxu1 %v11767_v19  ;;  %8826 = vmatprep.subr.bf16.mxu0 %v11773_v20  ;;  %v10966_v56 = vld [vmem:[%s14903_s26 + $0xc4] ss:$16 sps:$4 sm:$0xff]   ;;  %v10968_v57 = vld [vmem:[%s14903_s26 + $0xcc] ss:$16 sps:$4 sm:$0xff]   ;;  %v10970_v58 = vld [vmem:[%s14903_s26 + $0xc0] ss:$16 sps:$4 sm:$0xff]  }
  0x20   :  { %8890 = vmatprep.subr.bf16.mxu1 %v11779_v21  ;;  %v10971_v59 = vld [vmem:[%s14903_s26 + $0xc8] ss:$16 sps:$4 sm:$0xff]   ;;  %v10972_v60 = vld [vmem:[%s14903_s26 + $0xe4] ss:$16 sps:$4 sm:$0xff]   ;;  %v10974_v61 = vld [vmem:[%s14903_s26 + $0xec] ss:$16 sps:$4 sm:$0xff]  }
  0x21   :  { %v10976_v62 = vld [vmem:[%s14903_s26 + $0xe0] ss:$16 sps:$4 sm:$0xff]   ;;  %v10977_v63 = vld [vmem:[%s14903_s26 + $0xe8] ss:$16 sps:$4 sm:$0xff]  }
  0x22   :  { %8827 = vmatpush3.bf16.msra.mxu0 %v11785_v22  ;;  %v11027_v33 = vld [vmem:[%s14904_s28 + $0x8] sm:$0xff]  }
  0x23   :  { %8891 = vmatpush3.bf16.msra.mxu1 %v11791_v23  ;;  %8828 = vmatprep.subr.bf16.mxu0 %v11797_v24 }
  0x24   :  { %8892 = vmatprep.subr.bf16.mxu1 %v11803_v25 }
  0x26   :  { %8829 = vmatpush3.bf16.msra.mxu0 %v11809_v26 }
  0x27   :  { %8893 = vmatpush3.bf16.msra.mxu1 %v11815_v27  ;;  %8830 = vmatprep.subr.bf16.mxu0 %v11821_v28 }
  0x28   :  { %8894 = vmatprep.subr.bf16.mxu1 %v11827_v29 }
  0x2a   :  { %8831 = vmatpush3.bf16.msra.mxu0 %v11833_v30 }
  0x2b   :  { %8895 = vmatpush3.bf16.msra.mxu1 %v11839_v31  ;;  %8944 = vmatprep.subr.bf16.mxu0 %v11654_v0  ;;  %v10980_v0 = vld [vmem:[%s14903_s26 + $0x104] ss:$16 sps:$4 sm:$0xff]  }
  0x2c   :  { %9008 = vmatprep.subr.bf16.mxu1 %v11659_v1 }
  0x2d   :  { %544 = vmatmul.mubr.bf16.vlgmr.msra.gmra.mxu0 %v10930_v32  ;;  %v11025_v32 = vld [vmem:[%s14903_s26 + $0x1e8] ss:$16 sps:$4 sm:$0xff]  }
  0x2e   :  { %641 = vmatmul.mubr.bf16.vlgmr.msra.gmra.mxu1 %v10933_v34  ;;  %551 = vmatprep.mubr.bf16.mxu0 %v10936_v36  ;;  %v12077_v34 = vld [vmem:[%s14902_s20 + $0x78] sm:$0xff]  }
  0x2f   :  { %648 = vmatprep.mubr.bf16.mxu1 %v10938_v37  ;;  %8945 = vmatpush3.bf16.msra.mxu0 %v11665_v2  ;;  %v10983_v2 = vld [vmem:[%s14903_s26 + $0x10c] ss:$16 sps:$4 sm:$0xff]  }
  0x30   :  { %9009 = vmatpush3.bf16.msra.mxu1 %v11671_v3  ;;  %8946 = vmatprep.subr.bf16.mxu0 %v11677_v4  ;;  %v10978_v3 = vld [vmem:[%s14903_s26 + $0x100] ss:$16 sps:$4 sm:$0xff]   ;;  %v10981_v4 = vld [vmem:[%s14903_s26 + $0x108] ss:$16 sps:$4 sm:$0xff]  }
  0x31   :  { %9010 = vmatprep.subr.bf16.mxu1 %v11683_v5  ;;  %v10984_v5 = vld [vmem:[%s14903_s26 + $0x124] ss:$16 sps:$4 sm:$0xff]  }
  0x33   :  { %8947 = vmatpush3.bf16.msra.mxu0 %v11689_v6  ;;  %v10986_v6 = vld [vmem:[%s14903_s26 + $0x12c] ss:$16 sps:$4 sm:$0xff]  }
  0x34   :  { %9011 = vmatpush3.bf16.msra.mxu1 %v11695_v7  ;;  %8948 = vmatprep.subr.bf16.mxu0 %v11701_v8  ;;  %v10988_v7 = vld [vmem:[%s14903_s26 + $0x120] ss:$16 sps:$4 sm:$0xff]   ;;  %v10989_v8 = vld [vmem:[%s14903_s26 + $0x128] ss:$16 sps:$4 sm:$0xff]  }
  0x35   :  { %552 = vmatmul.mubr.bf16.gmra.mxu0 %v10940_v38  ;;  %9012 = vmatprep.subr.bf16.mxu1 %v11707_v9  ;;  %v10990_v9 = vld [vmem:[%s14903_s26 + $0x144] ss:$16 sps:$4 sm:$0xff]  }
  0x36   :  { %649 = vmatmul.mubr.bf16.gmra.mxu1 %v10941_v39  ;;  %559 = vmatprep.mubr.bf16.mxu0 %v10942_v40 }
  0x37   :  { %656 = vmatprep.mubr.bf16.mxu1 %v10944_v41  ;;  %8949 = vmatpush3.bf16.msra.mxu0 %v11713_v10  ;;  %v10992_v10 = vld [vmem:[%s14903_s26 + $0x14c] ss:$16 sps:$4 sm:$0xff]  }
  0x38   :  { %9013 = vmatpush3.bf16.msra.mxu1 %v11719_v11  ;;  %8950 = vmatprep.subr.bf16.mxu0 %v11725_v12  ;;  %v10994_v11 = vld [vmem:[%s14903_s26 + $0x140] ss:$16 sps:$4 sm:$0xff]   ;;  %v10995_v12 = vld [vmem:[%s14903_s26 + $0x148] ss:$16 sps:$4 sm:$0xff]  }
  0x39   :  { %9014 = vmatprep.subr.bf16.mxu1 %v11731_v13  ;;  %v10996_v13 = vld [vmem:[%s14903_s26 + $0x164] ss:$16 sps:$4 sm:$0xff]  }
  0x3b   :  { %8951 = vmatpush3.bf16.msra.mxu0 %v11737_v14  ;;  %v10998_v14 = vld [vmem:[%s14903_s26 + $0x16c] ss:$16 sps:$4 sm:$0xff]  }
  0x3c   :  { %9015 = vmatpush3.bf16.msra.mxu1 %v11743_v15  ;;  %8952 = vmatprep.subr.bf16.mxu0 %v11749_v16  ;;  %v11026_v15 = vld [vmem:[%s14904_s28] sm:$0xff]  }
  0x3d   :  { %560 = vmatmul.mubr.bf16.gmra.mxu0 %v10946_v42  ;;  %9016 = vmatprep.subr.bf16.mxu1 %v11755_v17  ;;  %v11000_v16 = vld [vmem:[%s14903_s26 + $0x160] ss:$16 sps:$4 sm:$0xff]   ;;  %v11001_v17 = vld [vmem:[%s14903_s26 + $0x168] ss:$16 sps:$4 sm:$0xff]  }
  0x3e   :  { %657 = vmatmul.mubr.bf16.gmra.mxu1 %v10947_v43  ;;  %567 = vmatprep.mubr.bf16.mxu0 %v10948_v44 }
  0x3f   :  { %664 = vmatprep.mubr.bf16.mxu1 %v10950_v45  ;;  %8953 = vmatpush3.bf16.msra.mxu0 %v11761_v18  ;;  %v11002_v18 = vld [vmem:[%s14903_s26 + $0x184] ss:$16 sps:$4 sm:$0xff]  }
  0x40   :  { %9017 = vmatpush3.bf16.msra.mxu1 %v11767_v19  ;;  %8954 = vmatprep.subr.bf16.mxu0 %v11773_v20  ;;  %v11004_v19 = vld [vmem:[%s14903_s26 + $0x18c] ss:$16 sps:$4 sm:$0xff]   ;;  %v11006_v20 = vld [vmem:[%s14903_s26 + $0x180] ss:$16 sps:$4 sm:$0xff]  }
  0x41   :  { %9018 = vmatprep.subr.bf16.mxu1 %v11779_v21  ;;  %v11007_v21 = vld [vmem:[%s14903_s26 + $0x188] ss:$16 sps:$4 sm:$0xff]  }
  0x43   :  { %8955 = vmatpush3.bf16.msra.mxu0 %v11785_v22  ;;  %v11008_v22 = vld [vmem:[%s14903_s26 + $0x1a4] ss:$16 sps:$4 sm:$0xff]  }
  0x44   :  { %9019 = vmatpush3.bf16.msra.mxu1 %v11791_v23  ;;  %8956 = vmatprep.subr.bf16.mxu0 %v11797_v24  ;;  %v11012_v23 = vld [vmem:[%s14903_s26 + $0x1a0] ss:$16 sps:$4 sm:$0xff]   ;;  %v11013_v24 = vld [vmem:[%s14903_s26 + $0x1a8] ss:$16 sps:$4 sm:$0xff]  }
  0x45   :  { %568 = vmatmul.mubr.bf16.gmra.mxu0 %v10952_v46  ;;  %9020 = vmatprep.subr.bf16.mxu1 %v11803_v25  ;;  %v11014_v25 = vld [vmem:[%s14903_s26 + $0x1c4] ss:$16 sps:$4 sm:$0xff]  }
  0x46   :  { %665 = vmatmul.mubr.bf16.gmra.mxu1 %v10953_v47  ;;  %575 = vmatprep.mubr.bf16.mxu0 %v10954_v48 }
  0x47   :  { %672 = vmatprep.mubr.bf16.mxu1 %v10956_v49  ;;  %8957 = vmatpush3.bf16.msra.mxu0 %v11809_v26  ;;  %v11016_v26 = vld [vmem:[%s14903_s26 + $0x1cc] ss:$16 sps:$4 sm:$0xff]  }
  0x48   :  { %9021 = vmatpush3.bf16.msra.mxu1 %v11815_v27  ;;  %8958 = vmatprep.subr.bf16.mxu0 %v11821_v28  ;;  %v11018_v27 = vld [vmem:[%s14903_s26 + $0x1c0] ss:$16 sps:$4 sm:$0xff]   ;;  %v11019_v28 = vld [vmem:[%s14903_s26 + $0x1c8] ss:$16 sps:$4 sm:$0xff]  }
  0x49   :  { %9022 = vmatprep.subr.bf16.mxu1 %v11827_v29  ;;  %v11020_v29 = vld [vmem:[%s14903_s26 + $0x1e4] ss:$16 sps:$4 sm:$0xff]  }
  0x4b   :  { %8959 = vmatpush3.bf16.msra.mxu0 %v11833_v30  ;;  %v11022_v30 = vld [vmem:[%s14903_s26 + $0x1ec] ss:$16 sps:$4 sm:$0xff]  }
  0x4c   :  { %9023 = vmatpush3.bf16.msra.mxu1 %v11839_v31  ;;  %v11024_v31 = vld [vmem:[%s14903_s26 + $0x1e0] ss:$16 sps:$4 sm:$0xff]   ;;  %10259 = vmatprep.subr.bf16.mxu0 %v11027_v33 }
  0x4d   :  { %576 = vmatmul.mubr.bf16.gmra.mxu0 %v10958_v50  ;;  %10277 = vmatprep.subr.bf16.mxu1 %v11026_v15 }
  0x4e   :  { %673 = vmatmul.mubr.bf16.gmra.mxu1 %v10959_v51  ;;  %583 = vmatprep.mubr.bf16.mxu0 %v10960_v52 }
  0x4f   :  { %680 = vmatprep.mubr.bf16.mxu1 %v10962_v53 }
  0x55   :  { %584 = vmatmul.mubr.bf16.gmra.mxu0 %v10964_v54 }
  0x56   :  { %681 = vmatmul.mubr.bf16.gmra.mxu1 %v10965_v55  ;;  %591 = vmatprep.mubr.bf16.mxu0 %v10966_v56 }
  0x57   :  { %688 = vmatprep.mubr.bf16.mxu1 %v10968_v57 }
  0x5d   :  { %592 = vmatmul.mubr.bf16.gmra.mxu0 %v10970_v58 }
  0x5e   :  { %689 = vmatmul.mubr.bf16.gmra.mxu1 %v10971_v59  ;;  %599 = vmatprep.mubr.bf16.mxu0 %v10972_v60 }
  0x5f   :  { %696 = vmatprep.mubr.bf16.mxu1 %v10974_v61 }
  0x65   :  { %600 = vmatmul.mubr.bf16.gmra.mxu0 %v10976_v62 }
  0x66   :  { %697 = vmatmul.mubr.bf16.gmra.mxu1 %v10977_v63  ;;  %940 = vmatprep.mubr.bf16.mxu0 %v10980_v0 }
  0x67   :  { %1037 = vmatprep.mubr.bf16.mxu1 %v10983_v2 }
  0x6d   :  { %941 = vmatmul.mubr.bf16.vlgmr.msra.gmra.mxu0 %v10978_v3 }
  0x6e   :  { %1038 = vmatmul.mubr.bf16.vlgmr.msra.gmra.mxu1 %v10981_v4  ;;  %948 = vmatprep.mubr.bf16.mxu0 %v10984_v5 }
  0x6f   :  { %1045 = vmatprep.mubr.bf16.mxu1 %v10986_v6  ;;  %10278 = vmatpush3.bf16.msra.mxu1 %v11026_v15 }
  0x70   :  { %9154 = vmatprep.subr.bf16.mxu1 %v11659_v1  ;;  %v11010_v1 = vld [vmem:[%s14903_s26 + $0x1ac] ss:$16 sps:$4 sm:$0xff]   ;;  %10260 = vmatpush3.bf16.msra.mxu0 %v11027_v33 }
  0x71   :  { %9090 = vmatprep.subr.bf16.mxu0 %v12077_v34 }
  0x75   :  { %949 = vmatmul.mubr.bf16.gmra.mxu0 %v10988_v7 }
  0x76   :  { %1046 = vmatmul.mubr.bf16.gmra.mxu1 %v10989_v8  ;;  %956 = vmatprep.mubr.bf16.mxu0 %v10990_v9 }
  0x77   :  { %1053 = vmatprep.mubr.bf16.mxu1 %v10992_v10 }
  0x7d   :  { %957 = vmatmul.mubr.bf16.gmra.mxu0 %v10994_v11 }
  0x7e   :  { %1054 = vmatmul.mubr.bf16.gmra.mxu1 %v10995_v12  ;;  %964 = vmatprep.mubr.bf16.mxu0 %v10996_v13  ;;  %v12085_v13 = vld [vmem:[%s14902_s20 + $0xb8] sm:$0xff]  }
  0x7f   :  { %1061 = vmatprep.mubr.bf16.mxu1 %v10998_v14 }
  0x85   :  { %965 = vmatmul.mubr.bf16.gmra.mxu0 %v11000_v16  ;;  %v12091_v16 = vld [vmem:[%s14902_s20 + $0xf0] sm:$0xff]  }
  0x86   :  { %1062 = vmatmul.mubr.bf16.gmra.mxu1 %v11001_v17  ;;  %972 = vmatprep.mubr.bf16.mxu0 %v11002_v18 }
  0x87   :  { %1069 = vmatprep.mubr.bf16.mxu1 %v11004_v19 }
  0x8d   :  { %973 = vmatmul.mubr.bf16.gmra.mxu0 %v11006_v20 }
  0x8e   :  { %1070 = vmatmul.mubr.bf16.gmra.mxu1 %v11007_v21  ;;  %980 = vmatprep.mubr.bf16.mxu0 %v11008_v22  ;;  %v12097_v22 = vld [vmem:[%s14902_s20 + $0xb0] sm:$0xff]  }
  0x8f   :  { %1077 = vmatprep.mubr.bf16.mxu1 %v11010_v1 }
  0x95   :  { %981 = vmatmul.mubr.bf16.gmra.mxu0 %v11012_v23 }
  0x96   :  { %1078 = vmatmul.mubr.bf16.gmra.mxu1 %v11013_v24  ;;  %988 = vmatprep.mubr.bf16.mxu0 %v11014_v25  ;;  %v12103_v24 = vld [vmem:[%s14902_s20 + $0xe8] sm:$0xff]  }
  0x97   :  { %1085 = vmatprep.mubr.bf16.mxu1 %v11016_v26 }
  0x9d   :  { %989 = vmatmul.mubr.bf16.gmra.mxu0 %v11018_v27 }
  0x9e   :  { %1086 = vmatmul.mubr.bf16.gmra.mxu1 %v11019_v28  ;;  %996 = vmatprep.mubr.bf16.mxu0 %v11020_v29 }
  0x9f   :  { %1093 = vmatprep.mubr.bf16.mxu1 %v11022_v30 }
  0xa5   :  { %997 = vmatmul.mubr.bf16.gmra.mxu0 %v11024_v31  ;;  %v12110_v31 = vld [vmem:[%s14902_s20 + $0xa8] sm:$0xff]  }
  0xa6   :  { %1094 = vmatmul.mubr.bf16.gmra.mxu1 %v11025_v32 }
  0xed   :  { %v8832_v35 = vpop.f32.mrf.mxu0 }
  0xee   :  { %v8896_v36 = vpop.f32.mrf.mxu1 }
  0xef   :  { %v8833_v37 = vpop.f32.mrf.mxu0 }
  0xf0   :  { %v8897_v38 = vpop.f32.mrf.mxu1  ;;  %v8834_v41 = vadd.f32 %v8833_v37, %v8832_v35  ;;  %v12116_v35 = vld [vmem:[%s14902_s20 + $0xe0] sm:$0xff]  }
  0xf1   :  { %v8835_v39 = vpop.f32.mrf.mxu0  ;;  %v8898_v42 = vadd.f32 %v8897_v38, %v8896_v36 }
  0xf2   :  { %v8899_v40 = vpop.f32.mrf.mxu1 }
  0xf3   :  { %v8836_v43 = vpop.f32.mrf.mxu0  ;;  %v643_v49 = vadd.f32 %v8898_v42, %v8834_v41  ;;  %v12122_v41 = vld [vmem:[%s14902_s20 + $0xa0] sm:$0xff]  }
  0xf4   :  { %v8837_v44 = vadd.f32 %v8836_v43, %v8835_v39  ;;  %v8900_v45 = vpop.f32.mrf.mxu1 }
  0xf5   :  { %v8901_v46 = vadd.f32 %v8900_v45, %v8899_v40  ;;  %v8838_v47 = vpop.f32.mrf.mxu0 }
  0xf6   :  { %v8902_v48 = vpop.f32.mrf.mxu1 }
  0xf7   :  { %v646_v50 = vadd.f32 %v8901_v46, %v8837_v44  ;;  %v8839_v51 = vpop.f32.mrf.mxu0  ;;  %v12128_v44 = vld [vmem:[%s14902_s20 + $0xd8] sm:$0xff]  }
  0xf8   :  { %v8903_v52 = vpop.f32.mrf.mxu1  ;;  %v8840_v56 = vadd.f32 %v8839_v51, %v8838_v47  ;;  %v12135_v51 = vld [vmem:[%s14902_s20 + $0x98] sm:$0xff]  }
  0xf9   :  { %v705_v53 = vpack.c.bf16 %v646_v50, %v643_v49  ;;  %v8841_v54 = vpop.f32.mrf.mxu0  ;;  %v8904_v57 = vadd.f32 %v8903_v52, %v8902_v48 }
  0xfa   :  { %v8905_v55 = vpop.f32.mrf.mxu1 }
  0xfb   :  { %10279 = vmatprep.mubr.msk.bf16.mxu1 %vm1119_vm0, %v705_v53  ;;  %v8842_v58 = vpop.f32.mrf.mxu0  ;;  %v651_v0 = vadd.f32 %v8904_v57, %v8840_v56 }
  0xfc   :  { %v8843_v59 = vadd.f32 %v8842_v58, %v8841_v54  ;;  %v8906_v60 = vpop.f32.mrf.mxu1  ;;  %v12141_v54 = vld [vmem:[%s14902_s20 + $0xd0] sm:$0xff]  }
  0xfd   :  { %v8907_v61 = vadd.f32 %v8906_v60, %v8905_v55  ;;  %v8844_v62 = vpop.f32.mrf.mxu0  ;;  %v12147_v60 = vld [vmem:[%s14902_s20 + $0x90] sm:$0xff]  }
  0xfe   :  { %v8908_v63 = vpop.f32.mrf.mxu1 }
  0xff   :  { %v654_v2 = vadd.f32 %v8907_v61, %v8843_v59  ;;  %v8845_v3 = vpop.f32.mrf.mxu0 }
 0x100   :  { %v8909_v4 = vpop.f32.mrf.mxu1  ;;  %v8846_v8 = vadd.f32 %v8845_v3, %v8844_v62 }
 0x101   :  { %v706_v5 = vpack.c.bf16 %v654_v2, %v651_v0  ;;  %v8847_v6 = vpop.f32.mrf.mxu0  ;;  %v8910_v9 = vadd.f32 %v8909_v4, %v8908_v63  ;;  %v12153_v63 = vld [vmem:[%s14902_s20 + $0xc8] sm:$0xff]  }
 0x102   :  { %v8911_v7 = vpop.f32.mrf.mxu1 }
 0x103   :  { %10280 = vmatmul.mubr.msk.bf16.vlgmr.msra.gmra.mxu1 %vm1119_vm0, %v706_v5  ;;  %v8848_v10 = vpop.f32.mrf.mxu0  ;;  %v659_v18 = vadd.f32 %v8910_v9, %v8846_v8 }
 0x104   :  { %v8849_v11 = vadd.f32 %v8848_v10, %v8847_v6  ;;  %v8912_v12 = vpop.f32.mrf.mxu1  ;;  %9155 = vmatpush3.bf16.msra.mxu1 %v12085_v13  ;;  %v12166_v10 = vld [vmem:[%s14902_s20 + $0xc0] sm:$0xff]  }
 0x105   :  { %v8913_v14 = vadd.f32 %v8912_v12, %v8911_v7  ;;  %v8850_v15 = vpop.f32.mrf.mxu0  ;;  %9156 = vmatprep.subr.bf16.mxu1 %v12091_v16  ;;  %v12160_v7 = vld [vmem:[%s14902_s20 + $0x88] sm:$0xff]  }
 0x106   :  { %v8914_v17 = vpop.f32.mrf.mxu1 }
 0x107   :  { %v662_v19 = vadd.f32 %v8913_v14, %v8849_v11  ;;  %v8851_v20 = vpop.f32.mrf.mxu0 }
 0x108   :  { %v8915_v21 = vpop.f32.mrf.mxu1  ;;  %9157 = vmatpush3.bf16.msra.mxu1 %v12097_v22  ;;  %v8852_v26 = vadd.f32 %v8851_v20, %v8850_v15 }
 0x109   :  { %v707_v1 = vpack.c.bf16 %v662_v19, %v659_v18  ;;  %v8853_v23 = vpop.f32.mrf.mxu0  ;;  %9158 = vmatprep.subr.bf16.mxu1 %v12103_v24  ;;  %v8916_v27 = vadd.f32 %v8915_v21, %v8914_v17  ;;  %v12172_v18 = vld [vmem:[%s14902_s20 + $0x80] sm:$0xff]  }
 0x10a   :  { %v8917_v25 = vpop.f32.mrf.mxu1 }
 0x10b   :  { %10283 = vmatprep.mubr.msk.bf16.mxu1 %vm1119_vm0, %v707_v1  ;;  %v8854_v28 = vpop.f32.mrf.mxu0  ;;  %v667_v37 = vadd.f32 %v8916_v27, %v8852_v26 }
 0x10c   :  { %v8855_v29 = vadd.f32 %v8854_v28, %v8853_v23  ;;  %v8918_v30 = vpop.f32.mrf.mxu1  ;;  %9159 = vmatpush3.bf16.msra.mxu1 %v12110_v31 }
 0x10d   :  { %v8919_v32 = vadd.f32 %v8918_v30, %v8917_v25  ;;  %v8856_v33 = vpop.f32.mrf.mxu0  ;;  %9160 = vmatprep.subr.bf16.mxu1 %v12116_v35 }
 0x10e   :  { %v8920_v36 = vpop.f32.mrf.mxu1 }
 0x10f   :  { %v670_v38 = vadd.f32 %v8919_v32, %v8855_v29  ;;  %v8857_v39 = vpop.f32.mrf.mxu0 }
 0x110   :  { %v8921_v40 = vpop.f32.mrf.mxu1  ;;  %9161 = vmatpush3.bf16.msra.mxu1 %v12122_v41  ;;  %v8858_v46 = vadd.f32 %v8857_v39, %v8856_v33 }
 0x111   :  { %v708_v42 = vpack.c.bf16 %v670_v38, %v667_v37  ;;  %v8859_v43 = vpop.f32.mrf.mxu0  ;;  %9162 = vmatprep.subr.bf16.mxu1 %v12128_v44  ;;  %v8922_v47 = vadd.f32 %v8921_v40, %v8920_v36 }
 0x112   :  { %v8923_v45 = vpop.f32.mrf.mxu1 }
 0x113   :  { %10284 = vmatmul.mubr.msk.bf16.gmra.mxu1 %vm1119_vm0, %v708_v42  ;;  %v8860_v48 = vpop.f32.mrf.mxu0  ;;  %v675_v56 = vadd.f32 %v8922_v47, %v8858_v46 }
 0x114   :  { %v8861_v49 = vadd.f32 %v8860_v48, %v8859_v43  ;;  %v8924_v50 = vpop.f32.mrf.mxu1  ;;  %9163 = vmatpush3.bf16.msra.mxu1 %v12135_v51 }
 0x115   :  { %v8925_v52 = vadd.f32 %v8924_v50, %v8923_v45  ;;  %v8862_v53 = vpop.f32.mrf.mxu0  ;;  %9164 = vmatprep.subr.bf16.mxu1 %v12141_v54 }
 0x116   :  { %v8926_v55 = vpop.f32.mrf.mxu1 }
 0x117   :  { %v678_v57 = vadd.f32 %v8925_v52, %v8861_v49  ;;  %v8863_v58 = vpop.f32.mrf.mxu0 }
 0x118   :  { %v8927_v59 = vpop.f32.mrf.mxu1  ;;  %9165 = vmatpush3.bf16.msra.mxu1 %v12147_v60  ;;  %v8864_v2 = vadd.f32 %v8863_v58, %v8862_v53 }
 0x119   :  { %v709_v61 = vpack.c.bf16 %v678_v57, %v675_v56  ;;  %v8865_v62 = vpop.f32.mrf.mxu0  ;;  %9166 = vmatprep.subr.bf16.mxu1 %v12153_v63  ;;  %v8928_v3 = vadd.f32 %v8927_v59, %v8926_v55  ;;  %v11030_v56 = vld [vmem:[%s14903_s26 + $0x20c] ss:$16 sps:$4 sm:$0xff]  }
 0x11a   :  { %v8929_v0 = vpop.f32.mrf.mxu1 }
 0x11b   :  { %10287 = vmatprep.mubr.msk.bf16.mxu1 %vm1119_vm0, %v709_v61  ;;  %v8866_v4 = vpop.f32.mrf.mxu0  ;;  %v683_v12 = vadd.f32 %v8928_v3, %v8864_v2 }
 0x11c   :  { %v8867_v5 = vadd.f32 %v8866_v4, %v8865_v62  ;;  %v8930_v6 = vpop.f32.mrf.mxu1  ;;  %9167 = vmatpush3.bf16.msra.mxu1 %v12160_v7 }
 0x11d   :  { %v8931_v8 = vadd.f32 %v8930_v6, %v8929_v0  ;;  %v8868_v9 = vpop.f32.mrf.mxu0  ;;  %9168 = vmatprep.subr.bf16.mxu1 %v12166_v10 }
 0x11e   :  { %v8932_v11 = vpop.f32.mrf.mxu1 }
 0x11f   :  { %v686_v14 = vadd.f32 %v8931_v8, %v8867_v5  ;;  %v8869_v15 = vpop.f32.mrf.mxu0 }
 0x120   :  { %v8933_v17 = vpop.f32.mrf.mxu1  ;;  %9169 = vmatpush3.bf16.msra.mxu1 %v12172_v18  ;;  %v8870_v1 = vadd.f32 %v8869_v15, %v8868_v9  ;;  %v11034_v15 = vld [vmem:[%s14903_s26 + $0x22c] ss:$16 sps:$4 sm:$0xff]  }
 0x121   :  { %v710_v19 = vpack.c.bf16 %v686_v14, %v683_v12  ;;  %v8871_v20 = vpop.f32.mrf.mxu0  ;;  %9227 = vmatprep.subr.bf16.mxu1 %v12077_v34  ;;  %v8934_v23 = vadd.f32 %v8933_v17, %v8932_v11  ;;  %v11028_v12 = vld [vmem:[%s14903_s26 + $0x208] ss:$16 sps:$4 sm:$0xff]  }
 0x122   :  { %v8935_v21 = vpop.f32.mrf.mxu1 }
 0x123   :  { %10288 = vmatmul.mubr.msk.bf16.gmra.mxu1 %vm1119_vm0, %v710_v19  ;;  %v8872_v25 = vpop.f32.mrf.mxu0  ;;  %v691_v32 = vadd.f32 %v8934_v23, %v8870_v1 }
 0x124   :  { %v8873_v26 = vadd.f32 %v8872_v25, %v8871_v20  ;;  %v8936_v27 = vpop.f32.mrf.mxu1 }
 0x125   :  { %v8937_v28 = vadd.f32 %v8936_v27, %v8935_v21  ;;  %v8874_v29 = vpop.f32.mrf.mxu0  ;;  %v12192_v27 = vld [vmem:[%s14902_s20 + $0x38] sm:$0xff]  }
 0x126   :  { %v8938_v30 = vpop.f32.mrf.mxu1 }
 0x127   :  { %v694_v33 = vadd.f32 %v8937_v28, %v8873_v26  ;;  %v8875_v36 = vpop.f32.mrf.mxu0 }
 0x128   :  { %v8939_v37 = vpop.f32.mrf.mxu1  ;;  %v8876_v42 = vadd.f32 %v8875_v36, %v8874_v29 }
 0x129   :  { %v711_v38 = vpack.c.bf16 %v694_v33, %v691_v32  ;;  %v8877_v39 = vpop.f32.mrf.mxu0  ;;  %v8940_v34 = vadd.f32 %v8939_v37, %v8938_v30  ;;  %v12198_v30 = vld [vmem:[%s14902_s20 + $0x70] sm:$0xff]  }
 0x12a   :  { %v8941_v40 = vpop.f32.mrf.mxu1 }
 0x12b   :  { %10291 = vmatprep.mubr.msk.bf16.mxu1 %vm1119_vm0, %v711_v38  ;;  %v8878_v43 = vpop.f32.mrf.mxu0  ;;  %v699_v50 = vadd.f32 %v8940_v34, %v8876_v42  ;;  %v11036_v38 = vld [vmem:[%s14903_s26 + $0x228] ss:$16 sps:$4 sm:$0xff]   ;;  %v12210_v42 = vld [vmem:[%s14902_s20 + $0x30] sm:$0xff]  }
 0x12c   :  { %v8879_v45 = vadd.f32 %v8878_v43, %v8877_v39  ;;  %v8942_v46 = vpop.f32.mrf.mxu1 }
 0x12d   :  { %v8943_v47 = vadd.f32 %v8942_v46, %v8941_v40  ;;  %v8960_v48 = vpop.f32.mrf.mxu0  ;;  %v11040_v40 = vld [vmem:[%s14903_s26 + $0x24c] ss:$16 sps:$4 sm:$0xff]  }
 0x12e   :  { %v9024_v49 = vpop.f32.mrf.mxu1 }
 0x12f   :  { %v702_v52 = vadd.f32 %v8943_v47, %v8879_v45  ;;  %v8961_v53 = vpop.f32.mrf.mxu0  ;;  %v12216_v45 = vld [vmem:[%s14902_s20 + $0x68] sm:$0xff]  }
 0x130   :  { %v9025_v55 = vpop.f32.mrf.mxu1  ;;  %v8962_v61 = vadd.f32 %v8961_v53, %v8960_v48 }
 0x131   :  { %v712_v57 = vpack.c.bf16 %v702_v52, %v699_v50  ;;  %v8963_v58 = vpop.f32.mrf.mxu0  ;;  %v9026_v62 = vadd.f32 %v9025_v55, %v9024_v49 }
 0x132   :  { %v9027_v59 = vpop.f32.mrf.mxu1 }
 0x133   :  { %10292 = vmatmul.mubr.msk.bf16.gmra.mxu1 %vm1119_vm0, %v712_v57  ;;  %v8964_v0 = vpop.f32.mrf.mxu0  ;;  %v1040_v8 = vadd.f32 %v9026_v62, %v8962_v61 }
 0x134   :  { %v8965_v2 = vadd.f32 %v8964_v0, %v8963_v58  ;;  %v9028_v3 = vpop.f32.mrf.mxu1  ;;  %1690 = vmatprep.mubr.bf16.mxu1 %v11030_v56  ;;  %v12225_v56 = vld [vmem:[%s14902_s20 + $0x28] sm:$0xff]   ;;  %v12231_v58 = vld [vmem:[%s14902_s20 + $0x60] sm:$0xff]  }
 0x135   :  { %v9029_v4 = vadd.f32 %v9028_v3, %v9027_v59  ;;  %v8966_v5 = vpop.f32.mrf.mxu0  ;;  %v11042_v0 = vld [vmem:[%s14903_s26 + $0x248] ss:$16 sps:$4 sm:$0xff]   ;;  %v11046_v3 = vld [vmem:[%s14903_s26 + $0x26c] ss:$16 sps:$4 sm:$0xff]  }
 0x136   :  { %v9030_v6 = vpop.f32.mrf.mxu1 }
 0x137   :  { %v1043_v9 = vadd.f32 %v9029_v4, %v8965_v2  ;;  %v8967_v11 = vpop.f32.mrf.mxu0 }
 0x138   :  { %v9031_v14 = vpop.f32.mrf.mxu1  ;;  %v8968_v21 = vadd.f32 %v8967_v11, %v8966_v5 }
 0x139   :  { %v1102_v17 = vpack.c.bf16 %v1043_v9, %v1040_v8  ;;  %v8969_v19 = vpop.f32.mrf.mxu0  ;;  %v9032_v1 = vadd.f32 %v9031_v14, %v9030_v6  ;;  %v12245_v6 = vld [vmem:[%s14902_s20 + $0x20] sm:$0xff]   ;;  %v12251_v9 = vld [vmem:[%s14902_s20 + $0x58] sm:$0xff]  }
 0x13a   :  { %v9033_v20 = vpop.f32.mrf.mxu1 }
 0x13b   :  { %10261 = vmatprep.mubr.msk.bf16.mxu0 %vm1119_vm0, %v1102_v17  ;;  %v8970_v23 = vpop.f32.mrf.mxu0  ;;  %1691 = vmatmul.mubr.bf16.vlgmr.msra.gmra.mxu1 %v11028_v12  ;;  %v1048_v33 = vadd.f32 %v9032_v1, %v8968_v21  ;;  %v12260_v21 = vld [vmem:[%s14902_s20 + $0x18] sm:$0xff]  }
 0x13c   :  { %v8971_v25 = vadd.f32 %v8970_v23, %v8969_v19  ;;  %v9034_v26 = vpop.f32.mrf.mxu1  ;;  %1698 = vmatprep.mubr.bf16.mxu1 %v11034_v15  ;;  %9228 = vmatpush3.bf16.msra.mxu1 %v12192_v27  ;;  %v12266_v23 = vld [vmem:[%s14902_s20 + $0x50] sm:$0xff]  }
 0x13d   :  { %v9035_v28 = vadd.f32 %v9034_v26, %v9033_v20  ;;  %v8972_v29 = vpop.f32.mrf.mxu0  ;;  %9229 = vmatprep.subr.bf16.mxu1 %v12198_v30 }
 0x13e   :  { %v9036_v32 = vpop.f32.mrf.mxu1 }
 0x13f   :  { %v1051_v36 = vadd.f32 %v9035_v28, %v8971_v25  ;;  %v8973_v37 = vpop.f32.mrf.mxu0 }
 0x140   :  { %v9037_v39 = vpop.f32.mrf.mxu1  ;;  %9230 = vmatpush3.bf16.msra.mxu1 %v12210_v42  ;;  %v8974_v47 = vadd.f32 %v8973_v37, %v8972_v29  ;;  %v11048_v29 = vld [vmem:[%s14903_s26 + $0x268] ss:$16 sps:$4 sm:$0xff]  }
 0x141   :  { %v1103_v34 = vpack.c.bf16 %v1051_v36, %v1048_v33  ;;  %v8975_v43 = vpop.f32.mrf.mxu0  ;;  %9231 = vmatprep.subr.bf16.mxu1 %v12216_v45  ;;  %v9038_v48 = vadd.f32 %v9037_v39, %v9036_v32  ;;  %v11052_v33 = vld [vmem:[%s14903_s26 + $0x28c] ss:$16 sps:$4 sm:$0xff]  }
 0x142   :  { %v9039_v46 = vpop.f32.mrf.mxu1 }
 0x143   :  { %10262 = vmatmul.mubr.msk.bf16.vlgmr.msra.gmra.mxu0 %vm1119_vm0, %v1103_v34  ;;  %v8976_v49 = vpop.f32.mrf.mxu0  ;;  %1699 = vmatmul.mubr.bf16.gmra.mxu1 %v11036_v38  ;;  %v1056_v59 = vadd.f32 %v9038_v48, %v8974_v47  ;;  %v12280_v38 = vld [vmem:[%s14902_s20 + $0x10] sm:$0xff]  }
 0x144   :  { %v8977_v50 = vadd.f32 %v8976_v49, %v8975_v43  ;;  %v9040_v52 = vpop.f32.mrf.mxu1  ;;  %9091 = vmatpush3.bf16.msra.mxu0 %v12192_v27  ;;  %1706 = vmatprep.mubr.bf16.mxu1 %v11040_v40  ;;  %v12286_v40 = vld [vmem:[%s14902_s20 + $0x48] sm:$0xff]  }
 0x145   :  { %v9041_v53 = vadd.f32 %v9040_v52, %v9039_v46  ;;  %v8978_v55 = vpop.f32.mrf.mxu0  ;;  %9092 = vmatprep.subr.bf16.mxu0 %v12198_v30  ;;  %9232 = vmatpush3.bf16.msra.mxu1 %v12225_v56  ;;  %v12295_v52 = vld [vmem:[%s14902_s20 + $0x8] sm:$0xff]  }
 0x146   :  { %v9042_v57 = vpop.f32.mrf.mxu1  ;;  %9233 = vmatprep.subr.bf16.mxu1 %v12231_v58 }
 0x147   :  { %v1059_v61 = vadd.f32 %v9041_v53, %v8977_v50  ;;  %v8979_v62 = vpop.f32.mrf.mxu0 }
 0x148   :  { %v9043_v2 = vpop.f32.mrf.mxu1  ;;  %9093 = vmatpush3.bf16.msra.mxu0 %v12210_v42  ;;  %v8980_v11 = vadd.f32 %v8979_v62, %v8978_v55  ;;  %v12301_v55 = vld [vmem:[%s14902_s20 + $0x40] sm:$0xff]   ;;  %v11054_v62 = vld [vmem:[%s14903_s26 + $0x288] ss:$16 sps:$4 sm:$0xff]  }
 0x149   :  { %v1104_v4 = vpack.c.bf16 %v1059_v61, %v1056_v59  ;;  %v8981_v5 = vpop.f32.mrf.mxu0  ;;  %9094 = vmatprep.subr.bf16.mxu0 %v12216_v45  ;;  %9234 = vmatpush3.bf16.msra.mxu1 %v12245_v6  ;;  %v9044_v12 = vadd.f32 %v9043_v2, %v9042_v57  ;;  %v11058_v2 = vld [vmem:[%s14903_s26 + $0x2ac] ss:$16 sps:$4 sm:$0xff]  }
 0x14a   :  { %v9045_v8 = vpop.f32.mrf.mxu1  ;;  %9235 = vmatprep.subr.bf16.mxu1 %v12251_v9 }
 0x14b   :  { %10265 = vmatprep.mubr.msk.bf16.mxu0 %vm1119_vm0, %v1104_v4  ;;  %v8982_v14 = vpop.f32.mrf.mxu0  ;;  %1707 = vmatmul.mubr.bf16.gmra.mxu1 %v11042_v0  ;;  %v1064_v25 = vadd.f32 %v9044_v12, %v8980_v11 }
 0x14c   :  { %v8983_v15 = vadd.f32 %v8982_v14, %v8981_v5  ;;  %v9046_v17 = vpop.f32.mrf.mxu1  ;;  %9095 = vmatpush3.bf16.msra.mxu0 %v12225_v56  ;;  %1714 = vmatprep.mubr.bf16.mxu1 %v11046_v3  ;;  %v12315_v5 = vld [vmem:[%s14902_s20] sm:$0xff]  }
 0x14d   :  { %v9047_v19 = vadd.f32 %v9046_v17, %v9045_v8  ;;  %v8984_v20 = vpop.f32.mrf.mxu0  ;;  %9096 = vmatprep.subr.bf16.mxu0 %v12231_v58  ;;  %9236 = vmatpush3.bf16.msra.mxu1 %v12260_v21  ;;  %14905 = vst [vmem:[#allocation2_spill] sm:$0xff] %v12315_v5 }
 0x14e   :  { %v9048_v1 = vpop.f32.mrf.mxu1  ;;  %9237 = vmatprep.subr.bf16.mxu1 %v12266_v23 }
 0x14f   :  { %v1067_v26 = vadd.f32 %v9047_v19, %v8983_v15  ;;  %v8985_v28 = vpop.f32.mrf.mxu0 }
 0x150   :  { %v9049_v32 = vpop.f32.mrf.mxu1  ;;  %9097 = vmatpush3.bf16.msra.mxu0 %v12245_v6  ;;  %v8986_v34 = vadd.f32 %v8985_v28, %v8984_v20 }
 0x151   :  { %v1105_v36 = vpack.c.bf16 %v1067_v26, %v1064_v25  ;;  %v8987_v37 = vpop.f32.mrf.mxu0  ;;  %9098 = vmatprep.subr.bf16.mxu0 %v12251_v9  ;;  %9238 = vmatpush3.bf16.msra.mxu1 %v12280_v38  ;;  %v9050_v43 = vadd.f32 %v9049_v32, %v9048_v1 }
 0x152   :  { %v9051_v39 = vpop.f32.mrf.mxu1  ;;  %9239 = vmatprep.subr.bf16.mxu1 %v12286_v40 }
 0x153   :  { %10266 = vmatmul.mubr.msk.bf16.gmra.mxu0 %vm1119_vm0, %v1105_v36  ;;  %v8988_v46 = vpop.f32.mrf.mxu0  ;;  %1715 = vmatmul.mubr.bf16.gmra.mxu1 %v11048_v29  ;;  %v1072_v57 = vadd.f32 %v9050_v43, %v8986_v34  ;;  %v11060_v29 = vld [vmem:[%s14903_s26 + $0x2a8] ss:$16 sps:$4 sm:$0xff]  }
 0x154   :  { %v8989_v47 = vadd.f32 %v8988_v46, %v8987_v37  ;;  %v9052_v48 = vpop.f32.mrf.mxu1  ;;  %9099 = vmatpush3.bf16.msra.mxu0 %v12260_v21  ;;  %1722 = vmatprep.mubr.bf16.mxu1 %v11052_v33  ;;  %v11064_v33 = vld [vmem:[%s14903_s26 + $0x2cc] ss:$16 sps:$4 sm:$0xff]  }
 0x155   :  { %v9053_v49 = vadd.f32 %v9052_v48, %v9051_v39  ;;  %v8990_v50 = vpop.f32.mrf.mxu0  ;;  %9100 = vmatprep.subr.bf16.mxu0 %v12266_v23  ;;  %9240 = vmatpush3.bf16.msra.mxu1 %v12295_v52 }
 0x156   :  { %v9054_v53 = vpop.f32.mrf.mxu1  ;;  %9241 = vmatprep.subr.bf16.mxu1 %v12301_v55 }
 0x157   :  { %v1075_v59 = vadd.f32 %v9053_v49, %v8989_v47  ;;  %v8991_v61 = vpop.f32.mrf.mxu0 }
 0x158   :  { %v9055_v0 = vpop.f32.mrf.mxu1  ;;  %9101 = vmatpush3.bf16.msra.mxu0 %v12280_v38  ;;  %v8992_v11 = vadd.f32 %v8991_v61, %v8990_v50 }
 0x159   :  { %v1106_v3 = vpack.c.bf16 %v1075_v59, %v1072_v57  ;;  %v8993_v4 = vpop.f32.mrf.mxu0  ;;  %9102 = vmatprep.subr.bf16.mxu0 %v12286_v40  ;;  %9242 = vmatpush3.bf16.msra.mxu1 %v12315_v5  ;;  %v9056_v12 = vadd.f32 %v9055_v0, %v9054_v53 }
 0x15a   :  { %v9057_v8 = vpop.f32.mrf.mxu1 }
 0x15b   :  { %10269 = vmatprep.mubr.msk.bf16.mxu0 %vm1119_vm0, %v1106_v3  ;;  %v8994_v14 = vpop.f32.mrf.mxu0  ;;  %1723 = vmatmul.mubr.bf16.gmra.mxu1 %v11054_v62  ;;  %v1080_v25 = vadd.f32 %v9056_v12, %v8992_v11  ;;  %v11066_v62 = vld [vmem:[%s14903_s26 + $0x2c8] ss:$16 sps:$4 sm:$0xff]  }
 0x15c   :  { %v8995_v15 = vadd.f32 %v8994_v14, %v8993_v4  ;;  %v9058_v17 = vpop.f32.mrf.mxu1  ;;  %9103 = vmatpush3.bf16.msra.mxu0 %v12295_v52  ;;  %1730 = vmatprep.mubr.bf16.mxu1 %v11058_v2  ;;  %v11070_v2 = vld [vmem:[%s14903_s26 + $0x2ec] ss:$16 sps:$4 sm:$0xff]  }
 0x15d   :  { %v9059_v19 = vadd.f32 %v9058_v17, %v9057_v8  ;;  %v8996_v20 = vpop.f32.mrf.mxu0  ;;  %9104 = vmatprep.subr.bf16.mxu0 %v12301_v55 }
 0x15e   :  { %v9060_v1 = vpop.f32.mrf.mxu1 }
 0x15f   :  { %v1083_v26 = vadd.f32 %v9059_v19, %v8995_v15  ;;  %v8997_v28 = vpop.f32.mrf.mxu0 }
 0x160   :  { %v9061_v32 = vpop.f32.mrf.mxu1  ;;  %9105 = vmatpush3.bf16.msra.mxu0 %v12315_v5  ;;  %v8998_v34 = vadd.f32 %v8997_v28, %v8996_v20 }
 0x161   :  { %v1107_v36 = vpack.c.bf16 %v1083_v26, %v1080_v25  ;;  %v8999_v37 = vpop.f32.mrf.mxu0  ;;  %v9062_v43 = vadd.f32 %v9061_v32, %v9060_v1  ;;  %v11072_v25 = vld [vmem:[%s14903_s26 + $0x2e8] ss:$16 sps:$4 sm:$0xff]   ;;  %v11033_v26 = vld [vmem:[%s14903_s26 + $0x204] ss:$16 sps:$4 sm:$0xff]  }
 0x162   :  { %v9063_v39 = vpop.f32.mrf.mxu1  ;;  %v11037_v32 = vld [vmem:[%s14903_s26 + $0x224] ss:$16 sps:$4 sm:$0xff]  }
 0x163   :  { %10270 = vmatmul.mubr.msk.bf16.gmra.mxu0 %vm1119_vm0, %v1107_v36  ;;  %v9000_v46 = vpop.f32.mrf.mxu0  ;;  %1731 = vmatmul.mubr.bf16.gmra.mxu1 %v11060_v29  ;;  %v1088_v57 = vadd.f32 %v9062_v43, %v8998_v34  ;;  %v11031_v29 = vld [vmem:[%s14903_s26 + $0x200] ss:$16 sps:$4 sm:$0xff]   ;;  %v11043_v36 = vld [vmem:[%s14903_s26 + $0x244] ss:$16 sps:$4 sm:$0xff]  }
 0x164   :  { %v9001_v47 = vadd.f32 %v9000_v46, %v8999_v37  ;;  %v9064_v48 = vpop.f32.mrf.mxu1  ;;  %1738 = vmatprep.mubr.bf16.mxu1 %v11064_v33  ;;  %v11039_v33 = vld [vmem:[%s14903_s26 + $0x220] ss:$16 sps:$4 sm:$0xff]   ;;  %v11055_v43 = vld [vmem:[%s14903_s26 + $0x284] ss:$16 sps:$4 sm:$0xff]  }
 0x165   :  { %v9065_v49 = vadd.f32 %v9064_v48, %v9063_v39  ;;  %v9002_v50 = vpop.f32.mrf.mxu0  ;;  %v11045_v37 = vld [vmem:[%s14903_s26 + $0x240] ss:$16 sps:$4 sm:$0xff]   ;;  %v11049_v39 = vld [vmem:[%s14903_s26 + $0x264] ss:$16 sps:$4 sm:$0xff]  }
 0x166   :  { %v9066_v53 = vpop.f32.mrf.mxu1  ;;  %v11051_v34 = vld [vmem:[%s14903_s26 + $0x260] ss:$16 sps:$4 sm:$0xff]  }
 0x167   :  { %v1091_v59 = vadd.f32 %v9065_v49, %v9001_v47  ;;  %v9003_v61 = vpop.f32.mrf.mxu0  ;;  %v11057_v46 = vld [vmem:[%s14903_s26 + $0x280] ss:$16 sps:$4 sm:$0xff]   ;;  %v11061_v47 = vld [vmem:[%s14903_s26 + $0x2a4] ss:$16 sps:$4 sm:$0xff]  }
 0x168   :  { %v9067_v0 = vpop.f32.mrf.mxu1  ;;  %v9004_v11 = vadd.f32 %v9003_v61, %v9002_v50  ;;  %v11063_v48 = vld [vmem:[%s14903_s26 + $0x2a0] ss:$16 sps:$4 sm:$0xff]   ;;  %v11067_v49 = vld [vmem:[%s14903_s26 + $0x2c4] ss:$16 sps:$4 sm:$0xff]   ;;  %v12394_v61 = vld [vmem:[%s14902_s20 + $0xf8] sm:$0xff]  }
 0x169   :  { %v1108_v3 = vpack.c.bf16 %v1091_v59, %v1088_v57  ;;  %v9005_v4 = vpop.f32.mrf.mxu0  ;;  %v9068_v12 = vadd.f32 %v9067_v0, %v9066_v53  ;;  %v11069_v50 = vld [vmem:[%s14903_s26 + $0x2c0] ss:$16 sps:$4 sm:$0xff]   ;;  %v11073_v53 = vld [vmem:[%s14903_s26 + $0x2e4] ss:$16 sps:$4 sm:$0xff]   ;;  %14906 = vst [vmem:[#allocation3_spill] sm:$0xff] %v12394_v61 }
 0x16a   :  { %v9069_v8 = vpop.f32.mrf.mxu1  ;;  %v11075_v57 = vld [vmem:[%s14903_s26 + $0x2e0] ss:$16 sps:$4 sm:$0xff]  }
 0x16b   :  { %10273 = vmatprep.mubr.msk.bf16.mxu0 %vm1119_vm0, %v1108_v3  ;;  %v9006_v14 = vpop.f32.mrf.mxu0  ;;  %1739 = vmatmul.mubr.bf16.gmra.mxu1 %v11066_v62  ;;  %v1096_v20 = vadd.f32 %v9068_v12, %v9004_v11  ;;  %v11076_v59 = vld [vmem:[%s14904_s28 + $0x10] sm:$0xff]  }
 0x16c   :  { %v9007_v15 = vadd.f32 %v9006_v14, %v9005_v4  ;;  %v9070_v17 = vpop.f32.mrf.mxu1  ;;  %1746 = vmatprep.mubr.bf16.mxu1 %v11070_v2  ;;  %10295 = vmatprep.subr.bf16.mxu0 %v11076_v59 }
 0x16d   :  { %v9071_v19 = vadd.f32 %v9070_v17, %v9069_v8 }
 0x16f   :  { %v1099_v1 = vadd.f32 %v9071_v19, %v9007_v15 }
 0x171   :  { %v1109_v28 = vpack.c.bf16 %v1099_v1, %v1096_v20 }
 0x173   :  { %10274 = vmatmul.mubr.msk.bf16.gmra.mxu0 %vm1119_vm0, %v1109_v28  ;;  %1747 = vmatmul.mubr.bf16.gmra.mxu1 %v11072_v25 }
 0x174   :  { %1593 = vmatprep.mubr.bf16.mxu0 %v11033_v26 }
 0x17b   :  { %1594 = vmatmul.mubr.bf16.vlgmr.msra.gmra.mxu0 %v11031_v29 }
 0x17c   :  { %1601 = vmatprep.mubr.bf16.mxu0 %v11037_v32  ;;  %10296 = vmatpush3.bf16.msra.mxu0 %v11076_v59  ;;  %v11079_v32 = vld [vmem:[%s14903_s26 + $0x304] ss:$16 sps:$4 sm:$0xff]  }
 0x17d   :  { %9291 = vmatprep.subr.bf16.mxu0 %v12394_v61  ;;  %2134 = vmatprep.mubr.bf16.mxu1 %v11079_v32  ;;  %v11091_v59 = vld [vmem:[%s14903_s26 + $0x344] ss:$16 sps:$4 sm:$0xff]  }
 0x183   :  { %1602 = vmatmul.mubr.bf16.gmra.mxu0 %v11039_v33  ;;  %v11077_v33 = vld [vmem:[%s14903_s26 + $0x300] ss:$16 sps:$4 sm:$0xff]  }
 0x184   :  { %1609 = vmatprep.mubr.bf16.mxu0 %v11043_v36  ;;  %2135 = vmatmul.mubr.bf16.vlgmr.msra.gmra.mxu1 %v11077_v33 }
 0x18b   :  { %1610 = vmatmul.mubr.bf16.gmra.mxu0 %v11045_v37 }
 0x18c   :  { %1617 = vmatprep.mubr.bf16.mxu0 %v11049_v39 }
 0x193   :  { %1618 = vmatmul.mubr.bf16.gmra.mxu0 %v11051_v34 }
 0x194   :  { %1625 = vmatprep.mubr.bf16.mxu0 %v11055_v43 }
 0x19b   :  { %1626 = vmatmul.mubr.bf16.gmra.mxu0 %v11057_v46 }
 0x19c   :  { %1633 = vmatprep.mubr.bf16.mxu0 %v11061_v47 }
 0x1a3   :  { %1634 = vmatmul.mubr.bf16.gmra.mxu0 %v11063_v48  ;;  %v11085_v48 = vld [vmem:[%s14903_s26 + $0x324] ss:$16 sps:$4 sm:$0xff]  }
 0x1a4   :  { %1641 = vmatprep.mubr.bf16.mxu0 %v11067_v49  ;;  %2142 = vmatprep.mubr.bf16.mxu1 %v11085_v48 }
 0x1ab   :  { %1642 = vmatmul.mubr.bf16.gmra.mxu0 %v11069_v50  ;;  %v11083_v50 = vld [vmem:[%s14903_s26 + $0x320] ss:$16 sps:$4 sm:$0xff]  }
 0x1ac   :  { %1649 = vmatprep.mubr.bf16.mxu0 %v11073_v53  ;;  %2143 = vmatmul.mubr.bf16.gmra.mxu1 %v11083_v50  ;;  %v11097_v50 = vld [vmem:[%s14903_s26 + $0x364] ss:$16 sps:$4 sm:$0xff]  }
 0x1ad   :  { %2150 = vmatprep.mubr.bf16.mxu1 %v11091_v59  ;;  %v11095_v59 = vld [vmem:[%s14903_s26 + $0x360] ss:$16 sps:$4 sm:$0xff]  }
 0x1b3   :  { %1650 = vmatmul.mubr.bf16.gmra.mxu0 %v11075_v57 }
 0x1c3   :  { %v10281_v62 = vpop.f32.mrf.mxu1 }
 0x1c5   :  { %v1305_v0 = vpop.f32.mrf.mxu1 }
 0x1c7   :  { %v10282_v2 = vpop.f32.mrf.mxu1 }
 0x1c9   :  { %v12397_v3 = vpop.f32.mrf.mxu1 }
 0x1ca   :  { %14907 = vst [vmem:[#allocation4_spill] sm:$0xff] %v12397_v3 }
 0x1d3   :  { %v10285_v4 = vpop.f32.mrf.mxu1 }
 0x1d5   :  { %v1321_v8 = vpop.f32.mrf.mxu1 }
 0x1d7   :  { %v10286_v11 = vpop.f32.mrf.mxu1 }
 0x1d9   :  { %v12399_v12 = vpop.f32.mrf.mxu1 }
 0x1da   :  { %14908 = vst [vmem:[#allocation5_spill] sm:$0xff] %v12399_v12 }
 0x1e3   :  { %v10289_v14 = vpop.f32.mrf.mxu1 }
 0x1e5   :  { %v1337_v15 = vpop.f32.mrf.mxu1 }
 0x1e7   :  { %v10290_v17 = vpop.f32.mrf.mxu1 }
 0x1e9   :  { %v12401_v19 = vpop.f32.mrf.mxu1 }
 0x1ea   :  { %14909 = vst [vmem:[#allocation6_spill] sm:$0xff] %v12401_v19 }
 0x1f3   :  { %v12403_v20 = vpop.f32.mrf.mxu1 }
 0x1f5   :  { %v12405_v1 = vpop.f32.mrf.mxu1 }
 0x1f7   :  { %v12407_v25 = vpop.f32.mrf.mxu1 }
 0x1f9   :  { %v12409_v26 = vpop.f32.mrf.mxu1 }
 0x1fa   :  { %14910 = vst [vmem:[#allocation7_spill] sm:$0xff] %v12409_v26  ;;  %v11109_v26 = vld [vmem:[%s14903_s26 + $0x3a4] ss:$16 sps:$4 sm:$0xff]  }
 0x1fb   :  { %v12411_v28 = vpop.f32.mrf.mxu1 }
 0x1fd   :  { %v12413_v29 = vpop.f32.mrf.mxu1 }
 0x1ff   :  { %v12421_v37 = vpop.f32.mrf.mxu1 }
 0x201   :  { %v12427_v47 = vpop.f32.mrf.mxu1 }
 0x203   :  { %v10263_v36 = vpop.f32.mrf.mxu0  ;;  %v12437_v53 = vpop.f32.mrf.mxu1 }
 0x204   :  { %v12423_v39 = vadd.f32 %v10281_v62, %v10263_v36  ;;  %v11089_v62 = vld [vmem:[%s14903_s26 + $0x340] ss:$16 sps:$4 sm:$0xff]  }
 0x205   :  { %v1178_v34 = vpop.f32.mrf.mxu0  ;;  %v12439_v57 = vpop.f32.mrf.mxu1  ;;  %2151 = vmatmul.mubr.bf16.gmra.mxu1 %v11089_v62 }
 0x206   :  { %14911 = vst [vmem:[#allocation8_spill] sm:$0xff] %v12423_v39  ;;  %v12425_v43 = vadd.f32 %v1305_v0, %v1178_v34  ;;  %2158 = vmatprep.mubr.bf16.mxu1 %v11097_v50 }
 0x207   :  { %v10264_v46 = vpop.f32.mrf.mxu0  ;;  %v12449_v32 = vpop.f32.mrf.mxu1 }
 0x208   :  { %14912 = vst [vmem:[#allocation9_spill] sm:$0xff] %v12425_v43  ;;  %v12432_v49 = vadd.f32 %v10282_v2, %v10264_v46 }
 0x209   :  { %v12447_v0 = vpop.f32.mrf.mxu0  ;;  %v12455_v48 = vpop.f32.mrf.mxu1 }
 0x20a   :  { %14913 = vst [vmem:[#allocation10_spill] sm:$0xff] %v12432_v49  ;;  %14914 = vst [vmem:[#allocation11_spill] sm:$0xff] %v12447_v0 }
 0x20d   :  { %2159 = vmatmul.mubr.bf16.gmra.mxu1 %v11095_v59 }
 0x213   :  { %v10267_v2 = vpop.f32.mrf.mxu0 }
 0x214   :  { %v12451_v33 = vadd.f32 %v10285_v4, %v10267_v2  ;;  %v12465_v4 = vpop.f32.mrf.mxu1  ;;  %v11101_v2 = vld [vmem:[%s14903_s26 + $0x380] ss:$16 sps:$4 sm:$0xff]  }
 0x215   :  { %v1194_v36 = vpop.f32.mrf.mxu0 }
 0x216   :  { %14915 = vst [vmem:[#allocation12_spill] sm:$0xff] %v12451_v33  ;;  %v12453_v34 = vadd.f32 %v1321_v8, %v1194_v36  ;;  %v12467_v62 = vpop.f32.mrf.mxu1  ;;  %v11103_v8 = vld [vmem:[%s14903_s26 + $0x384] ss:$16 sps:$4 sm:$0xff]  }
 0x217   :  { %v10268_v46 = vpop.f32.mrf.mxu0  ;;  %2166 = vmatprep.mubr.bf16.mxu1 %v11103_v8  ;;  %v11107_v8 = vld [vmem:[%s14903_s26 + $0x3a0] ss:$16 sps:$4 sm:$0xff]  }
 0x218   :  { %14916 = vst [vmem:[#allocation13_spill] sm:$0xff] %v12453_v34  ;;  %v12460_v3 = vadd.f32 %v10286_v11, %v10268_v46  ;;  %2167 = vmatmul.mubr.bf16.gmra.mxu1 %v11101_v2  ;;  %v12477_v46 = vpop.f32.mrf.mxu1 }
 0x219   :  { %v12475_v11 = vpop.f32.mrf.mxu0  ;;  %2174 = vmatprep.mubr.bf16.mxu1 %v11109_v26 }
 0x21a   :  { %14917 = vst [vmem:[#allocation14_spill] sm:$0xff] %v12460_v3  ;;  %14918 = vst [vmem:[#allocation15_spill] sm:$0xff] %v12475_v11  ;;  %v12483_v19 = vpop.f32.mrf.mxu1 }
 0x220   :  { %2175 = vmatmul.mubr.bf16.gmra.mxu1 %v11107_v8 }
 0x223   :  { %v10271_v36 = vpop.f32.mrf.mxu0 }
 0x224   :  { %v12479_v50 = vadd.f32 %v10289_v14, %v10271_v36  ;;  %v12493_v14 = vpop.f32.mrf.mxu1  ;;  %v11113_v36 = vld [vmem:[%s14903_s26 + $0x3c0] ss:$16 sps:$4 sm:$0xff]  }
 0x225   :  { %v1210_v59 = vpop.f32.mrf.mxu0 }
 0x226   :  { %14919 = vst [vmem:[#allocation16_spill] sm:$0xff] %v12479_v50  ;;  %v12481_v0 = vadd.f32 %v1337_v15, %v1210_v59  ;;  %v12495_v2 = vpop.f32.mrf.mxu1  ;;  %v11115_v15 = vld [vmem:[%s14903_s26 + $0x3c4] ss:$16 sps:$4 sm:$0xff]  }
 0x227   :  { %v10272_v12 = vpop.f32.mrf.mxu0  ;;  %2182 = vmatprep.mubr.bf16.mxu1 %v11115_v15  ;;  %v11121_v50 = vld [vmem:[%s14903_s26 + $0x3e4] ss:$16 sps:$4 sm:$0xff]   ;;  %v11119_v15 = vld [vmem:[%s14903_s26 + $0x3e0] ss:$16 sps:$4 sm:$0xff]  }
 0x228   :  { %14920 = vst [vmem:[#allocation17_spill] sm:$0xff] %v12481_v0  ;;  %v12488_v3 = vadd.f32 %v10290_v17, %v10272_v12  ;;  %2183 = vmatmul.mubr.bf16.gmra.mxu1 %v11113_v36  ;;  %v12505_v59 = vpop.f32.mrf.mxu1 }
 0x229   :  { %v12503_v12 = vpop.f32.mrf.mxu0  ;;  %2190 = vmatprep.mubr.bf16.mxu1 %v11121_v50 }
 0x22a   :  { %14921 = vst [vmem:[#allocation18_spill] sm:$0xff] %v12488_v3  ;;  %14922 = vst [vmem:[#allocation19_spill] sm:$0xff] %v12503_v12  ;;  %v9192_v0 = vpop.f32.mrf.mxu1 }
 0x230   :  { %2191 = vmatmul.mubr.bf16.gmra.mxu1 %v11119_v15 }
 0x233   :  { %v10275_v17 = vpop.f32.mrf.mxu0 }
 0x234   :  { %v12508_v26 = vadd.f32 %v12403_v20, %v10275_v17 }
 0x235   :  { %v1226_v8 = vpop.f32.mrf.mxu0 }
 0x236   :  { %14923 = vst [vmem:[#allocation20_spill] sm:$0xff] %v12508_v26  ;;  %v12511_v11 = vadd.f32 %v12405_v1, %v1226_v8  ;;  %v12524_v1 = vpop.f32.mrf.mxu1 }
 0x237   :  { %v10276_v3 = vpop.f32.mrf.mxu0 }
 0x238   :  { %14924 = vst [vmem:[#allocation21_spill] sm:$0xff] %v12511_v11  ;;  %v12517_v12 = vadd.f32 %v12407_v25, %v10276_v3  ;;  %v12526_v11 = vpop.f32.mrf.mxu1  ;;  %v9172_v3 = vadd.f32 %v12413_v29, %v12411_v28  ;;  %v9175_v25 = vadd.f32 %v12427_v47, %v12421_v37  ;;  %v9181_v28 = vadd.f32 %v12455_v48, %v12449_v32 }
 0x239   :  { %v12522_v36 = vpop.f32.mrf.mxu0 }
 0x23a   :  { %14925 = vst [vmem:[#allocation22_spill] sm:$0xff] %v12517_v12  ;;  %14926 = vst [vmem:[#allocation23_spill] sm:$0xff] %v12522_v36  ;;  %v9197_v36 = vpop.f32.mrf.mxu1 }
 0x23b   :  { %v9106_v20 = vpop.f32.mrf.mxu0 }
 0x23c   :  { %v9198_v61 = vpop.f32.mrf.mxu1 }
 0x23d   :  { %v9107_v17 = vpop.f32.mrf.mxu0 }
 0x23e   :  { %v9108_v26 = vadd.f32 %v9107_v17, %v9106_v20  ;;  %v9178_v17 = vadd.f32 %v12439_v57, %v12437_v53  ;;  %v12537_v47 = vpop.f32.mrf.mxu1  ;;  %v9184_v53 = vadd.f32 %v12467_v62, %v12465_v4 }
 0x23f   :  { %v9109_v8 = vpop.f32.mrf.mxu0 }
 0x240   :  { %v1693_v50 = vadd.f32 %v9172_v3, %v9108_v26 }
 0x241   :  { %v9110_v34 = vpop.f32.mrf.mxu0 }
 0x242   :  { %v9111_v12 = vadd.f32 %v9110_v34, %v9109_v8 }
 0x243   :  { %v9112_v33 = vpop.f32.mrf.mxu0 }
 0x244   :  { %v1696_v15 = vadd.f32 %v9175_v25, %v9111_v12  ;;  %v9201_v25 = vpop.f32.mrf.mxu1 }
 0x245   :  { %v9113_v49 = vpop.f32.mrf.mxu0 }
 0x246   :  { %v1755_v43 = vpack.c.bf16 %v1696_v15, %v1693_v50  ;;  %v9114_v5 = vadd.f32 %v9113_v49, %v9112_v33  ;;  %v9203_v32 = vpop.f32.mrf.mxu1 }
 0x247   :  { %v9115_v39 = vpop.f32.mrf.mxu0 }
 0x248   :  { %10297 = vmatprep.mubr.msk.bf16.mxu0 %vm1119_vm0, %v1755_v43  ;;  %v1701_v34 = vadd.f32 %v9178_v17, %v9114_v5 }
 0x249   :  { %v9116_v20 = vpop.f32.mrf.mxu0 }
 0x24a   :  { %v9117_v29 = vadd.f32 %v9116_v20, %v9115_v39  ;;  %v9187_v39 = vadd.f32 %v12483_v19, %v12477_v46  ;;  %v9204_v20 = vpop.f32.mrf.mxu1  ;;  %v9193_v19 = vadd.f32 %v9192_v0, %v12505_v59  ;;  %v9199_v0 = vadd.f32 %v9198_v61, %v9197_v36 }
 0x24b   :  { %v9118_v37 = vpop.f32.mrf.mxu0  ;;  %v9205_v61 = vadd.f32 %v9204_v20, %v9203_v32 }
 0x24c   :  { %v1704_v12 = vadd.f32 %v9181_v28, %v9117_v29  ;;  %v9206_v46 = vpop.f32.mrf.mxu1 }
 0x24d   :  { %v9119_v26 = vpop.f32.mrf.mxu0 }
 0x24e   :  { %v1756_v8 = vpack.c.bf16 %v1704_v12, %v1701_v34  ;;  %v9120_v49 = vadd.f32 %v9119_v26, %v9118_v37 }
 0x24f   :  { %v9121_v3 = vpop.f32.mrf.mxu0 }
 0x250   :  { %10298 = vmatmul.mubr.msk.bf16.vlgmr.msra.gmra.mxu0 %vm1119_vm0, %v1756_v8  ;;  %v1709_v33 = vadd.f32 %v9184_v53, %v9120_v49 }
 0x251   :  { %v9122_v43 = vpop.f32.mrf.mxu0  ;;  %9292 = vmatpush3.bf16.msra.mxu0 %v12085_v13 }
 0x252   :  { %v9123_v57 = vadd.f32 %v9122_v43, %v9121_v3  ;;  %9293 = vmatprep.subr.bf16.mxu0 %v12091_v16  ;;  %v9190_v16 = vadd.f32 %v12495_v2, %v12493_v14 }
 0x253   :  { %v9124_v5 = vpop.f32.mrf.mxu0 }
 0x254   :  { %v1712_v48 = vadd.f32 %v9187_v39, %v9123_v57 }
 0x255   :  { %v9125_v50 = vpop.f32.mrf.mxu0  ;;  %9294 = vmatpush3.bf16.msra.mxu0 %v12097_v22 }
 0x256   :  { %v1757_v15 = vpack.c.bf16 %v1712_v48, %v1709_v33  ;;  %9295 = vmatprep.subr.bf16.mxu0 %v12103_v24  ;;  %v9126_v17 = vadd.f32 %v9125_v50, %v9124_v5  ;;  %v12571_v5 = vld [vmem:[%s14902_s20 + $0x78] sm:$0xff]  }
 0x257   :  { %v9127_v13 = vpop.f32.mrf.mxu0 }
 0x258   :  { %10301 = vmatprep.mubr.msk.bf16.mxu0 %vm1119_vm0, %v1757_v15  ;;  %v1717_v28 = vadd.f32 %v9190_v16, %v9126_v17 }
 0x259   :  { %v9128_v4 = vpop.f32.mrf.mxu0  ;;  %9296 = vmatpush3.bf16.msra.mxu0 %v12110_v31  ;;  %v9207_v31 = vpop.f32.mrf.mxu1 }
 0x25a   :  { %v9129_v62 = vadd.f32 %v9128_v4, %v9127_v13  ;;  %9297 = vmatprep.subr.bf16.mxu0 %v12116_v35  ;;  %v9196_v35 = vadd.f32 %v12526_v11, %v12524_v1  ;;  %v9208_v32 = vadd.f32 %v9207_v31, %v9206_v46  ;;  %v11082_v46 = vld [vmem:[%s14903_s26 + $0x30c] ss:$16 sps:$4 sm:$0xff]   ;;  %v11080_v31 = vld [vmem:[%s14903_s26 + $0x308] ss:$16 sps:$4 sm:$0xff]  }
 0x25b   :  { %v9130_v22 = vpop.f32.mrf.mxu0 }
 0x25c   :  { %v1720_v24 = vadd.f32 %v9193_v19, %v9129_v62 }
 0x25d   :  { %v9131_v29 = vpop.f32.mrf.mxu0  ;;  %9298 = vmatpush3.bf16.msra.mxu0 %v12122_v41  ;;  %v9209_v41 = vpop.f32.mrf.mxu1 }
 0x25e   :  { %v1758_v37 = vpack.c.bf16 %v1720_v24, %v1717_v28  ;;  %9299 = vmatprep.subr.bf16.mxu0 %v12128_v44  ;;  %v9132_v12 = vadd.f32 %v9131_v29, %v9130_v22 }
 0x25f   :  { %v9133_v34 = vpop.f32.mrf.mxu0  ;;  %v9210_v43 = vpop.f32.mrf.mxu1 }
 0x260   :  { %10302 = vmatmul.mubr.msk.bf16.gmra.mxu0 %vm1119_vm0, %v1758_v37  ;;  %v1725_v26 = vadd.f32 %v9196_v35, %v9132_v12  ;;  %v9211_v33 = vadd.f32 %v9210_v43, %v9209_v41  ;;  %v11088_v12 = vld [vmem:[%s14903_s26 + $0x32c] ss:$16 sps:$4 sm:$0xff]   ;;  %v11126_v41 = vld [vmem:[%s14903_s26 + $0x400] ss:$16 sps:$4 sm:$0xff]  }
 0x261   :  { %v9134_v14 = vpop.f32.mrf.mxu0  ;;  %9300 = vmatpush3.bf16.msra.mxu0 %v12135_v51  ;;  %v9212_v53 = vpop.f32.mrf.mxu1  ;;  %v11094_v35 = vld [vmem:[%s14903_s26 + $0x34c] ss:$16 sps:$4 sm:$0xff]  }
 0x262   :  { %v9135_v2 = vadd.f32 %v9134_v14, %v9133_v34  ;;  %9301 = vmatprep.subr.bf16.mxu0 %v12141_v54  ;;  %v9202_v54 = vadd.f32 %v9201_v25, %v12537_v47  ;;  %v11086_v14 = vld [vmem:[%s14903_s26 + $0x328] ss:$16 sps:$4 sm:$0xff]  }
 0x263   :  { %v9136_v59 = vpop.f32.mrf.mxu0  ;;  %v9213_v47 = vpop.f32.mrf.mxu1  ;;  %v14930_v43 = vld [vmem:[#allocation9_spill] sm:$0xff] }
 0x264   :  { %v1728_v8 = vadd.f32 %v9199_v0, %v9135_v2  ;;  %v9214_v22 = vadd.f32 %v9213_v47, %v9212_v53  ;;  %v11132_v53 = vld [vmem:[%s14903_s26 + $0x420] ss:$16 sps:$4 sm:$0xff]  }
 0x265   :  { %v9137_v44 = vpop.f32.mrf.mxu0  ;;  %9302 = vmatpush3.bf16.msra.mxu0 %v12147_v60  ;;  %v9215_v50 = vpop.f32.mrf.mxu1 }
 0x266   :  { %v1759_v3 = vpack.c.bf16 %v1728_v8, %v1725_v26  ;;  %9303 = vmatprep.subr.bf16.mxu0 %v12153_v63  ;;  %v9138_v51 = vadd.f32 %v9137_v44, %v9136_v59  ;;  %v11128_v59 = vld [vmem:[%s14903_s26 + $0x404] ss:$16 sps:$4 sm:$0xff]  }
 0x267   :  { %v9139_v49 = vpop.f32.mrf.mxu0  ;;  %v9216_v4 = vpop.f32.mrf.mxu1  ;;  %v14929_v44 = vld [vmem:[#allocation8_spill] sm:$0xff] }
 0x268   :  { %10305 = vmatprep.mubr.msk.bf16.mxu0 %vm1119_vm0, %v1759_v3  ;;  %v1733_v60 = vadd.f32 %v9202_v54, %v9138_v51  ;;  %v9217_v28 = vadd.f32 %v9216_v4, %v9215_v50  ;;  %v11144_v4 = vld [vmem:[%s14903_s26 + $0x460] ss:$16 sps:$4 sm:$0xff]  }
 0x269   :  { %v9140_v11 = vpop.f32.mrf.mxu0  ;;  %9304 = vmatpush3.bf16.msra.mxu0 %v12160_v7  ;;  %v12644_v0 = vpop.f32.mrf.mxu1 }
 0x26a   :  { %v9141_v36 = vadd.f32 %v9140_v11, %v9139_v49  ;;  %9305 = vmatprep.subr.bf16.mxu0 %v12166_v10 }
 0x26b   :  { %v9142_v1 = vpop.f32.mrf.mxu0  ;;  %v12646_v2 = vpop.f32.mrf.mxu1 }
 0x26c   :  { %v1736_v39 = vadd.f32 %v9205_v61, %v9141_v36  ;;  %v11134_v61 = vld [vmem:[%s14903_s26 + $0x424] ss:$16 sps:$4 sm:$0xff]  }
 0x26d   :  { %v9143_v57 = vpop.f32.mrf.mxu0  ;;  %9306 = vmatpush3.bf16.msra.mxu0 %v12172_v18  ;;  %v12654_v8 = vpop.f32.mrf.mxu1  ;;  %v14931_v36 = vld [vmem:[#allocation10_spill] sm:$0xff] }
 0x26e   :  { %v1760_v63 = vpack.c.bf16 %v1736_v39, %v1733_v60  ;;  %9364 = vmatprep.subr.bf16.mxu0 %v12571_v5  ;;  %v9144_v25 = vadd.f32 %v9143_v57, %v9142_v1  ;;  %v11140_v57 = vld [vmem:[%s14903_s26 + $0x444] ss:$16 sps:$4 sm:$0xff]  }
 0x26f   :  { %v9145_v7 = vpop.f32.mrf.mxu0  ;;  %v12662_v54 = vpop.f32.mrf.mxu1 }
 0x270   :  { %10306 = vmatmul.mubr.msk.bf16.gmra.mxu0 %vm1119_vm0, %v1760_v63  ;;  %v1741_v18 = vadd.f32 %v9208_v32, %v9144_v25  ;;  %v11138_v63 = vld [vmem:[%s14903_s26 + $0x440] ss:$16 sps:$4 sm:$0xff]  }
 0x271   :  { %v9146_v10 = vpop.f32.mrf.mxu0  ;;  %v12673_v60 = vpop.f32.mrf.mxu1 }
 0x272   :  { %v9147_v48 = vadd.f32 %v9146_v10, %v9145_v7  ;;  %v14933_v10 = vld [vmem:[#allocation12_spill] sm:$0xff] }
 0x273   :  { %v9148_v15 = vpop.f32.mrf.mxu0  ;;  %v12675_v39 = vpop.f32.mrf.mxu1 }
 0x274   :  { %v1744_v13 = vadd.f32 %v9211_v33, %v9147_v48  ;;  %v14934_v48 = vld [vmem:[#allocation13_spill] sm:$0xff] }
 0x275   :  { %v9149_v20 = vpop.f32.mrf.mxu0  ;;  %v12685_v25 = vpop.f32.mrf.mxu1 }
 0x276   :  { %v1761_v17 = vpack.c.bf16 %v1744_v13, %v1741_v18  ;;  %v9150_v19 = vadd.f32 %v9149_v20, %v9148_v15  ;;  %v11146_v13 = vld [vmem:[%s14903_s26 + $0x464] ss:$16 sps:$4 sm:$0xff]  }
 0x277   :  { %v9151_v16 = vpop.f32.mrf.mxu0  ;;  %v12693_v18 = vpop.f32.mrf.mxu1  ;;  %v14935_v20 = vld [vmem:[#allocation14_spill] sm:$0xff] }
 0x278   :  { %10309 = vmatprep.mubr.msk.bf16.mxu0 %vm1119_vm0, %v1761_v17  ;;  %v1749_v29 = vadd.f32 %v9214_v22, %v9150_v19  ;;  %v11150_v22 = vld [vmem:[%s14903_s26 + $0x480] ss:$16 sps:$4 sm:$0xff]  }
 0x279   :  { %v9152_v62 = vpop.f32.mrf.mxu0 }
 0x27a   :  { %v9153_v24 = vadd.f32 %v9152_v62, %v9151_v16  ;;  %v11152_v62 = vld [vmem:[%s14903_s26 + $0x484] ss:$16 sps:$4 sm:$0xff]  }
 0x27c   :  { %v1752_v37 = vadd.f32 %v9217_v28, %v9153_v24 }
 0x27e   :  { %v1762_v34 = vpack.c.bf16 %v1752_v37, %v1749_v29  ;;  %v14937_v37 = vld [vmem:[#allocation16_spill] sm:$0xff] }
 0x280   :  { %10310 = vmatmul.mubr.msk.bf16.gmra.mxu0 %vm1119_vm0, %v1762_v34 }
 0x281   :  { %2231 = vmatprep.mubr.bf16.mxu0 %v11082_v46 }
 0x288   :  { %2232 = vmatmul.mubr.bf16.vlgmr.msra.gmra.mxu0 %v11080_v31  ;;  %v14938_v31 = vld [vmem:[#allocation17_spill] sm:$0xff] }
 0x289   :  { %2239 = vmatprep.mubr.bf16.mxu0 %v11088_v12  ;;  %9365 = vmatpush3.bf16.msra.mxu0 %v12192_v27  ;;  %v11092_v27 = vld [vmem:[%s14903_s26 + $0x348] ss:$16 sps:$4 sm:$0xff]  }
 0x28a   :  { %9366 = vmatprep.subr.bf16.mxu0 %v12198_v30  ;;  %v11100_v30 = vld [vmem:[%s14903_s26 + $0x36c] ss:$16 sps:$4 sm:$0xff]  }
 0x28d   :  { %9367 = vmatpush3.bf16.msra.mxu0 %v12210_v42  ;;  %v11098_v42 = vld [vmem:[%s14903_s26 + $0x368] ss:$16 sps:$4 sm:$0xff]  }
 0x28e   :  { %9368 = vmatprep.subr.bf16.mxu0 %v12216_v45  ;;  %v11106_v45 = vld [vmem:[%s14903_s26 + $0x38c] ss:$16 sps:$4 sm:$0xff]  }
 0x290   :  { %2240 = vmatmul.mubr.bf16.gmra.mxu0 %v11086_v14 }
 0x291   :  { %2247 = vmatprep.mubr.bf16.mxu0 %v11094_v35  ;;  %9369 = vmatpush3.bf16.msra.mxu0 %v12225_v56  ;;  %v11104_v56 = vld [vmem:[%s14903_s26 + $0x388] ss:$16 sps:$4 sm:$0xff]  }
 0x292   :  { %9370 = vmatprep.subr.bf16.mxu0 %v12231_v58  ;;  %v11112_v58 = vld [vmem:[%s14903_s26 + $0x3ac] ss:$16 sps:$4 sm:$0xff]  }
 0x295   :  { %9371 = vmatpush3.bf16.msra.mxu0 %v12245_v6  ;;  %v14927_v6 = vld [vmem:[#allocation2_spill] sm:$0xff] }
 0x296   :  { %9372 = vmatprep.subr.bf16.mxu0 %v12251_v9  ;;  %v11110_v9 = vld [vmem:[%s14903_s26 + $0x3a8] ss:$16 sps:$4 sm:$0xff]  }
 0x298   :  { %2248 = vmatmul.mubr.bf16.gmra.mxu0 %v11092_v27  ;;  %v11158_v27 = vld [vmem:[%s14903_s26 + $0x4a4] ss:$16 sps:$4 sm:$0xff]  }
 0x299   :  { %2255 = vmatprep.mubr.bf16.mxu0 %v11100_v30  ;;  %9373 = vmatpush3.bf16.msra.mxu0 %v12260_v21  ;;  %v11118_v21 = vld [vmem:[%s14903_s26 + $0x3cc] ss:$16 sps:$4 sm:$0xff]   ;;  %v14939_v30 = vld [vmem:[#allocation18_spill] sm:$0xff] }
 0x29a   :  { %9374 = vmatprep.subr.bf16.mxu0 %v12266_v23  ;;  %v11116_v23 = vld [vmem:[%s14903_s26 + $0x3c8] ss:$16 sps:$4 sm:$0xff]  }
 0x29d   :  { %9375 = vmatpush3.bf16.msra.mxu0 %v12280_v38  ;;  %v11124_v38 = vld [vmem:[%s14903_s26 + $0x3ec] ss:$16 sps:$4 sm:$0xff]  }
 0x29e   :  { %9376 = vmatprep.subr.bf16.mxu0 %v12286_v40  ;;  %v11122_v40 = vld [vmem:[%s14903_s26 + $0x3e8] ss:$16 sps:$4 sm:$0xff]  }
 0x2a0   :  { %2256 = vmatmul.mubr.bf16.gmra.mxu0 %v11098_v42 }
 0x2a1   :  { %2263 = vmatprep.mubr.bf16.mxu0 %v11106_v45  ;;  %9377 = vmatpush3.bf16.msra.mxu0 %v12295_v52  ;;  %v11125_v52 = vld [vmem:[%s14904_s28 + $0x18] sm:$0xff]   ;;  %v11156_v45 = vld [vmem:[%s14903_s26 + $0x4a0] ss:$16 sps:$4 sm:$0xff]  }
 0x2a2   :  { %9378 = vmatprep.subr.bf16.mxu0 %v12301_v55  ;;  %10313 = vmatprep.subr.bf16.mxu1 %v11125_v52  ;;  %v14928_v55 = vld [vmem:[#allocation3_spill] sm:$0xff] }
 0x2a3   :  { %10314 = vmatpush3.bf16.msra.mxu1 %v11125_v52 }
 0x2a4   :  { %9428 = vmatprep.subr.bf16.mxu1 %v14928_v55 }
 0x2a5   :  { %9379 = vmatpush3.bf16.msra.mxu0 %v14927_v6  ;;  %v11164_v6 = vld [vmem:[%s14903_s26 + $0x4c4] ss:$16 sps:$4 sm:$0xff]  }
 0x2a8   :  { %2264 = vmatmul.mubr.bf16.gmra.mxu0 %v11104_v56 }
 0x2a9   :  { %2271 = vmatprep.mubr.bf16.mxu0 %v11112_v58 }
 0x2b0   :  { %2272 = vmatmul.mubr.bf16.gmra.mxu0 %v11110_v9  ;;  %v11162_v9 = vld [vmem:[%s14903_s26 + $0x4c0] ss:$16 sps:$4 sm:$0xff]  }
 0x2b1   :  { %2279 = vmatprep.mubr.bf16.mxu0 %v11118_v21 }
 0x2b8   :  { %2280 = vmatmul.mubr.bf16.gmra.mxu0 %v11116_v23 }
 0x2b9   :  { %2287 = vmatprep.mubr.bf16.mxu0 %v11124_v38 }
 0x2c0   :  { %2288 = vmatmul.mubr.bf16.gmra.mxu0 %v11122_v40  ;;  %v14941_v40 = vld [vmem:[#allocation20_spill] sm:$0xff] }
 0x2c1   :  { %2675 = vmatprep.mubr.bf16.mxu0 %v11128_v59  ;;  %v14942_v59 = vld [vmem:[#allocation21_spill] sm:$0xff] }
 0x2c5   :  { %v12704_v16 = vpop.f32.mrf.mxu1 }
 0x2c7   :  { %v12706_v19 = vpop.f32.mrf.mxu1 }
 0x2c8   :  { %2676 = vmatmul.mubr.bf16.vlgmr.msra.gmra.mxu0 %v11126_v41 }
 0x2c9   :  { %2683 = vmatprep.mubr.bf16.mxu0 %v11134_v61  ;;  %v12716_v29 = vpop.f32.mrf.mxu1  ;;  %v11168_v61 = vld [vmem:[%s14903_s26 + $0x4e0] ss:$16 sps:$4 sm:$0xff]  }
 0x2cb   :  { %v12724_v35 = vpop.f32.mrf.mxu1 }
 0x2cd   :  { %v12735_v56 = vpop.f32.mrf.mxu1 }
 0x2cf   :  { %v12737_v58 = vpop.f32.mrf.mxu1 }
 0x2d0   :  { %2684 = vmatmul.mubr.bf16.gmra.mxu0 %v11132_v53 }
 0x2d1   :  { %2691 = vmatprep.mubr.bf16.mxu0 %v11140_v57  ;;  %v12747_v38 = vpop.f32.mrf.mxu1 }
 0x2d8   :  { %2692 = vmatmul.mubr.bf16.gmra.mxu0 %v11138_v63 }
 0x2d9   :  { %2699 = vmatprep.mubr.bf16.mxu0 %v11146_v13  ;;  %v9248_v13 = vadd.f32 %v12662_v54, %v12654_v8 }
 0x2e0   :  { %2700 = vmatmul.mubr.bf16.gmra.mxu0 %v11144_v4 }
 0x2e1   :  { %2707 = vmatprep.mubr.bf16.mxu0 %v11152_v62 }
 0x2e8   :  { %2708 = vmatmul.mubr.bf16.gmra.mxu0 %v11150_v22 }
 0x2e9   :  { %2715 = vmatprep.mubr.bf16.mxu0 %v11158_v27 }
 0x2f0   :  { %2716 = vmatmul.mubr.bf16.gmra.mxu0 %v11156_v45 }
 0x2f1   :  { %2723 = vmatprep.mubr.bf16.mxu0 %v11164_v6 }
 0x2f8   :  { %2724 = vmatmul.mubr.bf16.gmra.mxu0 %v11162_v9 }
 0x310   :  { %v10299_v26 = vpop.f32.mrf.mxu0 }
 0x311   :  { %v12657_v3 = vadd.f32 %v10299_v26, %v14929_v44  ;;  %v12755_v44 = vpop.f32.mrf.mxu1 }
 0x312   :  { %v1830_v49 = vpop.f32.mrf.mxu0 }
 0x313   :  { %v12660_v51 = vadd.f32 %v1830_v49, %v14930_v43  ;;  %v11170_v49 = vld [vmem:[%s14903_s26 + $0x4e4] ss:$16 sps:$4 sm:$0xff]   ;;  %v12768_v57 = vpop.f32.mrf.mxu1 }
 0x314   :  { %v10300_v11 = vpop.f32.mrf.mxu0  ;;  %v14943_v43 = vld [vmem:[#allocation22_spill] sm:$0xff]  ;;  %2731 = vmatprep.mubr.bf16.mxu0 %v11170_v49 }
 0x315   :  { %v12668_v1 = vadd.f32 %v10300_v11, %v14931_v36  ;;  %2732 = vmatmul.mubr.bf16.gmra.mxu0 %v11168_v61 }
 0x316   :  { %v12683_v7 = vpop.f32.mrf.mxu0 }
 0x317   :  { %14932 = vst [vmem:[#allocation2_spill] sm:$0xff] %v12683_v7  ;;  %v11195_v7 = vld [vmem:[%s14903_s26 + $0x564] ss:$16 sps:$4 sm:$0xff]  }
 0x320   :  { %v10303_v47 = vpop.f32.mrf.mxu0 }
 0x321   :  { %v12688_v32 = vadd.f32 %v10303_v47, %v14933_v10  ;;  %v12770_v10 = vpop.f32.mrf.mxu1 }
 0x322   :  { %v1846_v33 = vpop.f32.mrf.mxu0 }
 0x323   :  { %v12691_v50 = vadd.f32 %v1846_v33, %v14934_v48  ;;  %v12776_v62 = vpop.f32.mrf.mxu1 }
 0x324   :  { %v10304_v15 = vpop.f32.mrf.mxu0 }
 0x325   :  { %v12699_v17 = vadd.f32 %v10304_v15, %v14935_v20  ;;  %v9245_v15 = vadd.f32 %v12646_v2, %v12644_v0  ;;  %v9251_v0 = vadd.f32 %v12675_v39, %v12673_v60  ;;  %v9254_v2 = vadd.f32 %v12693_v18, %v12685_v25  ;;  %v12793_v60 = vld [vmem:[%s14902_s20 + $0xb8] sm:$0xff]  }
 0x326   :  { %v12714_v28 = vpop.f32.mrf.mxu0  ;;  %v9257_v39 = vadd.f32 %v12706_v19, %v12704_v16  ;;  %v9260_v25 = vadd.f32 %v12724_v35, %v12716_v29  ;;  %v12809_v16 = vld [vmem:[%s14902_s20 + $0xb0] sm:$0xff]   ;;  %v12815_v29 = vld [vmem:[%s14902_s20 + $0xe8] sm:$0xff]  }
 0x327   :  { %14936 = vst [vmem:[#allocation3_spill] sm:$0xff] %v12714_v28 }
 0x330   :  { %v10307_v24 = vpop.f32.mrf.mxu0 }
 0x331   :  { %v12719_v46 = vadd.f32 %v10307_v24, %v14937_v37 }
 0x332   :  { %v1862_v34 = vpop.f32.mrf.mxu0 }
 0x333   :  { %v12722_v12 = vadd.f32 %v1862_v34, %v14938_v31 }
 0x334   :  { %v10308_v14 = vpop.f32.mrf.mxu0 }
 0x335   :  { %v12730_v42 = vadd.f32 %v10308_v14, %v14939_v30  ;;  %v12778_v14 = vpop.f32.mrf.mxu1 }
 0x336   :  { %v12745_v21 = vpop.f32.mrf.mxu0 }
 0x337   :  { %14940 = vst [vmem:[#allocation8_spill] sm:$0xff] %v12745_v21  ;;  %v12785_v45 = vpop.f32.mrf.mxu1 }
 0x340   :  { %v10311_v23 = vpop.f32.mrf.mxu0 }
 0x341   :  { %v12750_v52 = vadd.f32 %v10311_v23, %v14941_v40 }
 0x342   :  { %v1878_v55 = vpop.f32.mrf.mxu0 }
 0x343   :  { %v12753_v41 = vadd.f32 %v1878_v55, %v14942_v59  ;;  %v12787_v59 = vpop.f32.mrf.mxu1 }
 0x344   :  { %v10312_v26 = vpop.f32.mrf.mxu0 }
 0x345   :  { %v12761_v11 = vadd.f32 %v10312_v26, %v14943_v43  ;;  %v12803_v43 = vld [vmem:[%s14902_s20 + $0xf0] sm:$0xff]  }
 0x346   :  { %v12766_v36 = vpop.f32.mrf.mxu0 }
 0x347   :  { %14944 = vst [vmem:[#allocation9_spill] sm:$0xff] %v12766_v36 }
 0x348   :  { %v9307_v53 = vpop.f32.mrf.mxu0 }
 0x34a   :  { %v9308_v63 = vpop.f32.mrf.mxu0 }
 0x34b   :  { %v9309_v33 = vadd.f32 %v9308_v63, %v9307_v53  ;;  %v9276_v53 = vpop.f32.mrf.mxu1 }
 0x34c   :  { %v9310_v47 = vpop.f32.mrf.mxu0 }
 0x34d   :  { %v2234_v22 = vadd.f32 %v9309_v33, %v9245_v15 }
 0x34e   :  { %v9311_v48 = vpop.f32.mrf.mxu0 }
 0x34f   :  { %v9312_v20 = vadd.f32 %v9311_v48, %v9310_v47  ;;  %v9277_v48 = vpop.f32.mrf.mxu1 }
 0x350   :  { %v9313_v4 = vpop.f32.mrf.mxu0 }
 0x351   :  { %v2237_v24 = vadd.f32 %v9312_v20, %v9248_v13  ;;  %v12822_v20 = vld [vmem:[%s14902_s20 + $0xa8] sm:$0xff]  }
 0x352   :  { %v9314_v37 = vpop.f32.mrf.mxu0 }
 0x353   :  { %v2296_v34 = vpack.c.bf16 %v2237_v24, %v2234_v22  ;;  %v9315_v27 = vadd.f32 %v9314_v37, %v9313_v4  ;;  %v9263_v4 = vadd.f32 %v12737_v58, %v12735_v56  ;;  %v9266_v22 = vadd.f32 %v12755_v44, %v12747_v38  ;;  %v12832_v37 = vld [vmem:[%s14902_s20 + $0xe0] sm:$0xff]   ;;  %v12844_v38 = vld [vmem:[%s14902_s20 + $0xd8] sm:$0xff]  }
 0x354   :  { %v9316_v31 = vpop.f32.mrf.mxu0  ;;  %v12838_v56 = vld [vmem:[%s14902_s20 + $0xa0] sm:$0xff]  }
 0x355   :  { %10315 = vmatprep.mubr.msk.bf16.mxu1 %vm1119_vm0, %v2296_v34  ;;  %v2242_v6 = vadd.f32 %v9315_v27, %v9251_v0 }
 0x356   :  { %v9317_v30 = vpop.f32.mrf.mxu0 }
 0x357   :  { %v9318_v8 = vadd.f32 %v9317_v30, %v9316_v31  ;;  %v9279_v31 = vpop.f32.mrf.mxu1 }
 0x358   :  { %v9319_v54 = vpop.f32.mrf.mxu0 }
 0x359   :  { %v2245_v9 = vadd.f32 %v9318_v8, %v9254_v2  ;;  %v9280_v2 = vpop.f32.mrf.mxu1 }
 0x35a   :  { %v9320_v23 = vpop.f32.mrf.mxu0 }
 0x35b   :  { %v2297_v40 = vpack.c.bf16 %v2245_v9, %v2242_v6  ;;  %v9321_v26 = vadd.f32 %v9320_v23, %v9319_v54  ;;  %v12851_v6 = vld [vmem:[%s14902_s20 + $0x98] sm:$0xff]   ;;  %v9269_v9 = vadd.f32 %v12770_v10, %v12768_v57  ;;  %v9272_v23 = vadd.f32 %v12778_v14, %v12776_v62  ;;  %v12867_v57 = vld [vmem:[%s14902_s20 + $0x90] sm:$0xff]   ;;  %v12873_v62 = vld [vmem:[%s14902_s20 + $0xc8] sm:$0xff]  }
 0x35c   :  { %v9322_v55 = vpop.f32.mrf.mxu0 }
 0x35d   :  { %10316 = vmatmul.mubr.msk.bf16.vlgmr.msra.gmra.mxu1 %vm1119_vm0, %v2297_v40  ;;  %v2250_v63 = vadd.f32 %v9321_v26, %v9257_v39 }
 0x35e   :  { %v9323_v49 = vpop.f32.mrf.mxu0  ;;  %9429 = vmatpush3.bf16.msra.mxu1 %v12793_v60 }
 0x35f   :  { %v9324_v18 = vadd.f32 %v9323_v49, %v9322_v55  ;;  %9430 = vmatprep.subr.bf16.mxu1 %v12803_v43  ;;  %v12861_v55 = vld [vmem:[%s14902_s20 + $0xd0] sm:$0xff]   ;;  %v9282_v49 = vpop.f32.mrf.mxu1 }
 0x360   :  { %v9325_v61 = vpop.f32.mrf.mxu0 }
 0x361   :  { %v2253_v47 = vadd.f32 %v9324_v18, %v9260_v25 }
 0x362   :  { %v9326_v33 = vpop.f32.mrf.mxu0  ;;  %9431 = vmatpush3.bf16.msra.mxu1 %v12809_v16 }
 0x363   :  { %v2298_v19 = vpack.c.bf16 %v2253_v47, %v2250_v63  ;;  %9432 = vmatprep.subr.bf16.mxu1 %v12815_v29  ;;  %v9327_v15 = vadd.f32 %v9326_v33, %v9325_v61  ;;  %v9283_v61 = vpop.f32.mrf.mxu1  ;;  %v12880_v33 = vld [vmem:[%s14902_s20 + $0x88] sm:$0xff]  }
 0x364   :  { %v9328_v35 = vpop.f32.mrf.mxu0 }
 0x365   :  { %10319 = vmatprep.mubr.msk.bf16.mxu1 %vm1119_vm0, %v2298_v19  ;;  %v2258_v27 = vadd.f32 %v9327_v15, %v9263_v4  ;;  %v9275_v19 = vadd.f32 %v12787_v59, %v12785_v45 }
 0x366   :  { %v9329_v13 = vpop.f32.mrf.mxu0  ;;  %9433 = vmatpush3.bf16.msra.mxu1 %v12822_v20 }
 0x367   :  { %v9330_v24 = vadd.f32 %v9329_v13, %v9328_v35  ;;  %9434 = vmatprep.subr.bf16.mxu1 %v12832_v37  ;;  %v9278_v35 = vadd.f32 %v9277_v48, %v9276_v53  ;;  %v12888_v13 = vld [vmem:[%s14902_s20 + $0xc0] sm:$0xff]  }
 0x368   :  { %v9331_v34 = vpop.f32.mrf.mxu0 }
 0x369   :  { %v2261_v30 = vadd.f32 %v9330_v24, %v9266_v22  ;;  %v9285_v22 = vpop.f32.mrf.mxu1 }
 0x36a   :  { %v9332_v0 = vpop.f32.mrf.mxu0  ;;  %9435 = vmatpush3.bf16.msra.mxu1 %v12838_v56 }
 0x36b   :  { %v2299_v58 = vpack.c.bf16 %v2261_v30, %v2258_v27  ;;  %9436 = vmatprep.subr.bf16.mxu1 %v12844_v38  ;;  %v9333_v8 = vadd.f32 %v9332_v0, %v9331_v34  ;;  %v12894_v30 = vld [vmem:[%s14902_s20 + $0x80] sm:$0xff]   ;;  %v9286_v59 = vpop.f32.mrf.mxu1 }
 0x36c   :  { %v9334_v44 = vpop.f32.mrf.mxu0 }
 0x36d   :  { %10320 = vmatmul.mubr.msk.bf16.gmra.mxu1 %vm1119_vm0, %v2299_v58  ;;  %v2266_v39 = vadd.f32 %v9333_v8, %v9269_v9  ;;  %v9281_v58 = vadd.f32 %v9280_v2, %v9279_v31  ;;  %v11131_v31 = vld [vmem:[%s14903_s26 + $0x40c] ss:$16 sps:$4 sm:$0xff]  }
 0x36e   :  { %v9335_v54 = vpop.f32.mrf.mxu0  ;;  %9437 = vmatpush3.bf16.msra.mxu1 %v12851_v6 }
 0x36f   :  { %v9336_v40 = vadd.f32 %v9335_v54, %v9334_v44  ;;  %9438 = vmatprep.subr.bf16.mxu1 %v12861_v55  ;;  %v9284_v44 = vadd.f32 %v9283_v61, %v9282_v49  ;;  %v9288_v54 = vpop.f32.mrf.mxu1  ;;  %v11129_v49 = vld [vmem:[%s14903_s26 + $0x408] ss:$16 sps:$4 sm:$0xff]   ;;  %v11137_v61 = vld [vmem:[%s14903_s26 + $0x42c] ss:$16 sps:$4 sm:$0xff]  }
 0x370   :  { %v9337_v26 = vpop.f32.mrf.mxu0 }
 0x371   :  { %v2269_v25 = vadd.f32 %v9336_v40, %v9272_v23 }
 0x372   :  { %v9338_v18 = vpop.f32.mrf.mxu0  ;;  %9439 = vmatpush3.bf16.msra.mxu1 %v12867_v57 }
 0x373   :  { %v2300_v10 = vpack.c.bf16 %v2269_v25, %v2266_v39  ;;  %9440 = vmatprep.subr.bf16.mxu1 %v12873_v62  ;;  %v9339_v63 = vadd.f32 %v9338_v18, %v9337_v26  ;;  %v9289_v25 = vpop.f32.mrf.mxu1 }
 0x374   :  { %v9340_v14 = vpop.f32.mrf.mxu0 }
 0x375   :  { %10323 = vmatprep.mubr.msk.bf16.mxu1 %vm1119_vm0, %v2300_v10  ;;  %v2274_v24 = vadd.f32 %v9339_v63, %v9275_v19  ;;  %v9287_v63 = vadd.f32 %v9286_v59, %v9285_v22  ;;  %v12919_v22 = vld [vmem:[%s14902_s20 + $0x70] sm:$0xff]   ;;  %v12943_v59 = vld [vmem:[%s14902_s20 + $0x28] sm:$0xff]  }
 0x376   :  { %v9341_v47 = vpop.f32.mrf.mxu0  ;;  %9441 = vmatpush3.bf16.msra.mxu1 %v12880_v33 }
 0x377   :  { %v9342_v15 = vadd.f32 %v9341_v47, %v9340_v14  ;;  %9442 = vmatprep.subr.bf16.mxu1 %v12888_v13  ;;  %v9290_v47 = vadd.f32 %v9289_v25, %v9288_v54  ;;  %v12979_v54 = vld [vmem:[%s14902_s20 + $0x50] sm:$0xff]   ;;  %v13009_v25 = vld [vmem:[%s14902_s20 + $0x40] sm:$0xff]  }
 0x378   :  { %v9343_v4 = vpop.f32.mrf.mxu0  ;;  %14945 = vst [vmem:[#allocation10_spill] sm:$0xff] %v13009_v25 }
 0x379   :  { %v2277_v34 = vadd.f32 %v9342_v15, %v9278_v35 }
 0x37a   :  { %v9344_v27 = vpop.f32.mrf.mxu0  ;;  %9443 = vmatpush3.bf16.msra.mxu1 %v12894_v30 }
 0x37b   :  { %v2301_v45 = vpack.c.bf16 %v2277_v34, %v2274_v24  ;;  %9501 = vmatprep.subr.bf16.mxu1 %v12571_v5  ;;  %v9345_v48 = vadd.f32 %v9344_v27, %v9343_v4  ;;  %v12913_v4 = vld [vmem:[%s14902_s20 + $0x38] sm:$0xff]   ;;  %v12931_v27 = vld [vmem:[%s14902_s20 + $0x30] sm:$0xff]  }
 0x37c   :  { %v9346_v53 = vpop.f32.mrf.mxu0  ;;  %v11135_v24 = vld [vmem:[%s14903_s26 + $0x428] ss:$16 sps:$4 sm:$0xff]   ;;  %v11143_v34 = vld [vmem:[%s14903_s26 + $0x44c] ss:$16 sps:$4 sm:$0xff]  }
 0x37d   :  { %10324 = vmatmul.mubr.msk.bf16.gmra.mxu1 %vm1119_vm0, %v2301_v45  ;;  %v2282_v23 = vadd.f32 %v9345_v48, %v9281_v58  ;;  %v12937_v45 = vld [vmem:[%s14902_s20 + $0x68] sm:$0xff]   ;;  %v12961_v58 = vld [vmem:[%s14902_s20 + $0x20] sm:$0xff]  }
 0x37e   :  { %v9347_v0 = vpop.f32.mrf.mxu0  ;;  %v11141_v48 = vld [vmem:[%s14903_s26 + $0x448] ss:$16 sps:$4 sm:$0xff]  }
 0x37f   :  { %v9348_v8 = vadd.f32 %v9347_v0, %v9346_v53  ;;  %v12949_v53 = vld [vmem:[%s14902_s20 + $0x60] sm:$0xff]   ;;  %v11149_v0 = vld [vmem:[%s14903_s26 + $0x46c] ss:$16 sps:$4 sm:$0xff]  }
 0x380   :  { %v9349_v9 = vpop.f32.mrf.mxu0 }
 0x381   :  { %v2285_v40 = vadd.f32 %v9348_v8, %v9284_v44  ;;  %v12967_v44 = vld [vmem:[%s14902_s20 + $0x58] sm:$0xff]  }
 0x382   :  { %v9350_v26 = vpop.f32.mrf.mxu0  ;;  %v12973_v8 = vld [vmem:[%s14902_s20 + $0x18] sm:$0xff]  }
 0x383   :  { %v2302_v39 = vpack.c.bf16 %v2285_v40, %v2282_v23  ;;  %v9351_v10 = vadd.f32 %v9350_v26, %v9349_v9  ;;  %v11147_v9 = vld [vmem:[%s14903_s26 + $0x468] ss:$16 sps:$4 sm:$0xff]   ;;  %v11155_v23 = vld [vmem:[%s14903_s26 + $0x48c] ss:$16 sps:$4 sm:$0xff]   ;;  %v12991_v40 = vld [vmem:[%s14902_s20 + $0x10] sm:$0xff]  }
 0x384   :  { %v9352_v18 = vpop.f32.mrf.mxu0  ;;  %v12997_v26 = vld [vmem:[%s14902_s20 + $0x48] sm:$0xff]  }
 0x385   :  { %10327 = vmatprep.mubr.msk.bf16.mxu1 %vm1119_vm0, %v2302_v39  ;;  %v2290_v35 = vadd.f32 %v9351_v10, %v9287_v63  ;;  %v13003_v39 = vld [vmem:[%s14902_s20 + $0x8] sm:$0xff]  }
 0x386   :  { %v9353_v14 = vpop.f32.mrf.mxu0  ;;  %v11161_v10 = vld [vmem:[%s14903_s26 + $0x4ac] ss:$16 sps:$4 sm:$0xff]   ;;  %v11159_v63 = vld [vmem:[%s14903_s26 + $0x4a8] ss:$16 sps:$4 sm:$0xff]  }
 0x387   :  { %v9354_v19 = vadd.f32 %v9353_v14, %v9352_v18  ;;  %v11153_v18 = vld [vmem:[%s14903_s26 + $0x488] ss:$16 sps:$4 sm:$0xff]   ;;  %v13021_v14 = vld [vmem:[%s14902_s20] sm:$0xff]  }
 0x388   :  { %14946 = vst [vmem:[#allocation12_spill] sm:$0xff] %v13021_v14 }
 0x389   :  { %v2293_v15 = vadd.f32 %v9354_v19, %v9290_v47  ;;  %v11167_v47 = vld [vmem:[%s14903_s26 + $0x4cc] ss:$16 sps:$4 sm:$0xff]   ;;  %v11165_v19 = vld [vmem:[%s14903_s26 + $0x4c8] ss:$16 sps:$4 sm:$0xff]  }
 0x38b   :  { %v2303_v2 = vpack.c.bf16 %v2293_v15, %v2290_v35  ;;  %v11173_v35 = vld [vmem:[%s14903_s26 + $0x4ec] ss:$16 sps:$4 sm:$0xff]   ;;  %v11171_v15 = vld [vmem:[%s14903_s26 + $0x4e8] ss:$16 sps:$4 sm:$0xff]  }
 0x38d   :  { %10328 = vmatmul.mubr.msk.bf16.gmra.mxu1 %vm1119_vm0, %v2303_v2  ;;  %v13045_v2 = vld [vmem:[%s14902_s20 + $0xf8] sm:$0xff]  }
 0x38e   :  { %2772 = vmatprep.mubr.bf16.mxu1 %v11131_v31  ;;  %v11174_v31 = vld [vmem:[%s14904_s28 + $0x20] sm:$0xff]   ;;  %14947 = vst [vmem:[#allocation13_spill] sm:$0xff] %v13045_v2 }
 0x38f   :  { %10331 = vmatprep.subr.bf16.mxu0 %v11174_v31 }
 0x390   :  { %10332 = vmatpush3.bf16.msra.mxu0 %v11174_v31  ;;  %v11187_v31 = vld [vmem:[%s14903_s26 + $0x540] ss:$16 sps:$4 sm:$0xff]  }
 0x391   :  { %9565 = vmatprep.subr.bf16.mxu0 %v13045_v2 }
 0x395   :  { %2773 = vmatmul.mubr.bf16.vlgmr.msra.gmra.mxu1 %v11129_v49  ;;  %v13048_v49 = vpop.f32.mrf.mxu0 }
 0x396   :  { %2780 = vmatprep.mubr.bf16.mxu1 %v11137_v61  ;;  %9502 = vmatpush3.bf16.msra.mxu1 %v12913_v4 }
 0x397   :  { %9503 = vmatprep.subr.bf16.mxu1 %v12919_v22  ;;  %v13050_v61 = vpop.f32.mrf.mxu0 }
 0x39a   :  { %9504 = vmatpush3.bf16.msra.mxu1 %v12931_v27 }
 0x39b   :  { %9505 = vmatprep.subr.bf16.mxu1 %v12937_v45 }
 0x39d   :  { %2781 = vmatmul.mubr.bf16.gmra.mxu1 %v11135_v24  ;;  %v11177_v24 = vld [vmem:[%s14903_s26 + $0x504] ss:$16 sps:$4 sm:$0xff]  }
 0x39e   :  { %2788 = vmatprep.mubr.bf16.mxu1 %v11143_v34  ;;  %9506 = vmatpush3.bf16.msra.mxu1 %v12943_v59  ;;  %v11175_v34 = vld [vmem:[%s14903_s26 + $0x500] ss:$16 sps:$4 sm:$0xff]  }
 0x39f   :  { %9507 = vmatprep.subr.bf16.mxu1 %v12949_v53 }
 0x3a2   :  { %9508 = vmatpush3.bf16.msra.mxu1 %v12961_v58 }
 0x3a3   :  { %9509 = vmatprep.subr.bf16.mxu1 %v12967_v44 }
 0x3a5   :  { %2789 = vmatmul.mubr.bf16.gmra.mxu1 %v11141_v48 }
 0x3a6   :  { %2796 = vmatprep.mubr.bf16.mxu1 %v11149_v0  ;;  %9510 = vmatpush3.bf16.msra.mxu1 %v12973_v8  ;;  %v13058_v0 = vpop.f32.mrf.mxu0 }
 0x3a7   :  { %9511 = vmatprep.subr.bf16.mxu1 %v12979_v54 }
 0x3aa   :  { %9512 = vmatpush3.bf16.msra.mxu1 %v12991_v40 }
 0x3ab   :  { %9513 = vmatprep.subr.bf16.mxu1 %v12997_v26 }
 0x3ad   :  { %2797 = vmatmul.mubr.bf16.gmra.mxu1 %v11147_v9 }
 0x3ae   :  { %2804 = vmatprep.mubr.bf16.mxu1 %v11155_v23  ;;  %9514 = vmatpush3.bf16.msra.mxu1 %v13003_v39 }
 0x3af   :  { %9515 = vmatprep.subr.bf16.mxu1 %v13009_v25 }
 0x3b2   :  { %9516 = vmatpush3.bf16.msra.mxu1 %v13021_v14 }
 0x3b5   :  { %2805 = vmatmul.mubr.bf16.gmra.mxu1 %v11153_v18 }
 0x3b6   :  { %2812 = vmatprep.mubr.bf16.mxu1 %v11161_v10 }
 0x3bd   :  { %2813 = vmatmul.mubr.bf16.gmra.mxu1 %v11159_v63  ;;  %v13066_v63 = vpop.f32.mrf.mxu0 }
 0x3be   :  { %2820 = vmatprep.mubr.bf16.mxu1 %v11167_v47  ;;  %v11183_v47 = vld [vmem:[%s14903_s26 + $0x524] ss:$16 sps:$4 sm:$0xff]  }
 0x3c5   :  { %2821 = vmatmul.mubr.bf16.gmra.mxu1 %v11165_v19 }
 0x3c6   :  { %2828 = vmatprep.mubr.bf16.mxu1 %v11173_v35  ;;  %v11181_v35 = vld [vmem:[%s14903_s26 + $0x520] ss:$16 sps:$4 sm:$0xff]  }
 0x3cd   :  { %2829 = vmatmul.mubr.bf16.gmra.mxu1 %v11171_v15  ;;  %v11189_v15 = vld [vmem:[%s14903_s26 + $0x544] ss:$16 sps:$4 sm:$0xff]  }
 0x3ce   :  { %3216 = vmatprep.mubr.bf16.mxu1 %v11177_v24 }
 0x3d5   :  { %3217 = vmatmul.mubr.bf16.vlgmr.msra.gmra.mxu1 %v11175_v34 }
 0x3d6   :  { %3224 = vmatprep.mubr.bf16.mxu1 %v11183_v47 }
 0x3dd   :  { %3225 = vmatmul.mubr.bf16.gmra.mxu1 %v11181_v35 }
 0x3de   :  { %3232 = vmatprep.mubr.bf16.mxu1 %v11189_v15 }
 0x3e5   :  { %3233 = vmatmul.mubr.bf16.gmra.mxu1 %v11187_v31  ;;  %v11193_v31 = vld [vmem:[%s14903_s26 + $0x560] ss:$16 sps:$4 sm:$0xff]  }
 0x3e6   :  { %3240 = vmatprep.mubr.bf16.mxu1 %v11195_v7 }
 0x3ed   :  { %3241 = vmatmul.mubr.bf16.gmra.mxu1 %v11193_v31 }
 0x41d   :  { %v10317_v48 = vpop.f32.mrf.mxu1 }
 0x41e   :  { %v13061_v9 = vadd.f32 %v10317_v48, %v12657_v3  ;;  %v13077_v3 = vpop.f32.mrf.mxu0 }
 0x41f   :  { %v2371_v23 = vpop.f32.mrf.mxu1 }
 0x420   :  { %14948 = vst [vmem:[#allocation14_spill] sm:$0xff] %v13061_v9  ;;  %v13064_v18 = vadd.f32 %v2371_v23, %v12660_v51  ;;  %v13079_v51 = vpop.f32.mrf.mxu0 }
 0x421   :  { %v10318_v10 = vpop.f32.mrf.mxu1 }
 0x422   :  { %14949 = vst [vmem:[#allocation16_spill] sm:$0xff] %v13064_v18  ;;  %v13072_v19 = vadd.f32 %v10318_v10, %v12668_v1  ;;  %v13089_v34 = vpop.f32.mrf.mxu0 }
 0x423   :  { %v13087_v1 = vpop.f32.mrf.mxu1 }
 0x424   :  { %14950 = vst [vmem:[#allocation17_spill] sm:$0xff] %v13072_v19  ;;  %14951 = vst [vmem:[#allocation18_spill] sm:$0xff] %v13087_v1  ;;  %v13097_v35 = vpop.f32.mrf.mxu0 }
 0x42d   :  { %v10321_v24 = vpop.f32.mrf.mxu1 }
 0x42e   :  { %v13092_v48 = vadd.f32 %v10321_v24, %v12688_v32  ;;  %v13108_v32 = vpop.f32.mrf.mxu0  ;;  %v11201_v24 = vld [vmem:[%s14903_s26 + $0x584] ss:$16 sps:$4 sm:$0xff]  }
 0x42f   :  { %v2387_v23 = vpop.f32.mrf.mxu1  ;;  %3248 = vmatprep.mubr.bf16.mxu1 %v11201_v24 }
 0x430   :  { %14952 = vst [vmem:[#allocation20_spill] sm:$0xff] %v13092_v48  ;;  %v13095_v10 = vadd.f32 %v2387_v23, %v12691_v50  ;;  %v13110_v50 = vpop.f32.mrf.mxu0  ;;  %v11199_v23 = vld [vmem:[%s14903_s26 + $0x580] ss:$16 sps:$4 sm:$0xff]  }
 0x431   :  { %v10322_v47 = vpop.f32.mrf.mxu1  ;;  %3249 = vmatmul.mubr.bf16.gmra.mxu1 %v11199_v23  ;;  %v11205_v23 = vld [vmem:[%s14903_s26 + $0x5a0] ss:$16 sps:$4 sm:$0xff]  }
 0x432   :  { %14953 = vst [vmem:[#allocation21_spill] sm:$0xff] %v13095_v10  ;;  %v13103_v15 = vadd.f32 %v10322_v47, %v12699_v17  ;;  %v13120_v1 = vpop.f32.mrf.mxu0  ;;  %v11219_v10 = vld [vmem:[%s14903_s26 + $0x5e4] ss:$16 sps:$4 sm:$0xff]  }
 0x433   :  { %v13118_v17 = vpop.f32.mrf.mxu1 }
 0x434   :  { %14954 = vst [vmem:[#allocation22_spill] sm:$0xff] %v13103_v15  ;;  %14955 = vst [vmem:[#allocation24_spill] sm:$0xff] %v13118_v17  ;;  %v13128_v36 = vpop.f32.mrf.mxu0  ;;  %v11207_v15 = vld [vmem:[%s14903_s26 + $0x5a4] ss:$16 sps:$4 sm:$0xff]  }
 0x435   :  { %3256 = vmatprep.mubr.bf16.mxu1 %v11207_v15 }
 0x439   :  { %3257 = vmatmul.mubr.bf16.gmra.mxu1 %v11205_v23 }
 0x43d   :  { %v10325_v47 = vpop.f32.mrf.mxu1 }
 0x43e   :  { %v13123_v7 = vadd.f32 %v10325_v47, %v12719_v46  ;;  %v13139_v46 = vpop.f32.mrf.mxu0  ;;  %v11213_v47 = vld [vmem:[%s14903_s26 + $0x5c4] ss:$16 sps:$4 sm:$0xff]  }
 0x43f   :  { %v2403_v31 = vpop.f32.mrf.mxu1  ;;  %3264 = vmatprep.mubr.bf16.mxu1 %v11213_v47  ;;  %v11217_v47 = vld [vmem:[%s14903_s26 + $0x5e0] ss:$16 sps:$4 sm:$0xff]  }
 0x440   :  { %14956 = vst [vmem:[#allocation25_spill] sm:$0xff] %v13123_v7  ;;  %v13126_v28 = vadd.f32 %v2403_v31, %v12722_v12  ;;  %v13141_v12 = vpop.f32.mrf.mxu0  ;;  %v11211_v31 = vld [vmem:[%s14903_s26 + $0x5c0] ss:$16 sps:$4 sm:$0xff]  }
 0x441   :  { %v10326_v21 = vpop.f32.mrf.mxu1  ;;  %3265 = vmatmul.mubr.bf16.gmra.mxu1 %v11211_v31 }
 0x442   :  { %14957 = vst [vmem:[#allocation26_spill] sm:$0xff] %v13126_v28  ;;  %v13134_v24 = vadd.f32 %v10326_v21, %v12730_v42  ;;  %v13151_v17 = vpop.f32.mrf.mxu0  ;;  %3272 = vmatprep.mubr.bf16.mxu1 %v11219_v10 }
 0x443   :  { %v13149_v42 = vpop.f32.mrf.mxu1 }
 0x444   :  { %14958 = vst [vmem:[#allocation27_spill] sm:$0xff] %v13134_v24  ;;  %14959 = vst [vmem:[#allocation28_spill] sm:$0xff] %v13149_v42  ;;  %v9402_v7 = vpop.f32.mrf.mxu0 }
 0x449   :  { %3273 = vmatmul.mubr.bf16.gmra.mxu1 %v11217_v47 }
 0x44d   :  { %v10329_v21 = vpop.f32.mrf.mxu1 }
 0x44e   :  { %v13154_v15 = vadd.f32 %v10329_v21, %v12750_v52 }
 0x44f   :  { %v2419_v23 = vpop.f32.mrf.mxu1 }
 0x450   :  { %14960 = vst [vmem:[#allocation29_spill] sm:$0xff] %v13154_v15  ;;  %v13157_v24 = vadd.f32 %v2419_v23, %v12753_v41  ;;  %v13170_v41 = vpop.f32.mrf.mxu0 }
 0x451   :  { %v10330_v28 = vpop.f32.mrf.mxu1 }
 0x452   :  { %14961 = vst [vmem:[#allocation30_spill] sm:$0xff] %v13157_v24  ;;  %v13163_v42 = vadd.f32 %v10330_v28, %v12761_v11  ;;  %v13172_v24 = vpop.f32.mrf.mxu0  ;;  %v9382_v28 = vadd.f32 %v13050_v61, %v13048_v49  ;;  %v9385_v11 = vadd.f32 %v13066_v63, %v13058_v0  ;;  %v9391_v49 = vadd.f32 %v13097_v35, %v13089_v34 }
 0x453   :  { %v13168_v31 = vpop.f32.mrf.mxu1 }
 0x454   :  { %14962 = vst [vmem:[#allocation31_spill] sm:$0xff] %v13163_v42  ;;  %14963 = vst [vmem:[#allocation32_spill] sm:$0xff] %v13168_v31  ;;  %v9407_v31 = vpop.f32.mrf.mxu0 }
 0x455   :  { %v9444_v52 = vpop.f32.mrf.mxu1 }
 0x456   :  { %v9408_v14 = vpop.f32.mrf.mxu0 }
 0x457   :  { %v9445_v21 = vpop.f32.mrf.mxu1 }
 0x458   :  { %v9446_v15 = vadd.f32 %v9445_v21, %v9444_v52  ;;  %v9388_v21 = vadd.f32 %v13079_v51, %v13077_v3  ;;  %v13183_v63 = vpop.f32.mrf.mxu0 }
 0x459   :  { %v9447_v23 = vpop.f32.mrf.mxu1 }
 0x45a   :  { %v2775_v10 = vadd.f32 %v9446_v15, %v9382_v28 }
 0x45b   :  { %v9448_v48 = vpop.f32.mrf.mxu1 }
 0x45c   :  { %v9449_v42 = vadd.f32 %v9448_v48, %v9447_v23 }
 0x45d   :  { %v9450_v19 = vpop.f32.mrf.mxu1 }
 0x45e   :  { %v2778_v47 = vadd.f32 %v9449_v42, %v9385_v11  ;;  %v9411_v11 = vpop.f32.mrf.mxu0 }
 0x45f   :  { %v9451_v18 = vpop.f32.mrf.mxu1 }
 0x460   :  { %v2837_v9 = vpack.c.bf16 %v2778_v47, %v2775_v10  ;;  %v9452_v25 = vadd.f32 %v9451_v18, %v9450_v19  ;;  %v9394_v19 = vadd.f32 %v13110_v50, %v13108_v32  ;;  %v9413_v51 = vpop.f32.mrf.mxu0 }
 0x461   :  { %v9453_v2 = vpop.f32.mrf.mxu1 }
 0x462   :  { %10333 = vmatprep.mubr.msk.bf16.mxu0 %vm1119_vm0, %v2837_v9  ;;  %v2783_v48 = vadd.f32 %v9452_v25, %v9388_v21  ;;  %v9414_v21 = vpop.f32.mrf.mxu0 }
 0x463   :  { %v9454_v52 = vpop.f32.mrf.mxu1 }
 0x464   :  { %v9455_v61 = vadd.f32 %v9454_v52, %v9453_v2  ;;  %v9397_v2 = vadd.f32 %v13128_v36, %v13120_v1  ;;  %v9400_v36 = vadd.f32 %v13141_v12, %v13139_v46  ;;  %v9403_v1 = vadd.f32 %v9402_v7, %v13151_v17 }
 0x465   :  { %v9456_v0 = vpop.f32.mrf.mxu1  ;;  %v9406_v17 = vadd.f32 %v13172_v24, %v13170_v41  ;;  %v9409_v7 = vadd.f32 %v9408_v14, %v9407_v31  ;;  %v9412_v14 = vadd.f32 %v9411_v11, %v13183_v63  ;;  %v9415_v31 = vadd.f32 %v9414_v21, %v9413_v51 }
 0x466   :  { %v2786_v42 = vadd.f32 %v9455_v61, %v9391_v49 }
 0x467   :  { %v9457_v15 = vpop.f32.mrf.mxu1 }
 0x468   :  { %v2838_v23 = vpack.c.bf16 %v2786_v42, %v2783_v48  ;;  %v9458_v18 = vadd.f32 %v9457_v15, %v9456_v0  ;;  %v9416_v0 = vpop.f32.mrf.mxu0 }
 0x469   :  { %v9459_v28 = vpop.f32.mrf.mxu1 }
 0x46a   :  { %10334 = vmatmul.mubr.msk.bf16.vlgmr.msra.gmra.mxu0 %vm1119_vm0, %v2838_v23  ;;  %v2791_v34 = vadd.f32 %v9458_v18, %v9394_v19  ;;  %v9417_v18 = vpop.f32.mrf.mxu0 }
 0x46b   :  { %v9460_v9 = vpop.f32.mrf.mxu1  ;;  %9566 = vmatpush3.bf16.msra.mxu0 %v12793_v60  ;;  %v9418_v11 = vadd.f32 %v9417_v18, %v9416_v0  ;;  %v11180_v0 = vld [vmem:[%s14903_s26 + $0x50c] ss:$16 sps:$4 sm:$0xff]  }
 0x46c   :  { %v9461_v3 = vadd.f32 %v9460_v9, %v9459_v28  ;;  %9567 = vmatprep.subr.bf16.mxu0 %v12803_v43 }
 0x46d   :  { %v9462_v25 = vpop.f32.mrf.mxu1 }
 0x46e   :  { %v2794_v35 = vadd.f32 %v9461_v3, %v9397_v2  ;;  %v9419_v2 = vpop.f32.mrf.mxu0 }
 0x46f   :  { %v9463_v10 = vpop.f32.mrf.mxu1  ;;  %9568 = vmatpush3.bf16.msra.mxu0 %v12809_v16 }
 0x470   :  { %v2839_v47 = vpack.c.bf16 %v2794_v35, %v2791_v34  ;;  %9569 = vmatprep.subr.bf16.mxu0 %v12815_v29  ;;  %v9464_v49 = vadd.f32 %v9463_v10, %v9462_v25 }
 0x471   :  { %v9465_v52 = vpop.f32.mrf.mxu1 }
 0x472   :  { %10337 = vmatprep.mubr.msk.bf16.mxu0 %vm1119_vm0, %v2839_v47  ;;  %v2799_v48 = vadd.f32 %v9464_v49, %v9400_v36  ;;  %v9420_v47 = vpop.f32.mrf.mxu0 }
 0x473   :  { %v9466_v32 = vpop.f32.mrf.mxu1  ;;  %9570 = vmatpush3.bf16.msra.mxu0 %v12822_v20  ;;  %v9421_v51 = vadd.f32 %v9420_v47, %v9419_v2  ;;  %v11178_v2 = vld [vmem:[%s14903_s26 + $0x508] ss:$16 sps:$4 sm:$0xff]   ;;  %v11186_v47 = vld [vmem:[%s14903_s26 + $0x52c] ss:$16 sps:$4 sm:$0xff]  }
 0x474   :  { %v9467_v50 = vadd.f32 %v9466_v32, %v9465_v52  ;;  %9571 = vmatprep.subr.bf16.mxu0 %v12832_v37  ;;  %v9422_v32 = vpop.f32.mrf.mxu0 }
 0x475   :  { %v9468_v61 = vpop.f32.mrf.mxu1 }
 0x476   :  { %v2802_v42 = vadd.f32 %v9467_v50, %v9403_v1 }
 0x477   :  { %v9469_v15 = vpop.f32.mrf.mxu1  ;;  %9572 = vmatpush3.bf16.msra.mxu0 %v12838_v56 }
 0x478   :  { %v2840_v23 = vpack.c.bf16 %v2802_v42, %v2799_v48  ;;  %9573 = vmatprep.subr.bf16.mxu0 %v12844_v38  ;;  %v9470_v9 = vadd.f32 %v9469_v15, %v9468_v61  ;;  %v9423_v48 = vpop.f32.mrf.mxu0 }
 0x479   :  { %v9471_v28 = vpop.f32.mrf.mxu1 }
 0x47a   :  { %10338 = vmatmul.mubr.msk.bf16.gmra.mxu0 %vm1119_vm0, %v2840_v23  ;;  %v2807_v3 = vadd.f32 %v9470_v9, %v9406_v17  ;;  %v9425_v23 = vpop.f32.mrf.mxu0 }
 0x47b   :  { %v9472_v46 = vpop.f32.mrf.mxu1  ;;  %9574 = vmatpush3.bf16.msra.mxu0 %v12851_v6 }
 0x47c   :  { %v9473_v12 = vadd.f32 %v9472_v46, %v9471_v28  ;;  %9575 = vmatprep.subr.bf16.mxu0 %v12861_v55 }
 0x47d   :  { %v9474_v19 = vpop.f32.mrf.mxu1 }
 0x47e   :  { %v2810_v25 = vadd.f32 %v9473_v12, %v9409_v7  ;;  %v9426_v12 = vpop.f32.mrf.mxu0 }
 0x47f   :  { %v9475_v34 = vpop.f32.mrf.mxu1  ;;  %9576 = vmatpush3.bf16.msra.mxu0 %v12867_v57 }
 0x480   :  { %v2841_v35 = vpack.c.bf16 %v2810_v25, %v2807_v3  ;;  %9577 = vmatprep.subr.bf16.mxu0 %v12873_v62  ;;  %v9476_v52 = vadd.f32 %v9475_v34, %v9474_v19  ;;  %v9424_v25 = vadd.f32 %v9423_v48, %v9422_v32  ;;  %v9427_v34 = vadd.f32 %v9426_v12, %v9425_v23  ;;  %v11204_v32 = vld [vmem:[%s14903_s26 + $0x58c] ss:$16 sps:$4 sm:$0xff]   ;;  %v11208_v48 = vld [vmem:[%s14903_s26 + $0x5a8] ss:$16 sps:$4 sm:$0xff]   ;;  %v14967_v12 = vld [vmem:[#allocation14_spill] sm:$0xff] }
 0x481   :  { %v9477_v10 = vpop.f32.mrf.mxu1 }
 0x482   :  { %10341 = vmatprep.mubr.msk.bf16.mxu0 %vm1119_vm0, %v2841_v35  ;;  %v2815_v36 = vadd.f32 %v9476_v52, %v9412_v14  ;;  %v11192_v14 = vld [vmem:[%s14903_s26 + $0x54c] ss:$16 sps:$4 sm:$0xff]  }
 0x483   :  { %v9478_v24 = vpop.f32.mrf.mxu1  ;;  %9578 = vmatpush3.bf16.msra.mxu0 %v12880_v33 }
 0x484   :  { %v9479_v41 = vadd.f32 %v9478_v24, %v9477_v10  ;;  %9579 = vmatprep.subr.bf16.mxu0 %v12888_v13  ;;  %v11184_v24 = vld [vmem:[%s14903_s26 + $0x528] ss:$16 sps:$4 sm:$0xff]  }
 0x485   :  { %v9480_v49 = vpop.f32.mrf.mxu1 }
 0x486   :  { %v2818_v1 = vadd.f32 %v9479_v41, %v9415_v31  ;;  %v11190_v31 = vld [vmem:[%s14903_s26 + $0x548] ss:$16 sps:$4 sm:$0xff]   ;;  %v11198_v41 = vld [vmem:[%s14903_s26 + $0x56c] ss:$16 sps:$4 sm:$0xff]  }
 0x487   :  { %v9481_v50 = vpop.f32.mrf.mxu1  ;;  %9580 = vmatpush3.bf16.msra.mxu0 %v12894_v30 }
 0x488   :  { %v2842_v61 = vpack.c.bf16 %v2818_v1, %v2815_v36  ;;  %9638 = vmatprep.subr.bf16.mxu0 %v12571_v5  ;;  %v9482_v15 = vadd.f32 %v9481_v50, %v9480_v49  ;;  %v11196_v49 = vld [vmem:[%s14903_s26 + $0x568] ss:$16 sps:$4 sm:$0xff]   ;;  %v14964_v36 = vld [vmem:[#allocation10_spill] sm:$0xff]  ;;  %v11210_v50 = vld [vmem:[%s14903_s26 + $0x5ac] ss:$16 sps:$4 sm:$0xff]  }
 0x489   :  { %v9483_v42 = vpop.f32.mrf.mxu1  ;;  %v11202_v1 = vld [vmem:[%s14903_s26 + $0x588] ss:$16 sps:$4 sm:$0xff]  }
 0x48a   :  { %10342 = vmatmul.mubr.msk.bf16.gmra.mxu0 %vm1119_vm0, %v2842_v61  ;;  %v2823_v9 = vadd.f32 %v9482_v15, %v9418_v11  ;;  %v14965_v61 = vld [vmem:[#allocation12_spill] sm:$0xff]  ;;  %v11214_v15 = vld [vmem:[%s14903_s26 + $0x5c8] ss:$16 sps:$4 sm:$0xff]  }
 0x48b   :  { %v9484_v63 = vpop.f32.mrf.mxu1  ;;  %v11220_v11 = vld [vmem:[%s14903_s26 + $0x5e8] ss:$16 sps:$4 sm:$0xff]  }
 0x48c   :  { %v9485_v21 = vadd.f32 %v9484_v63, %v9483_v42  ;;  %v11216_v42 = vld [vmem:[%s14903_s26 + $0x5cc] ss:$16 sps:$4 sm:$0xff]  }
 0x48d   :  { %v9486_v28 = vpop.f32.mrf.mxu1  ;;  %v11222_v63 = vld [vmem:[%s14903_s26 + $0x5ec] ss:$16 sps:$4 sm:$0xff]  }
 0x48e   :  { %v2826_v46 = vadd.f32 %v9485_v21, %v9421_v51  ;;  %v11223_v51 = vld [vmem:[%s14904_s28 + $0x28] sm:$0xff]   ;;  %v14966_v21 = vld [vmem:[#allocation13_spill] sm:$0xff] }
 0x48f   :  { %v9487_v17 = vpop.f32.mrf.mxu1  ;;  %10349 = vmatprep.subr.bf16.mxu1 %v11223_v51 }
 0x490   :  { %v2843_v7 = vpack.c.bf16 %v2826_v46, %v2823_v9  ;;  %v9488_v3 = vadd.f32 %v9487_v17, %v9486_v28  ;;  %10350 = vmatpush3.bf16.msra.mxu1 %v11223_v51  ;;  %v11226_v9 = vld [vmem:[%s14903_s26 + $0x604] ss:$16 sps:$4 sm:$0xff]   ;;  %v11224_v46 = vld [vmem:[%s14903_s26 + $0x600] ss:$16 sps:$4 sm:$0xff]  }
 0x491   :  { %v9489_v19 = vpop.f32.mrf.mxu1  ;;  %9702 = vmatprep.subr.bf16.mxu1 %v14966_v21  ;;  %v14978_v51 = vld [vmem:[#allocation22_spill] sm:$0xff] }
 0x492   :  { %10345 = vmatprep.mubr.msk.bf16.mxu0 %vm1119_vm0, %v2843_v7  ;;  %v2831_v10 = vadd.f32 %v9488_v3, %v9424_v25 }
 0x493   :  { %v9490_v5 = vpop.f32.mrf.mxu1 }
 0x494   :  { %v9491_v35 = vadd.f32 %v9490_v5, %v9489_v19  ;;  %v14969_v5 = vld [vmem:[#allocation16_spill] sm:$0xff] }
 0x495   :  { %v13285_v23 = vpop.f32.mrf.mxu1 }
 0x496   :  { %v2834_v52 = vadd.f32 %v9491_v35, %v9427_v34 }
 0x497   :  { %v13287_v28 = vpop.f32.mrf.mxu1 }
 0x498   :  { %v2844_v18 = vpack.c.bf16 %v2834_v52, %v2831_v10  ;;  %v11232_v10 = vld [vmem:[%s14903_s26 + $0x624] ss:$16 sps:$4 sm:$0xff]   ;;  %v14971_v52 = vld [vmem:[#allocation17_spill] sm:$0xff] }
 0x499   :  { %v13295_v7 = vpop.f32.mrf.mxu1 }
 0x49a   :  { %10346 = vmatmul.mubr.msk.bf16.gmra.mxu0 %vm1119_vm0, %v2844_v18  ;;  %v11230_v18 = vld [vmem:[%s14903_s26 + $0x620] ss:$16 sps:$4 sm:$0xff]  }
 0x49b   :  { %3313 = vmatprep.mubr.bf16.mxu0 %v11180_v0  ;;  %v13303_v35 = vpop.f32.mrf.mxu1 }
 0x4a2   :  { %3314 = vmatmul.mubr.bf16.vlgmr.msra.gmra.mxu0 %v11178_v2  ;;  %v13314_v2 = vpop.f32.mrf.mxu1 }
 0x4a3   :  { %3321 = vmatprep.mubr.bf16.mxu0 %v11186_v47  ;;  %9639 = vmatpush3.bf16.msra.mxu0 %v12913_v4 }
 0x4a4   :  { %9640 = vmatprep.subr.bf16.mxu0 %v12919_v22  ;;  %v13316_v47 = vpop.f32.mrf.mxu1 }
 0x4a7   :  { %9641 = vmatpush3.bf16.msra.mxu0 %v12931_v27 }
 0x4a8   :  { %9642 = vmatprep.subr.bf16.mxu0 %v12937_v45 }
 0x4aa   :  { %3322 = vmatmul.mubr.bf16.gmra.mxu0 %v11184_v24  ;;  %v11238_v24 = vld [vmem:[%s14903_s26 + $0x644] ss:$16 sps:$4 sm:$0xff]  }
 0x4ab   :  { %3329 = vmatprep.mubr.bf16.mxu0 %v11192_v14  ;;  %9643 = vmatpush3.bf16.msra.mxu0 %v12943_v59  ;;  %v11236_v14 = vld [vmem:[%s14903_s26 + $0x640] ss:$16 sps:$4 sm:$0xff]  }
 0x4ac   :  { %9644 = vmatprep.subr.bf16.mxu0 %v12949_v53 }
 0x4af   :  { %9645 = vmatpush3.bf16.msra.mxu0 %v12961_v58 }
 0x4b0   :  { %9646 = vmatprep.subr.bf16.mxu0 %v12967_v44 }
 0x4b2   :  { %3330 = vmatmul.mubr.bf16.gmra.mxu0 %v11190_v31 }
 0x4b3   :  { %3337 = vmatprep.mubr.bf16.mxu0 %v11198_v41  ;;  %9647 = vmatpush3.bf16.msra.mxu0 %v12973_v8 }
 0x4b4   :  { %9648 = vmatprep.subr.bf16.mxu0 %v12979_v54 }
 0x4b7   :  { %9649 = vmatpush3.bf16.msra.mxu0 %v12991_v40 }
 0x4b8   :  { %9650 = vmatprep.subr.bf16.mxu0 %v12997_v26 }
 0x4ba   :  { %3338 = vmatmul.mubr.bf16.gmra.mxu0 %v11196_v49  ;;  %v13326_v49 = vpop.f32.mrf.mxu1 }
 0x4bb   :  { %3345 = vmatprep.mubr.bf16.mxu0 %v11204_v32  ;;  %9651 = vmatpush3.bf16.msra.mxu0 %v13003_v39  ;;  %v14974_v32 = vld [vmem:[#allocation20_spill] sm:$0xff] }
 0x4bc   :  { %9652 = vmatprep.subr.bf16.mxu0 %v14964_v36 }
 0x4bf   :  { %9653 = vmatpush3.bf16.msra.mxu0 %v14965_v61 }
 0x4c2   :  { %3346 = vmatmul.mubr.bf16.gmra.mxu0 %v11202_v1 }
 0x4c3   :  { %3353 = vmatprep.mubr.bf16.mxu0 %v11210_v50 }
 0x4ca   :  { %3354 = vmatmul.mubr.bf16.gmra.mxu0 %v11208_v48  ;;  %v14976_v48 = vld [vmem:[#allocation21_spill] sm:$0xff] }
 0x4cb   :  { %3361 = vmatprep.mubr.bf16.mxu0 %v11216_v42 }
 0x4d2   :  { %3362 = vmatmul.mubr.bf16.gmra.mxu0 %v11214_v15 }
 0x4d3   :  { %3369 = vmatprep.mubr.bf16.mxu0 %v11222_v63  ;;  %v13334_v63 = vpop.f32.mrf.mxu1 }
 0x4da   :  { %3370 = vmatmul.mubr.bf16.gmra.mxu0 %v11220_v11  ;;  %v11244_v11 = vld [vmem:[%s14903_s26 + $0x664] ss:$16 sps:$4 sm:$0xff]  }
 0x4db   :  { %3757 = vmatprep.mubr.bf16.mxu0 %v11226_v9 }
 0x4e2   :  { %3758 = vmatmul.mubr.bf16.vlgmr.msra.gmra.mxu0 %v11224_v46  ;;  %v11242_v46 = vld [vmem:[%s14903_s26 + $0x660] ss:$16 sps:$4 sm:$0xff]  }
 0x4e3   :  { %3765 = vmatprep.mubr.bf16.mxu0 %v11232_v10 }
 0x4ea   :  { %3766 = vmatmul.mubr.bf16.gmra.mxu0 %v11230_v18  ;;  %v14981_v18 = vld [vmem:[#allocation25_spill] sm:$0xff] }
 0x4eb   :  { %3773 = vmatprep.mubr.bf16.mxu0 %v11238_v24 }
 0x4f2   :  { %3774 = vmatmul.mubr.bf16.gmra.mxu0 %v11236_v14 }
 0x4f3   :  { %3781 = vmatprep.mubr.bf16.mxu0 %v11244_v11  ;;  %v14985_v11 = vld [vmem:[#allocation27_spill] sm:$0xff] }
 0x4fa   :  { %3782 = vmatmul.mubr.bf16.gmra.mxu0 %v11242_v46  ;;  %v11254_v46 = vld [vmem:[%s14903_s26 + $0x6a0] ss:$16 sps:$4 sm:$0xff]  }
 0x52a   :  { %v10335_v17 = vpop.f32.mrf.mxu0 }
 0x52b   :  { %v13298_v19 = vadd.f32 %v10335_v17, %v14967_v12  ;;  %v13345_v17 = vpop.f32.mrf.mxu1 }
 0x52c   :  { %v2912_v3 = vpop.f32.mrf.mxu0 }
 0x52d   :  { %14968 = vst [vmem:[#allocation10_spill] sm:$0xff] %v13298_v19  ;;  %v13301_v25 = vadd.f32 %v2912_v3, %v14969_v5  ;;  %v13347_v12 = vpop.f32.mrf.mxu1  ;;  %v11250_v3 = vld [vmem:[%s14903_s26 + $0x684] ss:$16 sps:$4 sm:$0xff]   ;;  %v11248_v5 = vld [vmem:[%s14903_s26 + $0x680] ss:$16 sps:$4 sm:$0xff]  }
 0x52e   :  { %v10336_v34 = vpop.f32.mrf.mxu0  ;;  %3789 = vmatprep.mubr.bf16.mxu0 %v11250_v3 }
 0x52f   :  { %14970 = vst [vmem:[#allocation14_spill] sm:$0xff] %v13301_v25  ;;  %v13309_v0 = vadd.f32 %v10336_v34, %v14971_v52  ;;  %3790 = vmatmul.mubr.bf16.gmra.mxu0 %v11248_v5  ;;  %v13357_v52 = vpop.f32.mrf.mxu1 }
 0x530   :  { %v13324_v31 = vpop.f32.mrf.mxu0 }
 0x531   :  { %14972 = vst [vmem:[#allocation16_spill] sm:$0xff] %v13309_v0  ;;  %14973 = vst [vmem:[#allocation17_spill] sm:$0xff] %v13324_v31  ;;  %v14990_v31 = vld [vmem:[#allocation30_spill] sm:$0xff] }
 0x53a   :  { %v10339_v41 = vpop.f32.mrf.mxu0 }
 0x53b   :  { %v13329_v1 = vadd.f32 %v10339_v41, %v14974_v32  ;;  %v14983_v41 = vld [vmem:[#allocation26_spill] sm:$0xff] }
 0x53c   :  { %v2928_v50 = vpop.f32.mrf.mxu0 }
 0x53d   :  { %14975 = vst [vmem:[#allocation20_spill] sm:$0xff] %v13329_v1  ;;  %v13332_v42 = vadd.f32 %v2928_v50, %v14976_v48  ;;  %v13365_v48 = vpop.f32.mrf.mxu1 }
 0x53e   :  { %v10340_v15 = vpop.f32.mrf.mxu0 }
 0x53f   :  { %14977 = vst [vmem:[#allocation21_spill] sm:$0xff] %v13332_v42  ;;  %v13340_v9 = vadd.f32 %v10340_v15, %v14978_v51  ;;  %v11256_v15 = vld [vmem:[%s14903_s26 + $0x6a4] ss:$16 sps:$4 sm:$0xff]   ;;  %v13376_v3 = vpop.f32.mrf.mxu1 }
 0x540   :  { %v13355_v34 = vpop.f32.mrf.mxu0  ;;  %3797 = vmatprep.mubr.bf16.mxu0 %v11256_v15  ;;  %v14988_v15 = vld [vmem:[#allocation29_spill] sm:$0xff] }
 0x541   :  { %14979 = vst [vmem:[#allocation22_spill] sm:$0xff] %v13340_v9  ;;  %14980 = vst [vmem:[#allocation33_spill] sm:$0xff] %v13355_v34  ;;  %3798 = vmatmul.mubr.bf16.gmra.mxu0 %v11254_v46  ;;  %v13378_v5 = vpop.f32.mrf.mxu1  ;;  %v14992_v9 = vld [vmem:[#allocation31_spill] sm:$0xff] }
 0x54a   :  { %v10343_v10 = vpop.f32.mrf.mxu0 }
 0x54b   :  { %v13360_v24 = vadd.f32 %v10343_v10, %v14981_v18  ;;  %v11262_v10 = vld [vmem:[%s14903_s26 + $0x6c4] ss:$16 sps:$4 sm:$0xff]   ;;  %v11260_v18 = vld [vmem:[%s14903_s26 + $0x6c0] ss:$16 sps:$4 sm:$0xff]  }
 0x54c   :  { %v2944_v14 = vpop.f32.mrf.mxu0  ;;  %3805 = vmatprep.mubr.bf16.mxu0 %v11262_v10  ;;  %v11266_v10 = vld [vmem:[%s14903_s26 + $0x6e0] ss:$16 sps:$4 sm:$0xff]  }
 0x54d   :  { %14982 = vst [vmem:[#allocation25_spill] sm:$0xff] %v13360_v24  ;;  %v13363_v32 = vadd.f32 %v2944_v14, %v14983_v41  ;;  %3806 = vmatmul.mubr.bf16.gmra.mxu0 %v11260_v18  ;;  %v11268_v24 = vld [vmem:[%s14903_s26 + $0x6e4] ss:$16 sps:$4 sm:$0xff]  }
 0x54e   :  { %v10344_v50 = vpop.f32.mrf.mxu0  ;;  %3813 = vmatprep.mubr.bf16.mxu0 %v11268_v24 }
 0x54f   :  { %14984 = vst [vmem:[#allocation26_spill] sm:$0xff] %v13363_v32  ;;  %v13371_v51 = vadd.f32 %v10344_v50, %v14985_v11  ;;  %v13388_v50 = vpop.f32.mrf.mxu1 }
 0x550   :  { %v13386_v14 = vpop.f32.mrf.mxu0 }
 0x551   :  { %14986 = vst [vmem:[#allocation27_spill] sm:$0xff] %v13371_v51  ;;  %14987 = vst [vmem:[#allocation34_spill] sm:$0xff] %v13386_v14  ;;  %v9539_v32 = vpop.f32.mrf.mxu1 }
 0x555   :  { %3814 = vmatmul.mubr.bf16.gmra.mxu0 %v11266_v10 }
 0x55a   :  { %v10347_v41 = vpop.f32.mrf.mxu0 }
 0x55b   :  { %v13391_v11 = vadd.f32 %v10347_v41, %v14988_v15 }
 0x55c   :  { %v2960_v46 = vpop.f32.mrf.mxu0 }
 0x55d   :  { %14989 = vst [vmem:[#allocation29_spill] sm:$0xff] %v13391_v11  ;;  %v13394_v34 = vadd.f32 %v2960_v46, %v14990_v31  ;;  %v13407_v31 = vpop.f32.mrf.mxu1 }
 0x55e   :  { %v10348_v51 = vpop.f32.mrf.mxu0 }
 0x55f   :  { %14991 = vst [vmem:[#allocation30_spill] sm:$0xff] %v13394_v34  ;;  %v13400_v14 = vadd.f32 %v10348_v51, %v14992_v9  ;;  %v13409_v34 = vpop.f32.mrf.mxu1  ;;  %v9519_v9 = vadd.f32 %v13287_v28, %v13285_v23  ;;  %v9522_v51 = vadd.f32 %v13303_v35, %v13295_v7  ;;  %v9528_v23 = vadd.f32 %v13334_v63, %v13326_v49 }
 0x560   :  { %v13405_v18 = vpop.f32.mrf.mxu0 }
 0x561   :  { %14993 = vst [vmem:[#allocation31_spill] sm:$0xff] %v13400_v14  ;;  %14994 = vst [vmem:[#allocation35_spill] sm:$0xff] %v13405_v18  ;;  %v9544_v18 = vpop.f32.mrf.mxu1 }
 0x562   :  { %v9581_v41 = vpop.f32.mrf.mxu0 }
 0x563   :  { %v9545_v21 = vpop.f32.mrf.mxu1 }
 0x564   :  { %v9582_v15 = vpop.f32.mrf.mxu0 }
 0x565   :  { %v9583_v11 = vadd.f32 %v9582_v15, %v9581_v41  ;;  %v9525_v15 = vadd.f32 %v13316_v47, %v13314_v2  ;;  %v13420_v35 = vpop.f32.mrf.mxu1  ;;  %v9531_v2 = vadd.f32 %v13347_v12, %v13345_v17  ;;  %v9540_v12 = vadd.f32 %v9539_v32, %v13388_v50 }
 0x566   :  { %v9584_v46 = vpop.f32.mrf.mxu0  ;;  %v9546_v32 = vadd.f32 %v9545_v21, %v9544_v18 }
 0x567   :  { %v3316_v24 = vadd.f32 %v9583_v11, %v9519_v9 }
 0x568   :  { %v9585_v42 = vpop.f32.mrf.mxu0 }
 0x569   :  { %v9586_v14 = vadd.f32 %v9585_v42, %v9584_v46 }
 0x56a   :  { %v9587_v1 = vpop.f32.mrf.mxu0 }
 0x56b   :  { %v3319_v10 = vadd.f32 %v9586_v14, %v9522_v51  ;;  %v9548_v51 = vpop.f32.mrf.mxu1 }
 0x56c   :  { %v9588_v0 = vpop.f32.mrf.mxu0 }
 0x56d   :  { %v3378_v25 = vpack.c.bf16 %v3319_v10, %v3316_v24  ;;  %v9589_v61 = vadd.f32 %v9588_v0, %v9587_v1  ;;  %v9550_v49 = vpop.f32.mrf.mxu1 }
 0x56e   :  { %v9590_v19 = vpop.f32.mrf.mxu0 }
 0x56f   :  { %10351 = vmatprep.mubr.msk.bf16.mxu1 %vm1119_vm0, %v3378_v25  ;;  %v3324_v42 = vadd.f32 %v9589_v61, %v9525_v15 }
 0x570   :  { %v9591_v41 = vpop.f32.mrf.mxu0 }
 0x571   :  { %v9592_v28 = vadd.f32 %v9591_v41, %v9590_v19  ;;  %v9534_v19 = vadd.f32 %v13365_v48, %v13357_v52  ;;  %v9551_v41 = vpop.f32.mrf.mxu1 }
 0x572   :  { %v9593_v7 = vpop.f32.mrf.mxu0  ;;  %v9552_v21 = vadd.f32 %v9551_v41, %v9550_v49 }
 0x573   :  { %v3327_v14 = vadd.f32 %v9592_v28, %v9528_v23  ;;  %v9553_v48 = vpop.f32.mrf.mxu1 }
 0x574   :  { %v9594_v11 = vpop.f32.mrf.mxu0 }
 0x575   :  { %v3379_v46 = vpack.c.bf16 %v3327_v14, %v3324_v42  ;;  %v9595_v0 = vadd.f32 %v9594_v11, %v9593_v7 }
 0x576   :  { %v9596_v9 = vpop.f32.mrf.mxu0 }
 0x577   :  { %10352 = vmatmul.mubr.msk.bf16.vlgmr.msra.gmra.mxu1 %vm1119_vm0, %v3379_v46  ;;  %v3332_v1 = vadd.f32 %v9595_v0, %v9531_v2 }
 0x578   :  { %v9597_v25 = vpop.f32.mrf.mxu0  ;;  %9703 = vmatpush3.bf16.msra.mxu1 %v12793_v60 }
 0x579   :  { %v9598_v47 = vadd.f32 %v9597_v25, %v9596_v9  ;;  %9704 = vmatprep.subr.bf16.mxu1 %v12803_v43  ;;  %v9537_v43 = vadd.f32 %v13378_v5, %v13376_v3 }
 0x57a   :  { %v9599_v61 = vpop.f32.mrf.mxu0 }
 0x57b   :  { %v3335_v63 = vadd.f32 %v9598_v47, %v9534_v19 }
 0x57c   :  { %v9600_v24 = vpop.f32.mrf.mxu0  ;;  %9705 = vmatpush3.bf16.msra.mxu1 %v12809_v16 }
 0x57d   :  { %v3380_v10 = vpack.c.bf16 %v3335_v63, %v3332_v1  ;;  %9706 = vmatprep.subr.bf16.mxu1 %v12815_v29  ;;  %v9601_v15 = vadd.f32 %v9600_v24, %v9599_v61  ;;  %v13454_v61 = vld [vmem:[%s14902_s20 + $0x78] sm:$0xff]  }
 0x57e   :  { %v9602_v60 = vpop.f32.mrf.mxu0 }
 0x57f   :  { %10355 = vmatprep.mubr.msk.bf16.mxu1 %vm1119_vm0, %v3380_v10  ;;  %v3340_v23 = vadd.f32 %v9601_v15, %v9537_v43 }
 0x580   :  { %v9603_v17 = vpop.f32.mrf.mxu0  ;;  %9707 = vmatpush3.bf16.msra.mxu1 %v12822_v20  ;;  %v9554_v20 = vpop.f32.mrf.mxu1 }
 0x581   :  { %v9604_v52 = vadd.f32 %v9603_v17, %v9602_v60  ;;  %9708 = vmatprep.subr.bf16.mxu1 %v12832_v37  ;;  %v9543_v37 = vadd.f32 %v13409_v34, %v13407_v31  ;;  %v9555_v49 = vadd.f32 %v9554_v20, %v9553_v48  ;;  %v11229_v48 = vld [vmem:[%s14903_s26 + $0x60c] ss:$16 sps:$4 sm:$0xff]   ;;  %v11227_v20 = vld [vmem:[%s14903_s26 + $0x608] ss:$16 sps:$4 sm:$0xff]  }
 0x582   :  { %v9605_v16 = vpop.f32.mrf.mxu0 }
 0x583   :  { %v3343_v29 = vadd.f32 %v9604_v52, %v9540_v12 }
 0x584   :  { %v9606_v28 = vpop.f32.mrf.mxu0  ;;  %9709 = vmatpush3.bf16.msra.mxu1 %v12838_v56  ;;  %v9556_v56 = vpop.f32.mrf.mxu1 }
 0x585   :  { %v3381_v7 = vpack.c.bf16 %v3343_v29, %v3340_v23  ;;  %9710 = vmatprep.subr.bf16.mxu1 %v12844_v38  ;;  %v9607_v14 = vadd.f32 %v9606_v28, %v9605_v16 }
 0x586   :  { %v9608_v42 = vpop.f32.mrf.mxu0  ;;  %v9557_v25 = vpop.f32.mrf.mxu1 }
 0x587   :  { %10356 = vmatmul.mubr.msk.bf16.gmra.mxu1 %vm1119_vm0, %v3381_v7  ;;  %v3348_v11 = vadd.f32 %v9607_v14, %v9543_v37  ;;  %v9558_v1 = vadd.f32 %v9557_v25, %v9556_v56  ;;  %v11235_v14 = vld [vmem:[%s14903_s26 + $0x62c] ss:$16 sps:$4 sm:$0xff]   ;;  %v11273_v56 = vld [vmem:[%s14903_s26 + $0x700] ss:$16 sps:$4 sm:$0xff]  }
 0x588   :  { %v9609_v3 = vpop.f32.mrf.mxu0  ;;  %9711 = vmatpush3.bf16.msra.mxu1 %v12851_v6  ;;  %v9559_v2 = vpop.f32.mrf.mxu1  ;;  %v11241_v37 = vld [vmem:[%s14903_s26 + $0x64c] ss:$16 sps:$4 sm:$0xff]   ;;  %v14998_v25 = vld [vmem:[#allocation14_spill] sm:$0xff] }
 0x589   :  { %v9610_v5 = vadd.f32 %v9609_v3, %v9608_v42  ;;  %9712 = vmatprep.subr.bf16.mxu1 %v12861_v55  ;;  %v9549_v55 = vadd.f32 %v9548_v51, %v13420_v35  ;;  %v11233_v3 = vld [vmem:[%s14903_s26 + $0x628] ss:$16 sps:$4 sm:$0xff]  }
 0x58a   :  { %v9611_v50 = vpop.f32.mrf.mxu0 }
 0x58b   :  { %v3351_v46 = vadd.f32 %v9610_v5, %v9546_v32 }
 0x58c   :  { %v9612_v38 = vpop.f32.mrf.mxu0  ;;  %9713 = vmatpush3.bf16.msra.mxu1 %v12867_v57 }
 0x58d   :  { %v3382_v9 = vpack.c.bf16 %v3351_v46, %v3348_v11  ;;  %9714 = vmatprep.subr.bf16.mxu1 %v12873_v62  ;;  %v9613_v6 = vadd.f32 %v9612_v38, %v9611_v50  ;;  %v11275_v50 = vld [vmem:[%s14903_s26 + $0x704] ss:$16 sps:$4 sm:$0xff]  }
 0x58e   :  { %v9614_v0 = vpop.f32.mrf.mxu0  ;;  %v14997_v38 = vld [vmem:[#allocation10_spill] sm:$0xff] }
 0x58f   :  { %10359 = vmatprep.mubr.msk.bf16.mxu1 %vm1119_vm0, %v3382_v9  ;;  %v3356_v57 = vadd.f32 %v9613_v6, %v9549_v55 }
 0x590   :  { %v9615_v34 = vpop.f32.mrf.mxu0  ;;  %9715 = vmatpush3.bf16.msra.mxu1 %v12880_v33  ;;  %v9560_v33 = vpop.f32.mrf.mxu1 }
 0x591   :  { %v9616_v18 = vadd.f32 %v9615_v34, %v9614_v0  ;;  %9716 = vmatprep.subr.bf16.mxu1 %v12888_v13  ;;  %v9561_v16 = vadd.f32 %v9560_v33, %v9559_v2  ;;  %v11279_v2 = vld [vmem:[%s14903_s26 + $0x720] ss:$16 sps:$4 sm:$0xff]  }
 0x592   :  { %v9617_v31 = vpop.f32.mrf.mxu0  ;;  %v9562_v24 = vpop.f32.mrf.mxu1 }
 0x593   :  { %v3359_v19 = vadd.f32 %v9616_v18, %v9552_v21  ;;  %v11281_v21 = vld [vmem:[%s14903_s26 + $0x724] ss:$16 sps:$4 sm:$0xff]  }
 0x594   :  { %v9618_v47 = vpop.f32.mrf.mxu0  ;;  %9717 = vmatpush3.bf16.msra.mxu1 %v12894_v30  ;;  %v9563_v17 = vpop.f32.mrf.mxu1  ;;  %v14999_v18 = vld [vmem:[#allocation16_spill] sm:$0xff] }
 0x595   :  { %v3383_v62 = vpack.c.bf16 %v3359_v19, %v3356_v57  ;;  %9775 = vmatprep.subr.bf16.mxu1 %v13454_v61  ;;  %v9619_v51 = vadd.f32 %v9618_v47, %v9617_v31  ;;  %v9564_v23 = vadd.f32 %v9563_v17, %v9562_v24  ;;  %v11287_v47 = vld [vmem:[%s14903_s26 + $0x744] ss:$16 sps:$4 sm:$0xff]   ;;  %v11291_v17 = vld [vmem:[%s14903_s26 + $0x760] ss:$16 sps:$4 sm:$0xff]  }
 0x596   :  { %v9620_v35 = vpop.f32.mrf.mxu0 }
 0x597   :  { %10360 = vmatmul.mubr.msk.bf16.gmra.mxu1 %vm1119_vm0, %v3383_v62  ;;  %v3364_v30 = vadd.f32 %v9619_v51, %v9555_v49  ;;  %v11285_v62 = vld [vmem:[%s14903_s26 + $0x740] ss:$16 sps:$4 sm:$0xff]  }
 0x598   :  { %v9621_v13 = vpop.f32.mrf.mxu0 }
 0x599   :  { %v9622_v63 = vadd.f32 %v9621_v13, %v9620_v35  ;;  %v15001_v13 = vld [vmem:[#allocation20_spill] sm:$0xff] }
 0x59a   :  { %v9623_v10 = vpop.f32.mrf.mxu0 }
 0x59b   :  { %v3367_v60 = vadd.f32 %v9622_v63, %v9558_v1  ;;  %v15002_v63 = vld [vmem:[#allocation21_spill] sm:$0xff] }
 0x59c   :  { %v9624_v41 = vpop.f32.mrf.mxu0 }
 0x59d   :  { %v3384_v15 = vpack.c.bf16 %v3367_v60, %v3364_v30  ;;  %v9625_v12 = vadd.f32 %v9624_v41, %v9623_v10  ;;  %v11293_v60 = vld [vmem:[%s14903_s26 + $0x764] ss:$16 sps:$4 sm:$0xff]  }
 0x59e   :  { %v9626_v43 = vpop.f32.mrf.mxu0  ;;  %v15003_v41 = vld [vmem:[#allocation22_spill] sm:$0xff] }
 0x59f   :  { %10363 = vmatprep.mubr.msk.bf16.mxu1 %vm1119_vm0, %v3384_v15  ;;  %v3372_v28 = vadd.f32 %v9625_v12, %v9561_v16  ;;  %v11297_v16 = vld [vmem:[%s14903_s26 + $0x780] ss:$16 sps:$4 sm:$0xff]  }
 0x5a0   :  { %v9627_v52 = vpop.f32.mrf.mxu0 }
 0x5a1   :  { %v9628_v29 = vadd.f32 %v9627_v52, %v9626_v43  ;;  %v11299_v52 = vld [vmem:[%s14903_s26 + $0x784] ss:$16 sps:$4 sm:$0xff]  }
 0x5a2   :  { %v13527_v32 = vpop.f32.mrf.mxu0 }
 0x5a3   :  { %v3375_v7 = vadd.f32 %v9628_v29, %v9564_v23 }
 0x5a4   :  { %v13529_v5 = vpop.f32.mrf.mxu0 }
 0x5a5   :  { %v3385_v42 = vpack.c.bf16 %v3375_v7, %v3372_v28  ;;  %v15005_v7 = vld [vmem:[#allocation25_spill] sm:$0xff] }
 0x5a6   :  { %v13537_v46 = vpop.f32.mrf.mxu0 }
 0x5a7   :  { %10364 = vmatmul.mubr.msk.bf16.gmra.mxu1 %vm1119_vm0, %v3385_v42 }
 0x5a8   :  { %3854 = vmatprep.mubr.bf16.mxu1 %v11229_v48  ;;  %v13545_v55 = vpop.f32.mrf.mxu0 }
 0x5aa   :  { %v13556_v57 = vpop.f32.mrf.mxu0 }
 0x5ac   :  { %v13558_v19 = vpop.f32.mrf.mxu0 }
 0x5ae   :  { %v13568_v51 = vpop.f32.mrf.mxu0 }
 0x5af   :  { %3855 = vmatmul.mubr.bf16.vlgmr.msra.gmra.mxu1 %v11227_v20  ;;  %v15006_v20 = vld [vmem:[#allocation26_spill] sm:$0xff] }
 0x5b0   :  { %3862 = vmatprep.mubr.bf16.mxu1 %v11235_v14  ;;  %9776 = vmatpush3.bf16.msra.mxu1 %v12913_v4  ;;  %v11239_v4 = vld [vmem:[%s14903_s26 + $0x648] ss:$16 sps:$4 sm:$0xff]   ;;  %v13576_v30 = vpop.f32.mrf.mxu0 }
 0x5b1   :  { %9777 = vmatprep.subr.bf16.mxu1 %v12919_v22  ;;  %v11247_v22 = vld [vmem:[%s14903_s26 + $0x66c] ss:$16 sps:$4 sm:$0xff]  }
 0x5b2   :  { %v13587_v43 = vpop.f32.mrf.mxu0 }
 0x5b4   :  { %9778 = vmatpush3.bf16.msra.mxu1 %v12931_v27  ;;  %v11245_v27 = vld [vmem:[%s14903_s26 + $0x668] ss:$16 sps:$4 sm:$0xff]   ;;  %v13589_v12 = vpop.f32.mrf.mxu0 }
 0x5b5   :  { %9779 = vmatprep.subr.bf16.mxu1 %v12937_v45  ;;  %v11253_v45 = vld [vmem:[%s14903_s26 + $0x68c] ss:$16 sps:$4 sm:$0xff]  }
 0x5b6   :  { %v13599_v28 = vpop.f32.mrf.mxu0 }
 0x5b7   :  { %3863 = vmatmul.mubr.bf16.gmra.mxu1 %v11233_v3 }
 0x5b8   :  { %3870 = vmatprep.mubr.bf16.mxu1 %v11241_v37  ;;  %9780 = vmatpush3.bf16.msra.mxu1 %v12943_v59  ;;  %v11251_v59 = vld [vmem:[%s14903_s26 + $0x688] ss:$16 sps:$4 sm:$0xff]   ;;  %v13607_v37 = vpop.f32.mrf.mxu0 }
 0x5b9   :  { %9781 = vmatprep.subr.bf16.mxu1 %v12949_v53  ;;  %v11259_v53 = vld [vmem:[%s14903_s26 + $0x6ac] ss:$16 sps:$4 sm:$0xff]  }
 0x5bc   :  { %9782 = vmatpush3.bf16.msra.mxu1 %v12961_v58  ;;  %v14995_v58 = vld [vmem:[#allocation12_spill] sm:$0xff] }
 0x5bd   :  { %9783 = vmatprep.subr.bf16.mxu1 %v12967_v44  ;;  %v11257_v44 = vld [vmem:[%s14903_s26 + $0x6a8] ss:$16 sps:$4 sm:$0xff]  }
 0x5bf   :  { %3871 = vmatmul.mubr.bf16.gmra.mxu1 %v11239_v4  ;;  %v11305_v4 = vld [vmem:[%s14903_s26 + $0x7a4] ss:$16 sps:$4 sm:$0xff]  }
 0x5c0   :  { %3878 = vmatprep.mubr.bf16.mxu1 %v11247_v22  ;;  %9784 = vmatpush3.bf16.msra.mxu1 %v12973_v8  ;;  %v11265_v8 = vld [vmem:[%s14903_s26 + $0x6cc] ss:$16 sps:$4 sm:$0xff]  }
 0x5c1   :  { %9785 = vmatprep.subr.bf16.mxu1 %v12979_v54  ;;  %v11263_v54 = vld [vmem:[%s14903_s26 + $0x6c8] ss:$16 sps:$4 sm:$0xff]  }
 0x5c2   :  { %v15007_v22 = vld [vmem:[#allocation27_spill] sm:$0xff] }
 0x5c4   :  { %9786 = vmatpush3.bf16.msra.mxu1 %v12991_v40  ;;  %v11271_v40 = vld [vmem:[%s14903_s26 + $0x6ec] ss:$16 sps:$4 sm:$0xff]  }
 0x5c5   :  { %9787 = vmatprep.subr.bf16.mxu1 %v12997_v26  ;;  %v11269_v26 = vld [vmem:[%s14903_s26 + $0x6e8] ss:$16 sps:$4 sm:$0xff]  }
 0x5c7   :  { %3879 = vmatmul.mubr.bf16.gmra.mxu1 %v11245_v27 }
 0x5c8   :  { %3886 = vmatprep.mubr.bf16.mxu1 %v11253_v45  ;;  %9788 = vmatpush3.bf16.msra.mxu1 %v13003_v39  ;;  %v11272_v39 = vld [vmem:[%s14904_s28 + $0x30] sm:$0xff]  }
 0x5c9   :  { %9789 = vmatprep.subr.bf16.mxu1 %v14964_v36  ;;  %10367 = vmatprep.subr.bf16.mxu0 %v11272_v39  ;;  %v14996_v36 = vld [vmem:[#allocation13_spill] sm:$0xff]  ;;  %v11303_v45 = vld [vmem:[%s14903_s26 + $0x7a0] ss:$16 sps:$4 sm:$0xff]  }
 0x5ca   :  { %10368 = vmatpush3.bf16.msra.mxu0 %v11272_v39 }
 0x5cb   :  { %9839 = vmatprep.subr.bf16.mxu0 %v14996_v36 }
 0x5cc   :  { %9790 = vmatpush3.bf16.msra.mxu1 %v14995_v58  ;;  %v11311_v58 = vld [vmem:[%s14903_s26 + $0x7c4] ss:$16 sps:$4 sm:$0xff]  }
 0x5cf   :  { %3887 = vmatmul.mubr.bf16.gmra.mxu1 %v11251_v59  ;;  %v13618_v59 = vpop.f32.mrf.mxu0 }
 0x5d0   :  { %3894 = vmatprep.mubr.bf16.mxu1 %v11259_v53 }
 0x5d1   :  { %v13620_v53 = vpop.f32.mrf.mxu0 }
 0x5d7   :  { %3895 = vmatmul.mubr.bf16.gmra.mxu1 %v11257_v44  ;;  %v11309_v44 = vld [vmem:[%s14903_s26 + $0x7c0] ss:$16 sps:$4 sm:$0xff]  }
 0x5d8   :  { %3902 = vmatprep.mubr.bf16.mxu1 %v11265_v8 }
 0x5df   :  { %3903 = vmatmul.mubr.bf16.gmra.mxu1 %v11263_v54 }
 0x5e0   :  { %3910 = vmatprep.mubr.bf16.mxu1 %v11271_v40  ;;  %v13630_v40 = vpop.f32.mrf.mxu0 }
 0x5e7   :  { %3911 = vmatmul.mubr.bf16.gmra.mxu1 %v11269_v26  ;;  %v15008_v26 = vld [vmem:[#allocation29_spill] sm:$0xff] }
 0x5e8   :  { %4298 = vmatprep.mubr.bf16.mxu1 %v11275_v50  ;;  %v15009_v50 = vld [vmem:[#allocation30_spill] sm:$0xff] }
 0x5ef   :  { %4299 = vmatmul.mubr.bf16.vlgmr.msra.gmra.mxu1 %v11273_v56 }
 0x5f0   :  { %4306 = vmatprep.mubr.bf16.mxu1 %v11281_v21  ;;  %v11315_v21 = vld [vmem:[%s14903_s26 + $0x7e0] ss:$16 sps:$4 sm:$0xff]  }
 0x5f7   :  { %4307 = vmatmul.mubr.bf16.gmra.mxu1 %v11279_v2 }
 0x5f8   :  { %4314 = vmatprep.mubr.bf16.mxu1 %v11287_v47 }
 0x5ff   :  { %4315 = vmatmul.mubr.bf16.gmra.mxu1 %v11285_v62 }
 0x600   :  { %4322 = vmatprep.mubr.bf16.mxu1 %v11293_v60  ;;  %v9659_v60 = vadd.f32 %v13545_v55, %v13537_v46 }
 0x607   :  { %4323 = vmatmul.mubr.bf16.gmra.mxu1 %v11291_v17 }
 0x608   :  { %4330 = vmatprep.mubr.bf16.mxu1 %v11299_v52 }
 0x60f   :  { %4331 = vmatmul.mubr.bf16.gmra.mxu1 %v11297_v16 }
 0x610   :  { %4338 = vmatprep.mubr.bf16.mxu1 %v11305_v4 }
 0x617   :  { %4339 = vmatmul.mubr.bf16.gmra.mxu1 %v11303_v45 }
 0x618   :  { %4346 = vmatprep.mubr.bf16.mxu1 %v11311_v58 }
 0x61f   :  { %4347 = vmatmul.mubr.bf16.gmra.mxu1 %v11309_v44 }
 0x637   :  { %v10353_v11 = vpop.f32.mrf.mxu1 }
 0x638   :  { %v13540_v9 = vadd.f32 %v10353_v11, %v14997_v38  ;;  %v13638_v38 = vpop.f32.mrf.mxu0 }
 0x639   :  { %v3453_v0 = vpop.f32.mrf.mxu1 }
 0x63a   :  { %v13543_v6 = vadd.f32 %v3453_v0, %v14998_v25  ;;  %v11317_v0 = vld [vmem:[%s14903_s26 + $0x7e4] ss:$16 sps:$4 sm:$0xff]   ;;  %v15010_v25 = vld [vmem:[#allocation31_spill] sm:$0xff]  ;;  %v13651_v47 = vpop.f32.mrf.mxu0 }
 0x63b   :  { %v10354_v34 = vpop.f32.mrf.mxu1  ;;  %4354 = vmatprep.mubr.bf16.mxu1 %v11317_v0 }
 0x63c   :  { %v13551_v31 = vadd.f32 %v10354_v34, %v14999_v18  ;;  %4355 = vmatmul.mubr.bf16.gmra.mxu1 %v11315_v21 }
 0x63d   :  { %v13566_v33 = vpop.f32.mrf.mxu1 }
 0x63e   :  { %15000 = vst [vmem:[#allocation12_spill] sm:$0xff] %v13566_v33 }
 0x647   :  { %v10357_v35 = vpop.f32.mrf.mxu1 }
 0x648   :  { %v13571_v49 = vadd.f32 %v10357_v35, %v15001_v13  ;;  %v13653_v13 = vpop.f32.mrf.mxu0 }
 0x649   :  { %v3469_v1 = vpop.f32.mrf.mxu1 }
 0x64a   :  { %v13574_v24 = vadd.f32 %v3469_v1, %v15002_v63  ;;  %v13659_v52 = vpop.f32.mrf.mxu0 }
 0x64b   :  { %v10358_v10 = vpop.f32.mrf.mxu1 }
 0x64c   :  { %v13582_v15 = vadd.f32 %v10358_v10, %v15003_v41  ;;  %v9656_v10 = vadd.f32 %v13529_v5, %v13527_v32  ;;  %v9662_v32 = vadd.f32 %v13558_v19, %v13556_v57  ;;  %v9665_v5 = vadd.f32 %v13576_v30, %v13568_v51  ;;  %v13676_v57 = vld [vmem:[%s14902_s20 + $0xb8] sm:$0xff]  }
 0x64d   :  { %v13597_v23 = vpop.f32.mrf.mxu1  ;;  %v9668_v19 = vadd.f32 %v13589_v12, %v13587_v43  ;;  %v9671_v51 = vadd.f32 %v13607_v37, %v13599_v28  ;;  %v13692_v43 = vld [vmem:[%s14902_s20 + $0xb0] sm:$0xff]   ;;  %v13698_v28 = vld [vmem:[%s14902_s20 + $0xe8] sm:$0xff]  }
 0x64e   :  { %15004 = vst [vmem:[#allocation13_spill] sm:$0xff] %v13597_v23 }
 0x657   :  { %v10361_v29 = vpop.f32.mrf.mxu1 }
 0x658   :  { %v13602_v48 = vadd.f32 %v10361_v29, %v15005_v7 }
 0x659   :  { %v3485_v42 = vpop.f32.mrf.mxu1 }
 0x65a   :  { %v13605_v14 = vadd.f32 %v3485_v42, %v15006_v20 }
 0x65b   :  { %v10362_v3 = vpop.f32.mrf.mxu1 }
 0x65c   :  { %v13613_v27 = vadd.f32 %v10362_v3, %v15007_v22  ;;  %v13661_v3 = vpop.f32.mrf.mxu0 }
 0x65d   :  { %v13628_v8 = vpop.f32.mrf.mxu1 }
 0x65e   :  { %v13668_v45 = vpop.f32.mrf.mxu0 }
 0x667   :  { %v10365_v54 = vpop.f32.mrf.mxu1 }
 0x668   :  { %v13633_v39 = vadd.f32 %v10365_v54, %v15008_v26 }
 0x669   :  { %v3501_v36 = vpop.f32.mrf.mxu1 }
 0x66a   :  { %v13636_v56 = vadd.f32 %v3501_v36, %v15009_v50  ;;  %v13670_v50 = vpop.f32.mrf.mxu0 }
 0x66b   :  { %v10366_v11 = vpop.f32.mrf.mxu1 }
 0x66c   :  { %v13644_v34 = vadd.f32 %v10366_v11, %v15010_v25  ;;  %v13686_v25 = vld [vmem:[%s14902_s20 + $0xf0] sm:$0xff]  }
 0x66d   :  { %v13649_v18 = vpop.f32.mrf.mxu1 }
 0x66f   :  { %v9718_v2 = vpop.f32.mrf.mxu1 }
 0x671   :  { %v9719_v62 = vpop.f32.mrf.mxu1 }
 0x672   :  { %v9720_v1 = vadd.f32 %v9719_v62, %v9718_v2  ;;  %v9687_v2 = vpop.f32.mrf.mxu0 }
 0x673   :  { %v9721_v35 = vpop.f32.mrf.mxu1 }
 0x674   :  { %v3857_v16 = vadd.f32 %v9720_v1, %v9656_v10 }
 0x675   :  { %v9722_v63 = vpop.f32.mrf.mxu1 }
 0x676   :  { %v9723_v41 = vadd.f32 %v9722_v63, %v9721_v35  ;;  %v9688_v63 = vpop.f32.mrf.mxu0 }
 0x677   :  { %v9724_v17 = vpop.f32.mrf.mxu1 }
 0x678   :  { %v3860_v29 = vadd.f32 %v9723_v41, %v9659_v60  ;;  %v13705_v41 = vld [vmem:[%s14902_s20 + $0xa8] sm:$0xff]  }
 0x679   :  { %v9725_v7 = vpop.f32.mrf.mxu1 }
 0x67a   :  { %v3919_v42 = vpack.c.bf16 %v3860_v29, %v3857_v16  ;;  %v9726_v4 = vadd.f32 %v9725_v7, %v9724_v17  ;;  %v9674_v17 = vadd.f32 %v13620_v53, %v13618_v59  ;;  %v9677_v16 = vadd.f32 %v13638_v38, %v13630_v40  ;;  %v13715_v7 = vld [vmem:[%s14902_s20 + $0xe0] sm:$0xff]   ;;  %v13727_v40 = vld [vmem:[%s14902_s20 + $0xd8] sm:$0xff]  }
 0x67b   :  { %v9727_v20 = vpop.f32.mrf.mxu1  ;;  %v13721_v59 = vld [vmem:[%s14902_s20 + $0xa0] sm:$0xff]  }
 0x67c   :  { %10369 = vmatprep.mubr.msk.bf16.mxu0 %vm1119_vm0, %v3919_v42  ;;  %v3865_v58 = vadd.f32 %v9726_v4, %v9662_v32 }
 0x67d   :  { %v9728_v22 = vpop.f32.mrf.mxu1 }
 0x67e   :  { %v9729_v46 = vadd.f32 %v9728_v22, %v9727_v20  ;;  %v9690_v20 = vpop.f32.mrf.mxu0 }
 0x67f   :  { %v9730_v55 = vpop.f32.mrf.mxu1 }
 0x680   :  { %v3868_v44 = vadd.f32 %v9729_v46, %v9665_v5  ;;  %v9691_v5 = vpop.f32.mrf.mxu0 }
 0x681   :  { %v9731_v54 = vpop.f32.mrf.mxu1 }
 0x682   :  { %v3920_v26 = vpack.c.bf16 %v3868_v44, %v3865_v58  ;;  %v9732_v11 = vadd.f32 %v9731_v54, %v9730_v55  ;;  %v13734_v58 = vld [vmem:[%s14902_s20 + $0x98] sm:$0xff]   ;;  %v9680_v44 = vadd.f32 %v13653_v13, %v13651_v47  ;;  %v9683_v54 = vadd.f32 %v13661_v3, %v13659_v52  ;;  %v13750_v47 = vld [vmem:[%s14902_s20 + $0x90] sm:$0xff]   ;;  %v13756_v52 = vld [vmem:[%s14902_s20 + $0xc8] sm:$0xff]  }
 0x683   :  { %v9733_v36 = vpop.f32.mrf.mxu1 }
 0x684   :  { %10370 = vmatmul.mubr.msk.bf16.vlgmr.msra.gmra.mxu0 %vm1119_vm0, %v3920_v26  ;;  %v3873_v62 = vadd.f32 %v9732_v11, %v9668_v19 }
 0x685   :  { %v9734_v0 = vpop.f32.mrf.mxu1  ;;  %9840 = vmatpush3.bf16.msra.mxu0 %v13676_v57 }
 0x686   :  { %v9735_v30 = vadd.f32 %v9734_v0, %v9733_v36  ;;  %9841 = vmatprep.subr.bf16.mxu0 %v13686_v25  ;;  %v13744_v36 = vld [vmem:[%s14902_s20 + $0xd0] sm:$0xff]   ;;  %v9693_v0 = vpop.f32.mrf.mxu0 }
 0x687   :  { %v9736_v21 = vpop.f32.mrf.mxu1 }
 0x688   :  { %v3876_v35 = vadd.f32 %v9735_v30, %v9671_v51 }
 0x689   :  { %v9737_v1 = vpop.f32.mrf.mxu1  ;;  %9842 = vmatpush3.bf16.msra.mxu0 %v13692_v43 }
 0x68a   :  { %v3921_v12 = vpack.c.bf16 %v3876_v35, %v3873_v62  ;;  %9843 = vmatprep.subr.bf16.mxu0 %v13698_v28  ;;  %v9738_v10 = vadd.f32 %v9737_v1, %v9736_v21  ;;  %v9694_v21 = vpop.f32.mrf.mxu0  ;;  %v13763_v1 = vld [vmem:[%s14902_s20 + $0x88] sm:$0xff]  }
 0x68b   :  { %v9739_v37 = vpop.f32.mrf.mxu1 }
 0x68c   :  { %10373 = vmatprep.mubr.msk.bf16.mxu0 %vm1119_vm0, %v3921_v12  ;;  %v3881_v4 = vadd.f32 %v9738_v10, %v9674_v17  ;;  %v9686_v12 = vadd.f32 %v13670_v50, %v13668_v45 }
 0x68d   :  { %v9740_v60 = vpop.f32.mrf.mxu1  ;;  %9844 = vmatpush3.bf16.msra.mxu0 %v13705_v41 }
 0x68e   :  { %v9741_v29 = vadd.f32 %v9740_v60, %v9739_v37  ;;  %9845 = vmatprep.subr.bf16.mxu0 %v13715_v7  ;;  %v9689_v37 = vadd.f32 %v9688_v63, %v9687_v2  ;;  %v13771_v60 = vld [vmem:[%s14902_s20 + $0xc0] sm:$0xff]  }
 0x68f   :  { %v9742_v42 = vpop.f32.mrf.mxu1 }
 0x690   :  { %v3884_v22 = vadd.f32 %v9741_v29, %v9677_v16  ;;  %v9696_v16 = vpop.f32.mrf.mxu0 }
 0x691   :  { %v9743_v32 = vpop.f32.mrf.mxu1  ;;  %9846 = vmatpush3.bf16.msra.mxu0 %v13721_v59 }
 0x692   :  { %v3922_v53 = vpack.c.bf16 %v3884_v22, %v3881_v4  ;;  %9847 = vmatprep.subr.bf16.mxu0 %v13727_v40  ;;  %v9744_v46 = vadd.f32 %v9743_v32, %v9742_v42  ;;  %v13777_v22 = vld [vmem:[%s14902_s20 + $0x80] sm:$0xff]   ;;  %v9697_v50 = vpop.f32.mrf.mxu0 }
 0x693   :  { %v9745_v38 = vpop.f32.mrf.mxu1 }
 0x694   :  { %10374 = vmatmul.mubr.msk.bf16.gmra.mxu0 %vm1119_vm0, %v3922_v53  ;;  %v3889_v19 = vadd.f32 %v9744_v46, %v9680_v44  ;;  %v9692_v53 = vadd.f32 %v9691_v5, %v9690_v20  ;;  %v11278_v20 = vld [vmem:[%s14903_s26 + $0x70c] ss:$16 sps:$4 sm:$0xff]  }
 0x695   :  { %v9746_v55 = vpop.f32.mrf.mxu1  ;;  %9848 = vmatpush3.bf16.msra.mxu0 %v13734_v58 }
 0x696   :  { %v9747_v26 = vadd.f32 %v9746_v55, %v9745_v38  ;;  %9849 = vmatprep.subr.bf16.mxu0 %v13744_v36  ;;  %v9695_v38 = vadd.f32 %v9694_v21, %v9693_v0  ;;  %v9699_v55 = vpop.f32.mrf.mxu0  ;;  %v11276_v0 = vld [vmem:[%s14903_s26 + $0x708] ss:$16 sps:$4 sm:$0xff]   ;;  %v11284_v21 = vld [vmem:[%s14903_s26 + $0x72c] ss:$16 sps:$4 sm:$0xff]  }
 0x697   :  { %v9748_v11 = vpop.f32.mrf.mxu1 }
 0x698   :  { %v3892_v51 = vadd.f32 %v9747_v26, %v9683_v54 }
 0x699   :  { %v9749_v30 = vpop.f32.mrf.mxu1  ;;  %9850 = vmatpush3.bf16.msra.mxu0 %v13750_v47 }
 0x69a   :  { %v3923_v13 = vpack.c.bf16 %v3892_v51, %v3889_v19  ;;  %9851 = vmatprep.subr.bf16.mxu0 %v13756_v52  ;;  %v9750_v62 = vadd.f32 %v9749_v30, %v9748_v11  ;;  %v9700_v51 = vpop.f32.mrf.mxu0 }
 0x69b   :  { %v9751_v3 = vpop.f32.mrf.mxu1 }
 0x69c   :  { %10377 = vmatprep.mubr.msk.bf16.mxu0 %vm1119_vm0, %v3923_v13  ;;  %v3897_v29 = vadd.f32 %v9750_v62, %v9686_v12  ;;  %v9701_v62 = vadd.f32 %v9700_v51, %v9699_v55  ;;  %v11294_v55 = vld [vmem:[%s14903_s26 + $0x768] ss:$16 sps:$4 sm:$0xff]  }
 0x69d   :  { %v9752_v35 = vpop.f32.mrf.mxu1  ;;  %9852 = vmatpush3.bf16.msra.mxu0 %v13763_v1  ;;  %v11300_v51 = vld [vmem:[%s14903_s26 + $0x788] ss:$16 sps:$4 sm:$0xff]  }
 0x69e   :  { %v9753_v10 = vadd.f32 %v9752_v35, %v9751_v3  ;;  %9853 = vmatprep.subr.bf16.mxu0 %v13771_v60  ;;  %v9698_v3 = vadd.f32 %v9697_v50, %v9696_v16  ;;  %v11282_v16 = vld [vmem:[%s14903_s26 + $0x728] ss:$16 sps:$4 sm:$0xff]   ;;  %v11538_v50 = vld [vmem:[%s14902_s20 + $0x60] sm:$0xff]  }
 0x69f   :  { %v9754_v17 = vpop.f32.mrf.mxu1 }
 0x6a0   :  { %v3900_v42 = vadd.f32 %v9753_v10, %v9689_v37  ;;  %v11533_v10 = vld [vmem:[%s14902_s20 + $0x38] sm:$0xff]  }
 0x6a1   :  { %v9755_v4 = vpop.f32.mrf.mxu1  ;;  %9854 = vmatpush3.bf16.msra.mxu0 %v13777_v22 }
 0x6a2   :  { %v3924_v45 = vpack.c.bf16 %v3900_v42, %v3897_v29  ;;  %9912 = vmatprep.subr.bf16.mxu0 %v13454_v61  ;;  %v9756_v63 = vadd.f32 %v9755_v4, %v9754_v17  ;;  %v11534_v17 = vld [vmem:[%s14902_s20 + $0x70] sm:$0xff]   ;;  %v11290_v29 = vld [vmem:[%s14903_s26 + $0x74c] ss:$16 sps:$4 sm:$0xff]  }
 0x6a3   :  { %v9757_v2 = vpop.f32.mrf.mxu1  ;;  %v11535_v42 = vld [vmem:[%s14902_s20 + $0x30] sm:$0xff]   ;;  %v11536_v4 = vld [vmem:[%s14902_s20 + $0x68] sm:$0xff]  }
 0x6a4   :  { %10378 = vmatmul.mubr.msk.bf16.gmra.mxu0 %vm1119_vm0, %v3924_v45  ;;  %v3905_v54 = vadd.f32 %v9756_v63, %v9692_v53  ;;  %v11537_v45 = vld [vmem:[%s14902_s20 + $0x28] sm:$0xff]   ;;  %v11540_v53 = vld [vmem:[%s14902_s20 + $0x58] sm:$0xff]  }
 0x6a5   :  { %v9758_v32 = vpop.f32.mrf.mxu1  ;;  %v11296_v63 = vld [vmem:[%s14903_s26 + $0x76c] ss:$16 sps:$4 sm:$0xff]  }
 0x6a6   :  { %v9759_v46 = vadd.f32 %v9758_v32, %v9757_v2  ;;  %v11288_v2 = vld [vmem:[%s14903_s26 + $0x748] ss:$16 sps:$4 sm:$0xff]   ;;  %v11539_v32 = vld [vmem:[%s14902_s20 + $0x20] sm:$0xff]  }
 0x6a7   :  { %v9760_v44 = vpop.f32.mrf.mxu1 }
 0x6a8   :  { %v3908_v26 = vadd.f32 %v9759_v46, %v9695_v38  ;;  %v11541_v38 = vld [vmem:[%s14902_s20 + $0x18] sm:$0xff]   ;;  %v11542_v46 = vld [vmem:[%s14902_s20 + $0x50] sm:$0xff]  }
 0x6a9   :  { %v9761_v11 = vpop.f32.mrf.mxu1 }
 0x6aa   :  { %v3925_v19 = vpack.c.bf16 %v3908_v26, %v3905_v54  ;;  %v9762_v13 = vadd.f32 %v9761_v11, %v9760_v44  ;;  %v11302_v44 = vld [vmem:[%s14903_s26 + $0x78c] ss:$16 sps:$4 sm:$0xff]   ;;  %v11543_v54 = vld [vmem:[%s14902_s20 + $0x10] sm:$0xff]  }
 0x6ab   :  { %v9763_v30 = vpop.f32.mrf.mxu1  ;;  %v11544_v26 = vld [vmem:[%s14902_s20 + $0x48] sm:$0xff]  }
 0x6ac   :  { %10381 = vmatprep.mubr.msk.bf16.mxu0 %vm1119_vm0, %v3925_v19  ;;  %v3913_v12 = vadd.f32 %v9762_v13, %v9698_v3  ;;  %v11545_v11 = vld [vmem:[%s14902_s20 + $0x8] sm:$0xff]   ;;  %v11546_v19 = vld [vmem:[%s14902_s20 + $0x40] sm:$0xff]  }
 0x6ad   :  { %v9764_v61 = vpop.f32.mrf.mxu1  ;;  %v11547_v13 = vld [vmem:[%s14902_s20] sm:$0xff]   ;;  %v11314_v3 = vld [vmem:[%s14903_s26 + $0x7cc] ss:$16 sps:$4 sm:$0xff]  }
 0x6ae   :  { %v9765_v35 = vadd.f32 %v9764_v61, %v9763_v30  ;;  %v11308_v30 = vld [vmem:[%s14903_s26 + $0x7ac] ss:$16 sps:$4 sm:$0xff]   ;;  %v11306_v61 = vld [vmem:[%s14903_s26 + $0x7a8] ss:$16 sps:$4 sm:$0xff]  }
 0x6b0   :  { %v3916_v37 = vadd.f32 %v9765_v35, %v9701_v62  ;;  %v11312_v62 = vld [vmem:[%s14903_s26 + $0x7c8] ss:$16 sps:$4 sm:$0xff]   ;;  %v11320_v35 = vld [vmem:[%s14903_s26 + $0x7ec] ss:$16 sps:$4 sm:$0xff]  }
 0x6b2   :  { %v3926_v5 = vpack.c.bf16 %v3916_v37, %v3913_v12  ;;  %v11318_v12 = vld [vmem:[%s14903_s26 + $0x7e8] ss:$16 sps:$4 sm:$0xff]  }
 0x6b3   :  { %v11321_v37 = vld [vmem:[%s14904_s28 + $0x38] sm:$0xff]  }
 0x6b4   :  { %10382 = vmatmul.mubr.msk.bf16.gmra.mxu0 %vm1119_vm0, %v3926_v5  ;;  %10385 = vmatprep.subr.bf16.mxu1 %v11321_v37  ;;  %v13883_v5 = vpop.f32.mrf.mxu1 }
 0x6b5   :  { %4395 = vmatprep.mubr.bf16.mxu0 %v11278_v20  ;;  %10386 = vmatpush3.bf16.msra.mxu1 %v11321_v37  ;;  %v11548_v20 = vld [vmem:[%s14902_s20 + $0xf8] sm:$0xff]  }
 0x6b6   :  { %9976 = vmatprep.subr.bf16.mxu1 %v11548_v20 }
 0x6bc   :  { %4396 = vmatmul.mubr.bf16.vlgmr.msra.gmra.mxu0 %v11276_v0  ;;  %v13885_v0 = vpop.f32.mrf.mxu1 }
 0x6bd   :  { %4403 = vmatprep.mubr.bf16.mxu0 %v11284_v21  ;;  %9913 = vmatpush3.bf16.msra.mxu0 %v11533_v10  ;;  %v11324_v21 = vld [vmem:[%s14903_s26 + $0x804] ss:$16 sps:$4 sm:$0xff]   ;;  %v11322_v10 = vld [vmem:[%s14903_s26 + $0x800] ss:$16 sps:$4 sm:$0xff]  }
 0x6be   :  { %9914 = vmatprep.subr.bf16.mxu0 %v11534_v17 }
 0x6c1   :  { %9915 = vmatpush3.bf16.msra.mxu0 %v11535_v42 }
 0x6c2   :  { %9916 = vmatprep.subr.bf16.mxu0 %v11536_v4 }
 0x6c4   :  { %4404 = vmatmul.mubr.bf16.gmra.mxu0 %v11282_v16  ;;  %v13893_v16 = vpop.f32.mrf.mxu1 }
 0x6c5   :  { %4411 = vmatprep.mubr.bf16.mxu0 %v11290_v29  ;;  %9917 = vmatpush3.bf16.msra.mxu0 %v11537_v45 }
 0x6c6   :  { %9918 = vmatprep.subr.bf16.mxu0 %v11538_v50  ;;  %v13901_v50 = vpop.f32.mrf.mxu1 }
 0x6c9   :  { %9919 = vmatpush3.bf16.msra.mxu0 %v11539_v32  ;;  %v11328_v32 = vld [vmem:[%s14903_s26 + $0x820] ss:$16 sps:$4 sm:$0xff]  }
 0x6ca   :  { %9920 = vmatprep.subr.bf16.mxu0 %v11540_v53  ;;  %v11336_v53 = vld [vmem:[%s14903_s26 + $0x844] ss:$16 sps:$4 sm:$0xff]  }
 0x6cc   :  { %4412 = vmatmul.mubr.bf16.gmra.mxu0 %v11288_v2  ;;  %v11330_v2 = vld [vmem:[%s14903_s26 + $0x824] ss:$16 sps:$4 sm:$0xff]  }
 0x6cd   :  { %4419 = vmatprep.mubr.bf16.mxu0 %v11296_v63  ;;  %9921 = vmatpush3.bf16.msra.mxu0 %v11541_v38  ;;  %v11334_v38 = vld [vmem:[%s14903_s26 + $0x840] ss:$16 sps:$4 sm:$0xff]  }
 0x6ce   :  { %9922 = vmatprep.subr.bf16.mxu0 %v11542_v46 }
 0x6d1   :  { %9923 = vmatpush3.bf16.msra.mxu0 %v11543_v54 }
 0x6d2   :  { %9924 = vmatprep.subr.bf16.mxu0 %v11544_v26 }
 0x6d4   :  { %4420 = vmatmul.mubr.bf16.gmra.mxu0 %v11294_v55 }
 0x6d5   :  { %4427 = vmatprep.mubr.bf16.mxu0 %v11302_v44  ;;  %9925 = vmatpush3.bf16.msra.mxu0 %v11545_v11 }
 0x6d6   :  { %9926 = vmatprep.subr.bf16.mxu0 %v11546_v19 }
 0x6d9   :  { %9927 = vmatpush3.bf16.msra.mxu0 %v11547_v13  ;;  %v11340_v13 = vld [vmem:[%s14903_s26 + $0x860] ss:$16 sps:$4 sm:$0xff]  }
 0x6dc   :  { %4428 = vmatmul.mubr.bf16.gmra.mxu0 %v11300_v51  ;;  %v11342_v51 = vld [vmem:[%s14903_s26 + $0x864] ss:$16 sps:$4 sm:$0xff]  }
 0x6dd   :  { %4435 = vmatprep.mubr.bf16.mxu0 %v11308_v30 }
 0x6e4   :  { %4436 = vmatmul.mubr.bf16.gmra.mxu0 %v11306_v61  ;;  %v11348_v61 = vld [vmem:[%s14903_s26 + $0x884] ss:$16 sps:$4 sm:$0xff]  }
 0x6e5   :  { %4443 = vmatprep.mubr.bf16.mxu0 %v11314_v3  ;;  %v11346_v3 = vld [vmem:[%s14903_s26 + $0x880] ss:$16 sps:$4 sm:$0xff]  }
 0x6ec   :  { %4444 = vmatmul.mubr.bf16.gmra.mxu0 %v11312_v62 }
 0x6ed   :  { %4451 = vmatprep.mubr.bf16.mxu0 %v11320_v35 }
 0x6f4   :  { %4452 = vmatmul.mubr.bf16.gmra.mxu0 %v11318_v12 }
 0x6f5   :  { %4839 = vmatprep.mubr.bf16.mxu0 %v11324_v21 }
 0x6fc   :  { %4840 = vmatmul.mubr.bf16.vlgmr.msra.gmra.mxu0 %v11322_v10 }
 0x6fd   :  { %4847 = vmatprep.mubr.bf16.mxu0 %v11330_v2  ;;  %v11360_v2 = vld [vmem:[%s14903_s26 + $0x8c4] ss:$16 sps:$4 sm:$0xff]  }
 0x704   :  { %4848 = vmatmul.mubr.bf16.gmra.mxu0 %v11328_v32  ;;  %v11358_v32 = vld [vmem:[%s14903_s26 + $0x8c0] ss:$16 sps:$4 sm:$0xff]  }
 0x705   :  { %4855 = vmatprep.mubr.bf16.mxu0 %v11336_v53 }
 0x70c   :  { %4856 = vmatmul.mubr.bf16.gmra.mxu0 %v11334_v38 }
 0x70d   :  { %4863 = vmatprep.mubr.bf16.mxu0 %v11342_v51 }
 0x714   :  { %4864 = vmatmul.mubr.bf16.gmra.mxu0 %v11340_v13 }
 0x715   :  { %4871 = vmatprep.mubr.bf16.mxu0 %v11348_v61  ;;  %v11366_v61 = vld [vmem:[%s14903_s26 + $0x8e4] ss:$16 sps:$4 sm:$0xff]  }
 0x71c   :  { %4872 = vmatmul.mubr.bf16.gmra.mxu0 %v11346_v3 }
 0x744   :  { %v10371_v17 = vpop.f32.mrf.mxu0 }
 0x745   :  { %v13896_v29 = vadd.f32 %v10371_v17, %v13540_v9  ;;  %v13912_v9 = vpop.f32.mrf.mxu1  ;;  %v11354_v17 = vld [vmem:[%s14903_s26 + $0x8a4] ss:$16 sps:$4 sm:$0xff]  }
 0x746   :  { %v3994_v42 = vpop.f32.mrf.mxu0  ;;  %4879 = vmatprep.mubr.bf16.mxu0 %v11354_v17 }
 0x747   :  { %v13899_v4 = vadd.f32 %v3994_v42, %v13543_v6  ;;  %v13914_v6 = vpop.f32.mrf.mxu1 }
 0x748   :  { %v10372_v45 = vpop.f32.mrf.mxu0 }
 0x749   :  { %v13907_v63 = vadd.f32 %v10372_v45, %v13551_v31  ;;  %v13924_v55 = vpop.f32.mrf.mxu1  ;;  %v11352_v45 = vld [vmem:[%s14903_s26 + $0x8a0] ss:$16 sps:$4 sm:$0xff]  }
 0x74a   :  { %v13922_v31 = vpop.f32.mrf.mxu0  ;;  %4880 = vmatmul.mubr.bf16.gmra.mxu0 %v11352_v45 }
 0x74b   :  { %15011 = vst [vmem:[#allocation10_spill] sm:$0xff] %v13922_v31  ;;  %v13932_v19 = vpop.f32.mrf.mxu1  ;;  %4887 = vmatprep.mubr.bf16.mxu0 %v11360_v2 }
 0x752   :  { %4888 = vmatmul.mubr.bf16.gmra.mxu0 %v11358_v32 }
 0x753   :  { %4895 = vmatprep.mubr.bf16.mxu0 %v11366_v61 }
 0x754   :  { %v10375_v46 = vpop.f32.mrf.mxu0 }
 0x755   :  { %v13927_v44 = vadd.f32 %v10375_v46, %v13571_v49  ;;  %v13943_v49 = vpop.f32.mrf.mxu1 }
 0x756   :  { %v4010_v54 = vpop.f32.mrf.mxu0 }
 0x757   :  { %v13930_v26 = vadd.f32 %v4010_v54, %v13574_v24  ;;  %v13945_v24 = vpop.f32.mrf.mxu1 }
 0x758   :  { %v10376_v11 = vpop.f32.mrf.mxu0 }
 0x759   :  { %v13938_v30 = vadd.f32 %v10376_v11, %v13582_v15  ;;  %v13955_v35 = vpop.f32.mrf.mxu1 }
 0x75a   :  { %v13953_v15 = vpop.f32.mrf.mxu0 }
 0x75b   :  { %15012 = vst [vmem:[#allocation14_spill] sm:$0xff] %v13953_v15  ;;  %v13963_v10 = vpop.f32.mrf.mxu1 }
 0x764   :  { %v10379_v62 = vpop.f32.mrf.mxu0 }
 0x765   :  { %v13958_v12 = vadd.f32 %v10379_v62, %v13602_v48  ;;  %v13974_v48 = vpop.f32.mrf.mxu1  ;;  %v11364_v62 = vld [vmem:[%s14903_s26 + $0x8e0] ss:$16 sps:$4 sm:$0xff]  }
 0x766   :  { %v4026_v37 = vpop.f32.mrf.mxu0  ;;  %4896 = vmatmul.mubr.bf16.gmra.mxu0 %v11364_v62 }
 0x767   :  { %v13961_v20 = vadd.f32 %v4026_v37, %v13605_v14  ;;  %v13976_v14 = vpop.f32.mrf.mxu1 }
 0x768   :  { %v10380_v21 = vpop.f32.mrf.mxu0 }
 0x769   :  { %v13969_v42 = vadd.f32 %v10380_v21, %v13613_v27  ;;  %v13986_v38 = vpop.f32.mrf.mxu1 }
 0x76a   :  { %v13984_v27 = vpop.f32.mrf.mxu0 }
 0x76b   :  { %15013 = vst [vmem:[#allocation16_spill] sm:$0xff] %v13984_v27  ;;  %v9813_v13 = vpop.f32.mrf.mxu1 }
 0x774   :  { %v10383_v53 = vpop.f32.mrf.mxu0 }
 0x775   :  { %v13989_v46 = vadd.f32 %v10383_v53, %v13633_v39  ;;  %v9796_v53 = vadd.f32 %v13901_v50, %v13893_v16 }
 0x776   :  { %v4042_v54 = vpop.f32.mrf.mxu0 }
 0x777   :  { %v13992_v11 = vadd.f32 %v4042_v54, %v13636_v56  ;;  %v14005_v56 = vpop.f32.mrf.mxu1 }
 0x778   :  { %v10384_v51 = vpop.f32.mrf.mxu0 }
 0x779   :  { %v13998_v3 = vadd.f32 %v10384_v51, %v13644_v34  ;;  %v14007_v45 = vpop.f32.mrf.mxu1  ;;  %v9793_v34 = vadd.f32 %v13885_v0, %v13883_v5  ;;  %v9802_v5 = vadd.f32 %v13932_v19, %v13924_v55 }
 0x77a   :  { %v14003_v37 = vpop.f32.mrf.mxu0 }
 0x77b   :  { %15014 = vst [vmem:[#allocation20_spill] sm:$0xff] %v14003_v37  ;;  %v9818_v31 = vpop.f32.mrf.mxu1 }
 0x77c   :  { %v9855_v39 = vpop.f32.mrf.mxu0 }
 0x77d   :  { %v9819_v27 = vpop.f32.mrf.mxu1 }
 0x77e   :  { %v9856_v21 = vpop.f32.mrf.mxu0 }
 0x77f   :  { %v9857_v2 = vadd.f32 %v9856_v21, %v9855_v39  ;;  %v9799_v21 = vadd.f32 %v13914_v6, %v13912_v9  ;;  %v14018_v50 = vpop.f32.mrf.mxu1  ;;  %v9805_v9 = vadd.f32 %v13945_v24, %v13943_v49  ;;  %v9814_v24 = vadd.f32 %v9813_v13, %v13986_v38 }
 0x780   :  { %v9858_v17 = vpop.f32.mrf.mxu0 }
 0x781   :  { %v4398_v61 = vadd.f32 %v9857_v2, %v9793_v34 }
 0x782   :  { %v9859_v32 = vpop.f32.mrf.mxu0 }
 0x783   :  { %v9860_v54 = vadd.f32 %v9859_v32, %v9858_v17 }
 0x784   :  { %v9861_v51 = vpop.f32.mrf.mxu0 }
 0x785   :  { %v4401_v62 = vadd.f32 %v9860_v54, %v9796_v53  ;;  %v9822_v54 = vpop.f32.mrf.mxu1 }
 0x786   :  { %v9862_v33 = vpop.f32.mrf.mxu0 }
 0x787   :  { %v4460_v15 = vpack.c.bf16 %v4401_v62, %v4398_v61  ;;  %v9863_v37 = vadd.f32 %v9862_v33, %v9861_v51  ;;  %v9824_v19 = vpop.f32.mrf.mxu1 }
 0x788   :  { %v9864_v23 = vpop.f32.mrf.mxu0 }
 0x789   :  { %10387 = vmatprep.mubr.msk.bf16.mxu1 %vm1119_vm0, %v4460_v15  ;;  %v4406_v17 = vadd.f32 %v9863_v37, %v9799_v21 }
 0x78a   :  { %v9865_v39 = vpop.f32.mrf.mxu0 }
 0x78b   :  { %v9866_v0 = vadd.f32 %v9865_v39, %v9864_v23  ;;  %v9808_v23 = vadd.f32 %v13963_v10, %v13955_v35  ;;  %v9825_v39 = vpop.f32.mrf.mxu1 }
 0x78c   :  { %v9867_v16 = vpop.f32.mrf.mxu0 }
 0x78d   :  { %v4409_v2 = vadd.f32 %v9866_v0, %v9802_v5  ;;  %v9827_v10 = vpop.f32.mrf.mxu1 }
 0x78e   :  { %v9868_v32 = vpop.f32.mrf.mxu0 }
 0x78f   :  { %v4461_v34 = vpack.c.bf16 %v4409_v2, %v4406_v17  ;;  %v9869_v33 = vadd.f32 %v9868_v32, %v9867_v16 }
 0x790   :  { %v9870_v53 = vpop.f32.mrf.mxu0 }
 0x791   :  { %10388 = vmatmul.mubr.msk.bf16.vlgmr.msra.gmra.mxu1 %vm1119_vm0, %v4461_v34  ;;  %v4414_v37 = vadd.f32 %v9869_v33, %v9805_v9 }
 0x792   :  { %v9871_v15 = vpop.f32.mrf.mxu0  ;;  %9977 = vmatpush3.bf16.msra.mxu1 %v13676_v57 }
 0x793   :  { %v9872_v6 = vadd.f32 %v9871_v15, %v9870_v53  ;;  %9978 = vmatprep.subr.bf16.mxu1 %v13686_v25  ;;  %v9811_v25 = vadd.f32 %v13976_v14, %v13974_v48  ;;  %v9820_v14 = vadd.f32 %v9819_v27, %v9818_v31  ;;  %v9826_v31 = vadd.f32 %v9825_v39, %v9824_v19 }
 0x794   :  { %v9873_v55 = vpop.f32.mrf.mxu0 }
 0x795   :  { %v4417_v51 = vadd.f32 %v9872_v6, %v9808_v23 }
 0x796   :  { %v9874_v61 = vpop.f32.mrf.mxu0  ;;  %9979 = vmatpush3.bf16.msra.mxu1 %v13692_v43 }
 0x797   :  { %v4462_v62 = vpack.c.bf16 %v4417_v51, %v4414_v37  ;;  %9980 = vmatprep.subr.bf16.mxu1 %v13698_v28  ;;  %v9875_v21 = vadd.f32 %v9874_v61, %v9873_v55 }
 0x798   :  { %v9876_v57 = vpop.f32.mrf.mxu0 }
 0x799   :  { %10391 = vmatprep.mubr.msk.bf16.mxu1 %vm1119_vm0, %v4462_v62  ;;  %v4422_v5 = vadd.f32 %v9875_v21, %v9811_v25 }
 0x79a   :  { %v9877_v49 = vpop.f32.mrf.mxu0  ;;  %9981 = vmatpush3.bf16.msra.mxu1 %v13705_v41  ;;  %v9828_v41 = vpop.f32.mrf.mxu1 }
 0x79b   :  { %v9878_v35 = vadd.f32 %v9877_v49, %v9876_v57  ;;  %9982 = vmatprep.subr.bf16.mxu1 %v13715_v7  ;;  %v9817_v7 = vadd.f32 %v14007_v45, %v14005_v56  ;;  %v9829_v61 = vadd.f32 %v9828_v41, %v9827_v10  ;;  %v11327_v10 = vld [vmem:[%s14903_s26 + $0x80c] ss:$16 sps:$4 sm:$0xff]  }
 0x79c   :  { %v9879_v43 = vpop.f32.mrf.mxu0  ;;  %v11333_v41 = vld [vmem:[%s14903_s26 + $0x82c] ss:$16 sps:$4 sm:$0xff]  }
 0x79d   :  { %v4425_v28 = vadd.f32 %v9878_v35, %v9814_v24 }
 0x79e   :  { %v9880_v0 = vpop.f32.mrf.mxu0  ;;  %9983 = vmatpush3.bf16.msra.mxu1 %v13721_v59  ;;  %v9830_v59 = vpop.f32.mrf.mxu1 }
 0x79f   :  { %v4463_v16 = vpack.c.bf16 %v4425_v28, %v4422_v5  ;;  %9984 = vmatprep.subr.bf16.mxu1 %v13727_v40  ;;  %v9881_v2 = vadd.f32 %v9880_v0, %v9879_v43 }
 0x7a0   :  { %v9882_v17 = vpop.f32.mrf.mxu0  ;;  %v9831_v15 = vpop.f32.mrf.mxu1 }
 0x7a1   :  { %10392 = vmatmul.mubr.msk.bf16.gmra.mxu1 %vm1119_vm0, %v4463_v16  ;;  %v4430_v32 = vadd.f32 %v9881_v2, %v9817_v7  ;;  %v11331_v2 = vld [vmem:[%s14903_s26 + $0x828] ss:$16 sps:$4 sm:$0xff]  }
 0x7a2   :  { %v9883_v48 = vpop.f32.mrf.mxu0  ;;  %9985 = vmatpush3.bf16.msra.mxu1 %v13734_v58  ;;  %v9833_v9 = vpop.f32.mrf.mxu1  ;;  %v11337_v7 = vld [vmem:[%s14903_s26 + $0x848] ss:$16 sps:$4 sm:$0xff]  }
 0x7a3   :  { %v9884_v38 = vadd.f32 %v9883_v48, %v9882_v17  ;;  %9986 = vmatprep.subr.bf16.mxu1 %v13744_v36  ;;  %v9823_v36 = vadd.f32 %v9822_v54, %v14018_v50  ;;  %v9832_v50 = vadd.f32 %v9831_v15, %v9830_v59  ;;  %v11325_v17 = vld [vmem:[%s14903_s26 + $0x808] ss:$16 sps:$4 sm:$0xff]   ;;  %v11339_v48 = vld [vmem:[%s14903_s26 + $0x84c] ss:$16 sps:$4 sm:$0xff]  }
 0x7a4   :  { %v9885_v13 = vpop.f32.mrf.mxu0  ;;  %v9834_v55 = vpop.f32.mrf.mxu1  ;;  %v11349_v59 = vld [vmem:[%s14903_s26 + $0x888] ss:$16 sps:$4 sm:$0xff]  }
 0x7a5   :  { %v4433_v34 = vadd.f32 %v9884_v38, %v9820_v14  ;;  %v9835_v35 = vadd.f32 %v9834_v55, %v9833_v9  ;;  %v11345_v14 = vld [vmem:[%s14903_s26 + $0x86c] ss:$16 sps:$4 sm:$0xff]   ;;  %v11343_v38 = vld [vmem:[%s14903_s26 + $0x868] ss:$16 sps:$4 sm:$0xff]  }
 0x7a6   :  { %v9886_v40 = vpop.f32.mrf.mxu0  ;;  %9987 = vmatpush3.bf16.msra.mxu1 %v13750_v47  ;;  %v9836_v19 = vpop.f32.mrf.mxu1  ;;  %v11367_v15 = vld [vmem:[%s14903_s26 + $0x8e8] ss:$16 sps:$4 sm:$0xff]  }
 0x7a7   :  { %v4464_v53 = vpack.c.bf16 %v4433_v34, %v4430_v32  ;;  %9988 = vmatprep.subr.bf16.mxu1 %v13756_v52  ;;  %v9887_v58 = vadd.f32 %v9886_v40, %v9885_v13  ;;  %v11351_v13 = vld [vmem:[%s14903_s26 + $0x88c] ss:$16 sps:$4 sm:$0xff]   ;;  %v11355_v34 = vld [vmem:[%s14903_s26 + $0x8a8] ss:$16 sps:$4 sm:$0xff]  }
 0x7a8   :  { %v9888_v33 = vpop.f32.mrf.mxu0  ;;  %v9837_v49 = vpop.f32.mrf.mxu1  ;;  %v11357_v32 = vld [vmem:[%s14903_s26 + $0x8ac] ss:$16 sps:$4 sm:$0xff]  }
 0x7a9   :  { %10395 = vmatprep.mubr.msk.bf16.mxu1 %vm1119_vm0, %v4464_v53  ;;  %v4438_v47 = vadd.f32 %v9887_v58, %v9823_v36  ;;  %v9838_v43 = vadd.f32 %v9837_v49, %v9836_v19  ;;  %v11363_v40 = vld [vmem:[%s14903_s26 + $0x8cc] ss:$16 sps:$4 sm:$0xff]   ;;  %v11361_v53 = vld [vmem:[%s14903_s26 + $0x8c8] ss:$16 sps:$4 sm:$0xff]   ;;  %v11370_v58 = vld [vmem:[%s14904_s28 + $0x40] sm:$0xff]  }
 0x7aa   :  { %v9889_v56 = vpop.f32.mrf.mxu0  ;;  %9989 = vmatpush3.bf16.msra.mxu1 %v13763_v1  ;;  %10403 = vmatprep.subr.bf16.mxu0 %v11370_v58 }
 0x7ab   :  { %v9890_v27 = vadd.f32 %v9889_v56, %v9888_v33  ;;  %9990 = vmatprep.subr.bf16.mxu1 %v13771_v60  ;;  %v11369_v33 = vld [vmem:[%s14903_s26 + $0x8ec] ss:$16 sps:$4 sm:$0xff]   ;;  %10404 = vmatpush3.bf16.msra.mxu0 %v11370_v58 }
 0x7ac   :  { %v9891_v45 = vpop.f32.mrf.mxu0 }
 0x7ad   :  { %v4441_v23 = vadd.f32 %v9890_v27, %v9826_v31 }
 0x7ae   :  { %v9892_v6 = vpop.f32.mrf.mxu0  ;;  %9991 = vmatpush3.bf16.msra.mxu1 %v13777_v22 }
 0x7af   :  { %v4465_v52 = vpack.c.bf16 %v4441_v23, %v4438_v47  ;;  %v9893_v51 = vadd.f32 %v9892_v6, %v9891_v45 }
 0x7b0   :  { %v9894_v37 = vpop.f32.mrf.mxu0 }
 0x7b1   :  { %10396 = vmatmul.mubr.msk.bf16.gmra.mxu1 %vm1119_vm0, %v4465_v52  ;;  %v4446_v60 = vadd.f32 %v9893_v51, %v9829_v61 }
 0x7b2   :  { %v9895_v1 = vpop.f32.mrf.mxu0 }
 0x7b3   :  { %v9896_v54 = vadd.f32 %v9895_v1, %v9894_v37 }
 0x7b4   :  { %v9897_v62 = vpop.f32.mrf.mxu0 }
 0x7b5   :  { %v4449_v57 = vadd.f32 %v9896_v54, %v9832_v50 }
 0x7b6   :  { %v9898_v39 = vpop.f32.mrf.mxu0 }
 0x7b7   :  { %v4466_v21 = vpack.c.bf16 %v4449_v57, %v4446_v60  ;;  %v9899_v24 = vadd.f32 %v9898_v39, %v9897_v62 }
 0x7b8   :  { %v9900_v25 = vpop.f32.mrf.mxu0 }
 0x7b9   :  { %10399 = vmatprep.mubr.msk.bf16.mxu1 %vm1119_vm0, %v4466_v21  ;;  %v4454_v28 = vadd.f32 %v9899_v24, %v9835_v35 }
 0x7ba   :  { %v9901_v22 = vpop.f32.mrf.mxu0 }
 0x7bb   :  { %v9902_v5 = vadd.f32 %v9901_v22, %v9900_v25 }
 0x7bc   :  { %v9928_v56 = vpop.f32.mrf.mxu0 }
 0x7bd   :  { %v4457_v0 = vadd.f32 %v9902_v5, %v9838_v43 }
 0x7be   :  { %v9929_v36 = vpop.f32.mrf.mxu0 }
 0x7bf   :  { %v4467_v16 = vpack.c.bf16 %v4457_v0, %v4454_v28 }
 0x7c0   :  { %v9931_v27 = vpop.f32.mrf.mxu0 }
 0x7c1   :  { %10400 = vmatmul.mubr.msk.bf16.gmra.mxu1 %vm1119_vm0, %v4467_v16 }
 0x7c2   :  { %4936 = vmatprep.mubr.bf16.mxu1 %v11327_v10  ;;  %v9932_v6 = vpop.f32.mrf.mxu0 }
 0x7c4   :  { %v9934_v55 = vpop.f32.mrf.mxu0 }
 0x7c6   :  { %v9935_v37 = vpop.f32.mrf.mxu0 }
 0x7c8   :  { %v9937_v61 = vpop.f32.mrf.mxu0 }
 0x7c9   :  { %4937 = vmatmul.mubr.bf16.vlgmr.msra.gmra.mxu1 %v11325_v17 }
 0x7ca   :  { %4944 = vmatprep.mubr.bf16.mxu1 %v11333_v41  ;;  %v9938_v19 = vpop.f32.mrf.mxu0 }
 0x7d1   :  { %4945 = vmatmul.mubr.bf16.gmra.mxu1 %v11331_v2 }
 0x7d2   :  { %4952 = vmatprep.mubr.bf16.mxu1 %v11339_v48 }
 0x7d9   :  { %4953 = vmatmul.mubr.bf16.gmra.mxu1 %v11337_v7 }
 0x7da   :  { %4960 = vmatprep.mubr.bf16.mxu1 %v11345_v14 }
 0x7e1   :  { %4961 = vmatmul.mubr.bf16.gmra.mxu1 %v11343_v38 }
 0x7e2   :  { %4968 = vmatprep.mubr.bf16.mxu1 %v11351_v13 }
 0x7e9   :  { %4969 = vmatmul.mubr.bf16.gmra.mxu1 %v11349_v59  ;;  %v9933_v59 = vadd.f32 %v9932_v6, %v9931_v27 }
 0x7ea   :  { %4976 = vmatprep.mubr.bf16.mxu1 %v11357_v32 }
 0x7f1   :  { %4977 = vmatmul.mubr.bf16.gmra.mxu1 %v11355_v34 }
 0x7f2   :  { %4984 = vmatprep.mubr.bf16.mxu1 %v11363_v40 }
 0x7f9   :  { %4985 = vmatmul.mubr.bf16.gmra.mxu1 %v11361_v53 }
 0x7fa   :  { %4992 = vmatprep.mubr.bf16.mxu1 %v11369_v33 }
 0x801   :  { %4993 = vmatmul.mubr.bf16.gmra.mxu1 %v11367_v15 }
 0x851   :  { %v10389_v31 = vpop.f32.mrf.mxu1 }
 0x852   :  { %v14104_v45 = vadd.f32 %v10389_v31, %v13896_v29 }
 0x853   :  { %v4535_v9 = vpop.f32.mrf.mxu1 }
 0x854   :  { %v14107_v47 = vadd.f32 %v4535_v9, %v13899_v4 }
 0x855   :  { %v10390_v23 = vpop.f32.mrf.mxu1 }
 0x856   :  { %v14110_v52 = vadd.f32 %v10390_v23, %v13907_v63  ;;  %v9940_v63 = vpop.f32.mrf.mxu0  ;;  %v9936_v23 = vadd.f32 %v9935_v37, %v9934_v55 }
 0x857   :  { %v14112_v51 = vpop.f32.mrf.mxu1 }
 0x858   :  { %v9941_v60 = vpop.f32.mrf.mxu0 }
 0x85a   :  { %v9943_v21 = vpop.f32.mrf.mxu0 }
 0x85c   :  { %v9944_v24 = vpop.f32.mrf.mxu0 }
 0x861   :  { %v10393_v1 = vpop.f32.mrf.mxu1 }
 0x862   :  { %v14115_v50 = vadd.f32 %v10393_v1, %v13927_v44  ;;  %v9939_v1 = vadd.f32 %v9938_v19, %v9937_v61 }
 0x863   :  { %v4551_v29 = vpop.f32.mrf.mxu1 }
 0x864   :  { %v14118_v54 = vadd.f32 %v4551_v29, %v13930_v26 }
 0x865   :  { %v10394_v4 = vpop.f32.mrf.mxu1 }
 0x866   :  { %v14121_v62 = vadd.f32 %v10394_v4, %v13938_v30  ;;  %v9946_v30 = vpop.f32.mrf.mxu0 }
 0x867   :  { %v14123_v57 = vpop.f32.mrf.mxu1 }
 0x868   :  { %v9947_v35 = vpop.f32.mrf.mxu0 }
 0x86a   :  { %v9949_v28 = vpop.f32.mrf.mxu0 }
 0x86c   :  { %v9950_v16 = vpop.f32.mrf.mxu0 }
 0x86e   :  { %v9952_v2 = vpop.f32.mrf.mxu0 }
 0x870   :  { %v9953_v14 = vpop.f32.mrf.mxu0 }
 0x871   :  { %v10397_v39 = vpop.f32.mrf.mxu1 }
 0x872   :  { %v14126_v49 = vadd.f32 %v10397_v39, %v13958_v12 }
 0x873   :  { %v4567_v44 = vpop.f32.mrf.mxu1 }
 0x874   :  { %v14129_v25 = vadd.f32 %v4567_v44, %v13961_v20 }
 0x875   :  { %v10398_v26 = vpop.f32.mrf.mxu1 }
 0x876   :  { %v14132_v22 = vadd.f32 %v10398_v26, %v13969_v42 }
 0x877   :  { %v14134_v43 = vpop.f32.mrf.mxu1 }
 0x881   :  { %v10401_v5 = vpop.f32.mrf.mxu1 }
 0x882   :  { %v14137_v0 = vadd.f32 %v10401_v5, %v13989_v46  ;;  %v9930_v46 = vadd.f32 %v9929_v36, %v9928_v56 }
 0x883   :  { %v4583_v12 = vpop.f32.mrf.mxu1 }
 0x884   :  { %v14140_v10 = vadd.f32 %v4583_v12, %v13992_v11  ;;  %v9955_v11 = vpop.f32.mrf.mxu0 }
 0x885   :  { %v10402_v20 = vpop.f32.mrf.mxu1 }
 0x886   :  { %v14143_v17 = vadd.f32 %v10402_v20, %v13998_v3  ;;  %v9956_v58 = vpop.f32.mrf.mxu0  ;;  %v9942_v20 = vadd.f32 %v9941_v60, %v9940_v63 }
 0x887   :  { %v14145_v42 = vpop.f32.mrf.mxu1 }
 0x888   :  { %v9958_v39 = vpop.f32.mrf.mxu0 }
 0x889   :  { %v9992_v41 = vpop.f32.mrf.mxu1 }
 0x88a   :  { %v9959_v26 = vpop.f32.mrf.mxu0 }
 0x88b   :  { %v9993_v48 = vpop.f32.mrf.mxu1 }
 0x88c   :  { %v9994_v38 = vadd.f32 %v9993_v48, %v9992_v41  ;;  %v9945_v41 = vadd.f32 %v9944_v24, %v9943_v21 }
 0x88d   :  { %v9995_v7 = vpop.f32.mrf.mxu1 }
 0x88e   :  { %v4939_v40 = vadd.f32 %v9994_v38, %v9930_v46  ;;  %v9961_v38 = vpop.f32.mrf.mxu0 }
 0x88f   :  { %v9996_v13 = vpop.f32.mrf.mxu1 }
 0x890   :  { %v9997_v32 = vadd.f32 %v9996_v13, %v9995_v7  ;;  %v9962_v46 = vpop.f32.mrf.mxu0 }
 0x891   :  { %v9998_v34 = vpop.f32.mrf.mxu1 }
 0x892   :  { %v4942_v53 = vadd.f32 %v9997_v32, %v9933_v59 }
 0x893   :  { %v9999_v33 = vpop.f32.mrf.mxu1 }
 0x894   :  { %v5001_v15 = vpack.c.bf16 %v4942_v53, %v4939_v40  ;;  %v10000_v31 = vadd.f32 %v9999_v33, %v9998_v34  ;;  %v9948_v34 = vadd.f32 %v9947_v35, %v9946_v30  ;;  %v9951_v40 = vadd.f32 %v9950_v16, %v9949_v28 }
 0x895   :  { %v10001_v3 = vpop.f32.mrf.mxu1 }
 0x896   :  { %10405 = vmatprep.mubr.msk.bf16.mxu0 %vm1119_vm0, %v5001_v15  ;;  %v4947_v56 = vadd.f32 %v10000_v31, %v9936_v23  ;;  %v9964_v15 = vpop.f32.mrf.mxu0 }
 0x897   :  { %v10002_v9 = vpop.f32.mrf.mxu1 }
 0x898   :  { %v10003_v29 = vadd.f32 %v10002_v9, %v10001_v3  ;;  %v9965_v31 = vpop.f32.mrf.mxu0 }
 0x899   :  { %v10004_v4 = vpop.f32.mrf.mxu1 }
 0x89a   :  { %v4950_v36 = vadd.f32 %v10003_v29, %v9939_v1  ;;  %v9954_v1 = vadd.f32 %v9953_v14, %v9952_v2  ;;  %v9957_v29 = vadd.f32 %v9956_v58, %v9955_v11 }
 0x89b   :  { %v10005_v27 = vpop.f32.mrf.mxu1 }
 0x89c   :  { %v5002_v6 = vpack.c.bf16 %v4950_v36, %v4947_v56  ;;  %v10006_v5 = vadd.f32 %v10005_v27, %v10004_v4  ;;  %v9967_v36 = vpop.f32.mrf.mxu0 }
 0x89d   :  { %v10007_v44 = vpop.f32.mrf.mxu1 }
 0x89e   :  { %10406 = vmatmul.mubr.msk.bf16.vlgmr.msra.gmra.mxu0 %vm1119_vm0, %v5002_v6  ;;  %v4955_v55 = vadd.f32 %v10006_v5, %v9942_v20  ;;  %v9968_v6 = vpop.f32.mrf.mxu0  ;;  %v9963_v20 = vadd.f32 %v9962_v46, %v9961_v38 }
 0x89f   :  { %v10008_v12 = vpop.f32.mrf.mxu1 }
 0x8a0   :  { %v10009_v48 = vadd.f32 %v10008_v12, %v10007_v44  ;;  %v9960_v12 = vadd.f32 %v9959_v26, %v9958_v39 }
 0x8a1   :  { %v10010_v7 = vpop.f32.mrf.mxu1 }
 0x8a2   :  { %v4958_v37 = vadd.f32 %v10009_v48, %v9945_v41 }
 0x8a3   :  { %v10011_v61 = vpop.f32.mrf.mxu1 }
 0x8a4   :  { %v5003_v19 = vpack.c.bf16 %v4958_v37, %v4955_v55  ;;  %v10012_v59 = vadd.f32 %v10011_v61, %v10010_v7  ;;  %v9970_v7 = vpop.f32.mrf.mxu0 }
 0x8a5   :  { %v10013_v13 = vpop.f32.mrf.mxu1 }
 0x8a6   :  { %10409 = vmatprep.mubr.msk.bf16.mxu0 %vm1119_vm0, %v5003_v19  ;;  %v4963_v63 = vadd.f32 %v10012_v59, %v9948_v34  ;;  %v9971_v55 = vpop.f32.mrf.mxu0  ;;  %v9969_v59 = vadd.f32 %v9968_v6, %v9967_v36 }
 0x8a7   :  { %v10014_v32 = vpop.f32.mrf.mxu1 }
 0x8a8   :  { %v10015_v53 = vadd.f32 %v10014_v32, %v10013_v13  ;;  %v9966_v13 = vadd.f32 %v9965_v31, %v9964_v15  ;;  %v9973_v34 = vpop.f32.mrf.mxu0  ;;  %v11371_v31 = vld [vmem:[%s15015_s21 + $0x10] sm:$0xff]  }
 0x8a9   :  { %v10016_v33 = vpop.f32.mrf.mxu1 }
 0x8aa   :  { %v4966_v60 = vadd.f32 %v10015_v53, %v9951_v40  ;;  %v9974_v53 = vpop.f32.mrf.mxu0 }
 0x8ab   :  { %v10017_v21 = vpop.f32.mrf.mxu1 }
 0x8ac   :  { %v5004_v24 = vpack.c.bf16 %v4966_v60, %v4963_v63  ;;  %v10018_v9 = vadd.f32 %v10017_v21, %v10016_v33  ;;  %v9972_v21 = vadd.f32 %v9971_v55, %v9970_v7 }
 0x8ad   :  { %v10019_v3 = vpop.f32.mrf.mxu1 }
 0x8ae   :  { %10410 = vmatmul.mubr.msk.bf16.gmra.mxu0 %vm1119_vm0, %v5004_v24  ;;  %v4971_v30 = vadd.f32 %v10018_v9, %v9954_v1  ;;  %v9975_v24 = vadd.f32 %v9974_v53, %v9973_v34  ;;  %v11375_v1 = vld [vmem:[%s15015_s21] sm:$0xff]   ;;  %v15020_v53 = vld [vmem:[#allocation9_spill] sm:$0xff] }
 0x8af   :  { %v10020_v23 = vpop.f32.mrf.mxu1  ;;  %10437 = vmatprep.mubr.bf16.mxu1 %v11375_v1  ;;  %v15025_v1 = vld [vmem:[#allocation34_spill] sm:$0xff] }
 0x8b0   :  { %v10021_v4 = vadd.f32 %v10020_v23, %v10019_v3 }
 0x8b1   :  { %v10022_v56 = vpop.f32.mrf.mxu1 }
 0x8b2   :  { %v4974_v35 = vadd.f32 %v10021_v4, %v9957_v29 }
 0x8b3   :  { %v10023_v28 = vpop.f32.mrf.mxu1 }
 0x8b4   :  { %v5005_v16 = vpack.c.bf16 %v4974_v35, %v4971_v30  ;;  %v10024_v44 = vadd.f32 %v10023_v28, %v10022_v56  ;;  %v14165_v56 = vld [vmem:[%s14871_s3] ss:$0 sm:$0xff] }
 0x8b5   :  { %v10025_v27 = vpop.f32.mrf.mxu1 }
 0x8b6   :  { %10413 = vmatprep.mubr.msk.bf16.mxu0 %vm1119_vm0, %v5005_v16  ;;  %v4979_v2 = vadd.f32 %v10024_v44, %v9960_v12 }
 0x8b7   :  { %v10026_v5 = vpop.f32.mrf.mxu1 }
 0x8b8   :  { %v10027_v41 = vadd.f32 %v10026_v5, %v10025_v27 }
 0x8b9   :  { %v10028_v48 = vpop.f32.mrf.mxu1 }
 0x8ba   :  { %v4982_v14 = vadd.f32 %v10027_v41, %v9963_v20 }
 0x8bb   :  { %v10029_v11 = vpop.f32.mrf.mxu1 }
 0x8bc   :  { %v5006_v58 = vpack.c.bf16 %v4982_v14, %v4979_v2  ;;  %v10030_v61 = vadd.f32 %v10029_v11, %v10028_v48 }
 0x8bd   :  { %v10031_v37 = vpop.f32.mrf.mxu1 }
 0x8be   :  { %10414 = vmatmul.mubr.msk.bf16.gmra.mxu0 %vm1119_vm0, %v5006_v58  ;;  %v4987_v39 = vadd.f32 %v10030_v61, %v9966_v13 }
 0x8bf   :  { %v10032_v19 = vpop.f32.mrf.mxu1 }
 0x8c0   :  { %v10033_v32 = vadd.f32 %v10032_v19, %v10031_v37 }
 0x8c1   :  { %v10034_v40 = vpop.f32.mrf.mxu1 }
 0x8c2   :  { %v4990_v26 = vadd.f32 %v10033_v32, %v9969_v59  ;;  %v15017_v32 = vld [vmem:[#allocation7_spill] sm:$0xff] }
 0x8c3   :  { %v10035_v38 = vpop.f32.mrf.mxu1 }
 0x8c4   :  { %v5007_v46 = vpack.c.bf16 %v4990_v26, %v4987_v39  ;;  %v10036_v63 = vadd.f32 %v10035_v38, %v10034_v40  ;;  %v15018_v26 = vld [vmem:[#allocation19_spill] sm:$0xff]  ;;  %v15019_v38 = vld [vmem:[#allocation6_spill] sm:$0xff] }
 0x8c5   :  { %v10037_v33 = vpop.f32.mrf.mxu1 }
 0x8c6   :  { %10417 = vmatprep.mubr.msk.bf16.mxu0 %vm1119_vm0, %v5007_v46  ;;  %v4995_v9 = vadd.f32 %v10036_v63, %v9972_v21  ;;  %v1341_v46 = vadd.f32 %v15019_v38, %v15018_v26  ;;  %v15022_v21 = vld [vmem:[#allocation32_spill] sm:$0xff]  ;;  %v15033_v26 = vld [vmem:[#allocation11_spill] sm:$0xff] }
 0x8c7   :  { %v10038_v60 = vpop.f32.mrf.mxu1  ;;  %v15034_v38 = vld [vmem:[#allocation4_spill] sm:$0xff] }
 0x8c8   :  { %v10039_v3 = vadd.f32 %v10038_v60, %v10037_v33 }
 0x8ca   :  { %v4998_v23 = vadd.f32 %v10039_v3, %v9975_v24 }
 0x8cc   :  { %v5008_v15 = vpack.c.bf16 %v4998_v23, %v4995_v9  ;;  %v15024_v23 = vld [vmem:[#allocation35_spill] sm:$0xff] }
 0x8ce   :  { %10418 = vmatmul.mubr.msk.bf16.gmra.mxu0 %vm1119_vm0, %v5008_v15 }
 0x8cf   :  { %10457 = vmatprep.mubr.bf16.mxu0 %v11371_v31 }
 0x95e   :  { %v10407_v29 = vpop.f32.mrf.mxu0 }
 0x95f   :  { %v5141_v4 = vadd.f32 %v10407_v29, %v14104_v45 }
 0x960   :  { %v14167_v36 = vpop.f32.mrf.mxu0 }
 0x961   :  { %v5164_v35 = vadd.f32 %v14165_v56, %v5141_v4 }
 0x962   :  { %v10408_v30 = vpop.f32.mrf.mxu0 }
 0x963   :  { %v5142_v28 = vadd.f32 %v10408_v30, %v14110_v52  ;;  %v5180_v27 = vmax.f32 %v5164_v35, 0.0  ;;  %v15026_v35 = vld [vmem:[#allocation15_spill] sm:$0xff] }
 0x964   :  { %v14174_v5 = vpop.f32.mrf.mxu0 }
 0x965   :  { %v5165_v16 = vadd.f32 %v14165_v56, %v5142_v28  ;;  %v15027_v28 = vld [vmem:[#allocation5_spill] sm:$0xff] }
 0x967   :  { %v5181_v6 = vmax.f32 %v5165_v16, 0.0  ;;  %v1325_v16 = vadd.f32 %v15027_v28, %v15026_v35  ;;  %v15040_v35 = vld [vmem:[#allocation12_spill] sm:$0xff] }
 0x969   :  { %v14172_v44 = vpack.c.bf16 %v5181_v6, %v5180_v27 }
 0x96e   :  { %v10411_v45 = vpop.f32.mrf.mxu0 }
 0x96f   :  { %v5145_v12 = vadd.f32 %v10411_v45, %v14115_v50  ;;  %v15028_v45 = vld [vmem:[#allocation20_spill] sm:$0xff] }
 0x970   :  { %v14177_v20 = vpop.f32.mrf.mxu0 }
 0x971   :  { %v5168_v48 = vadd.f32 %v14165_v56, %v5145_v12 }
 0x972   :  { %v10412_v41 = vpop.f32.mrf.mxu0 }
 0x973   :  { %v5146_v7 = vadd.f32 %v10412_v41, %v14121_v62  ;;  %v5184_v2 = vmax.f32 %v5168_v48, 0.0  ;;  %v15016_v62 = vld [vmem:[#allocation23_spill] sm:$0xff] }
 0x974   :  { %v14184_v58 = vpop.f32.mrf.mxu0  ;;  %v1357_v34 = vadd.f32 %v15017_v32, %v15016_v62  ;;  %v15029_v48 = vld [vmem:[#allocation3_spill] sm:$0xff]  ;;  %v15032_v62 = vld [vmem:[#allocation33_spill] sm:$0xff] }
 0x975   :  { %v5169_v52 = vadd.f32 %v14165_v56, %v5146_v7  ;;  %v1898_v7 = vadd.f32 %v15029_v48, %v1325_v16  ;;  %v5139_v48 = vadd.f32 %v14167_v36, %v14107_v47 }
 0x976   :  { %v1906_v33 = vadd.f32 %v15020_v53, %v1357_v34 }
 0x977   :  { %v5185_v14 = vmax.f32 %v5169_v52, 0.0 }
 0x978   :  { %v2447_v24 = vadd.f32 %v15022_v21, %v1906_v33  ;;  %v15036_v21 = vld [vmem:[#allocation2_spill] sm:$0xff] }
 0x979   :  { %v14182_v11 = vpack.c.bf16 %v5185_v14, %v5184_v2  ;;  %v15030_v2 = vld [vmem:[#allocation16_spill] sm:$0xff] }
 0x97a   :  { %v2988_v15 = vadd.f32 %v15024_v23, %v2447_v24 }
 0x97c   :  { %v3529_v4 = vadd.f32 %v13649_v18, %v2988_v15 }
 0x97e   :  { %v10415_v55 = vpop.f32.mrf.mxu0  ;;  %v4070_v12 = vadd.f32 %v15028_v45, %v3529_v4 }
 0x97f   :  { %v5149_v37 = vadd.f32 %v10415_v55, %v14126_v49  ;;  %v15021_v49 = vld [vmem:[#allocation8_spill] sm:$0xff] }
 0x980   :  { %v5108_v61 = vpop.f32.mrf.mxu0  ;;  %v1902_v60 = vadd.f32 %v15021_v49, %v1341_v46  ;;  %v4611_v55 = vadd.f32 %v14145_v42, %v4070_v12  ;;  %v15035_v46 = vld [vmem:[#allocation13_spill] sm:$0xff] }
 0x981   :  { %v5172_v19 = vadd.f32 %v14165_v56, %v5149_v37  ;;  %v15031_v37 = vld [vmem:[#allocation24_spill] sm:$0xff]  ;;  %v5147_v33 = vadd.f32 %v5108_v61, %v14129_v25  ;;  %v15038_v25 = vld [vmem:[#allocation18_spill] sm:$0xff] }
 0x982   :  { %v10416_v50 = vpop.f32.mrf.mxu0 }
 0x983   :  { %v5150_v13 = vadd.f32 %v10416_v50, %v14132_v22  ;;  %v5188_v40 = vmax.f32 %v5172_v19, 0.0  ;;  %v15023_v22 = vld [vmem:[#allocation28_spill] sm:$0xff]  ;;  %v2439_v50 = vadd.f32 %v15031_v37, %v1898_v7 }
 0x984   :  { %v5111_v3 = vpop.f32.mrf.mxu0  ;;  %v2443_v9 = vadd.f32 %v15023_v22, %v1902_v60  ;;  %v15037_v22 = vld [vmem:[#allocation14_spill] sm:$0xff]  ;;  %v11377_v37 = vld [vmem:[%s14870_s5 + $0x14] ss:$0 sps:$4 sm:$0xff]  }
 0x985   :  { %v5173_v59 = vadd.f32 %v14165_v56, %v5150_v13  ;;  %v2980_v32 = vadd.f32 %v15032_v62, %v2439_v50  ;;  %v5362_v50 = vsel %vm5360_vm1, %v11377_v37, 0 }
 0x986   :  { %v2984_v29 = vadd.f32 %v15025_v1, %v2443_v9  ;;  %v15039_v1 = vld [vmem:[#allocation17_spill] sm:$0xff] }
 0x987   :  { %v5189_v39 = vmax.f32 %v5173_v59, 0.0  ;;  %v3521_v53 = vadd.f32 %v15035_v46, %v2980_v32  ;;  %v11380_v46 = vld [vmem:[%s14870_s5] sm:$0xff]  }
 0x988   :  { %v3525_v6 = vadd.f32 %v13628_v8, %v2984_v29 }
 0x989   :  { %v14195_v63 = vpack.c.bf16 %v5189_v39, %v5188_v40  ;;  %v4062_v9 = vadd.f32 %v15037_v22, %v3521_v53  ;;  %v11381_v53 = vld [vmem:[%s15015_s21 + $0x20] sm:$0xff]  }
 0x98a   :  { %v4066_v14 = vadd.f32 %v15030_v2, %v3525_v6 }
 0x98b   :  { %v4603_v15 = vadd.f32 %v14123_v57, %v4062_v9  ;;  %v5143_v57 = vadd.f32 %v14177_v20, %v14118_v54 }
 0x98c   :  { %v4607_v8 = vadd.f32 %v14134_v43, %v4066_v14  ;;  %v11372_v14 = vld [vmem:[%s15015_s21 + $0x18] sm:$0xff]  }
 0x98d   :  { %v5144_v4 = vadd.f32 %v14184_v58, %v4603_v15 }
 0x98e   :  { %v10419_v31 = vpop.f32.mrf.mxu0  ;;  %v5148_v34 = vadd.f32 %v5111_v3, %v4607_v8  ;;  %v11379_v8 = vld [vmem:[%s14870_s5 + $0x8] ss:$0 sps:$4 sm:$0xff]  }
 0x98f   :  { %v5153_v30 = vadd.f32 %v10419_v31, %v14137_v0  ;;  %v5170_v31 = vadd.f32 %v14165_v56, %v5147_v33  ;;  %v5167_v45 = vadd.f32 %v14165_v56, %v5144_v4 }
 0x990   :  { %v5124_v27 = vpop.f32.mrf.mxu0  ;;  %v5171_v3 = vadd.f32 %v14165_v56, %v5148_v34 }
 0x991   :  { %v5151_v41 = vadd.f32 %v5124_v27, %v14140_v10  ;;  %v5176_v18 = vadd.f32 %v14165_v56, %v5153_v30  ;;  %v5186_v16 = vmax.f32 %v5170_v31, 0.0  ;;  %v15041_v27 = vld [vmem:[#allocation10_spill] sm:$0xff]  ;;  %v5183_v20 = vmax.f32 %v5167_v45, 0.0  ;;  %v11385_v45 = vld [vmem:[%s15015_s21 + $0x30] sm:$0xff]  }
 0x992   :  { %v10420_v52 = vpop.f32.mrf.mxu0  ;;  %v5187_v30 = vmax.f32 %v5171_v3, 0.0 }
 0x993   :  { %v5154_v0 = vadd.f32 %v10420_v52, %v14143_v17  ;;  %v5174_v13 = vadd.f32 %v14165_v56, %v5151_v41  ;;  %v5192_v40 = vmax.f32 %v5176_v18, 0.0  ;;  %v1309_v17 = vadd.f32 %v15034_v38, %v15033_v26 }
 0x994   :  { %v5127_v19 = vpop.f32.mrf.mxu0  ;;  %v14251_v58 = vpack.c.bf16 %v5187_v30, %v5186_v16  ;;  %v5166_v41 = vadd.f32 %v14165_v56, %v5143_v57 }
 0x995   :  { %v5177_v10 = vadd.f32 %v14165_v56, %v5154_v0  ;;  %v5152_v59 = vadd.f32 %v5127_v19, %v4611_v55  ;;  %v5190_v43 = vmax.f32 %v5174_v13, 0.0  ;;  %v1894_v24 = vadd.f32 %v15036_v21, %v1309_v17  ;;  %v11376_v55 = vld [vmem:[%s15015_s21 + $0x8] sm:$0xff]   ;;  %v11374_v0 = vld [vmem:[%s14870_s5 + $0x18] sm:$0xff]  }
 0x996   :  { %v5182_v7 = vmax.f32 %v5166_v41, 0.0  ;;  %v11378_v19 = vld [vmem:[%s14870_s5 + $0xc] sm:$0xff]   ;;  %v5429_v17 = vsel %vm5360_vm1, %v11379_v8, 0  ;;  %v11387_v41 = vld [vmem:[%s14870_s5 + $0x38] ss:$0 sps:$4 sm:$0xff]  }
 0x997   :  { %v5193_v39 = vmax.f32 %v5177_v10, 0.0  ;;  %v5175_v42 = vadd.f32 %v14165_v56, %v5152_v59  ;;  %v2435_v61 = vadd.f32 %v15038_v25, %v1894_v24  ;;  %v11384_v24 = vld [vmem:[%s14870_s5 + $0x24] sm:$0xff]  }
 0x998   :  { %v14267_v52 = vpack.c.bf16 %v5183_v20, %v5182_v7  ;;  %v5854_v20 = vsel %vm5360_vm1, %v11387_v41, 0 }
 0x999   :  { %v14224_v49 = vpack.c.bf16 %v5193_v39, %v5192_v40  ;;  %v5191_v60 = vmax.f32 %v5175_v42, 0.0  ;;  %v2976_v29 = vadd.f32 %v15039_v1, %v2435_v61 }
 0x99b   :  { %v14229_v23 = vpack.c.bf16 %v5191_v60, %v5190_v43  ;;  %10421 = vmatprep.subr.bf16.mxu1 %v14224_v49  ;;  %10441 = vmatprep.subr.bf16.mxu0 %v14224_v49  ;;  %v3517_v28 = vadd.f32 %v15040_v35, %v2976_v29  ;;  %v11383_v43 = vld [vmem:[%s14870_s5 + $0x2c] ss:$0 sps:$4 sm:$0xff]  }
 0x99c   :  { %10422 = vmatpush3.bf16.msra.mxu1 %v14224_v49  ;;  %10442 = vmatpush3.bf16.msra.mxu0 %v14224_v49  ;;  %v11382_v60 = vld [vmem:[%s15015_s21 + $0x28] sm:$0xff]   ;;  %v5711_v21 = vsel %vm5360_vm1, %v11383_v43, 0 }
 0x99d   :  { %10423 = vmatprep.subr.bf16.mxu1 %v14229_v23  ;;  %10443 = vmatprep.subr.bf16.mxu0 %v14229_v23  ;;  %v4058_v6 = vadd.f32 %v15041_v27, %v3517_v28 }
 0x99f   :  { %v4599_v12 = vadd.f32 %v14112_v51, %v4058_v6 }
 0x9a0   :  { %10424 = vmatpush3.bf16.msra.mxu1 %v14229_v23  ;;  %10444 = vmatpush3.bf16.msra.mxu0 %v14229_v23 }
 0x9a1   :  { %10425 = vmatprep.subr.bf16.mxu1 %v14195_v63  ;;  %10445 = vmatprep.subr.bf16.mxu0 %v14195_v63  ;;  %v5140_v54 = vadd.f32 %v14174_v5, %v4599_v12  ;;  %v5162_v5 = vadd.f32 %v14165_v56, %v5139_v48  ;;  %v11388_v48 = vld [vmem:[%s14870_s5 + $0x30] sm:$0xff]  }
 0x9a3   :  { %v5163_v51 = vadd.f32 %v14165_v56, %v5140_v54  ;;  %v5178_v36 = vmax.f32 %v5162_v5, 0.0  ;;  %v11373_v56 = vld [vmem:[%s14870_s5 + $0x20] ss:$0 sps:$4 sm:$0xff]   ;;  %v11386_v54 = vld [vmem:[%s15015_s21 + $0x38] sm:$0xff]  }
 0x9a4   :  { %10426 = vmatpush3.bf16.msra.mxu1 %v14195_v63  ;;  %10446 = vmatpush3.bf16.msra.mxu0 %v14195_v63  ;;  %v5568_v18 = vsel %vm5360_vm1, %v11373_v56, 0 }
 0x9a5   :  { %10427 = vmatprep.subr.bf16.mxu1 %v14251_v58  ;;  %10447 = vmatprep.subr.bf16.mxu0 %v14251_v58  ;;  %v5179_v47 = vmax.f32 %v5163_v51, 0.0 }
 0x9a7   :  { %v14278_v2 = vpack.c.bf16 %v5179_v47, %v5178_v36 }
 0x9a8   :  { %10428 = vmatpush3.bf16.msra.mxu1 %v14251_v58  ;;  %10448 = vmatpush3.bf16.msra.mxu0 %v14251_v58 }
 0x9a9   :  { %10429 = vmatprep.subr.bf16.mxu1 %v14182_v11  ;;  %10449 = vmatprep.subr.bf16.mxu0 %v14182_v11 }
 0x9ac   :  { %10430 = vmatpush3.bf16.msra.mxu1 %v14182_v11  ;;  %10450 = vmatpush3.bf16.msra.mxu0 %v14182_v11 }
 0x9ad   :  { %10431 = vmatprep.subr.bf16.mxu1 %v14267_v52  ;;  %10451 = vmatprep.subr.bf16.mxu0 %v14267_v52 }
 0x9b0   :  { %10432 = vmatpush3.bf16.msra.mxu1 %v14267_v52  ;;  %10452 = vmatpush3.bf16.msra.mxu0 %v14267_v52 }
 0x9b1   :  { %10433 = vmatprep.subr.bf16.mxu1 %v14172_v44  ;;  %10453 = vmatprep.subr.bf16.mxu0 %v14172_v44 }
 0x9b4   :  { %10434 = vmatpush3.bf16.msra.mxu1 %v14172_v44  ;;  %10454 = vmatpush3.bf16.msra.mxu0 %v14172_v44 }
 0x9b5   :  { %10435 = vmatprep.subr.bf16.mxu1 %v14278_v2  ;;  %10455 = vmatprep.subr.bf16.mxu0 %v14278_v2 }
 0x9b8   :  { %10436 = vmatpush3.bf16.msra.mxu1 %v14278_v2  ;;  %10456 = vmatpush3.bf16.msra.mxu0 %v14278_v2 }
 0x9b9   :  { %10889 = vmatprep.subr.msk.bf16.mxu0 %vm5360_vm1, %v11373_v56  ;;  %10887 = vmatprep.subr.msk.bf16.mxu1 %vm5360_vm1, %v11377_v37 }
 0x9bb   :  { %10458 = vmatmul.mubr.bf16.vlgmr.msra.gmra.mxu0 %v11372_v14  ;;  %10438 = vmatmul.mubr.bf16.vlgmr.msra.gmra.mxu1 %v11376_v55 }
 0x9bc   :  { %10498 = vmatpush3.bf16.msra.mxu0 %v5568_v18  ;;  %10462 = vmatpush3.bf16.msra.mxu1 %v5362_v50 }
 0x9bd   :  { %10499 = vmatprep.subr.bf16.mxu0 %v11374_v0  ;;  %10463 = vmatprep.subr.bf16.mxu1 %v11378_v19 }
 0x9c0   :  { %10500 = vmatpush3.bf16.msra.mxu0 %v11374_v0  ;;  %10464 = vmatpush3.bf16.msra.mxu1 %v11378_v19 }
 0x9c1   :  { %10505 = vmatprep.subr.bf16.mxu0 %v14224_v49  ;;  %10888 = vmatprep.subr.msk.bf16.mxu1 %vm5360_vm1, %v11379_v8  ;;  %v11389_v8 = vld [vmem:[%s15015_s21 + $0x40] sm:$0xff]  }
 0xa7b   :  { %v10459_v13 = vpop.f32.mrf.mxu0  ;;  %v10439_v10 = vpop.f32.mrf.mxu1 }
 0xa7d   :  { %v5323_v59 = vpop.f32.mrf.mxu0  ;;  %v5252_v62 = vpop.f32.mrf.mxu1 }
 0xa7f   :  { %v10460_v32 = vpop.f32.mrf.mxu0  ;;  %v10440_v34 = vpop.f32.mrf.mxu1 }
 0xa80   :  { %v5339_v38 = vpack.c.bf16 %v10460_v32, %v10459_v13  ;;  %v5268_v33 = vpack.c.bf16 %v10440_v34, %v10439_v10  ;;  %v11391_v10 = vld [vmem:[%s14870_s5 + $0x44] ss:$0 sps:$4 sm:$0xff]   ;;  %v11392_v32 = vld [vmem:[%s14870_s5 + $0x3c] sm:$0xff]  }
 0xa81   :  { %v5326_v40 = vpop.f32.mrf.mxu0  ;;  %v5255_v39 = vpop.f32.mrf.mxu1 }
 0xa82   :  { %v5338_v42 = vpack.c.bf16 %v5326_v40, %v5323_v59  ;;  %v5267_v26 = vpack.c.bf16 %v5255_v39, %v5252_v62  ;;  %v11390_v59 = vld [vmem:[%s15015_s21 + $0x48] sm:$0xff]   ;;  %v5997_v62 = vsel %vm5360_vm1, %v11391_v10, 0 }
 0xa84   :  { %10465 = vmatprep.mubr.msk.bf16.mxu1 %vm5353_vm2, %v5338_v42 }
 0xa85   :  { %10466 = vmatmul.mubr.msk.bf16.vlgmr.msra.gmra.mxu1 %vm5353_vm2, %v5339_v38 }
 0xa86   :  { %10470 = vmatpush3.bf16.msra.mxu1 %v5429_v17  ;;  %10473 = vmatprep.mubr.msk.bf16.mxu1 %vm5353_vm2, %v5267_v26 }
 0xa87   :  { %10471 = vmatprep.subr.bf16.mxu1 %v11380_v46 }
 0xa8a   :  { %10472 = vmatpush3.bf16.msra.mxu1 %v11380_v46 }
 0xa8b   :  { %10477 = vmatprep.subr.bf16.mxu1 %v14224_v49 }
 0xa8d   :  { %10474 = vmatmul.mubr.msk.bf16.vlgmr.msra.gmra.mxu1 %vm5353_vm2, %v5268_v33 }
 0xa8e   :  { %10478 = vmatpush3.bf16.msra.mxu1 %v14224_v49  ;;  %10493 = vmatprep.mubr.bf16.mxu1 %v11381_v53 }
 0xa8f   :  { %10479 = vmatprep.subr.bf16.mxu1 %v14229_v23 }
 0xa92   :  { %10480 = vmatpush3.bf16.msra.mxu1 %v14229_v23 }
 0xa93   :  { %10481 = vmatprep.subr.bf16.mxu1 %v14195_v63 }
 0xa96   :  { %10482 = vmatpush3.bf16.msra.mxu1 %v14195_v63 }
 0xa97   :  { %10483 = vmatprep.subr.bf16.mxu1 %v14251_v58 }
 0xa9a   :  { %10484 = vmatpush3.bf16.msra.mxu1 %v14251_v58 }
 0xa9b   :  { %10485 = vmatprep.subr.bf16.mxu1 %v14182_v11 }
 0xa9e   :  { %10486 = vmatpush3.bf16.msra.mxu1 %v14182_v11 }
 0xa9f   :  { %10487 = vmatprep.subr.bf16.mxu1 %v14267_v52 }
 0xaa2   :  { %10488 = vmatpush3.bf16.msra.mxu1 %v14267_v52 }
 0xaa3   :  { %10489 = vmatprep.subr.bf16.mxu1 %v14172_v44 }
 0xaa6   :  { %10490 = vmatpush3.bf16.msra.mxu1 %v14172_v44 }
 0xaa7   :  { %10491 = vmatprep.subr.bf16.mxu1 %v14278_v2 }
 0xaaa   :  { %10492 = vmatpush3.bf16.msra.mxu1 %v14278_v2 }
 0xaab   :  { %10890 = vmatprep.subr.msk.bf16.mxu1 %vm5360_vm1, %v11383_v43 }
 0xaad   :  { %10494 = vmatmul.mubr.bf16.vlgmr.msra.gmra.mxu1 %v11382_v60 }
 0xaae   :  { %10526 = vmatpush3.bf16.msra.mxu1 %v5711_v21 }
 0xaaf   :  { %10527 = vmatprep.subr.bf16.mxu1 %v11384_v24 }
 0xab2   :  { %10528 = vmatpush3.bf16.msra.mxu1 %v11384_v24  ;;  %v11393_v24 = vld [vmem:[%s15015_s21 + $0x50] sm:$0xff]  }
 0xab3   :  { %10533 = vmatprep.subr.bf16.mxu1 %v14224_v49 }
 0xb45   :  { %v10467_v22 = vpop.f32.mrf.mxu1 }
 0xb47   :  { %v5398_v9 = vpop.f32.mrf.mxu1 }
 0xb49   :  { %v10468_v3 = vpop.f32.mrf.mxu1 }
 0xb4b   :  { %v5401_v25 = vpop.f32.mrf.mxu1 }
 0xb4d   :  { %v10475_v61 = vpop.f32.mrf.mxu1 }
 0xb4e   :  { %v5474_v15 = vadd.f32 %v10475_v61, %v10467_v22  ;;  %v11396_v61 = vld [vmem:[%s14870_s5 + $0x48] sm:$0xff]  }
 0xb4f   :  { %v5465_v31 = vpop.f32.mrf.mxu1 }
 0xb50   :  { %v5466_v1 = vadd.f32 %v5465_v31, %v5398_v9  ;;  %v11395_v9 = vld [vmem:[%s14870_s5 + $0x50] ss:$0 sps:$4 sm:$0xff]  }
 0xb51   :  { %v10476_v29 = vpop.f32.mrf.mxu1 }
 0xb52   :  { %v5477_v4 = vadd.f32 %v10476_v29, %v10468_v3  ;;  %v11394_v3 = vld [vmem:[%s15015_s21 + $0x58] sm:$0xff]  }
 0xb53   :  { %v5468_v30 = vpop.f32.mrf.mxu1 }
 0xb54   :  { %v5469_v35 = vadd.f32 %v5468_v30, %v5401_v25  ;;  %v6140_v25 = vsel %vm5360_vm1, %v11395_v9, 0 }
 0xb6d   :  { %v10495_v28 = vpop.f32.mrf.mxu1 }
 0xb6f   :  { %v5531_v57 = vpop.f32.mrf.mxu1 }
 0xb71   :  { %v10496_v16 = vpop.f32.mrf.mxu1 }
 0xb72   :  { %v5547_v12 = vpack.c.bf16 %v10496_v16, %v10495_v28 }
 0xb73   :  { %v5534_v27 = vpop.f32.mrf.mxu1 }
 0xb74   :  { %v5546_v6 = vpack.c.bf16 %v5534_v27, %v5531_v57 }
 0xb76   :  { %10501 = vmatprep.mubr.msk.bf16.mxu0 %vm5353_vm2, %v5546_v6 }
 0xb77   :  { %10502 = vmatmul.mubr.msk.bf16.vlgmr.msra.gmra.mxu0 %vm5353_vm2, %v5547_v12  ;;  %v11397_v12 = vld [vmem:[%s15015_s21 + $0x60] sm:$0xff]  }
 0xb78   :  { %10506 = vmatpush3.bf16.msra.mxu0 %v14224_v49  ;;  %10521 = vmatprep.mubr.bf16.mxu0 %v11385_v45 }
 0xb79   :  { %10507 = vmatprep.subr.bf16.mxu0 %v14229_v23 }
 0xb7c   :  { %10508 = vmatpush3.bf16.msra.mxu0 %v14229_v23 }
 0xb7d   :  { %10509 = vmatprep.subr.bf16.mxu0 %v14195_v63 }
 0xb80   :  { %10510 = vmatpush3.bf16.msra.mxu0 %v14195_v63 }
 0xb81   :  { %10511 = vmatprep.subr.bf16.mxu0 %v14251_v58 }
 0xb84   :  { %10512 = vmatpush3.bf16.msra.mxu0 %v14251_v58 }
 0xb85   :  { %10513 = vmatprep.subr.bf16.mxu0 %v14182_v11 }
 0xb88   :  { %10514 = vmatpush3.bf16.msra.mxu0 %v14182_v11 }
 0xb89   :  { %10515 = vmatprep.subr.bf16.mxu0 %v14267_v52 }
 0xb8c   :  { %10516 = vmatpush3.bf16.msra.mxu0 %v14267_v52 }
 0xb8d   :  { %10517 = vmatprep.subr.bf16.mxu0 %v14172_v44 }
 0xb90   :  { %10518 = vmatpush3.bf16.msra.mxu0 %v14172_v44 }
 0xb91   :  { %10519 = vmatprep.subr.bf16.mxu0 %v14278_v2 }
 0xb94   :  { %10520 = vmatpush3.bf16.msra.mxu0 %v14278_v2 }
 0xb95   :  { %10891 = vmatprep.subr.msk.bf16.mxu0 %vm5360_vm1, %v11387_v41 }
 0xb97   :  { %10522 = vmatmul.mubr.bf16.vlgmr.msra.gmra.mxu0 %v11386_v54  ;;  %v11399_v54 = vld [vmem:[%s14870_s5 + $0x5c] ss:$0 sps:$4 sm:$0xff]  }
 0xb98   :  { %10554 = vmatpush3.bf16.msra.mxu0 %v5854_v20  ;;  %v11398_v20 = vld [vmem:[%s15015_s21 + $0x68] sm:$0xff]  }
 0xb99   :  { %10555 = vmatprep.subr.bf16.mxu0 %v11388_v48 }
 0xb9c   :  { %10556 = vmatpush3.bf16.msra.mxu0 %v11388_v48  ;;  %v6283_v48 = vsel %vm5360_vm1, %v11399_v54, 0 }
 0xb9d   :  { %10561 = vmatprep.subr.bf16.mxu0 %v14224_v49 }
 0xc37   :  { %v10503_v7 = vpop.f32.mrf.mxu0 }
 0xc38   :  { %v5621_v51 = vadd.f32 %v10503_v7, %v5474_v15  ;;  %v11400_v7 = vld [vmem:[%s14870_s5 + $0x54] sm:$0xff]  }
 0xc39   :  { %v5604_v5 = vpop.f32.mrf.mxu0 }
 0xc3a   :  { %v5619_v47 = vadd.f32 %v5604_v5, %v5466_v1 }
 0xc3b   :  { %v10504_v36 = vpop.f32.mrf.mxu0 }
 0xc3c   :  { %v5622_v56 = vadd.f32 %v10504_v36, %v5477_v4 }
 0xc3d   :  { %v5607_v14 = vpop.f32.mrf.mxu0 }
 0xc3e   :  { %v5620_v55 = vadd.f32 %v5607_v14, %v5469_v35 }
 0xc57   :  { %v10523_v18 = vpop.f32.mrf.mxu0 }
 0xc59   :  { %v5674_v0 = vpop.f32.mrf.mxu0 }
 0xc5b   :  { %v10524_v37 = vpop.f32.mrf.mxu0 }
 0xc5c   :  { %v5690_v13 = vpack.c.bf16 %v10524_v37, %v10523_v18 }
 0xc5d   :  { %v5677_v50 = vpop.f32.mrf.mxu0 }
 0xc5e   :  { %v5689_v19 = vpack.c.bf16 %v5677_v50, %v5674_v0 }
 0xc60   :  { %10529 = vmatprep.mubr.msk.bf16.mxu1 %vm5353_vm2, %v5689_v19 }
 0xc61   :  { %10530 = vmatmul.mubr.msk.bf16.vlgmr.msra.gmra.mxu1 %vm5353_vm2, %v5690_v13  ;;  %v11401_v13 = vld [vmem:[%s15015_s21 + $0x70] sm:$0xff]  }
 0xc62   :  { %10534 = vmatpush3.bf16.msra.mxu1 %v14224_v49  ;;  %10549 = vmatprep.mubr.bf16.mxu1 %v11389_v8 }
 0xc63   :  { %10535 = vmatprep.subr.bf16.mxu1 %v14229_v23 }
 0xc66   :  { %10536 = vmatpush3.bf16.msra.mxu1 %v14229_v23 }
 0xc67   :  { %10537 = vmatprep.subr.bf16.mxu1 %v14195_v63 }
 0xc6a   :  { %10538 = vmatpush3.bf16.msra.mxu1 %v14195_v63 }
 0xc6b   :  { %10539 = vmatprep.subr.bf16.mxu1 %v14251_v58 }
 0xc6e   :  { %10540 = vmatpush3.bf16.msra.mxu1 %v14251_v58 }
 0xc6f   :  { %10541 = vmatprep.subr.bf16.mxu1 %v14182_v11 }
 0xc72   :  { %10542 = vmatpush3.bf16.msra.mxu1 %v14182_v11 }
 0xc73   :  { %10543 = vmatprep.subr.bf16.mxu1 %v14267_v52 }
 0xc76   :  { %10544 = vmatpush3.bf16.msra.mxu1 %v14267_v52 }
 0xc77   :  { %10545 = vmatprep.subr.bf16.mxu1 %v14172_v44 }
 0xc7a   :  { %10546 = vmatpush3.bf16.msra.mxu1 %v14172_v44 }
 0xc7b   :  { %10547 = vmatprep.subr.bf16.mxu1 %v14278_v2 }
 0xc7e   :  { %10548 = vmatpush3.bf16.msra.mxu1 %v14278_v2 }
 0xc7f   :  { %10892 = vmatprep.subr.msk.bf16.mxu1 %vm5360_vm1, %v11391_v10 }
 0xc81   :  { %10550 = vmatmul.mubr.bf16.vlgmr.msra.gmra.mxu1 %v11390_v59  ;;  %v11402_v59 = vld [vmem:[%s15015_s21 + $0x78] sm:$0xff]  }
 0xc82   :  { %10582 = vmatpush3.bf16.msra.mxu1 %v5997_v62 }
 0xc83   :  { %10583 = vmatprep.subr.bf16.mxu1 %v11392_v32 }
 0xc86   :  { %10584 = vmatpush3.bf16.msra.mxu1 %v11392_v32 }
 0xc87   :  { %10589 = vmatprep.subr.bf16.mxu1 %v14224_v49 }
 0xd21   :  { %v10531_v34 = vpop.f32.mrf.mxu1 }
 0xd22   :  { %v5764_v40 = vadd.f32 %v10531_v34, %v5621_v51 }
 0xd23   :  { %v5747_v39 = vpop.f32.mrf.mxu1 }
 0xd24   :  { %v5762_v42 = vadd.f32 %v5747_v39, %v5619_v47 }
 0xd25   :  { %v10532_v26 = vpop.f32.mrf.mxu1 }
 0xd26   :  { %v5765_v38 = vadd.f32 %v10532_v26, %v5622_v56 }
 0xd27   :  { %v5750_v17 = vpop.f32.mrf.mxu1 }
 0xd28   :  { %v5763_v46 = vadd.f32 %v5750_v17, %v5620_v55 }
 0xd41   :  { %v10551_v53 = vpop.f32.mrf.mxu1 }
 0xd43   :  { %v5817_v33 = vpop.f32.mrf.mxu1 }
 0xd45   :  { %v10552_v43 = vpop.f32.mrf.mxu1 }
 0xd46   :  { %v5833_v22 = vpack.c.bf16 %v10552_v43, %v10551_v53 }
 0xd47   :  { %v5820_v60 = vpop.f32.mrf.mxu1 }
 0xd48   :  { %v5832_v21 = vpack.c.bf16 %v5820_v60, %v5817_v33  ;;  %v11403_v60 = vld [vmem:[%s15015_s21 + $0x80] sm:$0xff]  }
 0xd4a   :  { %10557 = vmatprep.mubr.msk.bf16.mxu0 %vm5353_vm2, %v5832_v21 }
 0xd4b   :  { %10558 = vmatmul.mubr.msk.bf16.vlgmr.msra.gmra.mxu0 %vm5353_vm2, %v5833_v22 }
 0xd4c   :  { %10562 = vmatpush3.bf16.msra.mxu0 %v14224_v49  ;;  %10577 = vmatprep.mubr.bf16.mxu0 %v11393_v24 }
 0xd4d   :  { %10563 = vmatprep.subr.bf16.mxu0 %v14229_v23 }
 0xd50   :  { %10564 = vmatpush3.bf16.msra.mxu0 %v14229_v23 }
 0xd51   :  { %10565 = vmatprep.subr.bf16.mxu0 %v14195_v63 }
 0xd54   :  { %10566 = vmatpush3.bf16.msra.mxu0 %v14195_v63 }
 0xd55   :  { %10567 = vmatprep.subr.bf16.mxu0 %v14251_v58 }
 0xd58   :  { %10568 = vmatpush3.bf16.msra.mxu0 %v14251_v58 }
 0xd59   :  { %10569 = vmatprep.subr.bf16.mxu0 %v14182_v11 }
 0xd5c   :  { %10570 = vmatpush3.bf16.msra.mxu0 %v14182_v11 }
 0xd5d   :  { %10571 = vmatprep.subr.bf16.mxu0 %v14267_v52 }
 0xd60   :  { %10572 = vmatpush3.bf16.msra.mxu0 %v14267_v52 }
 0xd61   :  { %10573 = vmatprep.subr.bf16.mxu0 %v14172_v44 }
 0xd64   :  { %10574 = vmatpush3.bf16.msra.mxu0 %v14172_v44 }
 0xd65   :  { %10575 = vmatprep.subr.bf16.mxu0 %v14278_v2 }
 0xd68   :  { %10576 = vmatpush3.bf16.msra.mxu0 %v14278_v2 }
 0xd69   :  { %10893 = vmatprep.subr.msk.bf16.mxu0 %vm5360_vm1, %v11395_v9 }
 0xd6b   :  { %10578 = vmatmul.mubr.bf16.vlgmr.msra.gmra.mxu0 %v11394_v3 }
 0xd6c   :  { %10610 = vmatpush3.bf16.msra.mxu0 %v6140_v25 }
 0xd6d   :  { %10611 = vmatprep.subr.bf16.mxu0 %v11396_v61 }
 0xd70   :  { %10612 = vmatpush3.bf16.msra.mxu0 %v11396_v61 }
 0xd71   :  { %10617 = vmatprep.subr.bf16.mxu0 %v14224_v49 }
 0xe0b   :  { %v10559_v15 = vpop.f32.mrf.mxu0 }
 0xe0c   :  { %v5907_v31 = vadd.f32 %v10559_v15, %v5764_v40 }
 0xe0d   :  { %v5890_v1 = vpop.f32.mrf.mxu0 }
 0xe0e   :  { %v5905_v29 = vadd.f32 %v5890_v1, %v5762_v42 }
 0xe0f   :  { %v10560_v4 = vpop.f32.mrf.mxu0 }
 0xe10   :  { %v5908_v30 = vadd.f32 %v10560_v4, %v5765_v38  ;;  %v11549_v4 = vmov 0.0  }
 0xe11   :  { %v5893_v35 = vpop.f32.mrf.mxu0 }
 0xe12   :  { %v5906_v28 = vadd.f32 %v5893_v35, %v5763_v46 }
 0xe2b   :  { %v10579_v57 = vpop.f32.mrf.mxu0 }
 0xe2d   :  { %v5960_v16 = vpop.f32.mrf.mxu0 }
 0xe2f   :  { %v10580_v27 = vpop.f32.mrf.mxu0 }
 0xe30   :  { %v5976_v41 = vpack.c.bf16 %v10580_v27, %v10579_v57 }
 0xe31   :  { %v5963_v6 = vpop.f32.mrf.mxu0 }
 0xe32   :  { %v5975_v45 = vpack.c.bf16 %v5963_v6, %v5960_v16 }
 0xe34   :  { %10585 = vmatprep.mubr.msk.bf16.mxu1 %vm5353_vm2, %v5975_v45 }
 0xe35   :  { %10586 = vmatmul.mubr.msk.bf16.vlgmr.msra.gmra.mxu1 %vm5353_vm2, %v5976_v41 }
 0xe36   :  { %10590 = vmatpush3.bf16.msra.mxu1 %v14224_v49  ;;  %10605 = vmatprep.mubr.bf16.mxu1 %v11397_v12 }
 0xe37   :  { %10591 = vmatprep.subr.bf16.mxu1 %v14229_v23 }
 0xe3a   :  { %10592 = vmatpush3.bf16.msra.mxu1 %v14229_v23 }
 0xe3b   :  { %10593 = vmatprep.subr.bf16.mxu1 %v14195_v63 }
 0xe3e   :  { %10594 = vmatpush3.bf16.msra.mxu1 %v14195_v63 }
 0xe3f   :  { %10595 = vmatprep.subr.bf16.mxu1 %v14251_v58 }
 0xe42   :  { %10596 = vmatpush3.bf16.msra.mxu1 %v14251_v58 }
 0xe43   :  { %10597 = vmatprep.subr.bf16.mxu1 %v14182_v11 }
 0xe46   :  { %10598 = vmatpush3.bf16.msra.mxu1 %v14182_v11 }
 0xe47   :  { %10599 = vmatprep.subr.bf16.mxu1 %v14267_v52 }
 0xe4a   :  { %10600 = vmatpush3.bf16.msra.mxu1 %v14267_v52 }
 0xe4b   :  { %10601 = vmatprep.subr.bf16.mxu1 %v14172_v44 }
 0xe4e   :  { %10602 = vmatpush3.bf16.msra.mxu1 %v14172_v44 }
 0xe4f   :  { %10603 = vmatprep.subr.bf16.mxu1 %v14278_v2 }
 0xe52   :  { %10604 = vmatpush3.bf16.msra.mxu1 %v14278_v2 }
 0xe53   :  { %10894 = vmatprep.subr.msk.bf16.mxu1 %vm5360_vm1, %v11399_v54 }
 0xe55   :  { %10606 = vmatmul.mubr.bf16.vlgmr.msra.gmra.mxu1 %v11398_v20 }
 0xe56   :  { %10638 = vmatpush3.bf16.msra.mxu1 %v6283_v48 }
 0xe57   :  { %10639 = vmatprep.subr.bf16.mxu1 %v11400_v7 }
 0xe5a   :  { %10640 = vmatpush3.bf16.msra.mxu1 %v11400_v7 }
 0xe5b   :  { %10645 = vmatprep.subr.bf16.mxu1 %v14224_v49 }
 0xef5   :  { %v10587_v51 = vpop.f32.mrf.mxu1 }
 0xef6   :  { %v6050_v5 = vadd.f32 %v10587_v51, %v5907_v31 }
 0xef7   :  { %v6033_v47 = vpop.f32.mrf.mxu1 }
 0xef8   :  { %v6048_v36 = vadd.f32 %v6033_v47, %v5905_v29 }
 0xef9   :  { %v10588_v56 = vpop.f32.mrf.mxu1 }
 0xefa   :  { %v6051_v14 = vadd.f32 %v10588_v56, %v5908_v30 }
 0xefb   :  { %v6036_v55 = vpop.f32.mrf.mxu1 }
 0xefc   :  { %v6049_v18 = vadd.f32 %v6036_v55, %v5906_v28  ;;  %v8706_v28 = vld [vmem:[%s14872_s6] ss:$0 sm:$0xff]  ;;  %v8708_v55 = vld [vmem:[%s14873_s7 + $0x4] sm:$0xf] }
 0xf15   :  { %v10607_v0 = vpop.f32.mrf.mxu1 }
 0xf17   :  { %v6103_v37 = vpop.f32.mrf.mxu1 }
 0xf19   :  { %v10608_v50 = vpop.f32.mrf.mxu1 }
 0xf1a   :  { %v6119_v10 = vpack.c.bf16 %v10608_v50, %v10607_v0  ;;  %v11410_v0 = vld [vmem:[%s14874_s8] sm:$0xff]   ;;  %v11408_v50 = vld [vmem:[%s14874_s8 + $0x10] sm:$0xff]  }
 0xf1b   :  { %v6106_v19 = vpop.f32.mrf.mxu1 }
 0xf1c   :  { %v6118_v8 = vpack.c.bf16 %v6106_v19, %v6103_v37  ;;  %v11407_v37 = vld [vmem:[%s14874_s8 + $0x18] sm:$0xff]  }
 0xf1e   :  { %10613 = vmatprep.mubr.msk.bf16.mxu0 %vm5353_vm2, %v6118_v8 }
 0xf1f   :  { %10614 = vmatmul.mubr.msk.bf16.vlgmr.msra.gmra.mxu0 %vm5353_vm2, %v6119_v10 }
 0xf20   :  { %10618 = vmatpush3.bf16.msra.mxu0 %v14224_v49  ;;  %10633 = vmatprep.mubr.bf16.mxu0 %v11401_v13 }
 0xf21   :  { %10619 = vmatprep.subr.bf16.mxu0 %v14229_v23 }
 0xf24   :  { %10620 = vmatpush3.bf16.msra.mxu0 %v14229_v23 }
 0xf25   :  { %10621 = vmatprep.subr.bf16.mxu0 %v14195_v63 }
 0xf28   :  { %10622 = vmatpush3.bf16.msra.mxu0 %v14195_v63 }
 0xf29   :  { %10623 = vmatprep.subr.bf16.mxu0 %v14251_v58 }
 0xf2c   :  { %10624 = vmatpush3.bf16.msra.mxu0 %v14251_v58 }
 0xf2d   :  { %10625 = vmatprep.subr.bf16.mxu0 %v14182_v11 }
 0xf30   :  { %10626 = vmatpush3.bf16.msra.mxu0 %v14182_v11 }
 0xf31   :  { %10627 = vmatprep.subr.bf16.mxu0 %v14267_v52 }
 0xf34   :  { %10628 = vmatpush3.bf16.msra.mxu0 %v14267_v52 }
 0xf35   :  { %10629 = vmatprep.subr.bf16.mxu0 %v14172_v44 }
 0xf38   :  { %10630 = vmatpush3.bf16.msra.mxu0 %v14172_v44 }
 0xf39   :  { %10631 = vmatprep.subr.bf16.mxu0 %v14278_v2 }
 0xf3c   :  { %10632 = vmatpush3.bf16.msra.mxu0 %v14278_v2 }
 0xf3f   :  { %10634 = vmatmul.mubr.bf16.vlgmr.msra.gmra.mxu0 %v11402_v59 }
 0xfdf   :  { %v10615_v62 = vpop.f32.mrf.mxu0 }
 0xfe0   :  { %v6193_v32 = vadd.f32 %v10615_v62, %v6050_v5 }
 0xfe1   :  { %v6176_v34 = vpop.f32.mrf.mxu0 }
 0xfe2   :  { %v6191_v40 = vadd.f32 %v6176_v34, %v6048_v36 }
 0xfe3   :  { %v10616_v39 = vpop.f32.mrf.mxu0 }
 0xfe4   :  { %v6194_v42 = vadd.f32 %v10616_v39, %v6051_v14  ;;  %v6498_v14 = vld [vmem:[%s14873_s7] sm:$0xf] }
 0xfe5   :  { %v6179_v26 = vpop.f32.mrf.mxu0 }
 0xfe6   :  { %v6192_v38 = vadd.f32 %v6179_v26, %v6049_v18  ;;  %v11409_v18 = vld [vmem:[%s14874_s8 + $0x8] sm:$0xff]  }
 0xfe7   :  { %v8729_v26 = vld [vmem:[%s14873_s7 + $0xc] sm:$0xf] }
 0xfff   :  { %v10635_v17 = vpop.f32.mrf.mxu0 }
0x1001   :  { %v6246_v46 = vpop.f32.mrf.mxu0 }
0x1003   :  { %v10636_v53 = vpop.f32.mrf.mxu0 }
0x1004   :  { %v6262_v21 = vpack.c.bf16 %v10636_v53, %v10635_v17  ;;  %v8747_v17 = vld [vmem:[%s14873_s7 + $0x14] sm:$0xf]  ;;  %v8765_v53 = vld [vmem:[%s14873_s7 + $0x1c] sm:$0xf] }
0x1005   :  { %v6249_v33 = vpop.f32.mrf.mxu0 }
0x1006   :  { %v6261_v43 = vpack.c.bf16 %v6249_v33, %v6246_v46  ;;  %v8756_v46 = vld [vmem:[%s14873_s7 + $0x18] sm:$0xf]  ;;  %v8774_v33 = vld [vmem:[%s14873_s7 + $0x20] sm:$0xf] }
0x1008   :  { %10641 = vmatprep.mubr.msk.bf16.mxu1 %vm5353_vm2, %v6261_v43  ;;  %v11411_v43 = vld [vmem:[%s14874_s8 + $0x28] sm:$0xff]  }
0x1009   :  { %10642 = vmatmul.mubr.msk.bf16.vlgmr.msra.gmra.mxu1 %vm5353_vm2, %v6262_v21 }
0x100a   :  { %10646 = vmatpush3.bf16.msra.mxu1 %v14224_v49  ;;  %10661 = vmatprep.mubr.bf16.mxu1 %v11403_v60  ;;  %v11412_v60 = vld [vmem:[%s14874_s8 + $0x20] sm:$0xff]  }
0x100b   :  { %10647 = vmatprep.subr.bf16.mxu1 %v14229_v23 }
0x100e   :  { %10648 = vmatpush3.bf16.msra.mxu1 %v14229_v23 }
0x100f   :  { %10649 = vmatprep.subr.bf16.mxu1 %v14195_v63 }
0x1012   :  { %10650 = vmatpush3.bf16.msra.mxu1 %v14195_v63  ;;  %v11404_v63 = vld [vmem:[%s15015_s21 + $0x88] sm:$0xff]  }
0x1013   :  { %10651 = vmatprep.subr.bf16.mxu1 %v14251_v58 }
0x1016   :  { %10652 = vmatpush3.bf16.msra.mxu1 %v14251_v58 }
0x1017   :  { %10653 = vmatprep.subr.bf16.mxu1 %v14182_v11 }
0x101a   :  { %10654 = vmatpush3.bf16.msra.mxu1 %v14182_v11  ;;  %v11405_v11 = vld [vmem:[%s14870_s5 + $0x68] ss:$0 sps:$4 sm:$0xff]  }
0x101b   :  { %10655 = vmatprep.subr.bf16.mxu1 %v14267_v52  ;;  %10895 = vmatprep.subr.msk.bf16.mxu0 %vm5360_vm1, %v11405_v11  ;;  %v6426_v49 = vsel %vm5360_vm1, %v11405_v11, 0 }
0x101c   :  { %10666 = vmatpush3.bf16.msra.mxu0 %v6426_v49 }
0x101e   :  { %10656 = vmatpush3.bf16.msra.mxu1 %v14267_v52 }
0x101f   :  { %10657 = vmatprep.subr.bf16.mxu1 %v14172_v44 }
0x1022   :  { %10658 = vmatpush3.bf16.msra.mxu1 %v14172_v44  ;;  %v11406_v44 = vld [vmem:[%s14870_s5 + $0x60] sm:$0xff]  }
0x1023   :  { %10659 = vmatprep.subr.bf16.mxu1 %v14278_v2  ;;  %10667 = vmatprep.subr.bf16.mxu0 %v11406_v44 }
0x1024   :  { %10668 = vmatpush3.bf16.msra.mxu0 %v11406_v44 }
0x1025   :  { %10673 = vmatprep.subr.bf16.mxu0 %v11549_v4 }
0x1026   :  { %10660 = vmatpush3.bf16.msra.mxu1 %v14278_v2 }
0x1027   :  { %10689 = vmatprep.subr.bf16.mxu1 %v11549_v4 }
0x1029   :  { %10662 = vmatmul.mubr.bf16.vlgmr.msra.gmra.mxu1 %v11404_v63 }
0x102a   :  { %10693 = vmatprep.mubr.msk.bf16.mxu1 %vm11550_vm3, %v11549_v4  ;;  %10690 = vmatpush3.bf16.msra.mxu1 %v11407_v37  ;;  %v11422_v37 = vld [vmem:[%s14874_s8 + $0x70] sm:$0xff]  }
0x102b   :  { %10691 = vmatprep.subr.bf16.mxu1 %v11549_v4 }
0x102e   :  { %10692 = vmatpush3.bf16.msra.mxu1 %v11408_v50 }
0x102f   :  { %10705 = vmatprep.subr.bf16.mxu1 %v11549_v4 }
0x10c9   :  { %v10643_v23 = vpop.f32.mrf.mxu1 }
0x10ca   :  { %v6336_v58 = vadd.f32 %v10643_v23, %v6193_v32 }
0x10cb   :  { %v6319_v52 = vpop.f32.mrf.mxu1 }
0x10cc   :  { %v6334_v2 = vadd.f32 %v6319_v52, %v6191_v40 }
0x10cd   :  { %v10644_v24 = vpop.f32.mrf.mxu1 }
0x10ce   :  { %v6337_v22 = vadd.f32 %v10644_v24, %v6194_v42  ;;  %v8720_v42 = vld [vmem:[%s14873_s7 + $0x8] sm:$0xf] }
0x10cf   :  { %v6322_v9 = vpop.f32.mrf.mxu1 }
0x10d0   :  { %v6335_v3 = vadd.f32 %v6322_v9, %v6192_v38  ;;  %v8738_v38 = vld [vmem:[%s14873_s7 + $0x10] sm:$0xf] }
0x10e9   :  { %v10663_v25 = vpop.f32.mrf.mxu1 }
0x10eb   :  { %v6389_v61 = vpop.f32.mrf.mxu1 }
0x10ed   :  { %v10664_v15 = vpop.f32.mrf.mxu1 }
0x10ee   :  { %v6405_v29 = vpack.c.bf16 %v10664_v15, %v10663_v25 }
0x10ef   :  { %v6392_v31 = vpop.f32.mrf.mxu1 }
0x10f0   :  { %v6404_v1 = vpack.c.bf16 %v6392_v31, %v6389_v61  ;;  %v11414_v61 = vld [vmem:[%s14874_s8 + $0x30] sm:$0xff]  }
0x10f2   :  { %10669 = vmatprep.mubr.msk.bf16.mxu0 %vm5353_vm2, %v6404_v1  ;;  %v11415_v1 = vld [vmem:[%s14874_s8 + $0x48] sm:$0xff]  }
0x10f3   :  { %10670 = vmatmul.mubr.msk.bf16.vlgmr.msra.gmra.mxu0 %vm5353_vm2, %v6405_v29 }
0x10f4   :  { %10677 = vmatprep.mubr.msk.bf16.mxu0 %vm11550_vm3, %v11549_v4 }
0x11b3   :  { %v10671_v30 = vpop.f32.mrf.mxu0 }
0x11b4   :  { %v6479_v35 = vadd.f32 %v10671_v30, %v6336_v58 }
0x11b5   :  { %v6462_v57 = vpop.f32.mrf.mxu0 }
0x11b6   :  { %v6477_v16 = vadd.f32 %v6462_v57, %v6334_v2  ;;  %v6490_v6 = vadd.f32 %v8706_v28, %v6479_v35 }
0x11b7   :  { %v10672_v27 = vpop.f32.mrf.mxu0 }
0x11b8   :  { %v6480_v45 = vadd.f32 %v10672_v27, %v6337_v22  ;;  %v6488_v41 = vadd.f32 %v8706_v28, %v6477_v16  ;;  %v6494_v48 = vmax.f32 %v6490_v6, 0.0  ;;  %v11413_v22 = vld [vmem:[%s14874_s8 + $0x38] sm:$0xff]  }
0x11b9   :  { %v6465_v12 = vpop.f32.mrf.mxu0  ;;  %v11417_v27 = vld [vmem:[%s14874_s8 + $0x58] sm:$0xff]  }
0x11ba   :  { %v6491_v54 = vadd.f32 %v8706_v28, %v6480_v45  ;;  %v6478_v20 = vadd.f32 %v6465_v12, %v6335_v3  ;;  %v6492_v5 = vmax.f32 %v6488_v41, 0.0  ;;  %v11418_v41 = vld [vmem:[%s14874_s8 + $0x50] sm:$0xff]  }
0x11bc   :  { %v6495_v7 = vmax.f32 %v6491_v54, 0.0  ;;  %v6489_v51 = vadd.f32 %v8706_v28, %v6478_v20  ;;  %v11416_v28 = vld [vmem:[%s14874_s8 + $0x40] sm:$0xff]  }
0x11be   :  { %v14545_v47 = vpack.c.bf16 %v6495_v7, %v6494_v48  ;;  %v6493_v36 = vmax.f32 %v6489_v51, 0.0  ;;  %v11419_v48 = vld [vmem:[%s14874_s8 + $0x68] sm:$0xff]  }
0x11c0   :  { %v14547_v56 = vpack.c.bf16 %v6493_v36, %v6492_v5  ;;  %10674 = vmatpush3.bf16.msra.mxu0 %v14545_v47 }
0x11c1   :  { %10675 = vmatprep.subr.bf16.mxu0 %v11549_v4 }
0x11c4   :  { %10676 = vmatpush3.bf16.msra.mxu0 %v14547_v56 }
0x11c5   :  { %10681 = vmatprep.subr.bf16.mxu0 %v11549_v4 }
0x11c7   :  { %10678 = vmatmul.mubr.msk.bf16.vlgmr.msra.gmra.mxu0 %vm6499_vm4, %v6498_v14  ;;  %v11421_v14 = vld [vmem:[%s14874_s8 + $0x78] sm:$0xff]  }
0x11c8   :  { %10682 = vmatpush3.bf16.msra.mxu0 %v14545_v47  ;;  %10685 = vmatprep.mubr.msk.bf16.mxu0 %vm11550_vm3, %v11549_v4 }
0x11c9   :  { %10683 = vmatprep.subr.bf16.mxu0 %v11549_v4 }
0x11cc   :  { %10684 = vmatpush3.bf16.msra.mxu0 %v14547_v56 }
0x11cd   :  { %10697 = vmatprep.subr.bf16.mxu0 %v11549_v4 }
0x11cf   :  { %10686 = vmatmul.mubr.msk.bf16.vlgmr.msra.gmra.mxu0 %vm6499_vm4, %v8708_v55 }
0x11d0   :  { %10701 = vmatprep.mubr.msk.bf16.mxu0 %vm11550_vm3, %v11549_v4  ;;  %10698 = vmatpush3.bf16.msra.mxu0 %v11409_v18 }
0x11d1   :  { %10699 = vmatprep.subr.bf16.mxu0 %v11549_v4 }
0x11d4   :  { %10700 = vmatpush3.bf16.msra.mxu0 %v11410_v0 }
0x11d5   :  { %10713 = vmatprep.subr.bf16.mxu0 %v11549_v4 }
0x1287   :  { %v6537_v19 = vpop.f32.mrf.mxu0 }
0x1288   :  { %v6543_v8 = vpack.c.bf16 %v6537_v19, %v6537_v19 }
0x1289   :  { %v10679_v13 = vpop.f32.mrf.mxu0 }
0x128a   :  { %10702 = vmatmul.mubr.msk.bf16.vlgmr.msra.gmra.mxu0 %vm6499_vm4, %v6543_v8  ;;  %v11423_v8 = vld [vmem:[%s14874_s8 + $0x88] sm:$0xff]  }
0x128b   :  { %v6540_v10 = vpop.f32.mrf.mxu0  ;;  %10717 = vmatprep.mubr.msk.bf16.mxu0 %vm11550_vm3, %v11549_v4  ;;  %10714 = vmatpush3.bf16.msra.mxu0 %v11411_v43  ;;  %v11430_v43 = vld [vmem:[%s14876_s12 + $0x30] sm:$0xff]  }
0x128c   :  { %10715 = vmatprep.subr.bf16.mxu0 %v11549_v4 }
0x128d   :  { %v10680_v59 = vpop.f32.mrf.mxu0 }
0x128f   :  { %v6587_v62 = vpop.f32.mrf.mxu0  ;;  %10716 = vmatpush3.bf16.msra.mxu0 %v11412_v60  ;;  %v11431_v60 = vld [vmem:[%s14876_s12 + $0x28] sm:$0xff]  }
0x1290   :  { %v6593_v32 = vpack.c.bf16 %v6587_v62, %v6587_v62  ;;  %10729 = vmatprep.subr.bf16.mxu0 %v11549_v4  ;;  %v11424_v62 = vld [vmem:[%s14874_s8 + $0x80] sm:$0xff]  }
0x1291   :  { %v10687_v34 = vpop.f32.mrf.mxu0 }
0x1292   :  { %10694 = vmatmul.mubr.msk.bf16.vlgmr.msra.gmra.mxu1 %vm6499_vm4, %v6593_v32 }
0x1293   :  { %10706 = vmatpush3.bf16.msra.mxu1 %v14545_v47  ;;  %10709 = vmatprep.mubr.msk.bf16.mxu1 %vm11550_vm3, %v11549_v4  ;;  %v6590_v40 = vpop.f32.mrf.mxu0 }
0x1294   :  { %10707 = vmatprep.subr.bf16.mxu1 %v11549_v4 }
0x1295   :  { %v10688_v39 = vpop.f32.mrf.mxu0 }
0x1297   :  { %10708 = vmatpush3.bf16.msra.mxu1 %v14547_v56 }
0x1298   :  { %10721 = vmatprep.subr.bf16.mxu1 %v11549_v4 }
0x129a   :  { %10710 = vmatmul.mubr.msk.bf16.vlgmr.msra.gmra.mxu1 %vm6499_vm4, %v8720_v42 }
0x129b   :  { %10722 = vmatpush3.bf16.msra.mxu1 %v14545_v47  ;;  %10725 = vmatprep.mubr.msk.bf16.mxu1 %vm11550_vm3, %v11549_v4 }
0x129c   :  { %10723 = vmatprep.subr.bf16.mxu1 %v11549_v4 }
0x129f   :  { %10724 = vmatpush3.bf16.msra.mxu1 %v14547_v56 }
0x12a0   :  { %10737 = vmatprep.subr.bf16.mxu1 %v11549_v4 }
0x12a2   :  { %10726 = vmatmul.mubr.msk.bf16.vlgmr.msra.gmra.mxu1 %vm6499_vm4, %v8729_v26 }
0x12a3   :  { %10738 = vmatpush3.bf16.msra.mxu1 %v14545_v47  ;;  %10741 = vmatprep.mubr.msk.bf16.mxu1 %vm11550_vm3, %v11549_v4 }
0x12a4   :  { %10739 = vmatprep.subr.bf16.mxu1 %v11549_v4 }
0x12a7   :  { %10740 = vmatpush3.bf16.msra.mxu1 %v14547_v56 }
0x12a8   :  { %10753 = vmatprep.subr.bf16.mxu1 %v11549_v4 }
0x12aa   :  { %10742 = vmatmul.mubr.msk.bf16.vlgmr.msra.gmra.mxu1 %vm6499_vm4, %v8738_v38  ;;  %v11425_v38 = vld [vmem:[%s14875_s10 + $0x18] sm:$0xff]  }
0x12ab   :  { %10754 = vmatpush3.bf16.msra.mxu1 %v14545_v47  ;;  %10757 = vmatprep.mubr.msk.bf16.mxu1 %vm11550_vm3, %v11549_v4 }
0x12ac   :  { %10755 = vmatprep.subr.bf16.mxu1 %v11549_v4 }
0x12af   :  { %10756 = vmatpush3.bf16.msra.mxu1 %v14547_v56 }
0x12b0   :  { %10769 = vmatprep.subr.bf16.mxu1 %v11549_v4 }
0x12b2   :  { %10758 = vmatmul.mubr.msk.bf16.vlgmr.msra.gmra.mxu1 %vm6499_vm4, %v8747_v17  ;;  %v11426_v17 = vld [vmem:[%s14875_s10 + $0x10] sm:$0xff]  }
0x12b3   :  { %10770 = vmatpush3.bf16.msra.mxu1 %v14545_v47  ;;  %10773 = vmatprep.mubr.msk.bf16.mxu1 %vm11550_vm3, %v11549_v4 }
0x12b4   :  { %10771 = vmatprep.subr.bf16.mxu1 %v11549_v4 }
0x12b7   :  { %10772 = vmatpush3.bf16.msra.mxu1 %v14547_v56 }
0x12b8   :  { %10785 = vmatprep.subr.bf16.mxu1 %v11549_v4 }
0x12ba   :  { %10774 = vmatmul.mubr.msk.bf16.vlgmr.msra.gmra.mxu1 %vm6499_vm4, %v8756_v46  ;;  %v11427_v46 = vld [vmem:[%s14875_s10 + $0x8] sm:$0xff]  }
0x12bb   :  { %10786 = vmatpush3.bf16.msra.mxu1 %v14545_v47  ;;  %10789 = vmatprep.mubr.msk.bf16.mxu1 %vm11550_vm3, %v11549_v4 }
0x12bc   :  { %10787 = vmatprep.subr.bf16.mxu1 %v11549_v4 }
0x12bf   :  { %10788 = vmatpush3.bf16.msra.mxu1 %v14547_v56 }
0x12c0   :  { %10801 = vmatprep.subr.bf16.mxu1 %v11549_v4 }
0x12c2   :  { %10790 = vmatmul.mubr.msk.bf16.vlgmr.msra.gmra.mxu1 %vm6499_vm4, %v8765_v53  ;;  %v11428_v53 = vld [vmem:[%s14875_s10] sm:$0xff]  }
0x12c3   :  { %10802 = vmatpush3.bf16.msra.mxu1 %v14545_v47  ;;  %10805 = vmatprep.mubr.msk.bf16.mxu1 %vm11550_vm3, %v11549_v4  ;;  %v11420_v47 = vld [vmem:[%s14874_s8 + $0x60] sm:$0xff]  }
0x12c4   :  { %10803 = vmatprep.subr.bf16.mxu1 %v11549_v4 }
0x12c7   :  { %10804 = vmatpush3.bf16.msra.mxu1 %v14547_v56 }
0x12c8   :  { %10817 = vmatprep.subr.bf16.mxu1 %v11549_v4 }
0x12ca   :  { %10806 = vmatmul.mubr.msk.bf16.vlgmr.msra.gmra.mxu1 %vm6499_vm4, %v8774_v33  ;;  %v11429_v33 = vld [vmem:[%s14876_s12 + $0x38] sm:$0xff]  }
0x12cb   :  { %10825 = vmatprep.mubr.msk.bf16.mxu1 %vm11550_vm3, %v11549_v4  ;;  %10818 = vmatpush3.bf16.msra.mxu1 %v11425_v38 }
0x12cc   :  { %10819 = vmatprep.subr.bf16.mxu1 %v11549_v4 }
0x12cf   :  { %10820 = vmatpush3.bf16.msra.mxu1 %v11426_v17 }
0x12d0   :  { %10821 = vmatprep.subr.bf16.mxu1 %v11549_v4 }
0x12d3   :  { %10822 = vmatpush3.bf16.msra.mxu1 %v11427_v46 }
0x12d4   :  { %10823 = vmatprep.subr.bf16.mxu1 %v11549_v4 }
0x12d7   :  { %10824 = vmatpush3.bf16.msra.mxu1 %v11428_v53 }
0x12d8   :  { %10849 = vmatprep.subr.bf16.mxu1 %v11549_v4 }
0x134a   :  { %v6703_v21 = vpop.f32.mrf.mxu0 }
0x134c   :  { %v10703_v63 = vpop.f32.mrf.mxu0 }
0x134d   :  { %v11433_v63 = vld [vmem:[%s14876_s12 + $0x18] sm:$0xff]  }
0x134e   :  { %v6706_v11 = vpop.f32.mrf.mxu0 }
0x134f   :  { %v11434_v11 = vld [vmem:[%s14876_s12 + $0x10] sm:$0xff]  }
0x1350   :  { %v10704_v49 = vpop.f32.mrf.mxu0 }
0x1352   :  { %v6648_v44 = vpop.f32.mrf.mxu1 }
0x1353   :  { %v14669_v23 = vadd.f32 %v6703_v21, %v6648_v44  ;;  %v11432_v21 = vld [vmem:[%s14876_s12 + $0x20] sm:$0xff]  }
0x1354   :  { %v10695_v58 = vpop.f32.mrf.mxu1 }
0x1356   :  { %v6651_v52 = vpop.f32.mrf.mxu1 }
0x1358   :  { %v10696_v2 = vpop.f32.mrf.mxu1 }
0x135a   :  { %v6748_v24 = vpop.f32.mrf.mxu1 }
0x135b   :  { %v6754_v9 = vpack.c.bf16 %v6748_v24, %v6748_v24 }
0x135c   :  { %v10711_v3 = vpop.f32.mrf.mxu1 }
0x135d   :  { %10718 = vmatmul.mubr.msk.bf16.vlgmr.msra.gmra.mxu0 %vm6499_vm4, %v6754_v9 }
0x135e   :  { %v6751_v25 = vpop.f32.mrf.mxu1  ;;  %10730 = vmatpush3.bf16.msra.mxu0 %v11413_v22  ;;  %10733 = vmatprep.mubr.msk.bf16.mxu0 %vm11550_vm3, %v11549_v4 }
0x135f   :  { %10731 = vmatprep.subr.bf16.mxu0 %v11549_v4 }
0x1360   :  { %v10712_v15 = vpop.f32.mrf.mxu1 }
0x1362   :  { %v6855_v31 = vpop.f32.mrf.mxu1  ;;  %10732 = vmatpush3.bf16.msra.mxu0 %v11414_v61 }
0x1363   :  { %v6861_v29 = vpack.c.bf16 %v6855_v31, %v6855_v31  ;;  %10745 = vmatprep.subr.bf16.mxu0 %v11549_v4 }
0x1364   :  { %v10727_v30 = vpop.f32.mrf.mxu1 }
0x1365   :  { %10734 = vmatmul.mubr.msk.bf16.vlgmr.msra.gmra.mxu0 %vm6499_vm4, %v6861_v29 }
0x1366   :  { %v6858_v35 = vpop.f32.mrf.mxu1  ;;  %10746 = vmatpush3.bf16.msra.mxu0 %v11415_v1  ;;  %10749 = vmatprep.mubr.msk.bf16.mxu0 %vm11550_vm3, %v11549_v4 }
0x1367   :  { %10747 = vmatprep.subr.bf16.mxu0 %v11549_v4 }
0x1368   :  { %v10728_v57 = vpop.f32.mrf.mxu1 }
0x136a   :  { %v6962_v16 = vpop.f32.mrf.mxu1  ;;  %10748 = vmatpush3.bf16.msra.mxu0 %v11416_v28 }
0x136b   :  { %v6968_v6 = vpack.c.bf16 %v6962_v16, %v6962_v16  ;;  %10761 = vmatprep.subr.bf16.mxu0 %v11549_v4 }
0x136c   :  { %v10743_v45 = vpop.f32.mrf.mxu1 }
0x136d   :  { %10750 = vmatmul.mubr.msk.bf16.vlgmr.msra.gmra.mxu0 %vm6499_vm4, %v6968_v6 }
0x136e   :  { %v6965_v12 = vpop.f32.mrf.mxu1  ;;  %10762 = vmatpush3.bf16.msra.mxu0 %v11417_v27  ;;  %10765 = vmatprep.mubr.msk.bf16.mxu0 %vm11550_vm3, %v11549_v4 }
0x136f   :  { %10763 = vmatprep.subr.bf16.mxu0 %v11549_v4 }
0x1370   :  { %v10744_v54 = vpop.f32.mrf.mxu1 }
0x1372   :  { %v7069_v20 = vpop.f32.mrf.mxu1  ;;  %10764 = vmatpush3.bf16.msra.mxu0 %v11418_v41 }
0x1373   :  { %v7075_v7 = vpack.c.bf16 %v7069_v20, %v7069_v20  ;;  %10777 = vmatprep.subr.bf16.mxu0 %v11549_v4 }
0x1374   :  { %v10759_v51 = vpop.f32.mrf.mxu1 }
0x1375   :  { %10766 = vmatmul.mubr.msk.bf16.vlgmr.msra.gmra.mxu0 %vm6499_vm4, %v7075_v7 }
0x1376   :  { %v7072_v5 = vpop.f32.mrf.mxu1  ;;  %10778 = vmatpush3.bf16.msra.mxu0 %v11419_v48  ;;  %10781 = vmatprep.mubr.msk.bf16.mxu0 %vm11550_vm3, %v11549_v4 }
0x1377   :  { %10779 = vmatprep.subr.bf16.mxu0 %v11549_v4 }
0x1378   :  { %v10760_v36 = vpop.f32.mrf.mxu1 }
0x137a   :  { %v7176_v56 = vpop.f32.mrf.mxu1  ;;  %10780 = vmatpush3.bf16.msra.mxu0 %v11420_v47  ;;  %v8783_v47 = vld [vmem:[%s14877_s9] ss:$0 sm:$0xff] }
0x137b   :  { %v7182_v55 = vpack.c.bf16 %v7176_v56, %v7176_v56  ;;  %10793 = vmatprep.subr.bf16.mxu0 %v11549_v4 }
0x137c   :  { %v10775_v18 = vpop.f32.mrf.mxu1 }
0x137d   :  { %10782 = vmatmul.mubr.msk.bf16.vlgmr.msra.gmra.mxu0 %vm6499_vm4, %v7182_v55 }
0x137e   :  { %v7179_v0 = vpop.f32.mrf.mxu1  ;;  %10794 = vmatpush3.bf16.msra.mxu0 %v11421_v14  ;;  %10797 = vmatprep.mubr.msk.bf16.mxu0 %vm11550_vm3, %v11549_v4 }
0x137f   :  { %10795 = vmatprep.subr.bf16.mxu0 %v11549_v4 }
0x1380   :  { %v10776_v50 = vpop.f32.mrf.mxu1 }
0x1381   :  { %v11436_v50 = vld [vmem:[%s14876_s12] sm:$0xff]  }
0x1382   :  { %v7283_v19 = vpop.f32.mrf.mxu1  ;;  %10796 = vmatpush3.bf16.msra.mxu0 %v11422_v37  ;;  %v11435_v37 = vld [vmem:[%s14876_s12 + $0x8] sm:$0xff]  }
0x1383   :  { %v7289_v13 = vpack.c.bf16 %v7283_v19, %v7283_v19  ;;  %10809 = vmatprep.subr.bf16.mxu0 %v11549_v4  ;;  %v8784_v19 = vld [vmem:[%s14878_s11] ss:$0 sm:$0xff] }
0x1384   :  { %v10791_v10 = vpop.f32.mrf.mxu1 }
0x1385   :  { %10798 = vmatmul.mubr.msk.bf16.vlgmr.msra.gmra.mxu0 %vm6499_vm4, %v7289_v13 }
0x1386   :  { %v7286_v59 = vpop.f32.mrf.mxu1  ;;  %10810 = vmatpush3.bf16.msra.mxu0 %v11423_v8  ;;  %10813 = vmatprep.mubr.msk.bf16.mxu0 %vm11550_vm3, %v11549_v4 }
0x1387   :  { %10811 = vmatprep.subr.bf16.mxu0 %v11549_v4 }
0x1388   :  { %v10792_v32 = vpop.f32.mrf.mxu1 }
0x138a   :  { %v7390_v34 = vpop.f32.mrf.mxu1  ;;  %10812 = vmatpush3.bf16.msra.mxu0 %v11424_v62 }
0x138b   :  { %v7396_v40 = vpack.c.bf16 %v7390_v34, %v7390_v34  ;;  %10829 = vmatprep.subr.bf16.mxu0 %v11549_v4 }
0x138c   :  { %v10807_v39 = vpop.f32.mrf.mxu1 }
0x138d   :  { %10814 = vmatmul.mubr.msk.bf16.vlgmr.msra.gmra.mxu0 %vm6499_vm4, %v7396_v40  ;;  %v8790_v40 = vld [vmem:[%s14880_s13] ss:$0 sm:$0xff] }
0x138e   :  { %v7393_v42 = vpop.f32.mrf.mxu1  ;;  %10845 = vmatprep.mubr.msk.bf16.mxu0 %vm11550_vm3, %v11549_v4  ;;  %10830 = vmatpush3.bf16.msra.mxu0 %v11429_v33 }
0x138f   :  { %10831 = vmatprep.subr.bf16.mxu0 %v11549_v4 }
0x1390   :  { %v10808_v26 = vpop.f32.mrf.mxu1 }
0x1392   :  { %10832 = vmatpush3.bf16.msra.mxu0 %v11430_v43  ;;  %v7666_v43 = vld [vmem:[%s14881_s14] sm:$0x1] }
0x1393   :  { %10833 = vmatprep.subr.bf16.mxu0 %v11549_v4 }
0x1396   :  { %10834 = vmatpush3.bf16.msra.mxu0 %v11431_v60  ;;  %v11437_v60 = vld [vmem:[%s14879_s15 + $0x38] sm:$0xff]  }
0x1397   :  { %10835 = vmatprep.subr.bf16.mxu0 %v11549_v4 }
0x139a   :  { %10836 = vmatpush3.bf16.msra.mxu0 %v11432_v21  ;;  %v11438_v21 = vld [vmem:[%s14879_s15 + $0x30] sm:$0xff]  }
0x139b   :  { %10837 = vmatprep.subr.bf16.mxu0 %v11549_v4 }
0x139e   :  { %10838 = vmatpush3.bf16.msra.mxu0 %v11433_v63  ;;  %v11439_v63 = vld [vmem:[%s14879_s15 + $0x28] sm:$0xff]  }
0x139f   :  { %10839 = vmatprep.subr.bf16.mxu0 %v11549_v4 }
0x13a2   :  { %10840 = vmatpush3.bf16.msra.mxu0 %v11434_v11  ;;  %v11440_v11 = vld [vmem:[%s14879_s15 + $0x20] sm:$0xff]  }
0x13a3   :  { %10841 = vmatprep.subr.bf16.mxu0 %v11549_v4 }
0x13a6   :  { %10842 = vmatpush3.bf16.msra.mxu0 %v11435_v37 }
0x13a7   :  { %10843 = vmatprep.subr.bf16.mxu0 %v11549_v4 }
0x13aa   :  { %10844 = vmatpush3.bf16.msra.mxu0 %v11436_v50 }
0x13ab   :  { %10875 = vmatprep.subr.bf16.mxu0 %v11549_v4 }
0x141d   :  { %v6809_v49 = vpop.f32.mrf.mxu0 }
0x141e   :  { %v6815_v16 = vadd.f32 %v6809_v49, %v14669_v23  ;;  %v11441_v49 = vld [vmem:[%s14879_s15 + $0x18] sm:$0xff]  }
0x141f   :  { %v10719_v44 = vpop.f32.mrf.mxu0 }
0x1420   :  { %v11442_v44 = vld [vmem:[%s14879_s15 + $0x10] sm:$0xff]  }
0x1421   :  { %v6812_v58 = vpop.f32.mrf.mxu0 }
0x1422   :  { %v11443_v58 = vld [vmem:[%s14879_s15 + $0x8] sm:$0xff]  }
0x1423   :  { %v10720_v52 = vpop.f32.mrf.mxu0 }
0x1424   :  { %v11444_v52 = vld [vmem:[%s14879_s15] sm:$0xff]  }
0x1425   :  { %v6916_v2 = vpop.f32.mrf.mxu0 }
0x1426   :  { %v6922_v6 = vadd.f32 %v6916_v2, %v6815_v16  ;;  %v11445_v2 = vld [vmem:[%s14882_s17 + $0x18] sm:$0xff]  }
0x1427   :  { %v10735_v24 = vpop.f32.mrf.mxu0 }
0x1428   :  { %v11446_v24 = vld [vmem:[%s14882_s17 + $0x10] sm:$0xff]  }
0x1429   :  { %v6919_v22 = vpop.f32.mrf.mxu0 }
0x142b   :  { %v10736_v9 = vpop.f32.mrf.mxu0 }
0x142d   :  { %v7023_v3 = vpop.f32.mrf.mxu0 }
0x142e   :  { %v7029_v12 = vadd.f32 %v7023_v3, %v6922_v6 }
0x142f   :  { %v10751_v25 = vpop.f32.mrf.mxu0 }
0x1431   :  { %v7026_v61 = vpop.f32.mrf.mxu0 }
0x1433   :  { %v10752_v15 = vpop.f32.mrf.mxu0 }
0x1434   :  { %v11447_v15 = vld [vmem:[%s14882_s17 + $0x8] sm:$0xff]  }
0x1435   :  { %v7130_v31 = vpop.f32.mrf.mxu0 }
0x1436   :  { %v7136_v54 = vadd.f32 %v7130_v31, %v7029_v12  ;;  %v11448_v31 = vld [vmem:[%s14882_s17] sm:$0xff]  }
0x1437   :  { %v10767_v1 = vpop.f32.mrf.mxu0 }
0x1438   :  { %v8800_v1 = vld [vmem:[%s14883_s16] ss:$0 sm:$0xff] }
0x1439   :  { %v7133_v29 = vpop.f32.mrf.mxu0 }
0x143b   :  { %v10768_v30 = vpop.f32.mrf.mxu0 }
0x143d   :  { %v7237_v35 = vpop.f32.mrf.mxu0 }
0x143e   :  { %v7243_v48 = vadd.f32 %v7237_v35, %v7136_v54 }
0x143f   :  { %v10783_v28 = vpop.f32.mrf.mxu0 }
0x1441   :  { %v7240_v57 = vpop.f32.mrf.mxu0 }
0x1443   :  { %v10784_v27 = vpop.f32.mrf.mxu0 }
0x1445   :  { %v7344_v45 = vpop.f32.mrf.mxu0 }
0x1446   :  { %v7350_v51 = vadd.f32 %v7344_v45, %v7243_v48 }
0x1447   :  { %v10799_v41 = vpop.f32.mrf.mxu0 }
0x1449   :  { %v7347_v20 = vpop.f32.mrf.mxu0 }
0x144b   :  { %v10800_v7 = vpop.f32.mrf.mxu0 }
0x144d   :  { %v7451_v5 = vpop.f32.mrf.mxu0 }
0x144e   :  { %v7457_v36 = vadd.f32 %v7451_v5, %v7350_v51 }
0x144f   :  { %v10815_v56 = vpop.f32.mrf.mxu0 }
0x1450   :  { %v7465_v14 = vadd.f32 %v8783_v47, %v7457_v36 }
0x1451   :  { %v7454_v55 = vpop.f32.mrf.mxu0 }
0x1452   :  { %v7466_v23 = vmax.f32 %v7465_v14, 0.0 }
0x1453   :  { %v10816_v18 = vpop.f32.mrf.mxu0 }
0x1454   :  { %v7467_v0 = vpack.c.bf16 %v7466_v23, %v7466_v23 }
0x1456   :  { %10826 = vmatmul.mubr.msk.bf16.vlgmr.msra.gmra.mxu1 %vm7507_vm5, %v7467_v0 }
0x1457   :  { %10851 = vmatprep.mubr.msk.bf16.mxu1 %vm11550_vm3, %v11549_v4 }
0x1516   :  { %v7545_v8 = vpop.f32.mrf.mxu1 }
0x1517   :  { %v7546_v13 = vadd.f32 %v8784_v19, %v7545_v8 }
0x1518   :  { %v10827_v10 = vpop.f32.mrf.mxu1 }
0x1519   :  { %v7551_v59 = vmax.f32 %v7546_v13, 0.0 }
0x151a   :  { %v7548_v62 = vpop.f32.mrf.mxu1 }
0x151b   :  { %v7552_v32 = vpack.c.bf16 %v7551_v59, %v7551_v59 }
0x151c   :  { %v10828_v34 = vpop.f32.mrf.mxu1 }
0x151d   :  { %10846 = vmatmul.mubr.bf16.vlgmr.msra.gmra.mxu0 %v7552_v32 }
0x151e   :  { %10883 = vmatprep.mubr.msk.bf16.mxu0 %vm11550_vm3, %v11549_v4  ;;  %10876 = vmatpush3.bf16.msra.mxu0 %v11445_v2 }
0x151f   :  { %10877 = vmatprep.subr.bf16.mxu0 %v11549_v4 }
0x1522   :  { %10878 = vmatpush3.bf16.msra.mxu0 %v11446_v24 }
0x1523   :  { %10879 = vmatprep.subr.bf16.mxu0 %v11549_v4 }
0x1526   :  { %10880 = vmatpush3.bf16.msra.mxu0 %v11447_v15 }
0x1527   :  { %10881 = vmatprep.subr.bf16.mxu0 %v11549_v4 }
0x152a   :  { %10882 = vmatpush3.bf16.msra.mxu0 %v11448_v31 }
0x15dd   :  { %v7658_v39 = vpop.f32.mrf.mxu0 }
0x15de   :  { %v7659_v42 = vadd.f32 %v8790_v40, %v7658_v39 }
0x15df   :  { %v10847_v26 = vpop.f32.mrf.mxu0 }
0x15e0   :  { %v7664_v38 = vmax.f32 %v7659_v42, 0.0 }
0x15e1   :  { %v7661_v17 = vpop.f32.mrf.mxu0 }
0x15e2   :  { %v7665_v46 = vpack.c.bf16 %v7664_v38, %v7664_v38 }
0x15e3   :  { %v10848_v53 = vpop.f32.mrf.mxu0 }
0x15e4   :  { %v7672_v33 = vsel %vm5360_vm1, %v7665_v46, 0 }
0x15e5   :  { %10850 = vmatpush3.bf16.msra.mxu1 %v7672_v33 }
0x15e6   :  { %10855 = vmatprep.subr.bf16.mxu1 %v11549_v4 }
0x15e8   :  { %10852 = vmatmul.mubr.msk.bf16.vlgmr.msra.gmra.mxu1 %vm7667_vm6, %v7666_v43 }
0x15e9   :  { %10856 = vmatpush3.bf16.msra.mxu1 %v11437_v60  ;;  %10871 = vmatprep.mubr.msk.bf16.mxu1 %vm11550_vm3, %v11549_v4 }
0x15ea   :  { %10857 = vmatprep.subr.bf16.mxu1 %v11549_v4 }
0x15ed   :  { %10858 = vmatpush3.bf16.msra.mxu1 %v11438_v21 }
0x15ee   :  { %10859 = vmatprep.subr.bf16.mxu1 %v11549_v4 }
0x15f1   :  { %10860 = vmatpush3.bf16.msra.mxu1 %v11439_v63 }
0x15f2   :  { %10861 = vmatprep.subr.bf16.mxu1 %v11549_v4 }
0x15f5   :  { %10862 = vmatpush3.bf16.msra.mxu1 %v11440_v11 }
0x15f6   :  { %10863 = vmatprep.subr.bf16.mxu1 %v11549_v4 }
0x15f9   :  { %10864 = vmatpush3.bf16.msra.mxu1 %v11441_v49 }
0x15fa   :  { %10865 = vmatprep.subr.bf16.mxu1 %v11549_v4 }
0x15fd   :  { %10866 = vmatpush3.bf16.msra.mxu1 %v11442_v44 }
0x15fe   :  { %10867 = vmatprep.subr.bf16.mxu1 %v11549_v4 }
0x1601   :  { %10868 = vmatpush3.bf16.msra.mxu1 %v11443_v58 }
0x1602   :  { %10869 = vmatprep.subr.bf16.mxu1 %v11549_v4  ;;  %v8809_v4 = vld [vmem:[%s14884_s18] ss:$0 sm:$0xff] }
0x1605   :  { %10870 = vmatpush3.bf16.msra.mxu1 %v11444_v52 }
0x16a8   :  { %v7708_v22 = vpop.f32.mrf.mxu1 }
0x16a9   :  { %v7714_v9 = vpack.c.bf16 %v7708_v22, %v7708_v22 }
0x16aa   :  { %v10853_v3 = vpop.f32.mrf.mxu1 }
0x16ab   :  { %10872 = vmatmul.mubr.bf16.vlgmr.msra.gmra.mxu1 %v7714_v9 }
0x16ac   :  { %v7711_v25 = vpop.f32.mrf.mxu1 }
0x16ae   :  { %v10854_v61 = vpop.f32.mrf.mxu1 }
0x176b   :  { %v7820_v29 = vpop.f32.mrf.mxu1 }
0x176c   :  { %v7821_v30 = vadd.f32 %v8800_v1, %v7820_v29 }
0x176d   :  { %v10873_v35 = vpop.f32.mrf.mxu1 }
0x176e   :  { %v7826_v28 = vmax.f32 %v7821_v30, 0.0 }
0x176f   :  { %v7823_v57 = vpop.f32.mrf.mxu1 }
0x1770   :  { %v7827_v16 = vpack.c.bf16 %v7826_v28, %v7826_v28 }
0x1771   :  { %v10874_v27 = vpop.f32.mrf.mxu1 }
0x1772   :  { %10884 = vmatmul.mubr.msk.bf16.vlgmr.msra.gmra.mxu0 %vm7507_vm5, %v7827_v16 }
0x1832   :  { %v7904_v6 = vpop.f32.mrf.mxu0 }
0x1833   :  { %v7905_v45 = vadd.f32 %v8809_v4, %v7904_v6 }
0x1834   :  { %v10885_v12 = vpop.f32.mrf.mxu0 }
0x1835   :  { %v8815_v41 = vmul.f32 -1.442695, %v7905_v45 }
0x1836   :  { %v7907_v54 = vpop.f32.mrf.mxu0 }
0x1837   :  { %11449 = vpow2.f32 %v8815_v41 }
0x1838   :  { %v10886_v20 = vpop.f32.mrf.mxu0 }
0x1844   :  { %v11450_v48 = vpop.eup %11449 }
0x1845   :  { %v7913_v7 = vadd.f32 1.0, %v11450_v48 }
0x1847   :  { %11451 = vrcp.f32 %v7913_v7 }
0x1854   :  { %v11452_v51 = vpop.eup %11451 }
0x1855   :  { %7917 = vst.msk [vmem:[%s14885_s19] sm:$0x3] %vm7916_vm7, %v11452_v51 }

</bundles_post_ra>
